<compile_context>
chip_gen: v6e
topology: v6e:2x2x1
jax: 0.10.0
libtpu: 0.0.40
codegen_flags: <defaults>
</compile_context>

<pallas_src>
import jax
import jax.numpy as jnp
from jax import lax
from jax.experimental import pallas as pl
from jax.experimental.pallas import tpu as pltpu

EPS = 1e-5  # BatchNorm2d default eps


# ---------------------------- small helpers ---------------------------------

def _round_up(x, m):
    return ((x + m - 1) // m) * m


def _choose_tile_m(m, row_bytes, budget=8 << 20, want_multi=False):
    """Largest M-tile that (a) divides m, (b) is a multiple of 8 (or == m),
    (c) keeps the double-buffered per-tile footprint under `budget`, and
    (d) if want_multi, leaves >= 2 grid steps (v7x megacore split / DMA
    pipelining).  Budget is conservative so the same tiling fits v5e's 16 MiB
    default scoped VMEM and v7x's 64 MiB physical VMEM without flag bumps."""
    if m % 8 != 0:
        return m                      # full-dim block is always legal
    cap = m // 2 if (want_multi and m >= 16) else m
    for cand in (1024, 512, 256, 128, 64, 32, 16, 8):
        if cand <= cap and m % cand == 0 and 2 * cand * row_bytes <= budget:
            return cand
    return 8


# ----------------------------- Pallas kernels --------------------------------

def _fused_conv_bn_relu_kernel(a_ref, w_ref, gamma_ref, beta_ref, o_ref, y_acc):
    """Per M-tile: bf16 MXU matmul with f32 accumulation into a VMEM-resident
    f32 scratch.  On the last tile: two-pass batch statistics, BN scale/shift
    and ReLU applied in-kernel, single bf16 write of the whole output block."""
    i = pl.program_id(0)
    tm = a_ref.shape[0]
    y = jnp.dot(a_ref[...], w_ref[...], preferred_element_type=jnp.float32)
    off = pl.multiple_of(i * tm, tm)
    y_acc[pl.ds(off, tm), :] = y

    @pl.when(i == pl.num_programs(0) - 1)
    def _():
        y_full = y_acc[...]                                   # [M, N] f32, VMEM
        mean = jnp.mean(y_full, axis=0, keepdims=True)        # [1, N]
        var = jnp.mean((y_full - mean) ** 2, axis=0, keepdims=True)
        scale = gamma_ref[...] * lax.rsqrt(var + EPS)
        shift = beta_ref[...] - mean * scale
        o_ref[...] = jnp.maximum(y_full * scale + shift, 0.0).astype(o_ref.dtype)


def conv_bn_relu_fused(a, w, gamma, beta):
    """a: [M, K] bf16 (im2col), w: [K, N] bf16 (N multiple of 128),
    gamma/beta: [N] f32.  Returns ReLU(BN_train(a @ w)) as [M, N] bf16."""
    M, K = a.shape
    N = w.shape[1]
    assert N % 128 == 0
    tm = _choose_tile_m(M, row_bytes=K * 2, want_multi=True)
    nt = M // tm
    return pl.pallas_call(
        _fused_conv_bn_relu_kernel,
        out_shape=jax.ShapeDtypeStruct((M, N), jnp.bfloat16),
        grid=(nt,),
        in_specs=[
            pl.BlockSpec((tm, K), lambda i: (i, 0)),      # pipelined A tiles
            pl.BlockSpec((K, N), lambda i: (0, 0)),       # VMEM-resident weight
            pl.BlockSpec((1, N), lambda i: (0, 0)),       # gamma
            pl.BlockSpec((1, N), lambda i: (0, 0)),       # beta
        ],
        # Constant index map -> whole output block stays VMEM-resident and is
        # written back to HBM once, after the finalize step.
        out_specs=pl.BlockSpec((M, N), lambda i: (0, 0)),
        scratch_shapes=[pltpu.VMEM((M, N), jnp.float32)],
        compiler_params=pltpu.CompilerParams(
            dimension_semantics=("arbitrary",)),           # global batch stats
    )(a, w, gamma.reshape(1, N), beta.reshape(1, N))


def _mm_bias_tanh_kernel(a_ref, w_ref, b_ref, o_ref):
    y = jnp.dot(a_ref[...], w_ref[...],
                preferred_element_type=jnp.float32) + b_ref[...]
    o_ref[...] = jnp.tanh(y)


def matmul_bias_tanh(a, w_padded, b_padded, n_out):
    """tanh(a @ w + b).  w/b lane-padded to a multiple of 128 so stores are
    lane-dense; the wrapper slices back to n_out columns."""
    M, K = a.shape
    N = w_padded.shape[1]
    tm = _choose_tile_m(M, row_bytes=K * 2 + N * 4, want_multi=True)
    out = pl.pallas_call(
        _mm_bias_tanh_kernel,
        out_shape=jax.ShapeDtypeStruct((M, N), jnp.float32),
        grid=(M // tm,),
        in_specs=[
            pl.BlockSpec((tm, K), lambda i: (i, 0)),
            pl.BlockSpec((K, N), lambda i: (0, 0)),
            pl.BlockSpec((1, N), lambda i: (0, 0)),
        ],
        out_specs=pl.BlockSpec((tm, N), lambda i: (i, 0)),
        compiler_params=pltpu.CompilerParams(
            dimension_semantics=("parallel",)),            # v7x: 2 TCs split M
    )(a, w_padded, b_padded.reshape(1, N))
    return out[:, :n_out]


# ------------------------------ JAX glue -------------------------------------

def _im2col3x3(x):
    """x: [N,H,W,C] bf16 -> [N*H*W, 9*C], patch order (kh, kw, cin) matching a
    weight laid out as (kh, kw, cin, cout)."""
    # TODO(synk): fold this 9-tap expansion into the conv kernel's input DMA
    # (haloed row-block manual copies per tap) to avoid the 9x materialized
    # im2col in HBM; at 16x16 the expansion is ~2 MB so it is kept at the JAX
    # level for robustness.
    N, H, W, C = x.shape
    xp = jnp.pad(x, ((0, 0), (1, 1), (1, 1), (0, 0)))
    cols = [xp[:, dy:dy + H, dx:dx + W, :]
            for dy in range(3) for dx in range(3)]
    return jnp.concatenate(cols, axis=-1).reshape(N * H * W, 9 * C)


def conv3x3_bn_relu(x, w_hwio, gamma, beta):
    """Fused Conv2d(k=3, pad=1, no bias) + BatchNorm2d (training-mode batch
    stats) + ReLU.  x: NHWC bf16.  Returns NHWC bf16 with channels lane-padded
    to a multiple of 128 (padded channels are exactly zero)."""
    N, H, W, Cin = x.shape
    Cout = w_hwio.shape[-1]
    Npad = _round_up(Cout, 128)

    a = _im2col3x3(x).astype(jnp.bfloat16)                 # [M, 9*Cin]
    w2 = w_hwio.reshape(9 * Cin, Cout)
    if Npad != Cout:                                       # lane-pad 64 -> 128
        w2 = jnp.pad(w2, ((0, 0), (0, Npad - Cout)))
        gamma = jnp.pad(gamma, (0, Npad - Cout))
        beta = jnp.pad(beta, (0, Npad - Cout))

    y = conv_bn_relu_fused(a, w2.astype(jnp.bfloat16),
                           gamma.astype(jnp.float32), beta.astype(jnp.float32))
    return y.reshape(N, H, W, Npad)


# TODO(synk): maxpool / nearest-upsample / channel-concat could be folded into
# the adjacent conv kernels' input DMA; kept as cheap XLA ops at this size.
def maxpool2(x):
    N, H, W, C = x.shape
    return x.reshape(N, H // 2, 2, W // 2, 2, C).max(axis=(2, 4))


def upsample_nearest2(x):
    N, H, W, C = x.shape
    x = jnp.broadcast_to(x[:, :, None, :, None, :], (N, H, 2, W, 2, C))
    return x.reshape(N, 2 * H, 2 * W, C)


# ------------------------------ parameters -----------------------------------

def _init_conv(key, kh, kw, cin, cout, with_bias):
    """Kaiming-uniform-style init like nn.Conv2d default (deterministic)."""
    kw_, kb_ = jax.random.split(key)
    fan_in = kh * kw * cin
    bound = 1.0 / jnp.sqrt(jnp.asarray(fan_in, jnp.float32))
    w = jax.random.uniform(kw_, (kh, kw, cin, cout), jnp.float32,
                           minval=-bound, maxval=bound)
    if with_bias:
        b = jax.random.uniform(kb_, (cout,), jnp.float32,
                               minval=-bound, maxval=bound)
        return w, b
    return w


def init_unet_params(key, c_in, c_out):
    keys = jax.random.split(key, 6)

    def block(k, cin, cout):
        # Conv bias intentionally omitted: cancelled by training-mode BN.
        w = _init_conv(k, 3, 3, cin, cout, with_bias=False)
        gamma = jnp.ones((cout,), jnp.float32)   # BatchNorm2d default weight
        beta = jnp.zeros((cout,), jnp.float32)   # BatchNorm2d default bias
        return (w, gamma, beta)

    return {
        "down1": block(keys[0], c_in, 64),
        "down2": block(keys[1], 64, 128),
        "down3": block(keys[2], 128, 256),
        "up1":   block(keys[3], 256 + 128, 128),
        "up2":   block(keys[4], 128 + 64, 64),
        "up3":   _init_conv(keys[5], 1, 1, 64, c_out, with_bias=True),
    }


# ------------------------------ forward --------------------------------------

def unet_forward(params, x_nchw, t):
    # `t` is unused, matching the reference forward.
    del t
    x = jnp.transpose(x_nchw, (0, 2, 3, 1)).astype(jnp.bfloat16)  # NCHW -> NHWC

    d1p = conv3x3_bn_relu(x, *params["down1"])          # [...,128], 64 real
    d1 = d1p[..., :64]                                  # padded cols are zero
    d2 = conv3x3_bn_relu(maxpool2(d1), *params["down2"])
    d3 = conv3x3_bn_relu(maxpool2(d2), *params["down3"])

    u1 = jnp.concatenate([upsample_nearest2(d3), d2], axis=-1)   # cat(dim=1)
    u1 = conv3x3_bn_relu(u1, *params["up1"])

    u2 = jnp.concatenate([upsample_nearest2(u1), d1], axis=-1)
    u2p = conv3x3_bn_relu(u2, *params["up2"])           # [...,128], 64 real

    # up_conv3: 1x1 conv + Tanh.  Consume up2's padded 128-channel activation
    # directly (extra input rows of the weight are zero), lane-pad the output
    # to 128 for dense stores, and slice back to c_out afterwards.
    N, H, W, Cpad = u2p.shape
    w3, b3 = params["up3"]
    cin3 = w3.shape[-2]
    n_out = w3.shape[-1]
    n_pad = _round_up(max(n_out, 128), 128)
    w3p = jnp.pad(w3.reshape(cin3, n_out),
                  ((0, Cpad - cin3), (0, n_pad - n_out))).astype(jnp.bfloat16)
    b3p = jnp.pad(b3, (0, n_pad - n_out)).astype(jnp.float32)

    out = matmul_bias_tanh(u2p.reshape(N * H * W, Cpad), w3p, b3p, n_out)
    out = out.reshape(N, H, W, n_out)
    return jnp.transpose(out, (0, 3, 1, 2)).astype(jnp.float32)  # back to NCHW


# ------------------------------ main ------------------------------------------

if __name__ == "__main__":
    c_in, c_out, img_size, batch = 4, 4, 16, 2

    key = jax.random.PRNGKey(0)
    kx, kt, kp = jax.random.split(key, 3)

    x = jax.random.normal(kx, (batch, c_in, img_size, img_size), jnp.float32)
    t = jax.random.normal(kt, (batch,), jnp.float32)   # unused by forward

    params = init_unet_params(kp, c_in, c_out)

    fwd = jax.jit(unet_forward)
    out = jax.block_until_ready(fwd(params, x, t))

    assert out.shape == (batch, c_out, img_size, img_size)
    assert bool(jnp.all(jnp.isfinite(out)))
    print("KERNEL_OK")
</pallas_src>

<mosaic_0001>
module attributes {stable_mosaic.version = 11 : i64} {
  func.func @_fused_conv_bn_relu_kernel(%arg0: i32, %arg1: memref<256x36xbf16, #tpu.memory_space<vmem>>, %arg2: memref<36x128xbf16, #tpu.memory_space<vmem>>, %arg3: memref<1x128xf32, #tpu.memory_space<vmem>>, %arg4: memref<1x128xf32, #tpu.memory_space<vmem>>, %arg5: memref<512x128xbf16, #tpu.memory_space<vmem>>, %arg6: memref<512x128xf32, #tpu.memory_space<vmem>>) attributes {dimension_semantics = [#tpu.dimension_semantics<arbitrary>], iteration_bounds = array<i64: 2>, scalar_prefetch = 0 : i64, scratch_operands = 1 : i64, tpu.core_type = #tpu.core_type<tc>, window_params = [{transform_indices = @transform_0, window_bounds = array<i64: 256, 36>}, {pipeline_mode = #tpu.pipeline_mode<synchronous>, transform_indices = @transform_1, window_bounds = array<i64: 36, 128>}, {pipeline_mode = #tpu.pipeline_mode<synchronous>, transform_indices = @transform_2, window_bounds = array<i64: 1, 128>}, {pipeline_mode = #tpu.pipeline_mode<synchronous>, transform_indices = @transform_3, window_bounds = array<i64: 1, 128>}, {pipeline_mode = #tpu.pipeline_mode<synchronous>, transform_indices = @transform_4, window_bounds = array<i64: 512, 128>}]} {
    %c0 = arith.constant 0 : index
    %c0_0 = arith.constant 0 : index
    %0 = vector.load %arg1[%c0, %c0_0] : memref<256x36xbf16, #tpu.memory_space<vmem>>, vector<256x36xbf16>
    %c0_1 = arith.constant 0 : index
    %c0_2 = arith.constant 0 : index
    %1 = vector.load %arg2[%c0_1, %c0_2] : memref<36x128xbf16, #tpu.memory_space<vmem>>, vector<36x128xbf16>
    %cst = arith.constant dense<0.000000e+00> : vector<256x128xf32>
    %2 = tpu.matmul %0, %1, %cst {dimension_numbers = #tpu.dot_dimension_numbers<[1], [0], [0], [1], [0, 0, 1, 1], [], []>} : vector<256x36xbf16>, vector<36x128xbf16>, vector<256x128xf32> -> vector<256x128xf32>
    %c256_i32 = arith.constant 256 : i32
    %3 = arith.muli %arg0, %c256_i32 : i32
    %4 = tpu.assume_multiple %3, 256 : i32
    %5 = arith.index_cast %4 : i32 to index
    %c0_3 = arith.constant 0 : index
    %6 = vector.load %arg6[%5, %c0_3] : memref<512x128xf32, #tpu.memory_space<vmem>>, vector<256x128xf32>
    tpu.vector_store %arg6[%5, %c0_3], %2 {strides = array<i32>} : memref<512x128xf32, #tpu.memory_space<vmem>>, vector<256x128xf32>,
    %c1_i32 = arith.constant 1 : i32
    %7 = arith.cmpi eq, %arg0, %c1_i32 : i32
    %8 = arith.extui %7 : i1 to i32
    %c0_i32 = arith.constant 0 : i32
    %9 = arith.cmpi ne, %8, %c0_i32 : i32
    scf.if %9 {
      %c0_4 = arith.constant 0 : index
      %c0_5 = arith.constant 0 : index
      %10 = vector.load %arg6[%c0_4, %c0_5] : memref<512x128xf32, #tpu.memory_space<vmem>>, vector<512x128xf32>
      %cst_6 = arith.constant dense<0.000000e+00> : vector<128xf32>
      %11 = vector.multi_reduction <add>, %10, %cst_6 [0] : vector<512x128xf32> to vector<128xf32>
      %12 = vector.shape_cast %11 : vector<128xf32> to vector<1x128xf32>
      %cst_7 = arith.constant 5.120000e+02 : f32
      %13 = vector.broadcast %cst_7 : f32 to vector<1x128xf32>
      %14 = arith.divf %12, %13 : vector<1x128xf32>
      %15 = vector.broadcast %14 : vector<1x128xf32> to vector<512x128xf32>
      %16 = arith.subf %10, %15 : vector<512x128xf32>
      %17 = arith.mulf %16, %16 : vector<512x128xf32>
      %cst_8 = arith.constant dense<0.000000e+00> : vector<128xf32>
      %18 = vector.multi_reduction <add>, %17, %cst_8 [0] : vector<512x128xf32> to vector<128xf32>
      %19 = vector.shape_cast %18 : vector<128xf32> to vector<1x128xf32>
      %cst_9 = arith.constant 5.120000e+02 : f32
      %20 = vector.broadcast %cst_9 : f32 to vector<1x128xf32>
      %21 = arith.divf %19, %20 : vector<1x128xf32>
      %c0_10 = arith.constant 0 : index
      %c0_11 = arith.constant 0 : index
      %22 = vector.load %arg3[%c0_10, %c0_11] : memref<1x128xf32, #tpu.memory_space<vmem>>, vector<1x128xf32>
      %cst_12 = arith.constant 9.99999974E-6 : f32
      %23 = vector.broadcast %cst_12 : f32 to vector<1x128xf32>
      %24 = arith.addf %21, %23 : vector<1x128xf32>
      %25 = math.rsqrt %24 : vector<1x128xf32>
      %26 = arith.mulf %22, %25 : vector<1x128xf32>
      %c0_13 = arith.constant 0 : index
      %c0_14 = arith.constant 0 : index
      %27 = vector.load %arg4[%c0_13, %c0_14] : memref<1x128xf32, #tpu.memory_space<vmem>>, vector<1x128xf32>
      %28 = arith.mulf %14, %26 : vector<1x128xf32>
      %29 = arith.subf %27, %28 : vector<1x128xf32>
      %30 = vector.broadcast %26 : vector<1x128xf32> to vector<512x128xf32>
      %31 = arith.mulf %10, %30 : vector<512x128xf32>
      %32 = vector.broadcast %29 : vector<1x128xf32> to vector<512x128xf32>
      %33 = arith.addf %31, %32 : vector<512x128xf32>
      %cst_15 = arith.constant 0.000000e+00 : f32
      %34 = vector.broadcast %cst_15 : f32 to vector<512x128xf32>
      %35 = arith.maximumf %33, %34 : vector<512x128xf32>
      %36 = arith.truncf %35 : vector<512x128xf32> to vector<512x128xbf16>
      %c0_16 = arith.constant 0 : index
      %c0_17 = arith.constant 0 : index
      %37 = vector.load %arg5[%c0_16, %c0_17] : memref<512x128xbf16, #tpu.memory_space<vmem>>, vector<512x128xbf16>
      tpu.vector_store %arg5[%c0_16, %c0_17], %36 {strides = array<i32>} : memref<512x128xbf16, #tpu.memory_space<vmem>>, vector<512x128xbf16>,
    } else {
    }
    return
  }
  func.func @transform_0(%arg0: i32) -> (i32, i32) {
    %c0_i32 = arith.constant 0 : i32
    %c0_i32_0 = arith.constant 0 : i32
    return %arg0, %c0_i32 : i32, i32
  }
  func.func @transform_1(%arg0: i32) -> (i32, i32) {
    %c0_i32 = arith.constant 0 : i32
    %c0_i32_0 = arith.constant 0 : i32
    %c0_i32_1 = arith.constant 0 : i32
    return %c0_i32, %c0_i32_0 : i32, i32
  }
  func.func @transform_2(%arg0: i32) -> (i32, i32) {
    %c0_i32 = arith.constant 0 : i32
    %c0_i32_0 = arith.constant 0 : i32
    %c0_i32_1 = arith.constant 0 : i32
    return %c0_i32, %c0_i32_0 : i32, i32
  }
  func.func @transform_3(%arg0: i32) -> (i32, i32) {
    %c0_i32 = arith.constant 0 : i32
    %c0_i32_0 = arith.constant 0 : i32
    %c0_i32_1 = arith.constant 0 : i32
    return %c0_i32, %c0_i32_0 : i32, i32
  }
  func.func @transform_4(%arg0: i32) -> (i32, i32) {
    %c0_i32 = arith.constant 0 : i32
    %c0_i32_0 = arith.constant 0 : i32
    %c0_i32_1 = arith.constant 0 : i32
    return %c0_i32, %c0_i32_0 : i32, i32
  }
}

module attributes {stable_mosaic.version = 11 : i64} {
  func.func @_fused_conv_bn_relu_kernel(%arg0: i32, %arg1: memref<64x576xbf16, #tpu.memory_space<vmem>>, %arg2: memref<576x128xbf16, #tpu.memory_space<vmem>>, %arg3: memref<1x128xf32, #tpu.memory_space<vmem>>, %arg4: memref<1x128xf32, #tpu.memory_space<vmem>>, %arg5: memref<128x128xbf16, #tpu.memory_space<vmem>>, %arg6: memref<128x128xf32, #tpu.memory_space<vmem>>) attributes {dimension_semantics = [#tpu.dimension_semantics<arbitrary>], iteration_bounds = array<i64: 2>, scalar_prefetch = 0 : i64, scratch_operands = 1 : i64, tpu.core_type = #tpu.core_type<tc>, window_params = [{transform_indices = @transform_0, window_bounds = array<i64: 64, 576>}, {pipeline_mode = #tpu.pipeline_mode<synchronous>, transform_indices = @transform_1, window_bounds = array<i64: 576, 128>}, {pipeline_mode = #tpu.pipeline_mode<synchronous>, transform_indices = @transform_2, window_bounds = array<i64: 1, 128>}, {pipeline_mode = #tpu.pipeline_mode<synchronous>, transform_indices = @transform_3, window_bounds = array<i64: 1, 128>}, {pipeline_mode = #tpu.pipeline_mode<synchronous>, transform_indices = @transform_4, window_bounds = array<i64: 128, 128>}]} {
    %c0 = arith.constant 0 : index
    %c0_0 = arith.constant 0 : index
    %0 = vector.load %arg1[%c0, %c0_0] : memref<64x576xbf16, #tpu.memory_space<vmem>>, vector<64x576xbf16>
    %c0_1 = arith.constant 0 : index
    %c0_2 = arith.constant 0 : index
    %1 = vector.load %arg2[%c0_1, %c0_2] : memref<576x128xbf16, #tpu.memory_space<vmem>>, vector<576x128xbf16>
    %cst = arith.constant dense<0.000000e+00> : vector<64x128xf32>
    %2 = tpu.matmul %0, %1, %cst {dimension_numbers = #tpu.dot_dimension_numbers<[1], [0], [0], [1], [0, 0, 1, 1], [], []>} : vector<64x576xbf16>, vector<576x128xbf16>, vector<64x128xf32> -> vector<64x128xf32>
    %c64_i32 = arith.constant 64 : i32
    %3 = arith.muli %arg0, %c64_i32 : i32
    %4 = tpu.assume_multiple %3, 64 : i32
    %5 = arith.index_cast %4 : i32 to index
    %c0_3 = arith.constant 0 : index
    %6 = vector.load %arg6[%5, %c0_3] : memref<128x128xf32, #tpu.memory_space<vmem>>, vector<64x128xf32>
    tpu.vector_store %arg6[%5, %c0_3], %2 {strides = array<i32>} : memref<128x128xf32, #tpu.memory_space<vmem>>, vector<64x128xf32>,
    %c1_i32 = arith.constant 1 : i32
    %7 = arith.cmpi eq, %arg0, %c1_i32 : i32
    %8 = arith.extui %7 : i1 to i32
    %c0_i32 = arith.constant 0 : i32
    %9 = arith.cmpi ne, %8, %c0_i32 : i32
    scf.if %9 {
      %c0_4 = arith.constant 0 : index
      %c0_5 = arith.constant 0 : index
      %10 = vector.load %arg6[%c0_4, %c0_5] : memref<128x128xf32, #tpu.memory_space<vmem>>, vector<128x128xf32>
      %cst_6 = arith.constant dense<0.000000e+00> : vector<128xf32>
      %11 = vector.multi_reduction <add>, %10, %cst_6 [0] : vector<128x128xf32> to vector<128xf32>
      %12 = vector.shape_cast %11 : vector<128xf32> to vector<1x128xf32>
      %cst_7 = arith.constant 1.280000e+02 : f32
      %13 = vector.broadcast %cst_7 : f32 to vector<1x128xf32>
      %14 = arith.divf %12, %13 : vector<1x128xf32>
      %15 = vector.broadcast %14 : vector<1x128xf32> to vector<128x128xf32>
      %16 = arith.subf %10, %15 : vector<128x128xf32>
      %17 = arith.mulf %16, %16 : vector<128x128xf32>
      %cst_8 = arith.constant dense<0.000000e+00> : vector<128xf32>
      %18 = vector.multi_reduction <add>, %17, %cst_8 [0] : vector<128x128xf32> to vector<128xf32>
      %19 = vector.shape_cast %18 : vector<128xf32> to vector<1x128xf32>
      %cst_9 = arith.constant 1.280000e+02 : f32
      %20 = vector.broadcast %cst_9 : f32 to vector<1x128xf32>
      %21 = arith.divf %19, %20 : vector<1x128xf32>
      %c0_10 = arith.constant 0 : index
      %c0_11 = arith.constant 0 : index
      %22 = vector.load %arg3[%c0_10, %c0_11] : memref<1x128xf32, #tpu.memory_space<vmem>>, vector<1x128xf32>
      %cst_12 = arith.constant 9.99999974E-6 : f32
      %23 = vector.broadcast %cst_12 : f32 to vector<1x128xf32>
      %24 = arith.addf %21, %23 : vector<1x128xf32>
      %25 = math.rsqrt %24 : vector<1x128xf32>
      %26 = arith.mulf %22, %25 : vector<1x128xf32>
      %c0_13 = arith.constant 0 : index
      %c0_14 = arith.constant 0 : index
      %27 = vector.load %arg4[%c0_13, %c0_14] : memref<1x128xf32, #tpu.memory_space<vmem>>, vector<1x128xf32>
      %28 = arith.mulf %14, %26 : vector<1x128xf32>
      %29 = arith.subf %27, %28 : vector<1x128xf32>
      %30 = vector.broadcast %26 : vector<1x128xf32> to vector<128x128xf32>
      %31 = arith.mulf %10, %30 : vector<128x128xf32>
      %32 = vector.broadcast %29 : vector<1x128xf32> to vector<128x128xf32>
      %33 = arith.addf %31, %32 : vector<128x128xf32>
      %cst_15 = arith.constant 0.000000e+00 : f32
      %34 = vector.broadcast %cst_15 : f32 to vector<128x128xf32>
      %35 = arith.maximumf %33, %34 : vector<128x128xf32>
      %36 = arith.truncf %35 : vector<128x128xf32> to vector<128x128xbf16>
      %c0_16 = arith.constant 0 : index
      %c0_17 = arith.constant 0 : index
      %37 = vector.load %arg5[%c0_16, %c0_17] : memref<128x128xbf16, #tpu.memory_space<vmem>>, vector<128x128xbf16>
      tpu.vector_store %arg5[%c0_16, %c0_17], %36 {strides = array<i32>} : memref<128x128xbf16, #tpu.memory_space<vmem>>, vector<128x128xbf16>,
    } else {
    }
    return
  }
  func.func @transform_0(%arg0: i32) -> (i32, i32) {
    %c0_i32 = arith.constant 0 : i32
    %c0_i32_0 = arith.constant 0 : i32
    return %arg0, %c0_i32 : i32, i32
  }
  func.func @transform_1(%arg0: i32) -> (i32, i32) {
    %c0_i32 = arith.constant 0 : i32
    %c0_i32_0 = arith.constant 0 : i32
    %c0_i32_1 = arith.constant 0 : i32
    return %c0_i32, %c0_i32_0 : i32, i32
  }
  func.func @transform_2(%arg0: i32) -> (i32, i32) {
    %c0_i32 = arith.constant 0 : i32
    %c0_i32_0 = arith.constant 0 : i32
    %c0_i32_1 = arith.constant 0 : i32
    return %c0_i32, %c0_i32_0 : i32, i32
  }
  func.func @transform_3(%arg0: i32) -> (i32, i32) {
    %c0_i32 = arith.constant 0 : i32
    %c0_i32_0 = arith.constant 0 : i32
    %c0_i32_1 = arith.constant 0 : i32
    return %c0_i32, %c0_i32_0 : i32, i32
  }
  func.func @transform_4(%arg0: i32) -> (i32, i32) {
    %c0_i32 = arith.constant 0 : i32
    %c0_i32_0 = arith.constant 0 : i32
    %c0_i32_1 = arith.constant 0 : i32
    return %c0_i32, %c0_i32_0 : i32, i32
  }
}

module attributes {stable_mosaic.version = 11 : i64} {
  func.func @_fused_conv_bn_relu_kernel(%arg0: i32, %arg1: memref<16x1152xbf16, #tpu.memory_space<vmem>>, %arg2: memref<1152x256xbf16, #tpu.memory_space<vmem>>, %arg3: memref<1x256xf32, #tpu.memory_space<vmem>>, %arg4: memref<1x256xf32, #tpu.memory_space<vmem>>, %arg5: memref<32x256xbf16, #tpu.memory_space<vmem>>, %arg6: memref<32x256xf32, #tpu.memory_space<vmem>>) attributes {dimension_semantics = [#tpu.dimension_semantics<arbitrary>], iteration_bounds = array<i64: 2>, scalar_prefetch = 0 : i64, scratch_operands = 1 : i64, tpu.core_type = #tpu.core_type<tc>, window_params = [{transform_indices = @transform_0, window_bounds = array<i64: 16, 1152>}, {pipeline_mode = #tpu.pipeline_mode<synchronous>, transform_indices = @transform_1, window_bounds = array<i64: 1152, 256>}, {pipeline_mode = #tpu.pipeline_mode<synchronous>, transform_indices = @transform_2, window_bounds = array<i64: 1, 256>}, {pipeline_mode = #tpu.pipeline_mode<synchronous>, transform_indices = @transform_3, window_bounds = array<i64: 1, 256>}, {pipeline_mode = #tpu.pipeline_mode<synchronous>, transform_indices = @transform_4, window_bounds = array<i64: 32, 256>}]} {
    %c0 = arith.constant 0 : index
    %c0_0 = arith.constant 0 : index
    %0 = vector.load %arg1[%c0, %c0_0] : memref<16x1152xbf16, #tpu.memory_space<vmem>>, vector<16x1152xbf16>
    %c0_1 = arith.constant 0 : index
    %c0_2 = arith.constant 0 : index
    %1 = vector.load %arg2[%c0_1, %c0_2] : memref<1152x256xbf16, #tpu.memory_space<vmem>>, vector<1152x256xbf16>
    %cst = arith.constant dense<0.000000e+00> : vector<16x256xf32>
    %2 = tpu.matmul %0, %1, %cst {dimension_numbers = #tpu.dot_dimension_numbers<[1], [0], [0], [1], [0, 0, 1, 1], [], []>} : vector<16x1152xbf16>, vector<1152x256xbf16>, vector<16x256xf32> -> vector<16x256xf32>
    %c16_i32 = arith.constant 16 : i32
    %3 = arith.muli %arg0, %c16_i32 : i32
    %4 = tpu.assume_multiple %3, 16 : i32
    %5 = arith.index_cast %4 : i32 to index
    %c0_3 = arith.constant 0 : index
    %6 = vector.load %arg6[%5, %c0_3] : memref<32x256xf32, #tpu.memory_space<vmem>>, vector<16x256xf32>
    tpu.vector_store %arg6[%5, %c0_3], %2 {strides = array<i32>} : memref<32x256xf32, #tpu.memory_space<vmem>>, vector<16x256xf32>,
    %c1_i32 = arith.constant 1 : i32
    %7 = arith.cmpi eq, %arg0, %c1_i32 : i32
    %8 = arith.extui %7 : i1 to i32
    %c0_i32 = arith.constant 0 : i32
    %9 = arith.cmpi ne, %8, %c0_i32 : i32
    scf.if %9 {
      %c0_4 = arith.constant 0 : index
      %c0_5 = arith.constant 0 : index
      %10 = vector.load %arg6[%c0_4, %c0_5] : memref<32x256xf32, #tpu.memory_space<vmem>>, vector<32x256xf32>
      %cst_6 = arith.constant dense<0.000000e+00> : vector<256xf32>
      %11 = vector.multi_reduction <add>, %10, %cst_6 [0] : vector<32x256xf32> to vector<256xf32>
      %12 = vector.shape_cast %11 : vector<256xf32> to vector<1x256xf32>
      %cst_7 = arith.constant 3.200000e+01 : f32
      %13 = vector.broadcast %cst_7 : f32 to vector<1x256xf32>
      %14 = arith.divf %12, %13 : vector<1x256xf32>
      %15 = vector.broadcast %14 : vector<1x256xf32> to vector<32x256xf32>
      %16 = arith.subf %10, %15 : vector<32x256xf32>
      %17 = arith.mulf %16, %16 : vector<32x256xf32>
      %cst_8 = arith.constant dense<0.000000e+00> : vector<256xf32>
      %18 = vector.multi_reduction <add>, %17, %cst_8 [0] : vector<32x256xf32> to vector<256xf32>
      %19 = vector.shape_cast %18 : vector<256xf32> to vector<1x256xf32>
      %cst_9 = arith.constant 3.200000e+01 : f32
      %20 = vector.broadcast %cst_9 : f32 to vector<1x256xf32>
      %21 = arith.divf %19, %20 : vector<1x256xf32>
      %c0_10 = arith.constant 0 : index
      %c0_11 = arith.constant 0 : index
      %22 = vector.load %arg3[%c0_10, %c0_11] : memref<1x256xf32, #tpu.memory_space<vmem>>, vector<1x256xf32>
      %cst_12 = arith.constant 9.99999974E-6 : f32
      %23 = vector.broadcast %cst_12 : f32 to vector<1x256xf32>
      %24 = arith.addf %21, %23 : vector<1x256xf32>
      %25 = math.rsqrt %24 : vector<1x256xf32>
      %26 = arith.mulf %22, %25 : vector<1x256xf32>
      %c0_13 = arith.constant 0 : index
      %c0_14 = arith.constant 0 : index
      %27 = vector.load %arg4[%c0_13, %c0_14] : memref<1x256xf32, #tpu.memory_space<vmem>>, vector<1x256xf32>
      %28 = arith.mulf %14, %26 : vector<1x256xf32>
      %29 = arith.subf %27, %28 : vector<1x256xf32>
      %30 = vector.broadcast %26 : vector<1x256xf32> to vector<32x256xf32>
      %31 = arith.mulf %10, %30 : vector<32x256xf32>
      %32 = vector.broadcast %29 : vector<1x256xf32> to vector<32x256xf32>
      %33 = arith.addf %31, %32 : vector<32x256xf32>
      %cst_15 = arith.constant 0.000000e+00 : f32
      %34 = vector.broadcast %cst_15 : f32 to vector<32x256xf32>
      %35 = arith.maximumf %33, %34 : vector<32x256xf32>
      %36 = arith.truncf %35 : vector<32x256xf32> to vector<32x256xbf16>
      %c0_16 = arith.constant 0 : index
      %c0_17 = arith.constant 0 : index
      %37 = vector.load %arg5[%c0_16, %c0_17] : memref<32x256xbf16, #tpu.memory_space<vmem>>, vector<32x256xbf16>
      tpu.vector_store %arg5[%c0_16, %c0_17], %36 {strides = array<i32>} : memref<32x256xbf16, #tpu.memory_space<vmem>>, vector<32x256xbf16>,
    } else {
    }
    return
  }
  func.func @transform_0(%arg0: i32) -> (i32, i32) {
    %c0_i32 = arith.constant 0 : i32
    %c0_i32_0 = arith.constant 0 : i32
    return %arg0, %c0_i32 : i32, i32
  }
  func.func @transform_1(%arg0: i32) -> (i32, i32) {
    %c0_i32 = arith.constant 0 : i32
    %c0_i32_0 = arith.constant 0 : i32
    %c0_i32_1 = arith.constant 0 : i32
    return %c0_i32, %c0_i32_0 : i32, i32
  }
  func.func @transform_2(%arg0: i32) -> (i32, i32) {
    %c0_i32 = arith.constant 0 : i32
    %c0_i32_0 = arith.constant 0 : i32
    %c0_i32_1 = arith.constant 0 : i32
    return %c0_i32, %c0_i32_0 : i32, i32
  }
  func.func @transform_3(%arg0: i32) -> (i32, i32) {
    %c0_i32 = arith.constant 0 : i32
    %c0_i32_0 = arith.constant 0 : i32
    %c0_i32_1 = arith.constant 0 : i32
    return %c0_i32, %c0_i32_0 : i32, i32
  }
  func.func @transform_4(%arg0: i32) -> (i32, i32) {
    %c0_i32 = arith.constant 0 : i32
    %c0_i32_0 = arith.constant 0 : i32
    %c0_i32_1 = arith.constant 0 : i32
    return %c0_i32, %c0_i32_0 : i32, i32
  }
}

module attributes {stable_mosaic.version = 11 : i64} {
  func.func @_fused_conv_bn_relu_kernel(%arg0: i32, %arg1: memref<64x3456xbf16, #tpu.memory_space<vmem>>, %arg2: memref<3456x128xbf16, #tpu.memory_space<vmem>>, %arg3: memref<1x128xf32, #tpu.memory_space<vmem>>, %arg4: memref<1x128xf32, #tpu.memory_space<vmem>>, %arg5: memref<128x128xbf16, #tpu.memory_space<vmem>>, %arg6: memref<128x128xf32, #tpu.memory_space<vmem>>) attributes {dimension_semantics = [#tpu.dimension_semantics<arbitrary>], iteration_bounds = array<i64: 2>, scalar_prefetch = 0 : i64, scratch_operands = 1 : i64, tpu.core_type = #tpu.core_type<tc>, window_params = [{transform_indices = @transform_0, window_bounds = array<i64: 64, 3456>}, {pipeline_mode = #tpu.pipeline_mode<synchronous>, transform_indices = @transform_1, window_bounds = array<i64: 3456, 128>}, {pipeline_mode = #tpu.pipeline_mode<synchronous>, transform_indices = @transform_2, window_bounds = array<i64: 1, 128>}, {pipeline_mode = #tpu.pipeline_mode<synchronous>, transform_indices = @transform_3, window_bounds = array<i64: 1, 128>}, {pipeline_mode = #tpu.pipeline_mode<synchronous>, transform_indices = @transform_4, window_bounds = array<i64: 128, 128>}]} {
    %c0 = arith.constant 0 : index
    %c0_0 = arith.constant 0 : index
    %0 = vector.load %arg1[%c0, %c0_0] : memref<64x3456xbf16, #tpu.memory_space<vmem>>, vector<64x3456xbf16>
    %c0_1 = arith.constant 0 : index
    %c0_2 = arith.constant 0 : index
    %1 = vector.load %arg2[%c0_1, %c0_2] : memref<3456x128xbf16, #tpu.memory_space<vmem>>, vector<3456x128xbf16>
    %cst = arith.constant dense<0.000000e+00> : vector<64x128xf32>
    %2 = tpu.matmul %0, %1, %cst {dimension_numbers = #tpu.dot_dimension_numbers<[1], [0], [0], [1], [0, 0, 1, 1], [], []>} : vector<64x3456xbf16>, vector<3456x128xbf16>, vector<64x128xf32> -> vector<64x128xf32>
    %c64_i32 = arith.constant 64 : i32
    %3 = arith.muli %arg0, %c64_i32 : i32
    %4 = tpu.assume_multiple %3, 64 : i32
    %5 = arith.index_cast %4 : i32 to index
    %c0_3 = arith.constant 0 : index
    %6 = vector.load %arg6[%5, %c0_3] : memref<128x128xf32, #tpu.memory_space<vmem>>, vector<64x128xf32>
    tpu.vector_store %arg6[%5, %c0_3], %2 {strides = array<i32>} : memref<128x128xf32, #tpu.memory_space<vmem>>, vector<64x128xf32>,
    %c1_i32 = arith.constant 1 : i32
    %7 = arith.cmpi eq, %arg0, %c1_i32 : i32
    %8 = arith.extui %7 : i1 to i32
    %c0_i32 = arith.constant 0 : i32
    %9 = arith.cmpi ne, %8, %c0_i32 : i32
    scf.if %9 {
      %c0_4 = arith.constant 0 : index
      %c0_5 = arith.constant 0 : index
      %10 = vector.load %arg6[%c0_4, %c0_5] : memref<128x128xf32, #tpu.memory_space<vmem>>, vector<128x128xf32>
      %cst_6 = arith.constant dense<0.000000e+00> : vector<128xf32>
      %11 = vector.multi_reduction <add>, %10, %cst_6 [0] : vector<128x128xf32> to vector<128xf32>
      %12 = vector.shape_cast %11 : vector<128xf32> to vector<1x128xf32>
      %cst_7 = arith.constant 1.280000e+02 : f32
      %13 = vector.broadcast %cst_7 : f32 to vector<1x128xf32>
      %14 = arith.divf %12, %13 : vector<1x128xf32>
      %15 = vector.broadcast %14 : vector<1x128xf32> to vector<128x128xf32>
      %16 = arith.subf %10, %15 : vector<128x128xf32>
      %17 = arith.mulf %16, %16 : vector<128x128xf32>
      %cst_8 = arith.constant dense<0.000000e+00> : vector<128xf32>
      %18 = vector.multi_reduction <add>, %17, %cst_8 [0] : vector<128x128xf32> to vector<128xf32>
      %19 = vector.shape_cast %18 : vector<128xf32> to vector<1x128xf32>
      %cst_9 = arith.constant 1.280000e+02 : f32
      %20 = vector.broadcast %cst_9 : f32 to vector<1x128xf32>
      %21 = arith.divf %19, %20 : vector<1x128xf32>
      %c0_10 = arith.constant 0 : index
      %c0_11 = arith.constant 0 : index
      %22 = vector.load %arg3[%c0_10, %c0_11] : memref<1x128xf32, #tpu.memory_space<vmem>>, vector<1x128xf32>
      %cst_12 = arith.constant 9.99999974E-6 : f32
      %23 = vector.broadcast %cst_12 : f32 to vector<1x128xf32>
      %24 = arith.addf %21, %23 : vector<1x128xf32>
      %25 = math.rsqrt %24 : vector<1x128xf32>
      %26 = arith.mulf %22, %25 : vector<1x128xf32>
      %c0_13 = arith.constant 0 : index
      %c0_14 = arith.constant 0 : index
      %27 = vector.load %arg4[%c0_13, %c0_14] : memref<1x128xf32, #tpu.memory_space<vmem>>, vector<1x128xf32>
      %28 = arith.mulf %14, %26 : vector<1x128xf32>
      %29 = arith.subf %27, %28 : vector<1x128xf32>
      %30 = vector.broadcast %26 : vector<1x128xf32> to vector<128x128xf32>
      %31 = arith.mulf %10, %30 : vector<128x128xf32>
      %32 = vector.broadcast %29 : vector<1x128xf32> to vector<128x128xf32>
      %33 = arith.addf %31, %32 : vector<128x128xf32>
      %cst_15 = arith.constant 0.000000e+00 : f32
      %34 = vector.broadcast %cst_15 : f32 to vector<128x128xf32>
      %35 = arith.maximumf %33, %34 : vector<128x128xf32>
      %36 = arith.truncf %35 : vector<128x128xf32> to vector<128x128xbf16>
      %c0_16 = arith.constant 0 : index
      %c0_17 = arith.constant 0 : index
      %37 = vector.load %arg5[%c0_16, %c0_17] : memref<128x128xbf16, #tpu.memory_space<vmem>>, vector<128x128xbf16>
      tpu.vector_store %arg5[%c0_16, %c0_17], %36 {strides = array<i32>} : memref<128x128xbf16, #tpu.memory_space<vmem>>, vector<128x128xbf16>,
    } else {
    }
    return
  }
  func.func @transform_0(%arg0: i32) -> (i32, i32) {
    %c0_i32 = arith.constant 0 : i32
    %c0_i32_0 = arith.constant 0 : i32
    return %arg0, %c0_i32 : i32, i32
  }
  func.func @transform_1(%arg0: i32) -> (i32, i32) {
    %c0_i32 = arith.constant 0 : i32
    %c0_i32_0 = arith.constant 0 : i32
    %c0_i32_1 = arith.constant 0 : i32
    return %c0_i32, %c0_i32_0 : i32, i32
  }
  func.func @transform_2(%arg0: i32) -> (i32, i32) {
    %c0_i32 = arith.constant 0 : i32
    %c0_i32_0 = arith.constant 0 : i32
    %c0_i32_1 = arith.constant 0 : i32
    return %c0_i32, %c0_i32_0 : i32, i32
  }
  func.func @transform_3(%arg0: i32) -> (i32, i32) {
    %c0_i32 = arith.constant 0 : i32
    %c0_i32_0 = arith.constant 0 : i32
    %c0_i32_1 = arith.constant 0 : i32
    return %c0_i32, %c0_i32_0 : i32, i32
  }
  func.func @transform_4(%arg0: i32) -> (i32, i32) {
    %c0_i32 = arith.constant 0 : i32
    %c0_i32_0 = arith.constant 0 : i32
    %c0_i32_1 = arith.constant 0 : i32
    return %c0_i32, %c0_i32_0 : i32, i32
  }
}

module attributes {stable_mosaic.version = 11 : i64} {
  func.func @_fused_conv_bn_relu_kernel(%arg0: i32, %arg1: memref<256x1728xbf16, #tpu.memory_space<vmem>>, %arg2: memref<1728x128xbf16, #tpu.memory_space<vmem>>, %arg3: memref<1x128xf32, #tpu.memory_space<vmem>>, %arg4: memref<1x128xf32, #tpu.memory_space<vmem>>, %arg5: memref<512x128xbf16, #tpu.memory_space<vmem>>, %arg6: memref<512x128xf32, #tpu.memory_space<vmem>>) attributes {dimension_semantics = [#tpu.dimension_semantics<arbitrary>], iteration_bounds = array<i64: 2>, scalar_prefetch = 0 : i64, scratch_operands = 1 : i64, tpu.core_type = #tpu.core_type<tc>, window_params = [{transform_indices = @transform_0, window_bounds = array<i64: 256, 1728>}, {pipeline_mode = #tpu.pipeline_mode<synchronous>, transform_indices = @transform_1, window_bounds = array<i64: 1728, 128>}, {pipeline_mode = #tpu.pipeline_mode<synchronous>, transform_indices = @transform_2, window_bounds = array<i64: 1, 128>}, {pipeline_mode = #tpu.pipeline_mode<synchronous>, transform_indices = @transform_3, window_bounds = array<i64: 1, 128>}, {pipeline_mode = #tpu.pipeline_mode<synchronous>, transform_indices = @transform_4, window_bounds = array<i64: 512, 128>}]} {
    %c0 = arith.constant 0 : index
    %c0_0 = arith.constant 0 : index
    %0 = vector.load %arg1[%c0, %c0_0] : memref<256x1728xbf16, #tpu.memory_space<vmem>>, vector<256x1728xbf16>
    %c0_1 = arith.constant 0 : index
    %c0_2 = arith.constant 0 : index
    %1 = vector.load %arg2[%c0_1, %c0_2] : memref<1728x128xbf16, #tpu.memory_space<vmem>>, vector<1728x128xbf16>
    %cst = arith.constant dense<0.000000e+00> : vector<256x128xf32>
    %2 = tpu.matmul %0, %1, %cst {dimension_numbers = #tpu.dot_dimension_numbers<[1], [0], [0], [1], [0, 0, 1, 1], [], []>} : vector<256x1728xbf16>, vector<1728x128xbf16>, vector<256x128xf32> -> vector<256x128xf32>
    %c256_i32 = arith.constant 256 : i32
    %3 = arith.muli %arg0, %c256_i32 : i32
    %4 = tpu.assume_multiple %3, 256 : i32
    %5 = arith.index_cast %4 : i32 to index
    %c0_3 = arith.constant 0 : index
    %6 = vector.load %arg6[%5, %c0_3] : memref<512x128xf32, #tpu.memory_space<vmem>>, vector<256x128xf32>
    tpu.vector_store %arg6[%5, %c0_3], %2 {strides = array<i32>} : memref<512x128xf32, #tpu.memory_space<vmem>>, vector<256x128xf32>,
    %c1_i32 = arith.constant 1 : i32
    %7 = arith.cmpi eq, %arg0, %c1_i32 : i32
    %8 = arith.extui %7 : i1 to i32
    %c0_i32 = arith.constant 0 : i32
    %9 = arith.cmpi ne, %8, %c0_i32 : i32
    scf.if %9 {
      %c0_4 = arith.constant 0 : index
      %c0_5 = arith.constant 0 : index
      %10 = vector.load %arg6[%c0_4, %c0_5] : memref<512x128xf32, #tpu.memory_space<vmem>>, vector<512x128xf32>
      %cst_6 = arith.constant dense<0.000000e+00> : vector<128xf32>
      %11 = vector.multi_reduction <add>, %10, %cst_6 [0] : vector<512x128xf32> to vector<128xf32>
      %12 = vector.shape_cast %11 : vector<128xf32> to vector<1x128xf32>
      %cst_7 = arith.constant 5.120000e+02 : f32
      %13 = vector.broadcast %cst_7 : f32 to vector<1x128xf32>
      %14 = arith.divf %12, %13 : vector<1x128xf32>
      %15 = vector.broadcast %14 : vector<1x128xf32> to vector<512x128xf32>
      %16 = arith.subf %10, %15 : vector<512x128xf32>
      %17 = arith.mulf %16, %16 : vector<512x128xf32>
      %cst_8 = arith.constant dense<0.000000e+00> : vector<128xf32>
      %18 = vector.multi_reduction <add>, %17, %cst_8 [0] : vector<512x128xf32> to vector<128xf32>
      %19 = vector.shape_cast %18 : vector<128xf32> to vector<1x128xf32>
      %cst_9 = arith.constant 5.120000e+02 : f32
      %20 = vector.broadcast %cst_9 : f32 to vector<1x128xf32>
      %21 = arith.divf %19, %20 : vector<1x128xf32>
      %c0_10 = arith.constant 0 : index
      %c0_11 = arith.constant 0 : index
      %22 = vector.load %arg3[%c0_10, %c0_11] : memref<1x128xf32, #tpu.memory_space<vmem>>, vector<1x128xf32>
      %cst_12 = arith.constant 9.99999974E-6 : f32
      %23 = vector.broadcast %cst_12 : f32 to vector<1x128xf32>
      %24 = arith.addf %21, %23 : vector<1x128xf32>
      %25 = math.rsqrt %24 : vector<1x128xf32>
      %26 = arith.mulf %22, %25 : vector<1x128xf32>
      %c0_13 = arith.constant 0 : index
      %c0_14 = arith.constant 0 : index
      %27 = vector.load %arg4[%c0_13, %c0_14] : memref<1x128xf32, #tpu.memory_space<vmem>>, vector<1x128xf32>
      %28 = arith.mulf %14, %26 : vector<1x128xf32>
      %29 = arith.subf %27, %28 : vector<1x128xf32>
      %30 = vector.broadcast %26 : vector<1x128xf32> to vector<512x128xf32>
      %31 = arith.mulf %10, %30 : vector<512x128xf32>
      %32 = vector.broadcast %29 : vector<1x128xf32> to vector<512x128xf32>
      %33 = arith.addf %31, %32 : vector<512x128xf32>
      %cst_15 = arith.constant 0.000000e+00 : f32
      %34 = vector.broadcast %cst_15 : f32 to vector<512x128xf32>
      %35 = arith.maximumf %33, %34 : vector<512x128xf32>
      %36 = arith.truncf %35 : vector<512x128xf32> to vector<512x128xbf16>
      %c0_16 = arith.constant 0 : index
      %c0_17 = arith.constant 0 : index
      %37 = vector.load %arg5[%c0_16, %c0_17] : memref<512x128xbf16, #tpu.memory_space<vmem>>, vector<512x128xbf16>
      tpu.vector_store %arg5[%c0_16, %c0_17], %36 {strides = array<i32>} : memref<512x128xbf16, #tpu.memory_space<vmem>>, vector<512x128xbf16>,
    } else {
    }
    return
  }
  func.func @transform_0(%arg0: i32) -> (i32, i32) {
    %c0_i32 = arith.constant 0 : i32
    %c0_i32_0 = arith.constant 0 : i32
    return %arg0, %c0_i32 : i32, i32
  }
  func.func @transform_1(%arg0: i32) -> (i32, i32) {
    %c0_i32 = arith.constant 0 : i32
    %c0_i32_0 = arith.constant 0 : i32
    %c0_i32_1 = arith.constant 0 : i32
    return %c0_i32, %c0_i32_0 : i32, i32
  }
  func.func @transform_2(%arg0: i32) -> (i32, i32) {
    %c0_i32 = arith.constant 0 : i32
    %c0_i32_0 = arith.constant 0 : i32
    %c0_i32_1 = arith.constant 0 : i32
    return %c0_i32, %c0_i32_0 : i32, i32
  }
  func.func @transform_3(%arg0: i32) -> (i32, i32) {
    %c0_i32 = arith.constant 0 : i32
    %c0_i32_0 = arith.constant 0 : i32
    %c0_i32_1 = arith.constant 0 : i32
    return %c0_i32, %c0_i32_0 : i32, i32
  }
  func.func @transform_4(%arg0: i32) -> (i32, i32) {
    %c0_i32 = arith.constant 0 : i32
    %c0_i32_0 = arith.constant 0 : i32
    %c0_i32_1 = arith.constant 0 : i32
    return %c0_i32, %c0_i32_0 : i32, i32
  }
}

module attributes {stable_mosaic.version = 11 : i64} {
  func.func @_mm_bias_tanh_kernel(%arg0: i32, %arg1: memref<256x128xbf16, #tpu.memory_space<vmem>>, %arg2: memref<128x128xbf16, #tpu.memory_space<vmem>>, %arg3: memref<1x128xf32, #tpu.memory_space<vmem>>, %arg4: memref<256x128xf32, #tpu.memory_space<vmem>>) attributes {dimension_semantics = [#tpu.dimension_semantics<parallel>], iteration_bounds = array<i64: 2>, scalar_prefetch = 0 : i64, scratch_operands = 0 : i64, tpu.core_type = #tpu.core_type<tc>, window_params = [{transform_indices = @transform_0, window_bounds = array<i64: 256, 128>}, {pipeline_mode = #tpu.pipeline_mode<synchronous>, transform_indices = @transform_1, window_bounds = array<i64: 128, 128>}, {pipeline_mode = #tpu.pipeline_mode<synchronous>, transform_indices = @transform_2, window_bounds = array<i64: 1, 128>}, {transform_indices = @transform_3, window_bounds = array<i64: 256, 128>}]} {
    %c0 = arith.constant 0 : index
    %c0_0 = arith.constant 0 : index
    %0 = vector.load %arg1[%c0, %c0_0] : memref<256x128xbf16, #tpu.memory_space<vmem>>, vector<256x128xbf16>
    %c0_1 = arith.constant 0 : index
    %c0_2 = arith.constant 0 : index
    %1 = vector.load %arg2[%c0_1, %c0_2] : memref<128x128xbf16, #tpu.memory_space<vmem>>, vector<128x128xbf16>
    %cst = arith.constant dense<0.000000e+00> : vector<256x128xf32>
    %2 = tpu.matmul %0, %1, %cst {dimension_numbers = #tpu.dot_dimension_numbers<[1], [0], [0], [1], [0, 0, 1, 1], [], []>} : vector<256x128xbf16>, vector<128x128xbf16>, vector<256x128xf32> -> vector<256x128xf32>
    %c0_3 = arith.constant 0 : index
    %c0_4 = arith.constant 0 : index
    %3 = vector.load %arg3[%c0_3, %c0_4] : memref<1x128xf32, #tpu.memory_space<vmem>>, vector<1x128xf32>
    %4 = vector.broadcast %3 : vector<1x128xf32> to vector<256x128xf32>
    %5 = arith.addf %2, %4 : vector<256x128xf32>
    %6 = math.tanh %5 : vector<256x128xf32>
    %c0_5 = arith.constant 0 : index
    %c0_6 = arith.constant 0 : index
    %7 = vector.load %arg4[%c0_5, %c0_6] : memref<256x128xf32, #tpu.memory_space<vmem>>, vector<256x128xf32>
    tpu.vector_store %arg4[%c0_5, %c0_6], %6 {strides = array<i32>} : memref<256x128xf32, #tpu.memory_space<vmem>>, vector<256x128xf32>,
    return
  }
  func.func @transform_0(%arg0: i32) -> (i32, i32) {
    %c0_i32 = arith.constant 0 : i32
    %c0_i32_0 = arith.constant 0 : i32
    return %arg0, %c0_i32 : i32, i32
  }
  func.func @transform_1(%arg0: i32) -> (i32, i32) {
    %c0_i32 = arith.constant 0 : i32
    %c0_i32_0 = arith.constant 0 : i32
    %c0_i32_1 = arith.constant 0 : i32
    return %c0_i32, %c0_i32_0 : i32, i32
  }
  func.func @transform_2(%arg0: i32) -> (i32, i32) {
    %c0_i32 = arith.constant 0 : i32
    %c0_i32_0 = arith.constant 0 : i32
    %c0_i32_1 = arith.constant 0 : i32
    return %c0_i32, %c0_i32_0 : i32, i32
  }
  func.func @transform_3(%arg0: i32) -> (i32, i32) {
    %c0_i32 = arith.constant 0 : i32
    %c0_i32_0 = arith.constant 0 : i32
    return %arg0, %c0_i32 : i32, i32
  }
}

</mosaic_0001>

<bundles_post_ra>
// kernel: unet_forward.6
= control target key start
LH: loop header
LB: loop body
LE: loop exit
PB: predicated region body
PF: predicated region fallthrough
CT: control target
= control target key end

     0   :  { %s1955_s15 = smov 0   ;;  %s2672_s0 = inlined_call_operand.vmem [shape: bf16[512,36], index: 0, kind: input, shape index: {}]   ;;  %s2673_s1 = inlined_call_operand.vmem [shape: bf16[36,128], index: 1, kind: input, shape index: {}]   ;;  %s2674_s2 = inlined_call_operand.vmem [shape: f32[1,128], index: 2, kind: input, shape index: {}]   ;;  %s2675_s3 = inlined_call_operand.vmem [shape: f32[1,128], index: 3, kind: input, shape index: {}]   ;;  %s2676_s4 = inlined_call_operand.vmem [shape: bf16[512,128], index: 4, kind: output, shape index: {}]  }
   0x1 LB: > { %s1961_s16 = sadd.s32 4294967295, %s1928_s15   ;;  %p1467_p0 = scmp.ge.s32.totalorder %s1928_s15, 1  ;;  %s1928_s15 = sphi %s1955_s15, %s14_s15  }
   0x2   : > { %p158_p1 = scmp.lt.s32.totalorder %s1928_s15, 3 }
   0x4   : > { %p159_p2 = pnand %p1467_p0, %p158_p1 }
   0x5   : > { %s1468_s21 = sshll.u32 (!%p159_p2), %s1961_s16, 5  ;;  %s1505_s28 = sshll.u32 (!%p159_p2), %s1961_s16, 8 }
   0x6   : > { %162 = sbr.rel (%p159_p2) target bundleno = 621 (0x26d), region = 36  ;;  %p180_p3 = scmp.lt.s32.totalorder (!%p159_p2), %s1468_s21, 63 }
   0x7   : > { %s2013_s29 = scalar_lea.vmem (!%p159_p2), [#allocation2], %s1505_s28  ;;  %p1506_p4 = scmp.ne.s32.totalorder (!%p159_p2), %s1961_s16, 1 }
   0xb   : > { %v1901_v0 = vld [vmem:[%s2673_s1 + $0x10] ss:$0 sps:$4 sm:$0x33]   ;;  %vm367_vm0 = vcmask 1041408   ;;  %v1902_v1 = vld [vmem:[%s2673_s1 + $0x8] sm:$0xff]   ;;  %v1903_v3 = vld [vmem:[%s2673_s1] sm:$0xff]  }
   0xc   : > { %1891 = vmatprep.subr.msk.bf16.mxu0 %vm367_vm0, %v1901_v0  ;;  %1892 = vmatprep.subr.msk.bf16.mxu1 %vm367_vm0, %v1901_v0  ;;  %v369_v2 = vsel %vm367_vm0, %v1901_v0, 0  ;;  %s2781_s21 = smov (!%p180_p3, %s1468_s21), 63  ;;  %vm318_vm1 = vcmask 293888  }
   0xd   : > { %1848 = vmatpush3.bf16.msra.mxu0 %v369_v2  ;;  %1888 = vmatpush3.bf16.msra.mxu1 %v369_v2  ;;  %s1469_s24 = sshll.u32 %s2781_s21, 2 }
   0xe   : > { %1849 = vmatprep.subr.bf16.mxu0 %v1902_v1  ;;  %1886 = vmatprep.subr.bf16.mxu1 %v1902_v1  ;;  %s1978_s27 = scalar_lea.vmem %s2672_s0, %s1469_s24 }
   0xf   : > { %v1904_v4 = vld [vmem:[%s1978_s27] sm:$0xff]   ;;  %v1906_v6 = vld [vmem:[%s1978_s27 + $0x8] sm:$0xff]   ;;  %v1908_v8 = vld [vmem:[%s1978_s27 + $0x10] sm:$0xff]  }
  0x10   : > { %v1905_v5 = vld [vmem:[%s1978_s27 + $0x40] sm:$0xff]   ;;  %1853 = vmatprep.mubr.msk.bf16.mxu0 %vm318_vm1, %v1904_v4  ;;  %v1907_v7 = vld [vmem:[%s1978_s27 + $0x48] sm:$0xff]   ;;  %v1909_v9 = vld [vmem:[%s1978_s27 + $0x50] sm:$0xff]  }
  0x11   : > { %1850 = vmatpush3.bf16.msra.mxu0 %v1902_v1  ;;  %1889 = vmatpush3.bf16.msra.mxu1 %v1902_v1  ;;  %v1910_v10 = vld [vmem:[%s1978_s27 + $0x18] sm:$0xff]   ;;  %v1912_v12 = vld [vmem:[%s1978_s27 + $0x20] sm:$0xff]   ;;  %v1914_v14 = vld [vmem:[%s1978_s27 + $0x28] sm:$0xff]  }
  0x12   : > { %1851 = vmatprep.subr.bf16.mxu0 %v1903_v3  ;;  %1887 = vmatprep.subr.bf16.mxu1 %v1903_v3  ;;  %v1911_v11 = vld [vmem:[%s1978_s27 + $0x58] sm:$0xff]   ;;  %v1913_v13 = vld [vmem:[%s1978_s27 + $0x60] sm:$0xff]   ;;  %v1915_v15 = vld [vmem:[%s1978_s27 + $0x68] sm:$0xff]  }
  0x13   : > { %1869 = vmatprep.mubr.msk.bf16.mxu1 %vm318_vm1, %v1905_v5  ;;  %v1916_v16 = vld [vmem:[%s1978_s27 + $0x30] sm:$0xff]   ;;  %v1918_v18 = vld [vmem:[%s1978_s27 + $0x38] sm:$0xff]  }
  0x14   : > { %v1917_v17 = vld [vmem:[%s1978_s27 + $0x70] sm:$0xff]   ;;  %v1919_v19 = vld [vmem:[%s1978_s27 + $0x78] sm:$0xff]  }
  0x15   : > { %1852 = vmatpush3.bf16.msra.mxu0 %v1903_v3  ;;  %1890 = vmatpush3.bf16.msra.mxu1 %v1903_v3 }
  0x18   : > { %1854 = vmatmul.mubr.msk.bf16.vlgmr.msra.gmra.mxu0 %vm318_vm1, %v1906_v6  ;;  %1870 = vmatmul.mubr.msk.bf16.vlgmr.msra.gmra.mxu1 %vm318_vm1, %v1907_v7 }
  0x19   : > { %1857 = vmatprep.mubr.msk.bf16.mxu0 %vm318_vm1, %v1908_v8  ;;  %1873 = vmatprep.mubr.msk.bf16.mxu1 %vm318_vm1, %v1909_v9 }
  0x20   : > { %1858 = vmatmul.mubr.msk.bf16.gmra.mxu0 %vm318_vm1, %v1910_v10  ;;  %1874 = vmatmul.mubr.msk.bf16.gmra.mxu1 %vm318_vm1, %v1911_v11 }
  0x21   : > { %1861 = vmatprep.mubr.msk.bf16.mxu0 %vm318_vm1, %v1912_v12  ;;  %1877 = vmatprep.mubr.msk.bf16.mxu1 %vm318_vm1, %v1913_v13 }
  0x28   : > { %1862 = vmatmul.mubr.msk.bf16.gmra.mxu0 %vm318_vm1, %v1914_v14  ;;  %1878 = vmatmul.mubr.msk.bf16.gmra.mxu1 %vm318_vm1, %v1915_v15 }
  0x29   : > { %1865 = vmatprep.mubr.msk.bf16.mxu0 %vm318_vm1, %v1916_v16  ;;  %1881 = vmatprep.mubr.msk.bf16.mxu1 %vm318_vm1, %v1917_v17 }
  0x30   : > { %1866 = vmatmul.mubr.msk.bf16.gmra.mxu0 %vm318_vm1, %v1918_v18  ;;  %1882 = vmatmul.mubr.msk.bf16.gmra.mxu1 %vm318_vm1, %v1919_v19 }
  0xd8   : > { %v1855_v20 = vpop.f32.mrf.mxu0  ;;  %v1871_v21 = vpop.f32.mrf.mxu1 }
  0xd9   : > { %536 = vst [vmem:[%s2013_s29 + $0x10] sm:$0xff] %v1855_v20  ;;  %552 = vst [vmem:[%s2013_s29 + $0x90] sm:$0xff] %v1871_v21 }
  0xda   : > { %v405_v22 = vpop.f32.mrf.mxu0  ;;  %v469_v23 = vpop.f32.mrf.mxu1 }
  0xdb   : > { %534 = vst [vmem:[%s2013_s29] sm:$0xff] %v405_v22  ;;  %550 = vst [vmem:[%s2013_s29 + $0x80] sm:$0xff] %v469_v23 }
  0xdc   : > { %v1856_v24 = vpop.f32.mrf.mxu0  ;;  %v1872_v25 = vpop.f32.mrf.mxu1 }
  0xdd   : > { %537 = vst [vmem:[%s2013_s29 + $0x18] sm:$0xff] %v1856_v24  ;;  %553 = vst [vmem:[%s2013_s29 + $0x98] sm:$0xff] %v1872_v25 }
  0xde   : > { %v408_v26 = vpop.f32.mrf.mxu0  ;;  %v472_v27 = vpop.f32.mrf.mxu1 }
  0xdf   : > { %535 = vst [vmem:[%s2013_s29 + $0x8] sm:$0xff] %v408_v26  ;;  %551 = vst [vmem:[%s2013_s29 + $0x88] sm:$0xff] %v472_v27 }
  0xe0   : > { %v1859_v28 = vpop.f32.mrf.mxu0  ;;  %v1875_v29 = vpop.f32.mrf.mxu1 }
  0xe1   : > { %540 = vst [vmem:[%s2013_s29 + $0x30] sm:$0xff] %v1859_v28  ;;  %556 = vst [vmem:[%s2013_s29 + $0xb0] sm:$0xff] %v1875_v29 }
  0xe2   : > { %v421_v30 = vpop.f32.mrf.mxu0  ;;  %v485_v31 = vpop.f32.mrf.mxu1 }
  0xe3   : > { %538 = vst [vmem:[%s2013_s29 + $0x20] sm:$0xff] %v421_v30  ;;  %554 = vst [vmem:[%s2013_s29 + $0xa0] sm:$0xff] %v485_v31 }
  0xe4   : > { %v1860_v32 = vpop.f32.mrf.mxu0  ;;  %v1876_v33 = vpop.f32.mrf.mxu1 }
  0xe5   : > { %541 = vst [vmem:[%s2013_s29 + $0x38] sm:$0xff] %v1860_v32  ;;  %557 = vst [vmem:[%s2013_s29 + $0xb8] sm:$0xff] %v1876_v33 }
  0xe6   : > { %v424_v34 = vpop.f32.mrf.mxu0  ;;  %v488_v35 = vpop.f32.mrf.mxu1 }
  0xe7   : > { %539 = vst [vmem:[%s2013_s29 + $0x28] sm:$0xff] %v424_v34  ;;  %555 = vst [vmem:[%s2013_s29 + $0xa8] sm:$0xff] %v488_v35 }
  0xe8   : > { %v1863_v36 = vpop.f32.mrf.mxu0  ;;  %v1879_v37 = vpop.f32.mrf.mxu1 }
  0xe9   : > { %544 = vst [vmem:[%s2013_s29 + $0x50] sm:$0xff] %v1863_v36  ;;  %560 = vst [vmem:[%s2013_s29 + $0xd0] sm:$0xff] %v1879_v37 }
  0xea   : > { %v437_v38 = vpop.f32.mrf.mxu0  ;;  %v501_v39 = vpop.f32.mrf.mxu1 }
  0xeb   : > { %542 = vst [vmem:[%s2013_s29 + $0x40] sm:$0xff] %v437_v38  ;;  %558 = vst [vmem:[%s2013_s29 + $0xc0] sm:$0xff] %v501_v39 }
  0xec   : > { %v1864_v40 = vpop.f32.mrf.mxu0  ;;  %v1880_v41 = vpop.f32.mrf.mxu1 }
  0xed   : > { %545 = vst [vmem:[%s2013_s29 + $0x58] sm:$0xff] %v1864_v40  ;;  %561 = vst [vmem:[%s2013_s29 + $0xd8] sm:$0xff] %v1880_v41 }
  0xee   : > { %v440_v42 = vpop.f32.mrf.mxu0  ;;  %v504_v43 = vpop.f32.mrf.mxu1 }
  0xef   : > { %543 = vst [vmem:[%s2013_s29 + $0x48] sm:$0xff] %v440_v42  ;;  %559 = vst [vmem:[%s2013_s29 + $0xc8] sm:$0xff] %v504_v43 }
  0xf0   : > { %v1867_v44 = vpop.f32.mrf.mxu0  ;;  %v1883_v45 = vpop.f32.mrf.mxu1 }
  0xf1   : > { %548 = vst [vmem:[%s2013_s29 + $0x70] sm:$0xff] %v1867_v44  ;;  %564 = vst [vmem:[%s2013_s29 + $0xf0] sm:$0xff] %v1883_v45 }
  0xf2   : > { %v453_v46 = vpop.f32.mrf.mxu0  ;;  %v517_v47 = vpop.f32.mrf.mxu1 }
  0xf3   : > { %546 = vst [vmem:[%s2013_s29 + $0x60] sm:$0xff] %v453_v46  ;;  %562 = vst [vmem:[%s2013_s29 + $0xe0] sm:$0xff] %v517_v47  ;;  %569 = sbr.rel (%p1506_p4) target bundleno = 621 (0x26d), region = 40 }
  0xf4   : > { %v1868_v48 = vpop.f32.mrf.mxu0  ;;  %v1884_v49 = vpop.f32.mrf.mxu1 }
  0xf5   : > { %549 = vst [vmem:[%s2013_s29 + $0x78] sm:$0xff] %v1868_v48  ;;  %565 = vst [vmem:[%s2013_s29 + $0xf8] sm:$0xff] %v1884_v49 }
  0xf6   : > { %v456_v50 = vpop.f32.mrf.mxu0  ;;  %v520_v51 = vpop.f32.mrf.mxu1 }
  0xf7   : > { %547 = vst [vmem:[%s2013_s29 + $0x68] sm:$0xff] %v456_v50  ;;  %563 = vst [vmem:[%s2013_s29 + $0xe8] sm:$0xff] %v520_v51 }
  0xfe   : > { %v2048_v52 = vld [vmem:[#allocation2] sm:$0xff]  ;;  %v2050_v53 = vld [vmem:[#allocation2 + $0x8] sm:$0xff]  ;;  %v2052_v54 = vld [vmem:[#allocation2 + $0x10] sm:$0xff] }
  0xff   : > { %2716 = vst [vmem:[#allocation3_spill] sm:$0xff] %v2048_v52  ;;  %2717 = vst [vmem:[#allocation4_spill] sm:$0xff] %v2050_v53  ;;  %v634_v55 = vadd.f32 %v2050_v53, %v2048_v52  ;;  %v2056_v56 = vld [vmem:[#allocation2 + $0x18] sm:$0xff]  ;;  %v2059_v58 = vld [vmem:[#allocation2 + $0x20] sm:$0xff] }
 0x100   : > { %2718 = vst [vmem:[#allocation5_spill] sm:$0xff] %v2052_v54  ;;  %2719 = vst [vmem:[#allocation6_spill] sm:$0xff] %v2056_v56  ;;  %v2062_v60 = vld [vmem:[#allocation2 + $0x28] sm:$0xff]  ;;  %v2065_v62 = vld [vmem:[#allocation2 + $0x30] sm:$0xff] }
 0x101   : > { %v635_v57 = vadd.f32 %v634_v55, %v2052_v54  ;;  %2720 = vst [vmem:[#allocation7_spill] sm:$0xff] %v2059_v58  ;;  %2721 = vst [vmem:[#allocation8_spill] sm:$0xff] %v2062_v60  ;;  %v2068_v0 = vld [vmem:[#allocation2 + $0x38] sm:$0xff]  ;;  %v2071_v2 = vld [vmem:[#allocation2 + $0x40] sm:$0xff] }
 0x102   : > { %v2074_v4 = vld [vmem:[#allocation2 + $0x48] sm:$0xff]  ;;  %v2077_v6 = vld [vmem:[#allocation2 + $0x50] sm:$0xff]  ;;  %v2080_v8 = vld [vmem:[#allocation2 + $0x58] sm:$0xff] }
 0x103   : > { %v636_v59 = vadd.f32 %v635_v57, %v2056_v56  ;;  %v2083_v10 = vld [vmem:[#allocation2 + $0x60] sm:$0xff]  ;;  %v2086_v12 = vld [vmem:[#allocation2 + $0x68] sm:$0xff]  ;;  %v2089_v14 = vld [vmem:[#allocation2 + $0x70] sm:$0xff] }
 0x104   : > { %v2092_v16 = vld [vmem:[#allocation2 + $0x78] sm:$0xff]  ;;  %v2095_v18 = vld [vmem:[#allocation2 + $0x80] sm:$0xff]  ;;  %v2098_v20 = vld [vmem:[#allocation2 + $0x88] sm:$0xff] }
 0x105   : > { %v637_v61 = vadd.f32 %v636_v59, %v2059_v58  ;;  %v2101_v22 = vld [vmem:[#allocation2 + $0x90] sm:$0xff]  ;;  %v2104_v24 = vld [vmem:[#allocation2 + $0x98] sm:$0xff]  ;;  %v2107_v26 = vld [vmem:[#allocation2 + $0xa0] sm:$0xff] }
 0x106   : > { %v2110_v28 = vld [vmem:[#allocation2 + $0xa8] sm:$0xff]  ;;  %v2113_v30 = vld [vmem:[#allocation2 + $0xb0] sm:$0xff]  ;;  %v2116_v32 = vld [vmem:[#allocation2 + $0xb8] sm:$0xff] }
 0x107   : > { %v638_v63 = vadd.f32 %v637_v61, %v2062_v60  ;;  %v2119_v34 = vld [vmem:[#allocation2 + $0xc0] sm:$0xff]  ;;  %v2122_v36 = vld [vmem:[#allocation2 + $0xc8] sm:$0xff]  ;;  %v2125_v38 = vld [vmem:[#allocation2 + $0xd0] sm:$0xff] }
 0x108   : > { %v2128_v40 = vld [vmem:[#allocation2 + $0xd8] sm:$0xff]  ;;  %v2131_v42 = vld [vmem:[#allocation2 + $0xe0] sm:$0xff]  ;;  %v2134_v44 = vld [vmem:[#allocation2 + $0xe8] sm:$0xff] }
 0x109   : > { %v639_v1 = vadd.f32 %v638_v63, %v2065_v62  ;;  %v2137_v46 = vld [vmem:[#allocation2 + $0xf0] sm:$0xff]  ;;  %v2140_v48 = vld [vmem:[#allocation2 + $0xf8] sm:$0xff]  ;;  %v2143_v50 = vld [vmem:[#allocation2 + $0x100] sm:$0xff] }
 0x10a   : > { %v2146_v55 = vld [vmem:[#allocation2 + $0x108] sm:$0xff]  ;;  %v2149_v59 = vld [vmem:[#allocation2 + $0x110] sm:$0xff]  ;;  %v2152_v63 = vld [vmem:[#allocation2 + $0x118] sm:$0xff] }
 0x10b   : > { %v640_v3 = vadd.f32 %v639_v1, %v2068_v0 }
 0x10d   : > { %v641_v5 = vadd.f32 %v640_v3, %v2071_v2  ;;  %v2155_v3 = vld [vmem:[#allocation2 + $0x120] sm:$0xff] }
 0x10f   : > { %v642_v7 = vadd.f32 %v641_v5, %v2074_v4 }
 0x111   : > { %v643_v9 = vadd.f32 %v642_v7, %v2077_v6  ;;  %v2158_v7 = vld [vmem:[#allocation2 + $0x128] sm:$0xff] }
 0x113   : > { %v644_v11 = vadd.f32 %v643_v9, %v2080_v8 }
 0x115   : > { %v645_v13 = vadd.f32 %v644_v11, %v2083_v10  ;;  %v2161_v11 = vld [vmem:[#allocation2 + $0x130] sm:$0xff] }
 0x117   : > { %v646_v15 = vadd.f32 %v645_v13, %v2086_v12 }
 0x119   : > { %v647_v17 = vadd.f32 %v646_v15, %v2089_v14  ;;  %v2164_v15 = vld [vmem:[#allocation2 + $0x138] sm:$0xff] }
 0x11b   : > { %v648_v19 = vadd.f32 %v647_v17, %v2092_v16 }
 0x11d   : > { %v649_v21 = vadd.f32 %v648_v19, %v2095_v18  ;;  %v2167_v19 = vld [vmem:[#allocation2 + $0x140] sm:$0xff] }
 0x11f   : > { %v650_v23 = vadd.f32 %v649_v21, %v2098_v20 }
 0x121   : > { %v651_v25 = vadd.f32 %v650_v23, %v2101_v22  ;;  %v2170_v23 = vld [vmem:[#allocation2 + $0x148] sm:$0xff] }
 0x123   : > { %v652_v27 = vadd.f32 %v651_v25, %v2104_v24 }
 0x125   : > { %v653_v29 = vadd.f32 %v652_v27, %v2107_v26  ;;  %v2173_v27 = vld [vmem:[#allocation2 + $0x150] sm:$0xff] }
 0x127   : > { %v654_v31 = vadd.f32 %v653_v29, %v2110_v28 }
 0x129   : > { %v655_v33 = vadd.f32 %v654_v31, %v2113_v30  ;;  %v2176_v31 = vld [vmem:[#allocation2 + $0x158] sm:$0xff] }
 0x12b   : > { %v656_v35 = vadd.f32 %v655_v33, %v2116_v32 }
 0x12d   : > { %v657_v37 = vadd.f32 %v656_v35, %v2119_v34  ;;  %v2179_v35 = vld [vmem:[#allocation2 + $0x160] sm:$0xff] }
 0x12e   : > { %2722 = vst [vmem:[#allocation9_spill] sm:$0xff] %v2179_v35 }
 0x12f   : > { %v658_v39 = vadd.f32 %v657_v37, %v2122_v36 }
 0x131   : > { %v659_v41 = vadd.f32 %v658_v39, %v2125_v38  ;;  %v2182_v39 = vld [vmem:[#allocation2 + $0x168] sm:$0xff] }
 0x132   : > { %2723 = vst [vmem:[#allocation10_spill] sm:$0xff] %v2182_v39 }
 0x133   : > { %v660_v43 = vadd.f32 %v659_v41, %v2128_v40 }
 0x135   : > { %v661_v45 = vadd.f32 %v660_v43, %v2131_v42  ;;  %v2185_v43 = vld [vmem:[#allocation2 + $0x170] sm:$0xff] }
 0x136   : > { %2724 = vst [vmem:[#allocation11_spill] sm:$0xff] %v2185_v43 }
 0x137   : > { %v662_v47 = vadd.f32 %v661_v45, %v2134_v44 }
 0x139   : > { %v663_v49 = vadd.f32 %v662_v47, %v2137_v46  ;;  %v2188_v47 = vld [vmem:[#allocation2 + $0x178] sm:$0xff] }
 0x13a   : > { %2725 = vst [vmem:[#allocation12_spill] sm:$0xff] %v2188_v47 }
 0x13b   : > { %v664_v51 = vadd.f32 %v663_v49, %v2140_v48 }
 0x13d   : > { %v665_v57 = vadd.f32 %v664_v51, %v2143_v50  ;;  %v2191_v51 = vld [vmem:[#allocation2 + $0x180] sm:$0xff] }
 0x13e   : > { %2726 = vst [vmem:[#allocation13_spill] sm:$0xff] %v2191_v51 }
 0x13f   : > { %v666_v61 = vadd.f32 %v665_v57, %v2146_v55 }
 0x141   : > { %v667_v1 = vadd.f32 %v666_v61, %v2149_v59  ;;  %v2194_v61 = vld [vmem:[#allocation2 + $0x188] sm:$0xff] }
 0x142   : > { %2727 = vst [vmem:[#allocation14_spill] sm:$0xff] %v2194_v61 }
 0x143   : > { %v668_v5 = vadd.f32 %v667_v1, %v2152_v63 }
 0x145   : > { %v669_v9 = vadd.f32 %v668_v5, %v2155_v3  ;;  %v2197_v5 = vld [vmem:[#allocation2 + $0x190] sm:$0xff] }
 0x146   : > { %2728 = vst [vmem:[#allocation15_spill] sm:$0xff] %v2197_v5 }
 0x147   : > { %v670_v13 = vadd.f32 %v669_v9, %v2158_v7 }
 0x149   : > { %v671_v17 = vadd.f32 %v670_v13, %v2161_v11  ;;  %v2200_v13 = vld [vmem:[#allocation2 + $0x198] sm:$0xff] }
 0x14a   : > { %2729 = vst [vmem:[#allocation16_spill] sm:$0xff] %v2200_v13 }
 0x14b   : > { %v672_v21 = vadd.f32 %v671_v17, %v2164_v15 }
 0x14d   : > { %v673_v25 = vadd.f32 %v672_v21, %v2167_v19  ;;  %v2203_v21 = vld [vmem:[#allocation2 + $0x1a0] sm:$0xff] }
 0x14e   : > { %2730 = vst [vmem:[#allocation17_spill] sm:$0xff] %v2203_v21 }
 0x14f   : > { %v674_v29 = vadd.f32 %v673_v25, %v2170_v23 }
 0x151   : > { %v675_v33 = vadd.f32 %v674_v29, %v2173_v27  ;;  %v2206_v29 = vld [vmem:[#allocation2 + $0x1a8] sm:$0xff] }
 0x152   : > { %2731 = vst [vmem:[#allocation18_spill] sm:$0xff] %v2206_v29 }
 0x153   : > { %v676_v37 = vadd.f32 %v675_v33, %v2176_v31 }
 0x155   : > { %v677_v41 = vadd.f32 %v676_v37, %v2179_v35  ;;  %v2209_v37 = vld [vmem:[#allocation2 + $0x1b0] sm:$0xff] }
 0x156   : > { %2732 = vst [vmem:[#allocation19_spill] sm:$0xff] %v2209_v37 }
 0x157   : > { %v678_v45 = vadd.f32 %v677_v41, %v2182_v39 }
 0x159   : > { %v679_v49 = vadd.f32 %v678_v45, %v2185_v43  ;;  %v2212_v45 = vld [vmem:[#allocation2 + $0x1b8] sm:$0xff] }
 0x15a   : > { %2733 = vst [vmem:[#allocation20_spill] sm:$0xff] %v2212_v45 }
 0x15b   : > { %v680_v57 = vadd.f32 %v679_v49, %v2188_v47 }
 0x15d   : > { %v681_v1 = vadd.f32 %v680_v57, %v2191_v51  ;;  %v2215_v57 = vld [vmem:[#allocation2 + $0x1c0] sm:$0xff] }
 0x15e   : > { %2734 = vst [vmem:[#allocation21_spill] sm:$0xff] %v2215_v57 }
 0x15f   : > { %v682_v9 = vadd.f32 %v681_v1, %v2194_v61 }
 0x161   : > { %v683_v17 = vadd.f32 %v682_v9, %v2197_v5  ;;  %v2218_v9 = vld [vmem:[#allocation2 + $0x1c8] sm:$0xff]  ;;  %v2228_v5 = vld [vmem:[#allocation2 + $0x1e0] sm:$0xff] }
 0x162   : > { %2735 = vst [vmem:[#allocation22_spill] sm:$0xff] %v2218_v9  ;;  %2738 = vst [vmem:[#allocation25_spill] sm:$0xff] %v2228_v5 }
 0x163   : > { %v684_v25 = vadd.f32 %v683_v17, %v2200_v13  ;;  %v2221_v13 = vld [vmem:[#allocation2 + $0x1d0] sm:$0xff] }
 0x164   : > { %2736 = vst [vmem:[#allocation23_spill] sm:$0xff] %v2221_v13 }
 0x165   : > { %v685_v33 = vadd.f32 %v684_v25, %v2203_v21  ;;  %v2224_v21 = vld [vmem:[#allocation2 + $0x1d8] sm:$0xff] }
 0x166   : > { %2737 = vst [vmem:[#allocation24_spill] sm:$0xff] %v2224_v21 }
 0x167   : > { %v686_v41 = vadd.f32 %v685_v33, %v2206_v29 }
 0x169   : > { %v687_v49 = vadd.f32 %v686_v41, %v2209_v37  ;;  %v2231_v37 = vld [vmem:[#allocation2 + $0x1e8] sm:$0xff] }
 0x16a   : > { %2739 = vst [vmem:[#allocation26_spill] sm:$0xff] %v2231_v37 }
 0x16b   : > { %v688_v1 = vadd.f32 %v687_v49, %v2212_v45  ;;  %v2234_v45 = vld [vmem:[#allocation2 + $0x1f0] sm:$0xff] }
 0x16c   : > { %2740 = vst [vmem:[#allocation27_spill] sm:$0xff] %v2234_v45 }
 0x16d   : > { %v689_v17 = vadd.f32 %v688_v1, %v2215_v57  ;;  %v2237_v57 = vld [vmem:[#allocation2 + $0x1f8] sm:$0xff] }
 0x16e   : > { %2741 = vst [vmem:[#allocation28_spill] sm:$0xff] %v2237_v57 }
 0x16f   : > { %v690_v25 = vadd.f32 %v689_v17, %v2218_v9 }
 0x171   : > { %v691_v33 = vadd.f32 %v690_v25, %v2221_v13 }
 0x173   : > { %v692_v29 = vadd.f32 %v691_v33, %v2224_v21 }
 0x175   : > { %v693_v41 = vadd.f32 %v692_v29, %v2228_v5 }
 0x177   : > { %v694_v49 = vadd.f32 %v693_v41, %v2231_v37 }
 0x179   : > { %v695_v1 = vadd.f32 %v694_v49, %v2234_v45 }
 0x17b   : > { %v696_v17 = vadd.f32 %v695_v1, %v2237_v57 }
 0x17d   : > { %v697_v9 = vrot.slane %v696_v17, 4 }
 0x17f   : > { %v698_v25 = vadd.f32 %v697_v9, %v696_v17 }
 0x181   : > { %v699_v13 = vrot.slane %v698_v25, 2 }
 0x183   : > { %v700_v33 = vadd.f32 %v699_v13, %v698_v25 }
 0x185   : > { %v701_v21 = vrot.slane %v700_v33, 1 }
 0x187   : > { %v702_v61 = vadd.f32 %v701_v21, %v700_v33 }
 0x189   : > { %v2240_v51 = vmul.f32 0.001953125, %v702_v61 }
 0x18b   : > { %v705_v29 = vsub.f32 %v2048_v52, %v2240_v51  ;;  %v706_v41 = vsub.f32 %v2050_v53, %v2240_v51  ;;  %v707_v49 = vsub.f32 %v2052_v54, %v2240_v51  ;;  %v708_v1 = vsub.f32 %v2056_v56, %v2240_v51 }
 0x18c   : > { %v709_v13 = vsub.f32 %v2059_v58, %v2240_v51  ;;  %v710_v61 = vsub.f32 %v2062_v60, %v2240_v51  ;;  %v711_v33 = vsub.f32 %v2065_v62, %v2240_v51  ;;  %v712_v54 = vsub.f32 %v2068_v0, %v2240_v51 }
 0x18d   : > { %v769_v57 = vmul.f32 %v705_v29, %v705_v29  ;;  %v770_v9 = vmul.f32 %v706_v41, %v706_v41  ;;  %v771_v21 = vmul.f32 %v707_v49, %v707_v49  ;;  %v772_v17 = vmul.f32 %v708_v1, %v708_v1 }
 0x18e   : > { %v773_v53 = vmul.f32 %v709_v13, %v709_v13  ;;  %v774_v56 = vmul.f32 %v710_v61, %v710_v61  ;;  %v713_v41 = vsub.f32 %v2071_v2, %v2240_v51  ;;  %v775_v58 = vmul.f32 %v711_v33, %v711_v33 }
 0x18f   : > { %v833_v25 = vadd.f32 %v770_v9, %v769_v57  ;;  %v714_v60 = vsub.f32 %v2074_v4, %v2240_v51  ;;  %v776_v1 = vmul.f32 %v712_v54, %v712_v54  ;;  %v715_v9 = vsub.f32 %v2077_v6, %v2240_v51 }
 0x190   : > { %v777_v13 = vmul.f32 %v713_v41, %v713_v41 }
 0x191   : > { %v834_v52 = vadd.f32 %v833_v25, %v771_v21  ;;  %v716_v25 = vsub.f32 %v2080_v8, %v2240_v51  ;;  %v778_v61 = vmul.f32 %v714_v60, %v714_v60  ;;  %v779_v33 = vmul.f32 %v715_v9, %v715_v9 }
 0x193   : > { %v835_v29 = vadd.f32 %v834_v52, %v772_v17  ;;  %v717_v17 = vsub.f32 %v2083_v10, %v2240_v51  ;;  %v780_v54 = vmul.f32 %v716_v25, %v716_v25 }
 0x195   : > { %v836_v49 = vadd.f32 %v835_v29, %v773_v53  ;;  %v718_v29 = vsub.f32 %v2086_v12, %v2240_v51  ;;  %v781_v41 = vmul.f32 %v717_v17, %v717_v17 }
 0x197   : > { %v837_v57 = vadd.f32 %v836_v49, %v774_v56  ;;  %v719_v49 = vsub.f32 %v2089_v14, %v2240_v51  ;;  %v782_v60 = vmul.f32 %v718_v29, %v718_v29 }
 0x199   : > { %v838_v21 = vadd.f32 %v837_v57, %v775_v58  ;;  %v720_v57 = vsub.f32 %v2092_v16, %v2240_v51  ;;  %v783_v9 = vmul.f32 %v719_v49, %v719_v49 }
 0x19b   : > { %v839_v52 = vadd.f32 %v838_v21, %v776_v1  ;;  %v721_v21 = vsub.f32 %v2095_v18, %v2240_v51  ;;  %v784_v25 = vmul.f32 %v720_v57, %v720_v57 }
 0x19d   : > { %v840_v53 = vadd.f32 %v839_v52, %v777_v13  ;;  %v722_v52 = vsub.f32 %v2098_v20, %v2240_v51  ;;  %v785_v17 = vmul.f32 %v721_v21, %v721_v21 }
 0x19f   : > { %v841_v56 = vadd.f32 %v840_v53, %v778_v61  ;;  %v723_v53 = vsub.f32 %v2101_v22, %v2240_v51  ;;  %v786_v29 = vmul.f32 %v722_v52, %v722_v52 }
 0x1a1   : > { %v842_v58 = vadd.f32 %v841_v56, %v779_v33  ;;  %v724_v56 = vsub.f32 %v2104_v24, %v2240_v51  ;;  %v787_v49 = vmul.f32 %v723_v53, %v723_v53 }
 0x1a3   : > { %v843_v1 = vadd.f32 %v842_v58, %v780_v54  ;;  %v725_v58 = vsub.f32 %v2107_v26, %v2240_v51  ;;  %v788_v57 = vmul.f32 %v724_v56, %v724_v56 }
 0x1a5   : > { %v844_v13 = vadd.f32 %v843_v1, %v781_v41  ;;  %v726_v1 = vsub.f32 %v2110_v28, %v2240_v51  ;;  %v789_v21 = vmul.f32 %v725_v58, %v725_v58 }
 0x1a7   : > { %v845_v61 = vadd.f32 %v844_v13, %v782_v60  ;;  %v727_v13 = vsub.f32 %v2113_v30, %v2240_v51  ;;  %v790_v52 = vmul.f32 %v726_v1, %v726_v1 }
 0x1a9   : > { %v846_v33 = vadd.f32 %v845_v61, %v783_v9  ;;  %v728_v61 = vsub.f32 %v2116_v32, %v2240_v51  ;;  %v791_v53 = vmul.f32 %v727_v13, %v727_v13 }
 0x1ab   : > { %v847_v54 = vadd.f32 %v846_v33, %v784_v25  ;;  %v729_v33 = vsub.f32 %v2119_v34, %v2240_v51  ;;  %v792_v56 = vmul.f32 %v728_v61, %v728_v61 }
 0x1ad   : > { %v848_v41 = vadd.f32 %v847_v54, %v785_v17  ;;  %v730_v54 = vsub.f32 %v2122_v36, %v2240_v51  ;;  %v793_v58 = vmul.f32 %v729_v33, %v729_v33 }
 0x1af   : > { %v849_v60 = vadd.f32 %v848_v41, %v786_v29  ;;  %v731_v41 = vsub.f32 %v2125_v38, %v2240_v51  ;;  %v794_v1 = vmul.f32 %v730_v54, %v730_v54 }
 0x1b1   : > { %v850_v9 = vadd.f32 %v849_v60, %v787_v49  ;;  %v732_v60 = vsub.f32 %v2128_v40, %v2240_v51  ;;  %v795_v13 = vmul.f32 %v731_v41, %v731_v41 }
 0x1b3   : > { %v851_v25 = vadd.f32 %v850_v9, %v788_v57  ;;  %v733_v9 = vsub.f32 %v2131_v42, %v2240_v51  ;;  %v796_v61 = vmul.f32 %v732_v60, %v732_v60 }
 0x1b5   : > { %v852_v17 = vadd.f32 %v851_v25, %v789_v21  ;;  %v734_v25 = vsub.f32 %v2134_v44, %v2240_v51  ;;  %v797_v33 = vmul.f32 %v733_v9, %v733_v9 }
 0x1b7   : > { %v853_v29 = vadd.f32 %v852_v17, %v790_v52  ;;  %v735_v17 = vsub.f32 %v2137_v46, %v2240_v51  ;;  %v798_v54 = vmul.f32 %v734_v25, %v734_v25 }
 0x1b9   : > { %v854_v49 = vadd.f32 %v853_v29, %v791_v53  ;;  %v736_v29 = vsub.f32 %v2140_v48, %v2240_v51  ;;  %v799_v41 = vmul.f32 %v735_v17, %v735_v17 }
 0x1bb   : > { %v855_v57 = vadd.f32 %v854_v49, %v792_v56  ;;  %v737_v49 = vsub.f32 %v2143_v50, %v2240_v51  ;;  %v800_v60 = vmul.f32 %v736_v29, %v736_v29 }
 0x1bd   : > { %v856_v21 = vadd.f32 %v855_v57, %v793_v58  ;;  %v738_v57 = vsub.f32 %v2146_v55, %v2240_v51  ;;  %v801_v9 = vmul.f32 %v737_v49, %v737_v49 }
 0x1bf   : > { %v857_v52 = vadd.f32 %v856_v21, %v794_v1  ;;  %v739_v21 = vsub.f32 %v2149_v59, %v2240_v51  ;;  %v802_v25 = vmul.f32 %v738_v57, %v738_v57 }
 0x1c1   : > { %v858_v53 = vadd.f32 %v857_v52, %v795_v13  ;;  %v740_v52 = vsub.f32 %v2152_v63, %v2240_v51  ;;  %v803_v17 = vmul.f32 %v739_v21, %v739_v21 }
 0x1c3   : > { %v859_v56 = vadd.f32 %v858_v53, %v796_v61  ;;  %v741_v53 = vsub.f32 %v2155_v3, %v2240_v51  ;;  %v804_v29 = vmul.f32 %v740_v52, %v740_v52 }
 0x1c5   : > { %v860_v58 = vadd.f32 %v859_v56, %v797_v33  ;;  %v742_v56 = vsub.f32 %v2158_v7, %v2240_v51  ;;  %v805_v49 = vmul.f32 %v741_v53, %v741_v53 }
 0x1c7   : > { %v861_v1 = vadd.f32 %v860_v58, %v798_v54  ;;  %v743_v58 = vsub.f32 %v2161_v11, %v2240_v51  ;;  %v806_v57 = vmul.f32 %v742_v56, %v742_v56 }
 0x1c9   : > { %v862_v13 = vadd.f32 %v861_v1, %v799_v41  ;;  %v744_v1 = vsub.f32 %v2164_v15, %v2240_v51  ;;  %v807_v21 = vmul.f32 %v743_v58, %v743_v58 }
 0x1cb   : > { %v863_v61 = vadd.f32 %v862_v13, %v800_v60  ;;  %v745_v13 = vsub.f32 %v2167_v19, %v2240_v51  ;;  %v808_v52 = vmul.f32 %v744_v1, %v744_v1 }
 0x1cd   : > { %v864_v33 = vadd.f32 %v863_v61, %v801_v9  ;;  %v746_v61 = vsub.f32 %v2170_v23, %v2240_v51  ;;  %v809_v53 = vmul.f32 %v745_v13, %v745_v13 }
 0x1cf   : > { %v865_v54 = vadd.f32 %v864_v33, %v802_v25  ;;  %v747_v33 = vsub.f32 %v2173_v27, %v2240_v51  ;;  %v810_v56 = vmul.f32 %v746_v61, %v746_v61 }
 0x1d1   : > { %v866_v41 = vadd.f32 %v865_v54, %v803_v17  ;;  %v748_v54 = vsub.f32 %v2176_v31, %v2240_v51  ;;  %v811_v58 = vmul.f32 %v747_v33, %v747_v33 }
 0x1d3   : > { %v867_v60 = vadd.f32 %v866_v41, %v804_v29  ;;  %v749_v41 = vsub.f32 %v2179_v35, %v2240_v51  ;;  %v812_v1 = vmul.f32 %v748_v54, %v748_v54 }
 0x1d5   : > { %v868_v9 = vadd.f32 %v867_v60, %v805_v49  ;;  %v750_v60 = vsub.f32 %v2182_v39, %v2240_v51  ;;  %v813_v13 = vmul.f32 %v749_v41, %v749_v41 }
 0x1d7   : > { %v869_v25 = vadd.f32 %v868_v9, %v806_v57  ;;  %v751_v9 = vsub.f32 %v2185_v43, %v2240_v51  ;;  %v814_v61 = vmul.f32 %v750_v60, %v750_v60 }
 0x1d9   : > { %v870_v17 = vadd.f32 %v869_v25, %v807_v21  ;;  %v752_v25 = vsub.f32 %v2188_v47, %v2240_v51  ;;  %v815_v33 = vmul.f32 %v751_v9, %v751_v9 }
 0x1db   : > { %v871_v29 = vadd.f32 %v870_v17, %v808_v52  ;;  %v2742_v17 = vld [vmem:[#allocation13_spill] sm:$0xff]  ;;  %v816_v54 = vmul.f32 %v752_v25, %v752_v25 }
 0x1dc   : > { %v753_v35 = vsub.f32 %v2742_v17, %v2240_v51 }
 0x1dd   : > { %v872_v49 = vadd.f32 %v871_v29, %v809_v53  ;;  %v2743_v29 = vld [vmem:[#allocation14_spill] sm:$0xff] }
 0x1de   : > { %v754_v39 = vsub.f32 %v2743_v29, %v2240_v51  ;;  %v817_v41 = vmul.f32 %v753_v35, %v753_v35 }
 0x1df   : > { %v873_v57 = vadd.f32 %v872_v49, %v810_v56  ;;  %v2744_v49 = vld [vmem:[#allocation15_spill] sm:$0xff] }
 0x1e0   : > { %v755_v43 = vsub.f32 %v2744_v49, %v2240_v51  ;;  %v818_v60 = vmul.f32 %v754_v39, %v754_v39 }
 0x1e1   : > { %v874_v21 = vadd.f32 %v873_v57, %v811_v58  ;;  %v2745_v57 = vld [vmem:[#allocation16_spill] sm:$0xff] }
 0x1e2   : > { %v756_v47 = vsub.f32 %v2745_v57, %v2240_v51  ;;  %v819_v9 = vmul.f32 %v755_v43, %v755_v43 }
 0x1e3   : > { %v875_v52 = vadd.f32 %v874_v21, %v812_v1  ;;  %v2746_v21 = vld [vmem:[#allocation17_spill] sm:$0xff] }
 0x1e4   : > { %v757_v17 = vsub.f32 %v2746_v21, %v2240_v51  ;;  %v820_v25 = vmul.f32 %v756_v47, %v756_v47 }
 0x1e5   : > { %v876_v53 = vadd.f32 %v875_v52, %v813_v13  ;;  %v2747_v52 = vld [vmem:[#allocation18_spill] sm:$0xff] }
 0x1e6   : > { %v758_v29 = vsub.f32 %v2747_v52, %v2240_v51  ;;  %v821_v35 = vmul.f32 %v757_v17, %v757_v17 }
 0x1e7   : > { %v877_v56 = vadd.f32 %v876_v53, %v814_v61  ;;  %v2748_v53 = vld [vmem:[#allocation19_spill] sm:$0xff] }
 0x1e8   : > { %v759_v49 = vsub.f32 %v2748_v53, %v2240_v51  ;;  %v822_v39 = vmul.f32 %v758_v29, %v758_v29 }
 0x1e9   : > { %v878_v58 = vadd.f32 %v877_v56, %v815_v33  ;;  %v2749_v56 = vld [vmem:[#allocation20_spill] sm:$0xff] }
 0x1ea   : > { %v760_v57 = vsub.f32 %v2749_v56, %v2240_v51  ;;  %v823_v43 = vmul.f32 %v759_v49, %v759_v49 }
 0x1eb   : > { %v879_v1 = vadd.f32 %v878_v58, %v816_v54  ;;  %v2750_v58 = vld [vmem:[#allocation21_spill] sm:$0xff] }
 0x1ec   : > { %v761_v21 = vsub.f32 %v2750_v58, %v2240_v51  ;;  %v824_v47 = vmul.f32 %v760_v57, %v760_v57 }
 0x1ed   : > { %v880_v13 = vadd.f32 %v879_v1, %v817_v41  ;;  %v2751_v1 = vld [vmem:[#allocation22_spill] sm:$0xff] }
 0x1ee   : > { %v762_v52 = vsub.f32 %v2751_v1, %v2240_v51  ;;  %v825_v17 = vmul.f32 %v761_v21, %v761_v21 }
 0x1ef   : > { %v881_v61 = vadd.f32 %v880_v13, %v818_v60  ;;  %v2752_v13 = vld [vmem:[#allocation23_spill] sm:$0xff] }
 0x1f0   : > { %v763_v53 = vsub.f32 %v2752_v13, %v2240_v51  ;;  %v826_v29 = vmul.f32 %v762_v52, %v762_v52 }
 0x1f1   : > { %v882_v33 = vadd.f32 %v881_v61, %v819_v9  ;;  %v2753_v61 = vld [vmem:[#allocation24_spill] sm:$0xff] }
 0x1f2   : > { %v764_v56 = vsub.f32 %v2753_v61, %v2240_v51  ;;  %v827_v49 = vmul.f32 %v763_v53, %v763_v53 }
 0x1f3   : > { %v883_v54 = vadd.f32 %v882_v33, %v820_v25  ;;  %v765_v33 = vsub.f32 %v2228_v5, %v2240_v51 }
 0x1f4   : > { %v828_v57 = vmul.f32 %v764_v56, %v764_v56 }
 0x1f5   : > { %v884_v41 = vadd.f32 %v883_v54, %v821_v35  ;;  %v766_v54 = vsub.f32 %v2231_v37, %v2240_v51  ;;  %v829_v21 = vmul.f32 %v765_v33, %v765_v33 }
 0x1f7   : > { %v885_v60 = vadd.f32 %v884_v41, %v822_v39  ;;  %v767_v41 = vsub.f32 %v2234_v45, %v2240_v51  ;;  %v830_v52 = vmul.f32 %v766_v54, %v766_v54  ;;  %v903_v54 = vld [vmem:[%s2674_s2] sm:$0x1] }
 0x1f9   : > { %v886_v9 = vadd.f32 %v885_v60, %v823_v43  ;;  %v2754_v60 = vld [vmem:[#allocation28_spill] sm:$0xff] }
 0x1fa   : > { %v768_v61 = vsub.f32 %v2754_v60, %v2240_v51 }
 0x1fb   : > { %v887_v25 = vadd.f32 %v886_v9, %v824_v47  ;;  %v831_v9 = vmul.f32 %v767_v41, %v767_v41 }
 0x1fc   : > { %v832_v5 = vmul.f32 %v768_v61, %v768_v61 }
 0x1fd   : > { %v888_v35 = vadd.f32 %v887_v25, %v825_v17 }
 0x1ff   : > { %v889_v39 = vadd.f32 %v888_v35, %v826_v29 }
 0x201   : > { %v890_v43 = vadd.f32 %v889_v39, %v827_v49  ;;  %v911_v49 = vlaneseq }
 0x203   : > { %v891_v47 = vadd.f32 %v890_v43, %v828_v57  ;;  %v912_v39 = vshrl.u32 %v911_v49, 7 }
 0x205   : > { %v892_v13 = vadd.f32 %v891_v47, %v829_v21  ;;  %v913_v57 = vsub.s32 0, %v912_v39  ;;  %v2756_v21 = vld [vmem:[#allocation4_spill] sm:$0xff] }
 0x207   : > { %v893_v53 = vadd.f32 %v892_v13, %v830_v52  ;;  %v2757_v52 = vld [vmem:[#allocation5_spill] sm:$0xff] }
 0x209   : > { %v894_v17 = vadd.f32 %v893_v53, %v831_v9  ;;  %v2758_v9 = vld [vmem:[#allocation6_spill] sm:$0xff] }
 0x20b   : > { %v895_v25 = vadd.f32 %v894_v17, %v832_v5  ;;  %v907_v5 = vld [vmem:[%s2675_s3] sm:$0x1] }
 0x20c   : > { %v2759_v17 = vld [vmem:[#allocation7_spill] sm:$0xff] }
 0x20d   : > { %v896_v1 = vrot.slane %v895_v25, 4 }
 0x20f   : > { %v897_v37 = vadd.f32 %v896_v1, %v895_v25 }
 0x211   : > { %v898_v56 = vrot.slane %v897_v37, 2 }
 0x213   : > { %v899_v29 = vadd.f32 %v898_v56, %v897_v37  ;;  %v2760_v56 = vld [vmem:[#allocation8_spill] sm:$0xff] }
 0x215   : > { %v900_v35 = vrot.slane %v899_v29, 1 }
 0x217   : > { %v901_v58 = vadd.f32 %v900_v35, %v899_v29 }
 0x219   : > { %v902_v45 = vmul.f32 0.001953125, %v901_v58 }
 0x21b   : > { %v904_v33 = vadd.f32 1e-05, %v902_v45  ;;  %v2755_v45 = vld [vmem:[#allocation3_spill] sm:$0xff] }
 0x21d   : > { %1920 = vrsqrt.f32 %v904_v33 }
 0x22a   : > { %v1921_v61 = vpop.eup %1920 }
 0x22b   : > { %v906_v13 = vmul.f32 %v1921_v61, %v903_v54 }
 0x22d   : > { %v908_v37 = vmul.f32 %v906_v13, %v2240_v51  ;;  %v2377_v1 = vrot.slane %v906_v13, %v913_v57 }
 0x22f   : > { %v909_v58 = vsub.f32 %v907_v5, %v908_v37  ;;  %v916_v41 = vmul.f32 %v2377_v1, %v2755_v45  ;;  %v917_v43 = vmul.f32 %v2377_v1, %v2756_v21  ;;  %v918_v47 = vmul.f32 %v2377_v1, %v2757_v52 }
 0x230   : > { %v919_v53 = vmul.f32 %v2377_v1, %v2758_v9  ;;  %v920_v25 = vmul.f32 %v2377_v1, %v2759_v17  ;;  %v921_v51 = vmul.f32 %v2377_v1, %v2760_v56  ;;  %v922_v29 = vmul.f32 %v2377_v1, %v2065_v62 }
 0x231   : > { %v2393_v35 = vrot.slane %v909_v58, %v913_v57  ;;  %v923_v33 = vmul.f32 %v2377_v1, %v2068_v0  ;;  %v924_v49 = vmul.f32 %v2377_v1, %v2071_v2  ;;  %v925_v39 = vmul.f32 %v2377_v1, %v2074_v4 }
 0x232   : > { %v926_v54 = vmul.f32 %v2377_v1, %v2077_v6  ;;  %v927_v61 = vmul.f32 %v2377_v1, %v2080_v8  ;;  %v928_v62 = vmul.f32 %v2377_v1, %v2083_v10  ;;  %v929_v57 = vmul.f32 %v2377_v1, %v2086_v12 }
 0x233   : > { %v986_v0 = vadd.f32 %v2393_v35, %v916_v41  ;;  %v987_v13 = vadd.f32 %v2393_v35, %v917_v43  ;;  %v988_v2 = vadd.f32 %v2393_v35, %v918_v47  ;;  %v989_v4 = vadd.f32 %v2393_v35, %v919_v53 }
 0x234   : > { %v990_v5 = vadd.f32 %v2393_v35, %v920_v25  ;;  %v991_v6 = vadd.f32 %v2393_v35, %v921_v51  ;;  %v992_v8 = vadd.f32 %v2393_v35, %v922_v29  ;;  %v993_v37 = vadd.f32 %v2393_v35, %v923_v33 }
 0x235   : > { %v1050_v10 = vmax.f32 %v986_v0, 0.0  ;;  %v1051_v58 = vmax.f32 %v987_v13, 0.0  ;;  %v1052_v45 = vmax.f32 %v988_v2, 0.0  ;;  %v1053_v12 = vmax.f32 %v989_v4, 0.0 }
 0x236   : > { %v1054_v21 = vmax.f32 %v990_v5, 0.0  ;;  %v1055_v41 = vmax.f32 %v991_v6, 0.0  ;;  %v1056_v52 = vmax.f32 %v992_v8, 0.0  ;;  %v1057_v43 = vmax.f32 %v993_v37, 0.0 }
 0x237   : > { %v1640_v9 = vpack.c.bf16 %v1051_v58, %v1050_v10  ;;  %v1645_v47 = vpack.c.bf16 %v1053_v12, %v1052_v45  ;;  %v994_v53 = vadd.f32 %v2393_v35, %v924_v49  ;;  %v995_v17 = vadd.f32 %v2393_v35, %v925_v39 }
 0x238   : > { %v1650_v25 = vpack.c.bf16 %v1055_v41, %v1054_v21  ;;  %v1655_v56 = vpack.c.bf16 %v1057_v43, %v1056_v52  ;;  %v996_v51 = vadd.f32 %v2393_v35, %v926_v54  ;;  %v997_v29 = vadd.f32 %v2393_v35, %v927_v61 }
 0x239   : > { %1641 = vst [vmem:[%s2676_s4] sm:$0xff] %v1640_v9   ;;  %1797 = vst [vmem:[%s2676_s4 + $0x8] sm:$0xff] %v1645_v47   ;;  %v1058_v33 = vmax.f32 %v994_v53, 0.0  ;;  %v1059_v0 = vmax.f32 %v995_v17, 0.0  ;;  %v998_v49 = vadd.f32 %v2393_v35, %v928_v62  ;;  %v999_v39 = vadd.f32 %v2393_v35, %v929_v57 }
 0x23a   : > { %1798 = vst [vmem:[%s2676_s4 + $0x10] sm:$0xff] %v1650_v25   ;;  %1799 = vst [vmem:[%s2676_s4 + $0x18] sm:$0xff] %v1655_v56   ;;  %v1060_v54 = vmax.f32 %v996_v51, 0.0  ;;  %v1061_v61 = vmax.f32 %v997_v29, 0.0  ;;  %v930_v13 = vmul.f32 %v2377_v1, %v2089_v14  ;;  %v931_v2 = vmul.f32 %v2377_v1, %v2092_v16 }
 0x23b   : > { %v1660_v4 = vpack.c.bf16 %v1059_v0, %v1058_v33  ;;  %v1062_v62 = vmax.f32 %v998_v49, 0.0  ;;  %v1063_v5 = vmax.f32 %v999_v39, 0.0  ;;  %v932_v57 = vmul.f32 %v2377_v1, %v2095_v18 }
 0x23c   : > { %v1665_v6 = vpack.c.bf16 %v1061_v61, %v1060_v54  ;;  %v1000_v8 = vadd.f32 %v2393_v35, %v930_v13  ;;  %v1001_v37 = vadd.f32 %v2393_v35, %v931_v2  ;;  %v933_v10 = vmul.f32 %v2377_v1, %v2098_v20 }
 0x23d   : > { %1800 = vst [vmem:[%s2676_s4 + $0x20] sm:$0xff] %v1660_v4   ;;  %v1670_v14 = vpack.c.bf16 %v1063_v5, %v1062_v62  ;;  %v1002_v16 = vadd.f32 %v2393_v35, %v932_v57  ;;  %v934_v58 = vmul.f32 %v2377_v1, %v2101_v22  ;;  %v935_v18 = vmul.f32 %v2377_v1, %v2104_v24 }
 0x23e   : > { %1801 = vst [vmem:[%s2676_s4 + $0x28] sm:$0xff] %v1665_v6   ;;  %v1064_v45 = vmax.f32 %v1000_v8, 0.0  ;;  %v1065_v12 = vmax.f32 %v1001_v37, 0.0  ;;  %v1003_v20 = vadd.f32 %v2393_v35, %v933_v10  ;;  %v936_v21 = vmul.f32 %v2377_v1, %v2107_v26 }
 0x23f   : > { %1802 = vst [vmem:[%s2676_s4 + $0x30] sm:$0xff] %v1670_v14   ;;  %v1066_v41 = vmax.f32 %v1002_v16, 0.0  ;;  %v1004_v22 = vadd.f32 %v2393_v35, %v934_v58  ;;  %v1005_v24 = vadd.f32 %v2393_v35, %v935_v18  ;;  %v937_v52 = vmul.f32 %v2377_v1, %v2110_v28 }
 0x240   : > { %v1675_v43 = vpack.c.bf16 %v1065_v12, %v1064_v45  ;;  %v1067_v9 = vmax.f32 %v1003_v20, 0.0  ;;  %v1006_v47 = vadd.f32 %v2393_v35, %v936_v21  ;;  %v938_v53 = vmul.f32 %v2377_v1, %v2113_v30 }
 0x241   : > { %v1068_v26 = vmax.f32 %v1004_v22, 0.0  ;;  %v1069_v17 = vmax.f32 %v1005_v24, 0.0  ;;  %v1007_v25 = vadd.f32 %v2393_v35, %v937_v52  ;;  %v939_v56 = vmul.f32 %v2377_v1, %v2116_v32 }
 0x242   : > { %1803 = vst [vmem:[%s2676_s4 + $0x38] sm:$0xff] %v1675_v43   ;;  %v1680_v51 = vpack.c.bf16 %v1067_v9, %v1066_v41  ;;  %v1070_v28 = vmax.f32 %v1006_v47, 0.0  ;;  %v1008_v29 = vadd.f32 %v2393_v35, %v938_v53  ;;  %v940_v33 = vmul.f32 %v2377_v1, %v2119_v34 }
 0x243   : > { %v1685_v0 = vpack.c.bf16 %v1069_v17, %v1068_v26  ;;  %v1071_v30 = vmax.f32 %v1007_v25, 0.0  ;;  %v1009_v49 = vadd.f32 %v2393_v35, %v939_v56  ;;  %v941_v39 = vmul.f32 %v2377_v1, %v2122_v36 }
 0x244   : > { %1804 = vst [vmem:[%s2676_s4 + $0x40] sm:$0xff] %v1680_v51   ;;  %v1072_v32 = vmax.f32 %v1008_v29, 0.0  ;;  %v1010_v54 = vadd.f32 %v2393_v35, %v940_v33  ;;  %v942_v61 = vmul.f32 %v2377_v1, %v2125_v38  ;;  %v943_v34 = vmul.f32 %v2377_v1, %v2128_v40 }
 0x245   : > { %1805 = vst [vmem:[%s2676_s4 + $0x48] sm:$0xff] %v1685_v0   ;;  %v1690_v13 = vpack.c.bf16 %v1071_v30, %v1070_v28  ;;  %v1073_v2 = vmax.f32 %v1009_v49, 0.0  ;;  %v1011_v36 = vadd.f32 %v2393_v35, %v941_v39  ;;  %v944_v4 = vmul.f32 %v2377_v1, %v2131_v42 }
 0x246   : > { %v1074_v62 = vmax.f32 %v1010_v54, 0.0  ;;  %v1012_v5 = vadd.f32 %v2393_v35, %v942_v61  ;;  %v1013_v57 = vadd.f32 %v2393_v35, %v943_v34  ;;  %v945_v38 = vmul.f32 %v2377_v1, %v2134_v44 }
 0x247   : > { %1806 = vst [vmem:[%s2676_s4 + $0x50] sm:$0xff] %v1690_v13   ;;  %v1695_v40 = vpack.c.bf16 %v1073_v2, %v1072_v32  ;;  %v1075_v6 = vmax.f32 %v1011_v36, 0.0  ;;  %v1014_v8 = vadd.f32 %v2393_v35, %v944_v4  ;;  %v946_v37 = vmul.f32 %v2377_v1, %v2137_v46  ;;  %v2761_v13 = vld [vmem:[#allocation9_spill] sm:$0xff] }
 0x248   : > { %v1076_v42 = vmax.f32 %v1012_v5, 0.0  ;;  %v1077_v10 = vmax.f32 %v1013_v57, 0.0  ;;  %v1015_v14 = vadd.f32 %v2393_v35, %v945_v38  ;;  %v947_v16 = vmul.f32 %v2377_v1, %v2140_v48 }
 0x249   : > { %1807 = vst [vmem:[%s2676_s4 + $0x58] sm:$0xff] %v1695_v40   ;;  %v1700_v44 = vpack.c.bf16 %v1075_v6, %v1074_v62  ;;  %v1078_v58 = vmax.f32 %v1014_v8, 0.0  ;;  %v1016_v18 = vadd.f32 %v2393_v35, %v946_v37  ;;  %v948_v45 = vmul.f32 %v2377_v1, %v2143_v50  ;;  %v2763_v40 = vld [vmem:[#allocation11_spill] sm:$0xff] }
 0x24a   : > { %v1705_v12 = vpack.c.bf16 %v1077_v10, %v1076_v42  ;;  %v1079_v46 = vmax.f32 %v1015_v14, 0.0  ;;  %v1017_v20 = vadd.f32 %v2393_v35, %v947_v16  ;;  %v949_v21 = vmul.f32 %v2377_v1, %v2146_v55  ;;  %v2764_v10 = vld [vmem:[#allocation12_spill] sm:$0xff] }
 0x24b   : > { %1808 = vst [vmem:[%s2676_s4 + $0x60] sm:$0xff] %v1700_v44   ;;  %v1080_v48 = vmax.f32 %v1016_v18, 0.0  ;;  %v1018_v41 = vadd.f32 %v2393_v35, %v948_v45  ;;  %v950_v22 = vmul.f32 %v2377_v1, %v2149_v59  ;;  %v951_v50 = vmul.f32 %v2377_v1, %v2152_v63  ;;  %v2765_v18 = vld [vmem:[#allocation13_spill] sm:$0xff] }
 0x24c   : > { %1809 = vst [vmem:[%s2676_s4 + $0x68] sm:$0xff] %v1705_v12   ;;  %v1710_v24 = vpack.c.bf16 %v1079_v46, %v1078_v58  ;;  %v1081_v52 = vmax.f32 %v1017_v20, 0.0  ;;  %v1019_v55 = vadd.f32 %v2393_v35, %v949_v21  ;;  %v952_v43 = vmul.f32 %v2377_v1, %v2155_v3  ;;  %v2766_v21 = vld [vmem:[#allocation14_spill] sm:$0xff] }
 0x24d   : > { %v1082_v9 = vmax.f32 %v1018_v41, 0.0  ;;  %v1020_v47 = vadd.f32 %v2393_v35, %v950_v22  ;;  %v1021_v53 = vadd.f32 %v2393_v35, %v951_v50  ;;  %v953_v59 = vmul.f32 %v2377_v1, %v2158_v7  ;;  %v2767_v50 = vld [vmem:[#allocation15_spill] sm:$0xff] }
 0x24e   : > { %1810 = vst [vmem:[%s2676_s4 + $0x70] sm:$0xff] %v1710_v24   ;;  %v1715_v63 = vpack.c.bf16 %v1081_v52, %v1080_v48  ;;  %v1083_v26 = vmax.f32 %v1019_v55, 0.0  ;;  %v1022_v17 = vadd.f32 %v2393_v35, %v952_v43  ;;  %v954_v25 = vmul.f32 %v2377_v1, %v2161_v11  ;;  %v2768_v52 = vld [vmem:[#allocation16_spill] sm:$0xff] }
 0x24f   : > { %v1084_v3 = vmax.f32 %v1020_v47, 0.0  ;;  %v1085_v56 = vmax.f32 %v1021_v53, 0.0  ;;  %v1023_v51 = vadd.f32 %v2393_v35, %v953_v59  ;;  %v955_v28 = vmul.f32 %v2377_v1, %v2164_v15  ;;  %v2769_v53 = vld [vmem:[#allocation17_spill] sm:$0xff] }
 0x250   : > { %1811 = vst [vmem:[%s2676_s4 + $0x78] sm:$0xff] %v1715_v63   ;;  %v1720_v7 = vpack.c.bf16 %v1083_v26, %v1082_v9  ;;  %v1086_v29 = vmax.f32 %v1022_v17, 0.0  ;;  %v1024_v33 = vadd.f32 %v2393_v35, %v954_v25  ;;  %v956_v0 = vmul.f32 %v2377_v1, %v2167_v19  ;;  %v2770_v25 = vld [vmem:[#allocation18_spill] sm:$0xff] }
 0x251   : > { %v1725_v30 = vpack.c.bf16 %v1085_v56, %v1084_v3  ;;  %v1087_v11 = vmax.f32 %v1023_v51, 0.0  ;;  %v1025_v49 = vadd.f32 %v2393_v35, %v955_v28  ;;  %v957_v39 = vmul.f32 %v2377_v1, %v2170_v23 }
 0x252   : > { %1812 = vst [vmem:[%s2676_s4 + $0x80] sm:$0xff] %v1720_v7   ;;  %v1088_v15 = vmax.f32 %v1024_v33, 0.0  ;;  %v1026_v32 = vadd.f32 %v2393_v35, %v956_v0  ;;  %v958_v54 = vmul.f32 %v2377_v1, %v2173_v27  ;;  %v959_v19 = vmul.f32 %v2377_v1, %v2176_v31  ;;  %v2762_v27 = vld [vmem:[#allocation10_spill] sm:$0xff]  ;;  %v2771_v7 = vld [vmem:[#allocation19_spill] sm:$0xff] }
 0x253   : > { %1813 = vst [vmem:[%s2676_s4 + $0x88] sm:$0xff] %v1725_v30   ;;  %v1730_v61 = vpack.c.bf16 %v1087_v11, %v1086_v29  ;;  %v1089_v34 = vmax.f32 %v1025_v49, 0.0  ;;  %v1027_v23 = vadd.f32 %v2393_v35, %v957_v39  ;;  %v960_v2 = vmul.f32 %v2377_v1, %v2761_v13  ;;  %v2772_v11 = vld [vmem:[#allocation20_spill] sm:$0xff]  ;;  %v2774_v13 = vld [vmem:[#allocation22_spill] sm:$0xff] }
 0x254   : > { %v1090_v36 = vmax.f32 %v1026_v32, 0.0  ;;  %v1028_v4 = vadd.f32 %v2393_v35, %v958_v54  ;;  %v1029_v62 = vadd.f32 %v2393_v35, %v959_v19  ;;  %v961_v5 = vmul.f32 %v2377_v1, %v2762_v27  ;;  %v2773_v54 = vld [vmem:[#allocation21_spill] sm:$0xff] }
 0x255   : > { %1814 = vst [vmem:[%s2676_s4 + $0x90] sm:$0xff] %v1730_v61   ;;  %v1735_v31 = vpack.c.bf16 %v1089_v34, %v1088_v15  ;;  %v1091_v57 = vmax.f32 %v1027_v23, 0.0  ;;  %v1030_v38 = vadd.f32 %v2393_v35, %v960_v2  ;;  %v962_v6 = vmul.f32 %v2377_v1, %v2763_v40 }
 0x256   : > { %v1092_v8 = vmax.f32 %v1028_v4, 0.0  ;;  %v1093_v37 = vmax.f32 %v1029_v62, 0.0  ;;  %v1031_v42 = vadd.f32 %v2393_v35, %v961_v5  ;;  %v963_v14 = vmul.f32 %v2377_v1, %v2764_v10  ;;  %v2775_v62 = vld [vmem:[#allocation23_spill] sm:$0xff]  ;;  %v2776_v5 = vld [vmem:[#allocation24_spill] sm:$0xff] }
 0x257   : > { %1815 = vst [vmem:[%s2676_s4 + $0x98] sm:$0xff] %v1735_v31   ;;  %v1740_v16 = vpack.c.bf16 %v1091_v57, %v1090_v36  ;;  %v1094_v44 = vmax.f32 %v1030_v38, 0.0  ;;  %v1032_v58 = vadd.f32 %v2393_v35, %v962_v6  ;;  %v964_v45 = vmul.f32 %v2377_v1, %v2765_v18  ;;  %v2777_v6 = vld [vmem:[#allocation25_spill] sm:$0xff] }
 0x258   : > { %v1745_v12 = vpack.c.bf16 %v1093_v37, %v1092_v8  ;;  %v1095_v46 = vmax.f32 %v1031_v42, 0.0  ;;  %v1033_v20 = vadd.f32 %v2393_v35, %v963_v14  ;;  %v965_v48 = vmul.f32 %v2377_v1, %v2766_v21  ;;  %v2778_v14 = vld [vmem:[#allocation26_spill] sm:$0xff] }
 0x259   : > { %1816 = vst [vmem:[%s2676_s4 + $0xa0] sm:$0xff] %v1740_v16   ;;  %v1096_v41 = vmax.f32 %v1032_v58, 0.0  ;;  %v1034_v22 = vadd.f32 %v2393_v35, %v964_v45  ;;  %v966_v24 = vmul.f32 %v2377_v1, %v2767_v50  ;;  %v967_v55 = vmul.f32 %v2377_v1, %v2768_v52  ;;  %v2779_v45 = vld [vmem:[#allocation27_spill] sm:$0xff] }
 0x25a   : > { %1817 = vst [vmem:[%s2676_s4 + $0xa8] sm:$0xff] %v1745_v12   ;;  %v1750_v43 = vpack.c.bf16 %v1095_v46, %v1094_v44  ;;  %v1097_v9 = vmax.f32 %v1033_v20, 0.0  ;;  %v1035_v47 = vadd.f32 %v2393_v35, %v965_v48  ;;  %v968_v59 = vmul.f32 %v2377_v1, %v2769_v53 }
 0x25b   : > { %v1098_v63 = vmax.f32 %v1034_v22, 0.0  ;;  %v1036_v26 = vadd.f32 %v2393_v35, %v966_v24  ;;  %v1037_v17 = vadd.f32 %v2393_v35, %v967_v55  ;;  %v969_v3 = vmul.f32 %v2377_v1, %v2770_v25 }
 0x25c   : > { %1818 = vst [vmem:[%s2676_s4 + $0xb0] sm:$0xff] %v1750_v43   ;;  %v1755_v56 = vpack.c.bf16 %v1097_v9, %v1096_v41  ;;  %v1099_v51 = vmax.f32 %v1035_v47, 0.0  ;;  %v1038_v28 = vadd.f32 %v2393_v35, %v968_v59  ;;  %v970_v29 = vmul.f32 %v2377_v1, %v2771_v7 }
 0x25d   : > { %v1100_v33 = vmax.f32 %v1036_v26, 0.0  ;;  %v1101_v0 = vmax.f32 %v1037_v17, 0.0  ;;  %v1039_v30 = vadd.f32 %v2393_v35, %v969_v3  ;;  %v971_v49 = vmul.f32 %v2377_v1, %v2772_v11 }
 0x25e   : > { %1819 = vst [vmem:[%s2676_s4 + $0xb8] sm:$0xff] %v1755_v56   ;;  %v1760_v39 = vpack.c.bf16 %v1099_v51, %v1098_v63  ;;  %v1102_v15 = vmax.f32 %v1038_v28, 0.0  ;;  %v1040_v32 = vadd.f32 %v2393_v35, %v970_v29  ;;  %v972_v19 = vmul.f32 %v2377_v1, %v2773_v54 }
 0x25f   : > { %v1765_v61 = vpack.c.bf16 %v1101_v0, %v1100_v33  ;;  %v1103_v34 = vmax.f32 %v1039_v30, 0.0  ;;  %v1041_v23 = vadd.f32 %v2393_v35, %v971_v49  ;;  %v973_v2 = vmul.f32 %v2377_v1, %v2774_v13 }
 0x260   : > { %1820 = vst [vmem:[%s2676_s4 + $0xc0] sm:$0xff] %v1760_v39   ;;  %v1104_v36 = vmax.f32 %v1040_v32, 0.0  ;;  %v1042_v4 = vadd.f32 %v2393_v35, %v972_v19  ;;  %v974_v27 = vmul.f32 %v2377_v1, %v2775_v62  ;;  %v975_v31 = vmul.f32 %v2377_v1, %v2776_v5 }
 0x261   : > { %1821 = vst [vmem:[%s2676_s4 + $0xc8] sm:$0xff] %v1765_v61   ;;  %v1770_v57 = vpack.c.bf16 %v1103_v34, %v1102_v15  ;;  %v1105_v38 = vmax.f32 %v1041_v23, 0.0  ;;  %v1043_v40 = vadd.f32 %v2393_v35, %v973_v2  ;;  %v976_v8 = vmul.f32 %v2377_v1, %v2777_v6 }
 0x262   : > { %v1106_v37 = vmax.f32 %v1042_v4, 0.0  ;;  %v1044_v42 = vadd.f32 %v2393_v35, %v974_v27  ;;  %v1045_v10 = vadd.f32 %v2393_v35, %v975_v31  ;;  %v977_v16 = vmul.f32 %v2377_v1, %v2778_v14 }
 0x263   : > { %1822 = vst [vmem:[%s2676_s4 + $0xd0] sm:$0xff] %v1770_v57   ;;  %v1775_v44 = vpack.c.bf16 %v1105_v38, %v1104_v36  ;;  %v1107_v58 = vmax.f32 %v1043_v40, 0.0  ;;  %v1046_v18 = vadd.f32 %v2393_v35, %v976_v8  ;;  %v978_v12 = vmul.f32 %v2377_v1, %v2779_v45 }
 0x264   : > { %v1108_v46 = vmax.f32 %v1044_v42, 0.0  ;;  %v1109_v20 = vmax.f32 %v1045_v10, 0.0  ;;  %v1047_v21 = vadd.f32 %v2393_v35, %v977_v16  ;;  %v979_v48 = vmul.f32 %v2377_v1, %v2754_v60 }
 0x265   : > { %1823 = vst [vmem:[%s2676_s4 + $0xd8] sm:$0xff] %v1775_v44   ;;  %v1780_v41 = vpack.c.bf16 %v1107_v58, %v1106_v37  ;;  %v1110_v22 = vmax.f32 %v1046_v18, 0.0  ;;  %v1048_v50 = vadd.f32 %v2393_v35, %v978_v12 }
 0x266   : > { %v1785_v24 = vpack.c.bf16 %v1109_v20, %v1108_v46  ;;  %v1111_v52 = vmax.f32 %v1047_v21, 0.0  ;;  %v1049_v55 = vadd.f32 %v2393_v35, %v979_v48 }
 0x267   : > { %1824 = vst [vmem:[%s2676_s4 + $0xe0] sm:$0xff] %v1780_v41   ;;  %v1112_v43 = vmax.f32 %v1048_v50, 0.0 }
 0x268   : > { %1825 = vst [vmem:[%s2676_s4 + $0xe8] sm:$0xff] %v1785_v24   ;;  %v1790_v60 = vpack.c.bf16 %v1111_v52, %v1110_v22  ;;  %v1113_v1 = vmax.f32 %v1049_v55, 0.0 }
 0x26a   : > { %1826 = vst [vmem:[%s2676_s4 + $0xf0] sm:$0xff] %v1790_v60   ;;  %v1795_v9 = vpack.c.bf16 %v1113_v1, %v1112_v43 }
 0x26c   : > { %1827 = vst [vmem:[%s2676_s4 + $0xf8] sm:$0xff] %v1795_v9  }
 0x26d PF: > { %s14_s15 = sadd.s32 1, %s1928_s15  }
 0x26e   : > { %p11_p5 = scmp.ge.s32.totalorder %s14_s15, 4  }
 0x270   :  { %13 = sbr.rel (!%p11_p5) target bundleno = 1 (0x1), region = 67 }

// kernel: unet_forward.7
= control target key start
LH: loop header
LB: loop body
LE: loop exit
PB: predicated region body
PF: predicated region fallthrough
CT: control target
= control target key end

     0   :  { %s1462_s15 = smov 0   ;;  %s1740_s0 = inlined_call_operand.vmem [shape: bf16[128,576], index: 0, kind: input, shape index: {}]   ;;  %s1741_s1 = inlined_call_operand.vmem [shape: bf16[576,128], index: 1, kind: input, shape index: {}]   ;;  %s1742_s2 = inlined_call_operand.vmem [shape: f32[1,128], index: 2, kind: input, shape index: {}]   ;;  %s1743_s3 = inlined_call_operand.vmem [shape: f32[1,128], index: 3, kind: input, shape index: {}]   ;;  %s1744_s4 = inlined_call_operand.vmem [shape: bf16[128,128], index: 4, kind: output, shape index: {}]  }
   0x1 LB: > { %s1468_s16 = sadd.s32 4294967295, %s1435_s15   ;;  %p1096_p0 = scmp.ge.s32.totalorder %s1435_s15, 1  ;;  %s1435_s15 = sphi %s1462_s15, %s14_s15  }
   0x2   : > { %p159_p1 = scmp.lt.s32.totalorder %s1435_s15, 3 }
   0x4   : > { %p160_p2 = pnand %p1096_p0, %p159_p1 }
   0x5   : > { %s1097_s23 = sshll.u32 (!%p160_p2), %s1468_s16, 3  ;;  %p1160_p4 = scmp.ne.s32.totalorder (!%p160_p2), %s1468_s16, 1 }
   0x6   : > { %163 = sbr.rel (%p160_p2) target bundleno = 419 (0x1a3), region = 36  ;;  %p182_p3 = scmp.lt.s32.totalorder (!%p160_p2), %s1097_s23, 15 }
   0xb   : > { %v1363_v0 = vld [vmem:[%s1741_s1 + $0x78] sm:$0xff]   ;;  %v1367_v4 = vld [vmem:[%s1741_s1 + $0x70] sm:$0xff]   ;;  %v1371_v8 = vld [vmem:[%s1741_s1 + $0x68] sm:$0xff]   ;;  %s1746_s23 = smov (!%p182_p3, %s1097_s23), 15  ;;  %vm601_vm0 = vcmask 523264  }
   0xc   : > { %v1364_v1 = vld [vmem:[%s1741_s1 + $0xf8] sm:$0xff]   ;;  %1242 = vmatprep.subr.bf16.mxu0 %v1363_v0  ;;  %v1368_v5 = vld [vmem:[%s1741_s1 + $0xf0] sm:$0xff]   ;;  %v1372_v9 = vld [vmem:[%s1741_s1 + $0xe8] sm:$0xff]   ;;  %s1354_s22 = smul.u32 20, %s1746_s23 }
   0xd   : > { %v1365_v2 = vld [vmem:[%s1741_s1 + $0x38] sm:$0xff]   ;;  %1282 = vmatprep.subr.bf16.mxu1 %v1364_v1  ;;  %v1369_v6 = vld [vmem:[%s1741_s1 + $0x30] sm:$0xff]   ;;  %v1373_v10 = vld [vmem:[%s1741_s1 + $0x28] sm:$0xff]  }
   0xe   : > { %v1366_v3 = vld [vmem:[%s1741_s1 + $0xb8] sm:$0xff]   ;;  %1243 = vmatpush3.bf16.msra.mxu0 %v1365_v2  ;;  %v1370_v7 = vld [vmem:[%s1741_s1 + $0xb0] sm:$0xff]   ;;  %v1374_v11 = vld [vmem:[%s1741_s1 + $0xa8] sm:$0xff]   ;;  %s1566_s7 = scalar_lea.vmem %s1740_s0, %s1354_s22  ;;  %s1159_s22 = sshll.u32 %s1468_s16, 6 }
   0xf   : > { %1283 = vmatpush3.bf16.msra.mxu1 %v1366_v3  ;;  %1244 = vmatprep.subr.bf16.mxu0 %v1367_v4  ;;  %v1375_v12 = vld [vmem:[%s1741_s1 + $0x60] sm:$0xff]   ;;  %v1379_v16 = vld [vmem:[%s1741_s1 + $0x58] sm:$0xff]   ;;  %v1383_v20 = vld [vmem:[%s1741_s1 + $0x50] sm:$0xff]   ;;  %s810_s24 = scalar_lea.vmem [#allocation2], %s1159_s22 }
  0x10   : > { %1284 = vmatprep.subr.bf16.mxu1 %v1368_v5  ;;  %v1376_v13 = vld [vmem:[%s1741_s1 + $0xe0] sm:$0xff]   ;;  %v1380_v17 = vld [vmem:[%s1741_s1 + $0xd8] sm:$0xff]   ;;  %v1384_v21 = vld [vmem:[%s1741_s1 + $0xd0] sm:$0xff]  }
  0x11   : > { %v1377_v14 = vld [vmem:[%s1741_s1 + $0x20] sm:$0xff]   ;;  %v1381_v18 = vld [vmem:[%s1741_s1 + $0x18] sm:$0xff]   ;;  %v1385_v22 = vld [vmem:[%s1741_s1 + $0x10] sm:$0xff]  }
  0x12   : > { %1245 = vmatpush3.bf16.msra.mxu0 %v1369_v6  ;;  %v1378_v15 = vld [vmem:[%s1741_s1 + $0xa0] sm:$0xff]   ;;  %v1382_v19 = vld [vmem:[%s1741_s1 + $0x98] sm:$0xff]   ;;  %v1386_v23 = vld [vmem:[%s1741_s1 + $0x90] sm:$0xff]  }
  0x13   : > { %1285 = vmatpush3.bf16.msra.mxu1 %v1370_v7  ;;  %1246 = vmatprep.subr.bf16.mxu0 %v1371_v8  ;;  %v1387_v24 = vld [vmem:[%s1741_s1 + $0x48] sm:$0xff]   ;;  %v1391_v28 = vld [vmem:[%s1741_s1 + $0x40] sm:$0xff]   ;;  %v1401_v36 = vld [vmem:[%s1741_s1 + $0x118] sm:$0xff]  }
  0x14   : > { %1286 = vmatprep.subr.bf16.mxu1 %v1372_v9  ;;  %v1388_v25 = vld [vmem:[%s1741_s1 + $0xc8] sm:$0xff]   ;;  %v1392_v29 = vld [vmem:[%s1741_s1 + $0xc0] sm:$0xff]   ;;  %v1408_v39 = vld [vmem:[%s1741_s1 + $0x110] sm:$0xff]  }
  0x15   : > { %v1389_v26 = vld [vmem:[%s1741_s1 + $0x8] sm:$0xff]   ;;  %v1393_v30 = vld [vmem:[%s1741_s1] sm:$0xff]   ;;  %v1411_v43 = vld [vmem:[%s1566_s7 + $0x5c] ss:$20 sps:$4 sm:$0xff]  }
  0x16   : > { %1247 = vmatpush3.bf16.msra.mxu0 %v1373_v10  ;;  %v1390_v27 = vld [vmem:[%s1741_s1 + $0x88] sm:$0xff]   ;;  %v1394_v31 = vld [vmem:[%s1741_s1 + $0x80] sm:$0xff]   ;;  %v1416_v48 = vld [vmem:[%s1566_s7 + $0x7c] ss:$20 sps:$4 sm:$0xff]  }
  0x17   : > { %1287 = vmatpush3.bf16.msra.mxu1 %v1374_v11  ;;  %1248 = vmatprep.subr.bf16.mxu0 %v1375_v12  ;;  %v1395_v32 = vld [vmem:[%s1566_s7] ss:$20 sps:$4 sm:$0xff]   ;;  %v1397_v33 = vld [vmem:[%s1566_s7 + $0x4] ss:$20 sps:$4 sm:$0xff]   ;;  %v1398_v34 = vld [vmem:[%s1566_s7 + $0x8] ss:$20 sps:$4 sm:$0xff]  }
  0x18   : > { %1288 = vmatprep.subr.bf16.mxu1 %v1376_v13  ;;  %v1400_v35 = vld [vmem:[%s1566_s7 + $0xc] ss:$20 sps:$4 sm:$0xff]   ;;  %646 = vmatprep.mubr.bf16.mxu0 %v1397_v33  ;;  %v1404_v38 = vld [vmem:[%s1566_s7 + $0x34] ss:$20 sps:$4 sm:$0xff]   ;;  %v1407_v41 = vld [vmem:[%s1566_s7 + $0x30] ss:$20 sps:$4 sm:$0xff]  }
  0x19   : > { %711 = vmatprep.mubr.bf16.mxu1 %v1400_v35  ;;  %v1402_v37 = vld [vmem:[%s1566_s7 + $0x2c] ss:$20 sps:$4 sm:$0xff]   ;;  %v1406_v40 = vld [vmem:[%s1566_s7 + $0x28] ss:$20 sps:$4 sm:$0xff]   ;;  %v1413_v46 = vld [vmem:[%s1566_s7 + $0x50] ss:$20 sps:$4 sm:$0xff]  }
  0x1a   : > { %1249 = vmatpush3.bf16.msra.mxu0 %v1377_v14  ;;  %v1409_v42 = vld [vmem:[%s1566_s7 + $0x54] ss:$20 sps:$4 sm:$0xff]   ;;  %v1422_v45 = vld [vmem:[%s1741_s1 + $0x100] sm:$0xff]   ;;  %v1414_v47 = vld [vmem:[%s1566_s7 + $0x58] ss:$20 sps:$4 sm:$0xff]  }
  0x1b   : > { %1289 = vmatpush3.bf16.msra.mxu1 %v1378_v15  ;;  %1250 = vmatprep.subr.bf16.mxu0 %v1379_v16  ;;  %v1415_v44 = vld [vmem:[%s1741_s1 + $0x108] sm:$0xff]   ;;  %v1418_v49 = vld [vmem:[%s1566_s7 + $0x84] ss:$20 sps:$4 sm:$0xff]   ;;  %v1421_v51 = vld [vmem:[%s1566_s7 + $0x80] ss:$20 sps:$4 sm:$0xff]  }
  0x1c   : > { %1290 = vmatprep.subr.bf16.mxu1 %v1380_v17  ;;  %v1420_v50 = vld [vmem:[%s1566_s7 + $0x78] ss:$20 sps:$4 sm:$0xff]   ;;  %v1423_v52 = vld [vmem:[%s1566_s7 + $0x10] ss:$20 sps:$4 sm:$0xff]   ;;  %v1424_v53 = vld [vmem:[%s1566_s7 + $0x60] ss:$20 sps:$4 sm:$0xff]  }
  0x1d   : > { %v1425_v54 = vld [vmem:[%s1566_s7 + $0x38] ss:$20 sps:$4 sm:$0xff]   ;;  %v1426_v55 = vld [vmem:[%s1566_s7 + $0x88] ss:$20 sps:$4 sm:$0xff]  }
  0x1e   : > { %1251 = vmatpush3.bf16.msra.mxu0 %v1381_v18 }
  0x1f   : > { %1291 = vmatpush3.bf16.msra.mxu1 %v1382_v19  ;;  %1252 = vmatprep.subr.bf16.mxu0 %v1383_v20 }
  0x20   : > { %1292 = vmatprep.subr.bf16.mxu1 %v1384_v21 }
  0x22   : > { %1253 = vmatpush3.bf16.msra.mxu0 %v1385_v22 }
  0x23   : > { %1293 = vmatpush3.bf16.msra.mxu1 %v1386_v23  ;;  %1254 = vmatprep.subr.bf16.mxu0 %v1387_v24 }
  0x24   : > { %1294 = vmatprep.subr.bf16.mxu1 %v1388_v25 }
  0x26   : > { %1255 = vmatpush3.bf16.msra.mxu0 %v1389_v26 }
  0x27   : > { %1295 = vmatpush3.bf16.msra.mxu1 %v1390_v27  ;;  %1256 = vmatprep.subr.bf16.mxu0 %v1391_v28 }
  0x28   : > { %1296 = vmatprep.subr.bf16.mxu1 %v1392_v29 }
  0x2a   : > { %1257 = vmatpush3.bf16.msra.mxu0 %v1393_v30 }
  0x2b   : > { %1297 = vmatpush3.bf16.msra.mxu1 %v1394_v31  ;;  %1330 = vmatprep.subr.bf16.mxu0 %v1401_v36 }
  0x2c   : > { %1346 = vmatprep.subr.bf16.mxu1 %v1401_v36 }
  0x2d   : > { %647 = vmatmul.mubr.bf16.vlgmr.msra.gmra.mxu0 %v1395_v32 }
  0x2e   : > { %712 = vmatmul.mubr.bf16.vlgmr.msra.gmra.mxu1 %v1398_v34  ;;  %1331 = vmatpush3.bf16.msra.mxu0 %v1401_v36 }
  0x2f   : > { %1350 = vmatpush3.bf16.msra.mxu1 %v1401_v36  ;;  %654 = vmatprep.mubr.bf16.mxu0 %v1402_v37 }
  0x30   : > { %719 = vmatprep.mubr.bf16.mxu1 %v1404_v38  ;;  %1332 = vmatprep.subr.bf16.mxu0 %v1408_v39 }
  0x31   : > { %1347 = vmatprep.subr.bf16.mxu1 %v1408_v39 }
  0x32   : > { %1333 = vmatpush3.bf16.msra.mxu0 %v1408_v39 }
  0x33   : > { %1351 = vmatpush3.bf16.msra.mxu1 %v1408_v39  ;;  %1334 = vmatprep.subr.bf16.mxu0 %v1415_v44 }
  0x34   : > { %1348 = vmatprep.subr.bf16.mxu1 %v1415_v44 }
  0x35   : > { %655 = vmatmul.mubr.bf16.gmra.mxu0 %v1406_v40 }
  0x36   : > { %720 = vmatmul.mubr.bf16.gmra.mxu1 %v1407_v41  ;;  %662 = vmatprep.mubr.bf16.mxu0 %v1409_v42 }
  0x37   : > { %727 = vmatprep.mubr.bf16.mxu1 %v1411_v43  ;;  %1335 = vmatpush3.bf16.msra.mxu0 %v1415_v44 }
  0x38   : > { %1352 = vmatpush3.bf16.msra.mxu1 %v1415_v44  ;;  %1336 = vmatprep.subr.bf16.mxu0 %v1422_v45 }
  0x39   : > { %1349 = vmatprep.subr.bf16.mxu1 %v1422_v45 }
  0x3b   : > { %1337 = vmatpush3.bf16.msra.mxu0 %v1422_v45 }
  0x3c   : > { %1353 = vmatpush3.bf16.msra.mxu1 %v1422_v45 }
  0x3d   : > { %663 = vmatmul.mubr.bf16.gmra.mxu0 %v1413_v46 }
  0x3e   : > { %728 = vmatmul.mubr.bf16.gmra.mxu1 %v1414_v47  ;;  %670 = vmatprep.mubr.bf16.mxu0 %v1416_v48 }
  0x3f   : > { %735 = vmatprep.mubr.bf16.mxu1 %v1418_v49 }
  0x45   : > { %671 = vmatmul.mubr.bf16.gmra.mxu0 %v1420_v50 }
  0x46   : > { %736 = vmatmul.mubr.bf16.gmra.mxu1 %v1421_v51  ;;  %1338 = vmatprep.mubr.msk.bf16.mxu0 %vm601_vm0, %v1423_v52 }
  0x47   : > { %1342 = vmatprep.mubr.msk.bf16.mxu1 %vm601_vm0, %v1424_v53 }
  0x4d   : > { %1339 = vmatmul.mubr.msk.bf16.vlgmr.msra.gmra.mxu0 %vm601_vm0, %v1425_v54 }
  0x4e   : > { %1343 = vmatmul.mubr.msk.bf16.vlgmr.msra.gmra.mxu1 %vm601_vm0, %v1426_v55 }
  0xed   : > { %v1258_v56 = vpop.f32.mrf.mxu0 }
  0xee   : > { %v1298_v57 = vpop.f32.mrf.mxu1 }
  0xef   : > { %v1259_v58 = vpop.f32.mrf.mxu0 }
  0xf0   : > { %v1299_v59 = vpop.f32.mrf.mxu1  ;;  %v1260_v25 = vadd.f32 %v1259_v58, %v1258_v56 }
  0xf1   : > { %v1261_v60 = vpop.f32.mrf.mxu0  ;;  %v1300_v26 = vadd.f32 %v1299_v59, %v1298_v57 }
  0xf2   : > { %v1301_v61 = vpop.f32.mrf.mxu1 }
  0xf3   : > { %v1262_v62 = vpop.f32.mrf.mxu0  ;;  %v714_v43 = vadd.f32 %v1300_v26, %v1260_v25 }
  0xf4   : > { %v1302_v63 = vpop.f32.mrf.mxu1  ;;  %v1263_v39 = vadd.f32 %v1262_v62, %v1261_v60 }
  0xf5   : > { %v1264_v0 = vpop.f32.mrf.mxu0  ;;  %v1303_v40 = vadd.f32 %v1302_v63, %v1301_v61 }
  0xf6   : > { %v1304_v1 = vpop.f32.mrf.mxu1 }
  0xf7   : > { %v1265_v2 = vpop.f32.mrf.mxu0  ;;  %v717_v57 = vadd.f32 %v1303_v40, %v1263_v39 }
  0xf8   : > { %v1305_v3 = vpop.f32.mrf.mxu1  ;;  %v1266_v19 = vadd.f32 %v1265_v2, %v1264_v0 }
  0xf9   : > { %v1267_v4 = vpop.f32.mrf.mxu0  ;;  %v1306_v20 = vadd.f32 %v1305_v3, %v1304_v1 }
  0xfa   : > { %v1307_v5 = vpop.f32.mrf.mxu1 }
  0xfb   : > { %v1268_v6 = vpop.f32.mrf.mxu0  ;;  %v722_v34 = vadd.f32 %v1306_v20, %v1266_v19 }
  0xfc   : > { %v1308_v7 = vpop.f32.mrf.mxu1  ;;  %v1269_v31 = vadd.f32 %v1268_v6, %v1267_v4 }
  0xfd   : > { %v1270_v8 = vpop.f32.mrf.mxu0  ;;  %v1309_v32 = vadd.f32 %v1308_v7, %v1307_v5 }
  0xfe   : > { %v1310_v9 = vpop.f32.mrf.mxu1 }
  0xff   : > { %v1271_v10 = vpop.f32.mrf.mxu0  ;;  %v725_v51 = vadd.f32 %v1309_v32, %v1269_v31 }
 0x100   : > { %v1311_v11 = vpop.f32.mrf.mxu1  ;;  %v1272_v28 = vadd.f32 %v1271_v10, %v1270_v8 }
 0x101   : > { %v1273_v12 = vpop.f32.mrf.mxu0  ;;  %v1312_v29 = vadd.f32 %v1311_v11, %v1310_v9 }
 0x102   : > { %v1313_v13 = vpop.f32.mrf.mxu1 }
 0x103   : > { %v1274_v14 = vpop.f32.mrf.mxu0  ;;  %v730_v48 = vadd.f32 %v1312_v29, %v1272_v28 }
 0x104   : > { %v1314_v15 = vpop.f32.mrf.mxu1  ;;  %v1275_v44 = vadd.f32 %v1274_v14, %v1273_v12 }
 0x105   : > { %v1276_v16 = vpop.f32.mrf.mxu0  ;;  %v1315_v45 = vadd.f32 %v1314_v15, %v1313_v13 }
 0x106   : > { %v1316_v17 = vpop.f32.mrf.mxu1 }
 0x107   : > { %v1277_v18 = vpop.f32.mrf.mxu0  ;;  %v733_v60 = vadd.f32 %v1315_v45, %v1275_v44 }
 0x108   : > { %v1317_v21 = vpop.f32.mrf.mxu1  ;;  %v1278_v22 = vadd.f32 %v1277_v18, %v1276_v16 }
 0x109   : > { %v1318_v23 = vadd.f32 %v1317_v21, %v1316_v17  ;;  %v1279_v24 = vpop.f32.mrf.mxu0 }
 0x10a   : > { %v1319_v27 = vpop.f32.mrf.mxu1 }
 0x10b   : > { %v1280_v30 = vpop.f32.mrf.mxu0  ;;  %v738_v38 = vadd.f32 %v1318_v23, %v1278_v22 }
 0x10c   : > { %v1320_v33 = vpop.f32.mrf.mxu1  ;;  %v1281_v35 = vadd.f32 %v1280_v30, %v1279_v24 }
 0x10d   : > { %v1321_v36 = vadd.f32 %v1320_v33, %v1319_v27  ;;  %v1340_v37 = vpop.f32.mrf.mxu0 }
 0x10e   : > { %v787_v41 = vadd.f32 %v1340_v37, %v722_v34  ;;  %v1344_v42 = vpop.f32.mrf.mxu1 }
 0x10f   : > { %v803_v46 = vadd.f32 %v1344_v42, %v738_v38  ;;  %v778_v47 = vpop.f32.mrf.mxu0  ;;  %v741_v54 = vadd.f32 %v1321_v36, %v1281_v35 }
 0x110   : > { %813 = vst [vmem:[%s810_s24 + $0x10] sm:$0xff] %v787_v41  ;;  %v779_v49 = vadd.f32 %v778_v47, %v714_v43  ;;  %v794_v50 = vpop.f32.mrf.mxu1 }
 0x111   : > { %817 = vst [vmem:[%s810_s24 + $0x30] sm:$0xff] %v803_v46  ;;  %v795_v52 = vadd.f32 %v794_v50, %v730_v48  ;;  %v1341_v53 = vpop.f32.mrf.mxu0 }
 0x112   : > { %811 = vst [vmem:[%s810_s24] sm:$0xff] %v779_v49  ;;  %v790_v55 = vadd.f32 %v1341_v53, %v725_v51  ;;  %v1345_v56 = vpop.f32.mrf.mxu1 }
 0x113   : > { %815 = vst [vmem:[%s810_s24 + $0x20] sm:$0xff] %v795_v52  ;;  %v806_v58 = vadd.f32 %v1345_v56, %v741_v54  ;;  %v781_v59 = vpop.f32.mrf.mxu0  ;;  %822 = sbr.rel (%p1160_p4) target bundleno = 419 (0x1a3), region = 40 }
 0x114   : > { %814 = vst [vmem:[%s810_s24 + $0x18] sm:$0xff] %v790_v55  ;;  %v782_v61 = vadd.f32 %v781_v59, %v717_v57  ;;  %v797_v62 = vpop.f32.mrf.mxu1 }
 0x115   : > { %818 = vst [vmem:[%s810_s24 + $0x38] sm:$0xff] %v806_v58  ;;  %v798_v63 = vadd.f32 %v797_v62, %v733_v60 }
 0x116   : > { %812 = vst [vmem:[%s810_s24 + $0x8] sm:$0xff] %v782_v61 }
 0x117   : > { %816 = vst [vmem:[%s810_s24 + $0x28] sm:$0xff] %v798_v63 }
 0x11e   : > { %v1608_v0 = vld [vmem:[#allocation2] sm:$0xff]  ;;  %v1610_v1 = vld [vmem:[#allocation2 + $0x8] sm:$0xff]  ;;  %v1612_v2 = vld [vmem:[#allocation2 + $0x10] sm:$0xff] }
 0x11f   : > { %v839_v3 = vadd.f32 %v1610_v1, %v1608_v0  ;;  %v1616_v4 = vld [vmem:[#allocation2 + $0x18] sm:$0xff]  ;;  %v1619_v6 = vld [vmem:[#allocation2 + $0x20] sm:$0xff]  ;;  %v1622_v8 = vld [vmem:[#allocation2 + $0x28] sm:$0xff] }
 0x120   : > { %v1625_v10 = vld [vmem:[#allocation2 + $0x30] sm:$0xff]  ;;  %v1628_v12 = vld [vmem:[#allocation2 + $0x38] sm:$0xff]  ;;  %v1631_v14 = vld [vmem:[#allocation2 + $0x40] sm:$0xff] }
 0x121   : > { %v840_v5 = vadd.f32 %v839_v3, %v1612_v2  ;;  %v1634_v16 = vld [vmem:[#allocation2 + $0x48] sm:$0xff]  ;;  %v1637_v18 = vld [vmem:[#allocation2 + $0x50] sm:$0xff]  ;;  %v1640_v20 = vld [vmem:[#allocation2 + $0x58] sm:$0xff] }
 0x122   : > { %v1643_v22 = vld [vmem:[#allocation2 + $0x60] sm:$0xff]  ;;  %v1646_v24 = vld [vmem:[#allocation2 + $0x68] sm:$0xff]  ;;  %v1649_v26 = vld [vmem:[#allocation2 + $0x70] sm:$0xff] }
 0x123   : > { %v841_v7 = vadd.f32 %v840_v5, %v1616_v4  ;;  %v1652_v28 = vld [vmem:[#allocation2 + $0x78] sm:$0xff] }
 0x125   : > { %v842_v9 = vadd.f32 %v841_v7, %v1619_v6 }
 0x127   : > { %v843_v11 = vadd.f32 %v842_v9, %v1622_v8 }
 0x129   : > { %v844_v13 = vadd.f32 %v843_v11, %v1625_v10 }
 0x12b   : > { %v845_v15 = vadd.f32 %v844_v13, %v1628_v12 }
 0x12d   : > { %v846_v17 = vadd.f32 %v845_v15, %v1631_v14 }
 0x12f   : > { %v847_v19 = vadd.f32 %v846_v17, %v1634_v16 }
 0x131   : > { %v848_v21 = vadd.f32 %v847_v19, %v1637_v18 }
 0x133   : > { %v849_v23 = vadd.f32 %v848_v21, %v1640_v20 }
 0x135   : > { %v850_v25 = vadd.f32 %v849_v23, %v1643_v22 }
 0x137   : > { %v851_v27 = vadd.f32 %v850_v25, %v1646_v24 }
 0x139   : > { %v852_v29 = vadd.f32 %v851_v27, %v1649_v26 }
 0x13b   : > { %v853_v30 = vadd.f32 %v852_v29, %v1652_v28 }
 0x13d   : > { %v854_v31 = vrot.slane %v853_v30, 4 }
 0x13f   : > { %v855_v32 = vadd.f32 %v854_v31, %v853_v30 }
 0x141   : > { %v856_v33 = vrot.slane %v855_v32, 2 }
 0x143   : > { %v857_v34 = vadd.f32 %v856_v33, %v855_v32 }
 0x145   : > { %v858_v35 = vrot.slane %v857_v34, 1 }
 0x147   : > { %v859_v36 = vadd.f32 %v858_v35, %v857_v34 }
 0x149   : > { %v1656_v37 = vmul.f32 0.0078125, %v859_v36 }
 0x14b   : > { %v862_v38 = vsub.f32 %v1608_v0, %v1656_v37  ;;  %v863_v39 = vsub.f32 %v1610_v1, %v1656_v37  ;;  %v864_v40 = vsub.f32 %v1612_v2, %v1656_v37  ;;  %v865_v41 = vsub.f32 %v1616_v4, %v1656_v37 }
 0x14c   : > { %v866_v44 = vsub.f32 %v1619_v6, %v1656_v37  ;;  %v867_v46 = vsub.f32 %v1622_v8, %v1656_v37  ;;  %v868_v49 = vsub.f32 %v1625_v10, %v1656_v37  ;;  %v869_v52 = vsub.f32 %v1628_v12, %v1656_v37 }
 0x14d   : > { %v878_v42 = vmul.f32 %v862_v38, %v862_v38  ;;  %v879_v43 = vmul.f32 %v863_v39, %v863_v39  ;;  %v880_v45 = vmul.f32 %v864_v40, %v864_v40  ;;  %v881_v47 = vmul.f32 %v865_v41, %v865_v41 }
 0x14e   : > { %v882_v50 = vmul.f32 %v866_v44, %v866_v44  ;;  %v883_v53 = vmul.f32 %v867_v46, %v867_v46  ;;  %v870_v55 = vsub.f32 %v1631_v14, %v1656_v37  ;;  %v884_v56 = vmul.f32 %v868_v49, %v868_v49 }
 0x14f   : > { %v894_v48 = vadd.f32 %v879_v43, %v878_v42  ;;  %v871_v58 = vsub.f32 %v1634_v16, %v1656_v37  ;;  %v885_v59 = vmul.f32 %v869_v52, %v869_v52  ;;  %v872_v61 = vsub.f32 %v1637_v18, %v1656_v37  ;;  %v920_v52 = vld [vmem:[%s1743_s3] sm:$0x1] }
 0x150   : > { %v886_v62 = vmul.f32 %v870_v55, %v870_v55  ;;  %v873_v3 = vsub.f32 %v1640_v20, %v1656_v37  ;;  %v874_v9 = vsub.f32 %v1643_v22, %v1656_v37  ;;  %v875_v15 = vsub.f32 %v1646_v24, %v1656_v37 }
 0x151   : > { %v895_v51 = vadd.f32 %v894_v48, %v880_v45  ;;  %v887_v5 = vmul.f32 %v871_v58, %v871_v58  ;;  %v888_v11 = vmul.f32 %v872_v61, %v872_v61  ;;  %v876_v21 = vsub.f32 %v1649_v26, %v1656_v37  ;;  %v916_v48 = vld [vmem:[%s1742_s2] sm:$0x1] }
 0x152   : > { %v889_v17 = vmul.f32 %v873_v3, %v873_v3  ;;  %v890_v23 = vmul.f32 %v874_v9, %v874_v9  ;;  %v877_v27 = vsub.f32 %v1652_v28, %v1656_v37  ;;  %v891_v29 = vmul.f32 %v875_v15, %v875_v15 }
 0x153   : > { %v896_v54 = vadd.f32 %v895_v51, %v881_v47  ;;  %v892_v31 = vmul.f32 %v876_v21, %v876_v21  ;;  %v924_v46 = vlaneseq }
 0x154   : > { %v893_v33 = vmul.f32 %v877_v27, %v877_v27 }
 0x155   : > { %v897_v57 = vadd.f32 %v896_v54, %v882_v50  ;;  %v925_v47 = vshrl.u32 %v924_v46, 7 }
 0x157   : > { %v898_v60 = vadd.f32 %v897_v57, %v883_v53  ;;  %v926_v49 = vsub.s32 0, %v925_v47 }
 0x159   : > { %v899_v63 = vadd.f32 %v898_v60, %v884_v56 }
 0x15b   : > { %v900_v7 = vadd.f32 %v899_v63, %v885_v59 }
 0x15d   : > { %v901_v13 = vadd.f32 %v900_v7, %v886_v62 }
 0x15f   : > { %v902_v19 = vadd.f32 %v901_v13, %v887_v5 }
 0x161   : > { %v903_v25 = vadd.f32 %v902_v19, %v888_v11 }
 0x163   : > { %v904_v30 = vadd.f32 %v903_v25, %v889_v17 }
 0x165   : > { %v905_v32 = vadd.f32 %v904_v30, %v890_v23 }
 0x167   : > { %v906_v34 = vadd.f32 %v905_v32, %v891_v29 }
 0x169   : > { %v907_v35 = vadd.f32 %v906_v34, %v892_v31 }
 0x16b   : > { %v908_v36 = vadd.f32 %v907_v35, %v893_v33 }
 0x16d   : > { %v909_v38 = vrot.slane %v908_v36, 4 }
 0x16f   : > { %v910_v39 = vadd.f32 %v909_v38, %v908_v36 }
 0x171   : > { %v911_v40 = vrot.slane %v910_v39, 2 }
 0x173   : > { %v912_v41 = vadd.f32 %v911_v40, %v910_v39 }
 0x175   : > { %v913_v42 = vrot.slane %v912_v41, 1 }
 0x177   : > { %v914_v43 = vadd.f32 %v913_v42, %v912_v41 }
 0x179   : > { %v915_v44 = vmul.f32 0.0078125, %v914_v43 }
 0x17b   : > { %v917_v45 = vadd.f32 1e-05, %v915_v44 }
 0x17d   : > { %1427 = vrsqrt.f32 %v917_v45 }
 0x18a   : > { %v1428_v50 = vpop.eup %1427 }
 0x18b   : > { %v919_v51 = vmul.f32 %v1428_v50, %v916_v48 }
 0x18d   : > { %v921_v53 = vmul.f32 %v919_v51, %v1656_v37  ;;  %v927_v54 = vrot.slane %v919_v51, %v926_v49 }
 0x18f   : > { %v922_v55 = vsub.f32 %v920_v52, %v921_v53  ;;  %v929_v56 = vmul.f32 %v927_v54, %v1608_v0  ;;  %v930_v57 = vmul.f32 %v927_v54, %v1610_v1  ;;  %v931_v58 = vmul.f32 %v927_v54, %v1612_v2 }
 0x190   : > { %v932_v59 = vmul.f32 %v927_v54, %v1616_v4  ;;  %v933_v60 = vmul.f32 %v927_v54, %v1619_v6  ;;  %v934_v61 = vmul.f32 %v927_v54, %v1622_v8  ;;  %v935_v62 = vmul.f32 %v927_v54, %v1625_v10 }
 0x191   : > { %v949_v63 = vrot.slane %v922_v55, %v926_v49  ;;  %v936_v3 = vmul.f32 %v927_v54, %v1628_v12  ;;  %v937_v37 = vmul.f32 %v927_v54, %v1631_v14  ;;  %v938_v5 = vmul.f32 %v927_v54, %v1634_v16 }
 0x192   : > { %v939_v0 = vmul.f32 %v927_v54, %v1637_v18  ;;  %v940_v1 = vmul.f32 %v927_v54, %v1640_v20  ;;  %v941_v2 = vmul.f32 %v927_v54, %v1643_v22  ;;  %v942_v4 = vmul.f32 %v927_v54, %v1646_v24 }
 0x193   : > { %v951_v6 = vadd.f32 %v949_v63, %v929_v56  ;;  %v952_v7 = vadd.f32 %v949_v63, %v930_v57  ;;  %v953_v8 = vadd.f32 %v949_v63, %v931_v58  ;;  %v954_v9 = vadd.f32 %v949_v63, %v932_v59 }
 0x194   : > { %v955_v10 = vadd.f32 %v949_v63, %v933_v60  ;;  %v956_v11 = vadd.f32 %v949_v63, %v934_v61  ;;  %v957_v13 = vadd.f32 %v949_v63, %v935_v62  ;;  %v958_v12 = vadd.f32 %v949_v63, %v936_v3 }
 0x195   : > { %v967_v15 = vmax.f32 %v951_v6, 0.0  ;;  %v968_v14 = vmax.f32 %v952_v7, 0.0  ;;  %v969_v17 = vmax.f32 %v953_v8, 0.0  ;;  %v970_v16 = vmax.f32 %v954_v9, 0.0 }
 0x196   : > { %v971_v19 = vmax.f32 %v955_v10, 0.0  ;;  %v972_v18 = vmax.f32 %v956_v11, 0.0  ;;  %v973_v21 = vmax.f32 %v957_v13, 0.0  ;;  %v974_v20 = vmax.f32 %v958_v12, 0.0 }
 0x197   : > { %v1198_v23 = vpack.c.bf16 %v968_v14, %v967_v15  ;;  %v1203_v22 = vpack.c.bf16 %v970_v16, %v969_v17  ;;  %v959_v25 = vadd.f32 %v949_v63, %v937_v37  ;;  %v960_v24 = vadd.f32 %v949_v63, %v938_v5 }
 0x198   : > { %v1208_v27 = vpack.c.bf16 %v972_v18, %v971_v19  ;;  %v1213_v29 = vpack.c.bf16 %v974_v20, %v973_v21  ;;  %v961_v30 = vadd.f32 %v949_v63, %v939_v0  ;;  %v962_v31 = vadd.f32 %v949_v63, %v940_v1 }
 0x199   : > { %1199 = vst [vmem:[%s1744_s4] sm:$0xff] %v1198_v23   ;;  %1235 = vst [vmem:[%s1744_s4 + $0x8] sm:$0xff] %v1203_v22   ;;  %v975_v32 = vmax.f32 %v959_v25, 0.0  ;;  %v976_v33 = vmax.f32 %v960_v24, 0.0  ;;  %v963_v34 = vadd.f32 %v949_v63, %v941_v2  ;;  %v964_v35 = vadd.f32 %v949_v63, %v942_v4 }
 0x19a   : > { %1236 = vst [vmem:[%s1744_s4 + $0x10] sm:$0xff] %v1208_v27   ;;  %1237 = vst [vmem:[%s1744_s4 + $0x18] sm:$0xff] %v1213_v29   ;;  %v977_v36 = vmax.f32 %v961_v30, 0.0  ;;  %v978_v38 = vmax.f32 %v962_v31, 0.0  ;;  %v943_v39 = vmul.f32 %v927_v54, %v1649_v26  ;;  %v944_v40 = vmul.f32 %v927_v54, %v1652_v28 }
 0x19b   : > { %v1218_v41 = vpack.c.bf16 %v976_v33, %v975_v32  ;;  %v979_v42 = vmax.f32 %v963_v34, 0.0  ;;  %v980_v43 = vmax.f32 %v964_v35, 0.0 }
 0x19c   : > { %v1223_v44 = vpack.c.bf16 %v978_v38, %v977_v36  ;;  %v965_v45 = vadd.f32 %v949_v63, %v943_v39  ;;  %v966_v46 = vadd.f32 %v949_v63, %v944_v40 }
 0x19d   : > { %1238 = vst [vmem:[%s1744_s4 + $0x20] sm:$0xff] %v1218_v41   ;;  %v1228_v47 = vpack.c.bf16 %v980_v43, %v979_v42 }
 0x19e   : > { %1239 = vst [vmem:[%s1744_s4 + $0x28] sm:$0xff] %v1223_v44   ;;  %v981_v48 = vmax.f32 %v965_v45, 0.0  ;;  %v982_v49 = vmax.f32 %v966_v46, 0.0 }
 0x19f   : > { %1240 = vst [vmem:[%s1744_s4 + $0x30] sm:$0xff] %v1228_v47  }
 0x1a0   : > { %v1233_v26 = vpack.c.bf16 %v982_v49, %v981_v48 }
 0x1a2   : > { %1241 = vst [vmem:[%s1744_s4 + $0x38] sm:$0xff] %v1233_v26  }
 0x1a3 PF: > { %s14_s15 = sadd.s32 1, %s1435_s15  }
 0x1a4   : > { %p11_p5 = scmp.ge.s32.totalorder %s14_s15, 4  }
 0x1a6   :  { %13 = sbr.rel (!%p11_p5) target bundleno = 1 (0x1), region = 67 }

// kernel: unet_forward.8
= control target key start
LH: loop header
LB: loop body
LE: loop exit
PB: predicated region body
PF: predicated region fallthrough
CT: control target
= control target key end

     0   :  { %s2006_s15 = smov 0   ;;  %s2526_s0 = inlined_call_operand.vmem [shape: bf16[32,1152], index: 0, kind: input, shape index: {}]   ;;  %s2527_s1 = inlined_call_operand.vmem [shape: bf16[1152,256], index: 1, kind: input, shape index: {}]   ;;  %s2528_s2 = inlined_call_operand.vmem [shape: f32[1,256], index: 2, kind: input, shape index: {}]   ;;  %s2529_s3 = inlined_call_operand.vmem [shape: f32[1,256], index: 3, kind: input, shape index: {}]   ;;  %s2530_s4 = inlined_call_operand.vmem [shape: bf16[32,256], index: 4, kind: output, shape index: {}]  }
   0x1 LB: > { %s2012_s16 = sadd.s32 4294967295, %s1977_s15   ;;  %p1556_p0 = scmp.ge.s32.totalorder %s1977_s15, 1  ;;  %s1977_s15 = sphi %s2006_s15, %s14_s15  }
   0x2   : > { %p159_p1 = scmp.lt.s32.totalorder %s1977_s15, 3 }
   0x4   : > { %p160_p2 = pnand %p1556_p0, %p159_p1 }
   0x5   : > { %s1557_s29 = sshll.u32 (!%p160_p2), %s2012_s16, 1  ;;  %s1712_s5 = sshll.u32 (!%p160_p2), %s2012_s16, 4 }
   0x6   : > { %163 = sbr.rel (%p160_p2) target bundleno = 472 (0x1d8), region = 36  ;;  %p182_p3 = scmp.lt.s32.totalorder (!%p160_p2), %s1557_s29, 3 }
   0x7   : > { %s1325_s6 = sshra.s32 (!%p160_p2), %s1712_s5, 3  ;;  %p1715_p4 = scmp.ne.s32.totalorder (!%p160_p2), %s2012_s16, 1 }
   0xb   : > { %v1738_v0 = vld [vmem:[%s2527_s1 + $0x74] ss:$8 sps:$4 sm:$0xff]   ;;  %v1742_v2 = vld [vmem:[%s2527_s1 + $0x70] ss:$8 sps:$4 sm:$0xff]   ;;  %v1744_v4 = vld [vmem:[%s2527_s1 + $0x64] ss:$8 sps:$4 sm:$0xff]  }
   0xc   : > { %v1740_v1 = vld [vmem:[%s2527_s1 + $0x174] ss:$8 sps:$4 sm:$0xff]   ;;  %1109 = vmatprep.subr.bf16.mxu0 %v1738_v0  ;;  %v1743_v3 = vld [vmem:[%s2527_s1 + $0x170] ss:$8 sps:$4 sm:$0xff]   ;;  %v1746_v5 = vld [vmem:[%s2527_s1 + $0x164] ss:$8 sps:$4 sm:$0xff]  }
   0xd   : > { %1152 = vmatprep.subr.bf16.mxu1 %v1740_v1  ;;  %1110 = vmatpush1.bf16.msra.mxu0 %v1742_v2  ;;  %v1748_v6 = vld [vmem:[%s2527_s1 + $0x60] ss:$8 sps:$4 sm:$0xff]   ;;  %v1750_v8 = vld [vmem:[%s2527_s1 + $0x54] ss:$8 sps:$4 sm:$0xff]   ;;  %v1754_v10 = vld [vmem:[%s2527_s1 + $0x50] ss:$8 sps:$4 sm:$0xff]  }
   0xe   : > { %1153 = vmatpush1.bf16.msra.mxu1 %v1743_v3  ;;  %1111 = vmatprep.subr.bf16.mxu0 %v1744_v4  ;;  %v1749_v7 = vld [vmem:[%s2527_s1 + $0x160] ss:$8 sps:$4 sm:$0xff]   ;;  %v1752_v9 = vld [vmem:[%s2527_s1 + $0x154] ss:$8 sps:$4 sm:$0xff]   ;;  %v1755_v11 = vld [vmem:[%s2527_s1 + $0x150] ss:$8 sps:$4 sm:$0xff]  }
   0xf   : > { %1154 = vmatprep.subr.bf16.mxu1 %v1746_v5  ;;  %v1756_v12 = vld [vmem:[%s2527_s1 + $0x44] ss:$8 sps:$4 sm:$0xff]   ;;  %v1760_v14 = vld [vmem:[%s2527_s1 + $0x40] ss:$8 sps:$4 sm:$0xff]   ;;  %v1762_v16 = vld [vmem:[%s2527_s1 + $0x34] ss:$8 sps:$4 sm:$0xff]  }
  0x10   : > { %v1758_v13 = vld [vmem:[%s2527_s1 + $0x144] ss:$8 sps:$4 sm:$0xff]   ;;  %v1761_v15 = vld [vmem:[%s2527_s1 + $0x140] ss:$8 sps:$4 sm:$0xff]   ;;  %v1764_v17 = vld [vmem:[%s2527_s1 + $0x134] ss:$8 sps:$4 sm:$0xff]  }
  0x11   : > { %1112 = vmatpush1.bf16.msra.mxu0 %v1748_v6  ;;  %v1766_v18 = vld [vmem:[%s2527_s1 + $0x30] ss:$8 sps:$4 sm:$0xff]   ;;  %v1768_v20 = vld [vmem:[%s2527_s1 + $0x24] ss:$8 sps:$4 sm:$0xff]   ;;  %v1772_v22 = vld [vmem:[%s2527_s1 + $0x20] ss:$8 sps:$4 sm:$0xff]  }
  0x12   : > { %1155 = vmatpush1.bf16.msra.mxu1 %v1749_v7  ;;  %1113 = vmatprep.subr.bf16.mxu0 %v1750_v8  ;;  %v1767_v19 = vld [vmem:[%s2527_s1 + $0x130] ss:$8 sps:$4 sm:$0xff]   ;;  %v1770_v21 = vld [vmem:[%s2527_s1 + $0x124] ss:$8 sps:$4 sm:$0xff]   ;;  %v1773_v23 = vld [vmem:[%s2527_s1 + $0x120] ss:$8 sps:$4 sm:$0xff]  }
  0x13   : > { %1156 = vmatprep.subr.bf16.mxu1 %v1752_v9  ;;  %v1774_v24 = vld [vmem:[%s2527_s1 + $0x14] ss:$8 sps:$4 sm:$0xff]   ;;  %v1778_v26 = vld [vmem:[%s2527_s1 + $0x10] ss:$8 sps:$4 sm:$0xff]   ;;  %v1780_v28 = vld [vmem:[%s2527_s1 + $0x4] ss:$8 sps:$4 sm:$0xff]  }
  0x14   : > { %v1776_v25 = vld [vmem:[%s2527_s1 + $0x114] ss:$8 sps:$4 sm:$0xff]   ;;  %v1779_v27 = vld [vmem:[%s2527_s1 + $0x110] ss:$8 sps:$4 sm:$0xff]   ;;  %v1782_v29 = vld [vmem:[%s2527_s1 + $0x104] ss:$8 sps:$4 sm:$0xff]  }
  0x15   : > { %1114 = vmatpush1.bf16.msra.mxu0 %v1754_v10  ;;  %v1784_v30 = vld [vmem:[%s2527_s1] ss:$8 sps:$4 sm:$0xff]   ;;  %v1786_v32 = vld [vmem:[%s2527_s1 + $0xf4] ss:$8 sps:$4 sm:$0xff]   ;;  %v1790_v34 = vld [vmem:[%s2527_s1 + $0xf0] ss:$8 sps:$4 sm:$0xff]  }
  0x16   : > { %1157 = vmatpush1.bf16.msra.mxu1 %v1755_v11  ;;  %1115 = vmatprep.subr.bf16.mxu0 %v1756_v12  ;;  %v1785_v31 = vld [vmem:[%s2527_s1 + $0x100] ss:$8 sps:$4 sm:$0xff]   ;;  %v1788_v33 = vld [vmem:[%s2527_s1 + $0x1f4] ss:$8 sps:$4 sm:$0xff]   ;;  %v1791_v35 = vld [vmem:[%s2527_s1 + $0x1f0] ss:$8 sps:$4 sm:$0xff]  }
  0x17   : > { %1158 = vmatprep.subr.bf16.mxu1 %v1758_v13  ;;  %v1792_v36 = vld [vmem:[%s2527_s1 + $0xe4] ss:$8 sps:$4 sm:$0xff]   ;;  %s2532_s29 = smov (!%p182_p3, %s1557_s29), 3  ;;  %v1796_v38 = vld [vmem:[%s2527_s1 + $0xe0] ss:$8 sps:$4 sm:$0xff]  }
  0x18   : > { %v1794_v37 = vld [vmem:[%s2527_s1 + $0x1e4] ss:$8 sps:$4 sm:$0xff]   ;;  %v1797_v39 = vld [vmem:[%s2527_s1 + $0x1e0] ss:$8 sps:$4 sm:$0xff]   ;;  %v1798_v40 = vld [vmem:[%s2527_s1 + $0xd4] ss:$8 sps:$4 sm:$0xff]  }
  0x19   : > { %1116 = vmatpush1.bf16.msra.mxu0 %v1760_v14  ;;  %s1727_s28 = smul.u32 36, %s2532_s29  ;;  %v1800_v41 = vld [vmem:[%s2527_s1 + $0x1d4] ss:$8 sps:$4 sm:$0xff]   ;;  %v1802_v42 = vld [vmem:[%s2527_s1 + $0xd0] ss:$8 sps:$4 sm:$0xff]  }
  0x1a   : > { %1159 = vmatpush1.bf16.msra.mxu1 %v1761_v15  ;;  %1117 = vmatprep.subr.bf16.mxu0 %v1762_v16  ;;  %v1803_v43 = vld [vmem:[%s2527_s1 + $0x1d0] ss:$8 sps:$4 sm:$0xff]   ;;  %v1804_v44 = vld [vmem:[%s2527_s1 + $0xc4] ss:$8 sps:$4 sm:$0xff]   ;;  %v1808_v46 = vld [vmem:[%s2527_s1 + $0xc0] ss:$8 sps:$4 sm:$0xff]  }
  0x1b   : > { %1160 = vmatprep.subr.bf16.mxu1 %v1764_v17  ;;  %s2155_s13 = scalar_lea.vmem %s2526_s0, %s1727_s28  ;;  %v1806_v45 = vld [vmem:[%s2527_s1 + $0x1c4] ss:$8 sps:$4 sm:$0xff]   ;;  %v1809_v47 = vld [vmem:[%s2527_s1 + $0x1c0] ss:$8 sps:$4 sm:$0xff]   ;;  %v1810_v48 = vld [vmem:[%s2527_s1 + $0xb4] ss:$8 sps:$4 sm:$0xff]  }
  0x1c   : > { %v1836_v49 = vld [vmem:[%s2155_s13 + $0x4] ss:$36 sps:$4 sm:$0xff]   ;;  %v1812_v50 = vld [vmem:[%s2527_s1 + $0x1b4] ss:$8 sps:$4 sm:$0xff]   ;;  %v1839_v51 = vld [vmem:[%s2155_s13 + $0xc] ss:$36 sps:$4 sm:$0xff]  }
  0x1d   : > { %1118 = vmatpush1.bf16.msra.mxu0 %v1766_v18  ;;  %1141 = vmatprep.mubr.bf16.mxu0 %v1836_v49  ;;  %v1814_v52 = vld [vmem:[%s2527_s1 + $0xb0] ss:$8 sps:$4 sm:$0xff]   ;;  %v1816_v54 = vld [vmem:[%s2527_s1 + $0xa4] ss:$8 sps:$4 sm:$0xff]   ;;  %v1820_v56 = vld [vmem:[%s2527_s1 + $0xa0] ss:$8 sps:$4 sm:$0xff]  }
  0x1e   : > { %1161 = vmatpush1.bf16.msra.mxu1 %v1767_v19  ;;  %1119 = vmatprep.subr.bf16.mxu0 %v1768_v20  ;;  %v1815_v53 = vld [vmem:[%s2527_s1 + $0x1b0] ss:$8 sps:$4 sm:$0xff]   ;;  %v1818_v55 = vld [vmem:[%s2527_s1 + $0x1a4] ss:$8 sps:$4 sm:$0xff]   ;;  %v1821_v57 = vld [vmem:[%s2527_s1 + $0x1a0] ss:$8 sps:$4 sm:$0xff]  }
  0x1f   : > { %1162 = vmatprep.subr.bf16.mxu1 %v1770_v21  ;;  %1184 = vmatprep.mubr.bf16.mxu1 %v1839_v51  ;;  %v1822_v58 = vld [vmem:[%s2527_s1 + $0x94] ss:$8 sps:$4 sm:$0xff]   ;;  %v1826_v60 = vld [vmem:[%s2527_s1 + $0x90] ss:$8 sps:$4 sm:$0xff]   ;;  %v1828_v62 = vld [vmem:[%s2527_s1 + $0x84] ss:$8 sps:$4 sm:$0xff]  }
  0x20   : > { %v1824_v59 = vld [vmem:[%s2527_s1 + $0x194] ss:$8 sps:$4 sm:$0xff]   ;;  %v1827_v61 = vld [vmem:[%s2527_s1 + $0x190] ss:$8 sps:$4 sm:$0xff]   ;;  %v1830_v63 = vld [vmem:[%s2527_s1 + $0x184] ss:$8 sps:$4 sm:$0xff]  }
  0x21   : > { %1120 = vmatpush1.bf16.msra.mxu0 %v1772_v22  ;;  %v1832_v0 = vld [vmem:[%s2527_s1 + $0x80] ss:$8 sps:$4 sm:$0xff]   ;;  %v1842_v2 = vld [vmem:[%s2527_s1 + $0x274] ss:$8 sps:$4 sm:$0xff]   ;;  %v1840_v6 = vld [vmem:[%s2527_s1 + $0x270] ss:$8 sps:$4 sm:$0xff]  }
  0x22   : > { %1163 = vmatpush1.bf16.msra.mxu1 %v1773_v23  ;;  %1121 = vmatprep.subr.bf16.mxu0 %v1774_v24  ;;  %v1833_v1 = vld [vmem:[%s2527_s1 + $0x180] ss:$8 sps:$4 sm:$0xff]   ;;  %v1845_v3 = vld [vmem:[%s2527_s1 + $0x374] ss:$8 sps:$4 sm:$0xff]   ;;  %v1843_v7 = vld [vmem:[%s2527_s1 + $0x370] ss:$8 sps:$4 sm:$0xff]  }
  0x23   : > { %1164 = vmatprep.subr.bf16.mxu1 %v1776_v25  ;;  %v1834_v4 = vld [vmem:[%s2155_s13] ss:$36 sps:$4 sm:$0xff]   ;;  %v1837_v5 = vld [vmem:[%s2155_s13 + $0x8] ss:$36 sps:$4 sm:$0xff]   ;;  %v1854_v12 = vld [vmem:[%s2527_s1 + $0x254] ss:$8 sps:$4 sm:$0xff]  }
  0x24   : > { %v1848_v8 = vld [vmem:[%s2527_s1 + $0x264] ss:$8 sps:$4 sm:$0xff]   ;;  %v1846_v10 = vld [vmem:[%s2527_s1 + $0x260] ss:$8 sps:$4 sm:$0xff]   ;;  %v1857_v13 = vld [vmem:[%s2527_s1 + $0x354] ss:$8 sps:$4 sm:$0xff]  }
  0x25   : > { %1122 = vmatpush1.bf16.msra.mxu0 %v1778_v26  ;;  %v1851_v9 = vld [vmem:[%s2527_s1 + $0x364] ss:$8 sps:$4 sm:$0xff]   ;;  %v1849_v11 = vld [vmem:[%s2527_s1 + $0x360] ss:$8 sps:$4 sm:$0xff]   ;;  %v1852_v14 = vld [vmem:[%s2527_s1 + $0x250] ss:$8 sps:$4 sm:$0xff]  }
  0x26   : > { %1165 = vmatpush1.bf16.msra.mxu1 %v1779_v27  ;;  %1123 = vmatprep.subr.bf16.mxu0 %v1780_v28  ;;  %v1855_v15 = vld [vmem:[%s2527_s1 + $0x350] ss:$8 sps:$4 sm:$0xff]   ;;  %v1860_v16 = vld [vmem:[%s2527_s1 + $0x244] ss:$8 sps:$4 sm:$0xff]   ;;  %v1858_v18 = vld [vmem:[%s2527_s1 + $0x240] ss:$8 sps:$4 sm:$0xff]  }
  0x27   : > { %1166 = vmatprep.subr.bf16.mxu1 %v1782_v29  ;;  %v1863_v17 = vld [vmem:[%s2527_s1 + $0x344] ss:$8 sps:$4 sm:$0xff]   ;;  %v1861_v19 = vld [vmem:[%s2527_s1 + $0x340] ss:$8 sps:$4 sm:$0xff]   ;;  %v1866_v20 = vld [vmem:[%s2527_s1 + $0x234] ss:$8 sps:$4 sm:$0xff]  }
  0x28   : > { %v1869_v21 = vld [vmem:[%s2527_s1 + $0x334] ss:$8 sps:$4 sm:$0xff]   ;;  %v1864_v22 = vld [vmem:[%s2527_s1 + $0x230] ss:$8 sps:$4 sm:$0xff]   ;;  %v1872_v24 = vld [vmem:[%s2527_s1 + $0x224] ss:$8 sps:$4 sm:$0xff]  }
  0x29   : > { %1124 = vmatpush1.bf16.msra.mxu0 %v1784_v30  ;;  %v1867_v23 = vld [vmem:[%s2527_s1 + $0x330] ss:$8 sps:$4 sm:$0xff]   ;;  %v1875_v25 = vld [vmem:[%s2527_s1 + $0x324] ss:$8 sps:$4 sm:$0xff]   ;;  %v1870_v26 = vld [vmem:[%s2527_s1 + $0x220] ss:$8 sps:$4 sm:$0xff]  }
  0x2a   : > { %1167 = vmatpush1.bf16.msra.mxu1 %v1785_v31  ;;  %1125 = vmatprep.subr.bf16.mxu0 %v1786_v32  ;;  %v1873_v27 = vld [vmem:[%s2527_s1 + $0x320] ss:$8 sps:$4 sm:$0xff]   ;;  %v1878_v28 = vld [vmem:[%s2527_s1 + $0x214] ss:$8 sps:$4 sm:$0xff]   ;;  %v1876_v30 = vld [vmem:[%s2527_s1 + $0x210] ss:$8 sps:$4 sm:$0xff]  }
  0x2b   : > { %1168 = vmatprep.subr.bf16.mxu1 %v1788_v33  ;;  %v1881_v29 = vld [vmem:[%s2527_s1 + $0x314] ss:$8 sps:$4 sm:$0xff]   ;;  %v1879_v31 = vld [vmem:[%s2527_s1 + $0x310] ss:$8 sps:$4 sm:$0xff]   ;;  %v1884_v32 = vld [vmem:[%s2527_s1 + $0x204] ss:$8 sps:$4 sm:$0xff]  }
  0x2c   : > { %v1887_v33 = vld [vmem:[%s2527_s1 + $0x304] ss:$8 sps:$4 sm:$0xff]   ;;  %v1903_v49 = vld [vmem:[%s2527_s1 + $0x3d0] ss:$8 sps:$4 sm:$0xff]  }
  0x2d   : > { %1126 = vmatpush2.bf16.msra.mxu0 %v1790_v34  ;;  %v1938_v34 = vld [vmem:[%s2155_s13 + $0x14] ss:$36 sps:$4 sm:$0xff]   ;;  %v1911_v51 = vld [vmem:[%s2527_s1 + $0x3c4] ss:$8 sps:$4 sm:$0xff]  }
  0x2e   : > { %1169 = vmatpush2.bf16.msra.mxu1 %v1791_v35  ;;  %1127 = vmatprep.subr.bf16.mxu0 %v1792_v36  ;;  %v1882_v35 = vld [vmem:[%s2527_s1 + $0x200] ss:$8 sps:$4 sm:$0xff]  }
  0x2f   : > { %1170 = vmatprep.subr.bf16.mxu1 %v1794_v37  ;;  %v1885_v36 = vld [vmem:[%s2527_s1 + $0x300] ss:$8 sps:$4 sm:$0xff]  }
  0x30   : > { %v1944_v37 = vld [vmem:[%s2155_s13 + $0x1c] ss:$36 sps:$4 sm:$0xff]  }
  0x31   : > { %1128 = vmatpush2.bf16.msra.mxu0 %v1796_v38  ;;  %v1890_v38 = vld [vmem:[%s2527_s1 + $0x2f4] ss:$8 sps:$4 sm:$0xff]  }
  0x32   : > { %1171 = vmatpush2.bf16.msra.mxu1 %v1797_v39  ;;  %1129 = vmatprep.subr.bf16.mxu0 %v1798_v40  ;;  %v1893_v39 = vld [vmem:[%s2527_s1 + $0x3f4] ss:$8 sps:$4 sm:$0xff]   ;;  %v1888_v40 = vld [vmem:[%s2527_s1 + $0x2f0] ss:$8 sps:$4 sm:$0xff]  }
  0x33   : > { %1172 = vmatprep.subr.bf16.mxu1 %v1800_v41  ;;  %v1891_v41 = vld [vmem:[%s2527_s1 + $0x3f0] ss:$8 sps:$4 sm:$0xff]  }
  0x35   : > { %1130 = vmatpush2.bf16.msra.mxu0 %v1802_v42  ;;  %v1896_v42 = vld [vmem:[%s2527_s1 + $0x2e4] ss:$8 sps:$4 sm:$0xff]  }
  0x36   : > { %1173 = vmatpush2.bf16.msra.mxu1 %v1803_v43  ;;  %1131 = vmatprep.subr.bf16.mxu0 %v1804_v44  ;;  %v1899_v43 = vld [vmem:[%s2527_s1 + $0x3e4] ss:$8 sps:$4 sm:$0xff]   ;;  %v1894_v44 = vld [vmem:[%s2527_s1 + $0x2e0] ss:$8 sps:$4 sm:$0xff]  }
  0x37   : > { %1174 = vmatprep.subr.bf16.mxu1 %v1806_v45  ;;  %v1897_v45 = vld [vmem:[%s2527_s1 + $0x3e0] ss:$8 sps:$4 sm:$0xff]  }
  0x39   : > { %1132 = vmatpush2.bf16.msra.mxu0 %v1808_v46  ;;  %v1902_v46 = vld [vmem:[%s2527_s1 + $0x2d4] ss:$8 sps:$4 sm:$0xff]  }
  0x3a   : > { %1175 = vmatpush2.bf16.msra.mxu1 %v1809_v47  ;;  %1133 = vmatprep.subr.bf16.mxu0 %v1810_v48  ;;  %v1905_v47 = vld [vmem:[%s2527_s1 + $0x3d4] ss:$8 sps:$4 sm:$0xff]   ;;  %v1900_v48 = vld [vmem:[%s2527_s1 + $0x2d0] ss:$8 sps:$4 sm:$0xff]  }
  0x3b   : > { %1176 = vmatprep.subr.bf16.mxu1 %v1812_v50  ;;  %v1908_v50 = vld [vmem:[%s2527_s1 + $0x2c4] ss:$8 sps:$4 sm:$0xff]  }
  0x3d   : > { %1134 = vmatpush2.bf16.msra.mxu0 %v1814_v52  ;;  %v1906_v52 = vld [vmem:[%s2527_s1 + $0x2c0] ss:$8 sps:$4 sm:$0xff]  }
  0x3e   : > { %1177 = vmatpush2.bf16.msra.mxu1 %v1815_v53  ;;  %1135 = vmatprep.subr.bf16.mxu0 %v1816_v54  ;;  %v1909_v53 = vld [vmem:[%s2527_s1 + $0x3c0] ss:$8 sps:$4 sm:$0xff]   ;;  %v1914_v54 = vld [vmem:[%s2527_s1 + $0x2b4] ss:$8 sps:$4 sm:$0xff]  }
  0x3f   : > { %1178 = vmatprep.subr.bf16.mxu1 %v1818_v55  ;;  %v1917_v55 = vld [vmem:[%s2527_s1 + $0x3b4] ss:$8 sps:$4 sm:$0xff]  }
  0x41   : > { %1136 = vmatpush2.bf16.msra.mxu0 %v1820_v56  ;;  %v1912_v56 = vld [vmem:[%s2527_s1 + $0x2b0] ss:$8 sps:$4 sm:$0xff]  }
  0x42   : > { %1179 = vmatpush2.bf16.msra.mxu1 %v1821_v57  ;;  %1137 = vmatprep.subr.bf16.mxu0 %v1822_v58  ;;  %v1915_v57 = vld [vmem:[%s2527_s1 + $0x3b0] ss:$8 sps:$4 sm:$0xff]   ;;  %v1920_v58 = vld [vmem:[%s2527_s1 + $0x2a4] ss:$8 sps:$4 sm:$0xff]  }
  0x43   : > { %1180 = vmatprep.subr.bf16.mxu1 %v1824_v59  ;;  %v1923_v59 = vld [vmem:[%s2527_s1 + $0x3a4] ss:$8 sps:$4 sm:$0xff]  }
  0x45   : > { %1138 = vmatpush2.bf16.msra.mxu0 %v1826_v60  ;;  %v1918_v60 = vld [vmem:[%s2527_s1 + $0x2a0] ss:$8 sps:$4 sm:$0xff]  }
  0x46   : > { %1181 = vmatpush2.bf16.msra.mxu1 %v1827_v61  ;;  %1139 = vmatprep.subr.bf16.mxu0 %v1828_v62  ;;  %v1921_v61 = vld [vmem:[%s2527_s1 + $0x3a0] ss:$8 sps:$4 sm:$0xff]   ;;  %v1926_v62 = vld [vmem:[%s2527_s1 + $0x294] ss:$8 sps:$4 sm:$0xff]  }
  0x47   : > { %1182 = vmatprep.subr.bf16.mxu1 %v1830_v63  ;;  %v1929_v63 = vld [vmem:[%s2527_s1 + $0x394] ss:$8 sps:$4 sm:$0xff]  }
  0x49   : > { %1140 = vmatpush2.bf16.msra.mxu0 %v1832_v0  ;;  %v1924_v0 = vld [vmem:[%s2527_s1 + $0x290] ss:$8 sps:$4 sm:$0xff]  }
  0x4a   : > { %1183 = vmatpush2.bf16.msra.mxu1 %v1833_v1  ;;  %1195 = vmatprep.subr.bf16.mxu0 %v1842_v2  ;;  %v1927_v1 = vld [vmem:[%s2527_s1 + $0x390] ss:$8 sps:$4 sm:$0xff]   ;;  %v1932_v2 = vld [vmem:[%s2527_s1 + $0x284] ss:$8 sps:$4 sm:$0xff]  }
  0x4b   : > { %1238 = vmatprep.subr.bf16.mxu1 %v1845_v3  ;;  %v1935_v3 = vld [vmem:[%s2527_s1 + $0x384] ss:$8 sps:$4 sm:$0xff]  }
  0x4c   : > { %1142 = vmatmul.mubr.bf16.vlgmr.msra.gmra.mxu0 %v1834_v4  ;;  %v1930_v4 = vld [vmem:[%s2527_s1 + $0x280] ss:$8 sps:$4 sm:$0xff]  }
  0x4d   : > { %1185 = vmatmul.mubr.bf16.vlgmr.msra.gmra.mxu1 %v1837_v5  ;;  %1196 = vmatpush1.bf16.msra.mxu0 %v1840_v6  ;;  %v1933_v5 = vld [vmem:[%s2527_s1 + $0x380] ss:$8 sps:$4 sm:$0xff]   ;;  %v1941_v6 = vld [vmem:[%s2527_s1 + $0x474] ss:$8 sps:$4 sm:$0xff]  }
  0x4e   : > { %1239 = vmatpush1.bf16.msra.mxu1 %v1843_v7  ;;  %1197 = vmatprep.subr.bf16.mxu0 %v1848_v8  ;;  %v1936_v7 = vld [vmem:[%s2155_s13 + $0x10] ss:$36 sps:$4 sm:$0xff]   ;;  %v1942_v8 = vld [vmem:[%s2155_s13 + $0x18] ss:$36 sps:$4 sm:$0xff]  }
  0x4f   : > { %1240 = vmatprep.subr.bf16.mxu1 %v1851_v9  ;;  %1227 = vmatprep.mubr.bf16.mxu0 %v1938_v34  ;;  %v1939_v9 = vld [vmem:[%s2527_s1 + $0x470] ss:$8 sps:$4 sm:$0xff]  }
  0x50   : > { %1270 = vmatprep.mubr.bf16.mxu1 %v1944_v37 }
  0x51   : > { %1198 = vmatpush1.bf16.msra.mxu0 %v1846_v10  ;;  %v1947_v10 = vld [vmem:[%s2527_s1 + $0x464] ss:$8 sps:$4 sm:$0xff]  }
  0x52   : > { %1241 = vmatpush1.bf16.msra.mxu1 %v1849_v11  ;;  %1199 = vmatprep.subr.bf16.mxu0 %v1854_v12  ;;  %v1945_v11 = vld [vmem:[%s2527_s1 + $0x460] ss:$8 sps:$4 sm:$0xff]   ;;  %v1979_v12 = vmov 0  }
  0x53   : > { %1242 = vmatprep.subr.bf16.mxu1 %v1857_v13  ;;  %v1950_v13 = vld [vmem:[%s2527_s1 + $0x454] ss:$8 sps:$4 sm:$0xff]  }
  0x55   : > { %1200 = vmatpush1.bf16.msra.mxu0 %v1852_v14  ;;  %v1948_v14 = vld [vmem:[%s2527_s1 + $0x450] ss:$8 sps:$4 sm:$0xff]  }
  0x56   : > { %1243 = vmatpush1.bf16.msra.mxu1 %v1855_v15  ;;  %1201 = vmatprep.subr.bf16.mxu0 %v1860_v16  ;;  %v1953_v15 = vld [vmem:[%s2527_s1 + $0x444] ss:$8 sps:$4 sm:$0xff]   ;;  %v1951_v16 = vld [vmem:[%s2527_s1 + $0x440] ss:$8 sps:$4 sm:$0xff]  }
  0x57   : > { %1244 = vmatprep.subr.bf16.mxu1 %v1863_v17  ;;  %v1956_v17 = vld [vmem:[%s2527_s1 + $0x434] ss:$8 sps:$4 sm:$0xff]  }
  0x59   : > { %1202 = vmatpush1.bf16.msra.mxu0 %v1858_v18  ;;  %v1954_v18 = vld [vmem:[%s2527_s1 + $0x430] ss:$8 sps:$4 sm:$0xff]  }
  0x5a   : > { %1245 = vmatpush1.bf16.msra.mxu1 %v1861_v19  ;;  %1203 = vmatprep.subr.bf16.mxu0 %v1866_v20  ;;  %v1959_v19 = vld [vmem:[%s2527_s1 + $0x424] ss:$8 sps:$4 sm:$0xff]   ;;  %v1957_v20 = vld [vmem:[%s2527_s1 + $0x420] ss:$8 sps:$4 sm:$0xff]  }
  0x5b   : > { %1246 = vmatprep.subr.bf16.mxu1 %v1869_v21  ;;  %v1962_v21 = vld [vmem:[%s2527_s1 + $0x414] ss:$8 sps:$4 sm:$0xff]  }
  0x5d   : > { %1204 = vmatpush1.bf16.msra.mxu0 %v1864_v22  ;;  %v1960_v22 = vld [vmem:[%s2527_s1 + $0x410] ss:$8 sps:$4 sm:$0xff]  }
  0x5e   : > { %1247 = vmatpush1.bf16.msra.mxu1 %v1867_v23  ;;  %1205 = vmatprep.subr.bf16.mxu0 %v1872_v24  ;;  %v1965_v23 = vld [vmem:[%s2527_s1 + $0x404] ss:$8 sps:$4 sm:$0xff]   ;;  %v1963_v24 = vld [vmem:[%s2527_s1 + $0x400] ss:$8 sps:$4 sm:$0xff]  }
  0x5f   : > { %1248 = vmatprep.subr.bf16.mxu1 %v1875_v25  ;;  %v1966_v25 = vld [vmem:[%s2155_s13 + $0x20] ss:$36 sps:$4 sm:$0xff]   ;;  %s1722_s13 = sshll.u32 %s1325_s6, 4 }
  0x60   : > { %s1329_s7 = scalar_lea.vmem [#allocation2], %s1722_s13 }
  0x61   : > { %1206 = vmatpush1.bf16.msra.mxu0 %v1870_v26 }
  0x62   : > { %1249 = vmatpush1.bf16.msra.mxu1 %v1873_v27  ;;  %1207 = vmatprep.subr.bf16.mxu0 %v1878_v28 }
  0x63   : > { %1250 = vmatprep.subr.bf16.mxu1 %v1881_v29 }
  0x65   : > { %1208 = vmatpush1.bf16.msra.mxu0 %v1876_v30 }
  0x66   : > { %1251 = vmatpush1.bf16.msra.mxu1 %v1879_v31  ;;  %1209 = vmatprep.subr.bf16.mxu0 %v1884_v32 }
  0x67   : > { %1252 = vmatprep.subr.bf16.mxu1 %v1887_v33 }
  0x69   : > { %1210 = vmatpush1.bf16.msra.mxu0 %v1882_v35 }
  0x6a   : > { %1253 = vmatpush1.bf16.msra.mxu1 %v1885_v36  ;;  %1211 = vmatprep.subr.bf16.mxu0 %v1890_v38 }
  0x6b   : > { %1254 = vmatprep.subr.bf16.mxu1 %v1893_v39 }
  0x6d   : > { %1212 = vmatpush2.bf16.msra.mxu0 %v1888_v40 }
  0x6e   : > { %1255 = vmatpush2.bf16.msra.mxu1 %v1891_v41  ;;  %1213 = vmatprep.subr.bf16.mxu0 %v1896_v42 }
  0x6f   : > { %1256 = vmatprep.subr.bf16.mxu1 %v1899_v43 }
  0x71   : > { %1214 = vmatpush2.bf16.msra.mxu0 %v1894_v44 }
  0x72   : > { %1257 = vmatpush2.bf16.msra.mxu1 %v1897_v45  ;;  %1215 = vmatprep.subr.bf16.mxu0 %v1902_v46 }
  0x73   : > { %1258 = vmatprep.subr.bf16.mxu1 %v1905_v47 }
  0x75   : > { %1216 = vmatpush2.bf16.msra.mxu0 %v1900_v48 }
  0x76   : > { %1259 = vmatpush2.bf16.msra.mxu1 %v1903_v49  ;;  %1217 = vmatprep.subr.bf16.mxu0 %v1908_v50 }
  0x77   : > { %1260 = vmatprep.subr.bf16.mxu1 %v1911_v51 }
  0x79   : > { %1218 = vmatpush2.bf16.msra.mxu0 %v1906_v52 }
  0x7a   : > { %1261 = vmatpush2.bf16.msra.mxu1 %v1909_v53  ;;  %1219 = vmatprep.subr.bf16.mxu0 %v1914_v54 }
  0x7b   : > { %1262 = vmatprep.subr.bf16.mxu1 %v1917_v55 }
  0x7d   : > { %1220 = vmatpush2.bf16.msra.mxu0 %v1912_v56 }
  0x7e   : > { %1263 = vmatpush2.bf16.msra.mxu1 %v1915_v57  ;;  %1221 = vmatprep.subr.bf16.mxu0 %v1920_v58 }
  0x7f   : > { %1264 = vmatprep.subr.bf16.mxu1 %v1923_v59 }
  0x81   : > { %1222 = vmatpush2.bf16.msra.mxu0 %v1918_v60 }
  0x82   : > { %1265 = vmatpush2.bf16.msra.mxu1 %v1921_v61  ;;  %1223 = vmatprep.subr.bf16.mxu0 %v1926_v62 }
  0x83   : > { %1266 = vmatprep.subr.bf16.mxu1 %v1929_v63 }
  0x85   : > { %1224 = vmatpush2.bf16.msra.mxu0 %v1924_v0 }
  0x86   : > { %1267 = vmatpush2.bf16.msra.mxu1 %v1927_v1  ;;  %1225 = vmatprep.subr.bf16.mxu0 %v1932_v2 }
  0x87   : > { %1268 = vmatprep.subr.bf16.mxu1 %v1935_v3 }
  0x89   : > { %1226 = vmatpush2.bf16.msra.mxu0 %v1930_v4 }
  0x8a   : > { %1269 = vmatpush2.bf16.msra.mxu1 %v1933_v5  ;;  %1281 = vmatprep.subr.bf16.mxu0 %v1941_v6 }
  0x8c   : > { %1228 = vmatmul.mubr.bf16.vlgmr.msra.gmra.mxu0 %v1936_v7 }
  0x8d   : > { %1271 = vmatmul.mubr.bf16.vlgmr.msra.gmra.mxu1 %v1942_v8  ;;  %1282 = vmatpush1.bf16.msra.mxu0 %v1939_v9 }
  0x8e   : > { %1313 = vmatprep.mubr.bf16.mxu0 %v1979_v12  ;;  %1283 = vmatprep.subr.bf16.mxu0 %v1947_v10 }
  0x91   : > { %1284 = vmatpush1.bf16.msra.mxu0 %v1945_v11 }
  0x92   : > { %1285 = vmatprep.subr.bf16.mxu0 %v1950_v13 }
  0x95   : > { %1286 = vmatpush1.bf16.msra.mxu0 %v1948_v14 }
  0x96   : > { %1287 = vmatprep.subr.bf16.mxu0 %v1953_v15 }
  0x99   : > { %1288 = vmatpush1.bf16.msra.mxu0 %v1951_v16 }
  0x9a   : > { %1289 = vmatprep.subr.bf16.mxu0 %v1956_v17 }
  0x9d   : > { %1290 = vmatpush1.bf16.msra.mxu0 %v1954_v18 }
  0x9e   : > { %1291 = vmatprep.subr.bf16.mxu0 %v1959_v19 }
  0xa1   : > { %1292 = vmatpush1.bf16.msra.mxu0 %v1957_v20 }
  0xa2   : > { %1293 = vmatprep.subr.bf16.mxu0 %v1962_v21 }
  0xa5   : > { %1294 = vmatpush1.bf16.msra.mxu0 %v1960_v22 }
  0xa6   : > { %1295 = vmatprep.subr.bf16.mxu0 %v1965_v23 }
  0xa9   : > { %1296 = vmatpush1.bf16.msra.mxu0 %v1963_v24 }
  0xac   : > { %1314 = vmatmul.mubr.bf16.vlgmr.msra.gmra.mxu0 %v1966_v25 }
 0x10c   : > { %v1143_v26 = vpop.f32.mrf.mxu0 }
 0x10d   : > { %v1186_v27 = vpop.f32.mrf.mxu1 }
 0x10e   : > { %v1145_v28 = vpop.f32.mrf.mxu0  ;;  %v1187_v37 = vadd.f32 %v1186_v27, %v1143_v26 }
 0x10f   : > { %v1188_v29 = vpop.f32.mrf.mxu1 }
 0x110   : > { %v1147_v30 = vpop.f32.mrf.mxu0  ;;  %v1189_v40 = vadd.f32 %v1188_v29, %v1145_v28 }
 0x111   : > { %v1190_v31 = vpop.f32.mrf.mxu1 }
 0x112   : > { %v1149_v32 = vpop.f32.mrf.mxu0  ;;  %v1191_v42 = vadd.f32 %v1190_v31, %v1147_v30 }
 0x113   : > { %v1192_v34 = vpop.f32.mrf.mxu1 }
 0x114   : > { %v1193_v46 = vadd.f32 %v1192_v34, %v1149_v32 }
 0x14c   : > { %v1229_v33 = vpop.f32.mrf.mxu0 }
 0x14d   : > { %v1272_v36 = vpop.f32.mrf.mxu1  ;;  %v1230_v41 = vadd.f32 %v1229_v33, %v1187_v37 }
 0x14e   : > { %v1231_v35 = vpop.f32.mrf.mxu0 }
 0x14f   : > { %v1274_v39 = vpop.f32.mrf.mxu1  ;;  %v1232_v43 = vadd.f32 %v1231_v35, %v1189_v40  ;;  %v1273_v47 = vadd.f32 %v1272_v36, %v1230_v41 }
 0x150   : > { %v1233_v38 = vpop.f32.mrf.mxu0 }
 0x151   : > { %v1276_v45 = vpop.f32.mrf.mxu1  ;;  %v1234_v48 = vadd.f32 %v1233_v38, %v1191_v42  ;;  %v1275_v50 = vadd.f32 %v1274_v39, %v1232_v43 }
 0x152   : > { %v1235_v44 = vpop.f32.mrf.mxu0 }
 0x153   : > { %v1236_v51 = vadd.f32 %v1235_v44, %v1193_v46  ;;  %v1278_v53 = vpop.f32.mrf.mxu1  ;;  %v1277_v55 = vadd.f32 %v1276_v45, %v1234_v48 }
 0x155   : > { %v1279_v58 = vadd.f32 %v1278_v53, %v1236_v51 }
 0x16c   : > { %v1315_v49 = vpop.f32.mrf.mxu0 }
 0x16d   : > { %v1316_v52 = vadd.f32 %v1315_v49, %v1273_v47 }
 0x16e   : > { %v1317_v54 = vpop.f32.mrf.mxu0 }
 0x16f   : > { %1330 = vst [vmem:[%s1329_s7] sm:$0xff] %v1316_v52  ;;  %v1318_v56 = vadd.f32 %v1317_v54, %v1275_v50 }
 0x170   : > { %v1319_v57 = vpop.f32.mrf.mxu0 }
 0x171   : > { %1331 = vst [vmem:[%s1329_s7 + $0x8] sm:$0xff] %v1318_v56  ;;  %v1320_v59 = vadd.f32 %v1319_v57, %v1277_v55  ;;  %1337 = sbr.rel (%p1715_p4) target bundleno = 472 (0x1d8), region = 40 }
 0x172   : > { %v1321_v60 = vpop.f32.mrf.mxu0 }
 0x173   : > { %1332 = vst [vmem:[%s1329_s7 + $0x10] sm:$0xff] %v1320_v59  ;;  %v1322_v61 = vadd.f32 %v1321_v60, %v1279_v58 }
 0x175   : > { %1333 = vst [vmem:[%s1329_s7 + $0x18] sm:$0xff] %v1322_v61 }
 0x17c   : > { %v2465_v62 = vld [vmem:[#allocation2] sm:$0xff]  ;;  %v2467_v63 = vld [vmem:[#allocation2 + $0x8] sm:$0xff]  ;;  %v2469_v0 = vld [vmem:[#allocation2 + $0x10] sm:$0xff] }
 0x17d   : > { %v2471_v1 = vld [vmem:[#allocation2 + $0x18] sm:$0xff]  ;;  %v2473_v2 = vld [vmem:[#allocation2 + $0x20] sm:$0xff]  ;;  %v2475_v3 = vld [vmem:[#allocation2 + $0x28] sm:$0xff]  ;;  %v1346_v4 = vadd.f32 %v2469_v0, %v2465_v62 }
 0x17e   : > { %v2479_v5 = vld [vmem:[#allocation2 + $0x30] sm:$0xff]  ;;  %v1355_v6 = vadd.f32 %v2471_v1, %v2467_v63  ;;  %v2483_v7 = vld [vmem:[#allocation2 + $0x38] sm:$0xff] }
 0x17f   : > { %v1347_v8 = vadd.f32 %v1346_v4, %v2473_v2 }
 0x180   : > { %v1356_v9 = vadd.f32 %v1355_v6, %v2475_v3 }
 0x181   : > { %v1348_v10 = vadd.f32 %v1347_v8, %v2479_v5  ;;  %v1980_v8 = vmov 1966171168  }
 0x182   : > { %v1357_v11 = vadd.f32 %v1356_v9, %v2483_v7  ;;  %v1412_v9 = vunpack.c.l.s4 %v1980_v8 }
 0x183   : > { %v1349_v12 = vrot.slane %v1348_v10, 4 }
 0x184   : > { %v1358_v13 = vrot.slane %v1357_v11, 4 }
 0x185   : > { %v1350_v14 = vadd.f32 %v1349_v12, %v1348_v10  ;;  %v1414_v10 = vlaneseq }
 0x186   : > { %v1359_v15 = vadd.f32 %v1358_v13, %v1357_v11  ;;  %v1413_v11 = vunpack.c.0.s8 %v1412_v9 }
 0x187   : > { %v1351_v16 = vrot.slane %v1350_v14, 2  ;;  %v1415_v12 = vshrl.u32 %v1414_v10, 7 }
 0x188   : > { %v1360_v17 = vrot.slane %v1359_v15, 2 }
 0x189   : > { %v1352_v18 = vadd.f32 %v1351_v16, %v1350_v14  ;;  %v1416_v14 = vsub.s32 %v1413_v11, %v1415_v12 }
 0x18a   : > { %v1361_v19 = vadd.f32 %v1360_v17, %v1359_v15 }
 0x18b   : > { %v1353_v20 = vrot.slane %v1352_v18, 1 }
 0x18c   : > { %v1362_v21 = vrot.slane %v1361_v19, 1 }
 0x18d   : > { %v1354_v22 = vadd.f32 %v1353_v20, %v1352_v18  ;;  %v1403_v18 = vld [vmem:[%s2528_s2] sm:$0x3]  ;;  %v1431_v20 = vsub.s32 0, %v1415_v12 }
 0x18e   : > { %v1363_v23 = vadd.f32 %v1362_v21, %v1361_v19  ;;  %v1435_v21 = vsub.s32 1, %v1415_v12 }
 0x18f   : > { %v1365_v24 = vmul.f32 0.03125, %v1354_v22 }
 0x190   : > { %v1366_v25 = vmul.f32 0.03125, %v1363_v23 }
 0x191   : > { %v1367_v26 = vsub.f32 %v2465_v62, %v1365_v24  ;;  %v1369_v27 = vsub.f32 %v2469_v0, %v1365_v24  ;;  %v1371_v28 = vsub.f32 %v2473_v2, %v1365_v24  ;;  %v1373_v29 = vsub.f32 %v2479_v5, %v1365_v24 }
 0x192   : > { %v1368_v30 = vsub.f32 %v2467_v63, %v1366_v25  ;;  %v1370_v31 = vsub.f32 %v2471_v1, %v1366_v25  ;;  %v1372_v32 = vsub.f32 %v2475_v3, %v1366_v25  ;;  %v1374_v33 = vsub.f32 %v2483_v7, %v1366_v25 }
 0x193   : > { %v1375_v34 = vmul.f32 %v1367_v26, %v1367_v26  ;;  %v1377_v35 = vmul.f32 %v1369_v27, %v1369_v27  ;;  %v1379_v36 = vmul.f32 %v1371_v28, %v1371_v28  ;;  %v1381_v40 = vmul.f32 %v1373_v29, %v1373_v29 }
 0x194   : > { %v1376_v37 = vmul.f32 %v1368_v30, %v1368_v30  ;;  %v1378_v38 = vmul.f32 %v1370_v31, %v1370_v31  ;;  %v1380_v39 = vmul.f32 %v1372_v32, %v1372_v32  ;;  %v1382_v42 = vmul.f32 %v1374_v33, %v1374_v33  ;;  %v1427_v31 = vld [vmem:[%s2529_s3] sm:$0x3] }
 0x195   : > { %v1383_v41 = vadd.f32 %v1377_v35, %v1375_v34 }
 0x196   : > { %v1392_v43 = vadd.f32 %v1378_v38, %v1376_v37 }
 0x197   : > { %v1384_v44 = vadd.f32 %v1383_v41, %v1379_v36 }
 0x198   : > { %v1393_v45 = vadd.f32 %v1392_v43, %v1380_v39 }
 0x199   : > { %v1385_v46 = vadd.f32 %v1384_v44, %v1381_v40 }
 0x19a   : > { %v1394_v47 = vadd.f32 %v1393_v45, %v1382_v42 }
 0x19b   : > { %v1386_v48 = vrot.slane %v1385_v46, 4 }
 0x19c   : > { %v1395_v49 = vrot.slane %v1394_v47, 4 }
 0x19d   : > { %v1387_v50 = vadd.f32 %v1386_v48, %v1385_v46 }
 0x19e   : > { %v1396_v51 = vadd.f32 %v1395_v49, %v1394_v47 }
 0x19f   : > { %v1388_v52 = vrot.slane %v1387_v50, 2 }
 0x1a0   : > { %v1397_v53 = vrot.slane %v1396_v51, 2 }
 0x1a1   : > { %v1389_v54 = vadd.f32 %v1388_v52, %v1387_v50 }
 0x1a2   : > { %v1398_v55 = vadd.f32 %v1397_v53, %v1396_v51 }
 0x1a3   : > { %v1390_v56 = vrot.slane %v1389_v54, 1 }
 0x1a4   : > { %v1399_v57 = vrot.slane %v1398_v55, 1 }
 0x1a5   : > { %v1391_v58 = vadd.f32 %v1390_v56, %v1389_v54 }
 0x1a6   : > { %v1400_v59 = vadd.f32 %v1399_v57, %v1398_v55 }
 0x1a7   : > { %v1401_v60 = vmul.f32 0.03125, %v1391_v58 }
 0x1a8   : > { %v1402_v61 = vmul.f32 0.03125, %v1400_v59 }
 0x1a9   : > { %v1404_v4 = vadd.f32 1e-05, %v1401_v60 }
 0x1aa   : > { %v1405_v6 = vadd.f32 1e-05, %v1402_v61 }
 0x1ab   : > { %1967 = vrsqrt.f32 %v1404_v4 }
 0x1ac   : > { %1969 = vrsqrt.f32 %v1405_v6 }
 0x1b8   : > { %v1968_v13 = vpop.eup %1967 }
 0x1b9   : > { %v1970_v15 = vpop.eup %1969 }
 0x1ba   : > { %v1410_v16 = vcombine.low %v1968_v13, %v1970_v15 }
 0x1bc   : > { %v1417_v17 = vrot.slane %v1410_v16, %v1416_v14 }
 0x1be   : > { %v1424_v19 = vrot.slane %v1417_v17, %v1416_v14 }
 0x1c0   : > { %v1426_v22 = vmul.f32 %v1424_v19, %v1403_v18 }
 0x1c2   : > { %v1432_v23 = vrot.slane %v1426_v22, %v1431_v20  ;;  %v1436_v26 = vrot.slane %v1426_v22, %v1435_v21 }
 0x1c4   : > { %v1439_v27 = vmul.f32 %v1432_v23, %v1365_v24  ;;  %v1440_v28 = vmul.f32 %v1436_v26, %v1366_v25  ;;  %v1460_v33 = vmul.f32 %v1432_v23, %v2465_v62  ;;  %v1461_v35 = vmul.f32 %v1436_v26, %v2467_v63 }
 0x1c5   : > { %v1462_v36 = vmul.f32 %v1432_v23, %v2469_v0  ;;  %v1463_v37 = vmul.f32 %v1436_v26, %v2471_v1  ;;  %v1464_v38 = vmul.f32 %v1432_v23, %v2473_v2  ;;  %v1465_v24 = vmul.f32 %v1436_v26, %v2475_v3 }
 0x1c6   : > { %v1443_v29 = vcombine.low %v1439_v27, %v1440_v28  ;;  %v1466_v25 = vmul.f32 %v1432_v23, %v2479_v5  ;;  %v1467_v39 = vmul.f32 %v1436_v26, %v2483_v7 }
 0x1c8   : > { %v1450_v30 = vrot.slane %v1443_v29, %v1416_v14 }
 0x1ca   : > { %v1457_v32 = vrot.slane %v1450_v30, %v1416_v14 }
 0x1cc   : > { %v1459_v34 = vsub.f32 %v1427_v31, %v1457_v32 }
 0x1ce   : > { %v1472_v40 = vrot.slane %v1459_v34, %v1431_v20  ;;  %v1476_v41 = vrot.slane %v1459_v34, %v1435_v21 }
 0x1d0   : > { %v1479_v42 = vadd.f32 %v1472_v40, %v1460_v33  ;;  %v1480_v43 = vadd.f32 %v1476_v41, %v1461_v35  ;;  %v1481_v62 = vadd.f32 %v1472_v40, %v1462_v36  ;;  %v1482_v44 = vadd.f32 %v1476_v41, %v1463_v37 }
 0x1d1   : > { %v1483_v45 = vadd.f32 %v1472_v40, %v1464_v38  ;;  %v1484_v63 = vadd.f32 %v1476_v41, %v1465_v24  ;;  %v1485_v46 = vadd.f32 %v1472_v40, %v1466_v25  ;;  %v1486_v0 = vadd.f32 %v1476_v41, %v1467_v39 }
 0x1d2   : > { %v1487_v47 = vmax.f32 %v1479_v42, 0.0  ;;  %v1488_v1 = vmax.f32 %v1480_v43, 0.0  ;;  %v1489_v48 = vmax.f32 %v1481_v62, 0.0  ;;  %v1490_v2 = vmax.f32 %v1482_v44, 0.0 }
 0x1d3   : > { %v1491_v49 = vmax.f32 %v1483_v45, 0.0  ;;  %v1492_v3 = vmax.f32 %v1484_v63, 0.0  ;;  %v1493_v50 = vmax.f32 %v1485_v46, 0.0  ;;  %v1494_v5 = vmax.f32 %v1486_v0, 0.0 }
 0x1d4   : > { %v1723_v51 = vpack.c.bf16 %v1488_v1, %v1487_v47  ;;  %v1724_v7 = vpack.c.bf16 %v1490_v2, %v1489_v48 }
 0x1d5   : > { %v1725_v52 = vpack.c.bf16 %v1492_v3, %v1491_v49  ;;  %v1726_v53 = vpack.c.bf16 %v1494_v5, %v1493_v50 }
 0x1d6   : > { %1519 = vst [vmem:[%s2530_s4] sm:$0xff] %v1723_v51  ;;  %1520 = vst [vmem:[%s2530_s4 + $0x8] sm:$0xff] %v1724_v7 }
 0x1d7   : > { %1521 = vst [vmem:[%s2530_s4 + $0x10] sm:$0xff] %v1725_v52  ;;  %1522 = vst [vmem:[%s2530_s4 + $0x18] sm:$0xff] %v1726_v53 }
 0x1d8 PF: > { %s14_s15 = sadd.s32 1, %s1977_s15  }
 0x1d9   : > { %p11_p5 = scmp.ge.s32.totalorder %s14_s15, 4  }
 0x1db   :  { %13 = sbr.rel (!%p11_p5) target bundleno = 1 (0x1), region = 67 }

// kernel: unet_forward.9
= control target key start
LH: loop header
LB: loop body
LE: loop exit
PB: predicated region body
PF: predicated region fallthrough
CT: control target
= control target key end

     0   :  { %s5156_s15 = smov 0   ;;  %s6258_s0 = inlined_call_operand.vmem [shape: bf16[128,3456], index: 0, kind: input, shape index: {}]   ;;  %s6259_s1 = inlined_call_operand.vmem [shape: bf16[3456,128], index: 1, kind: input, shape index: {}]   ;;  %s6260_s2 = inlined_call_operand.vmem [shape: f32[1,128], index: 2, kind: input, shape index: {}]   ;;  %s6261_s3 = inlined_call_operand.vmem [shape: f32[1,128], index: 3, kind: input, shape index: {}]   ;;  %s6262_s4 = inlined_call_operand.vmem [shape: bf16[128,128], index: 4, kind: output, shape index: {}]  }
   0x1 LB: > { %s5162_s16 = sadd.s32 4294967295, %s5129_s15   ;;  %p3770_p0 = scmp.ge.s32.totalorder %s5129_s15, 1  ;;  %s5129_s15 = sphi %s5156_s15, %s14_s15  }
   0x2   : > { %p159_p1 = scmp.lt.s32.totalorder %s5129_s15, 3 }
   0x4   : > { %p160_p2 = pnand %p3770_p0, %p159_p1 }
   0x6   : > { %163 = sbr.rel (%p160_p2) target bundleno = 636 (0x27c), region = 36 }
   0xb   : > { %v4745_v0 = vld [vmem:[%s6259_s1 + $0x78] sm:$0xff]   ;;  %v4749_v4 = vld [vmem:[%s6259_s1 + $0x70] sm:$0xff]   ;;  %v4753_v8 = vld [vmem:[%s6259_s1 + $0x68] sm:$0xff]   ;;  %s3771_s23 = sshll.u32 %s5162_s16, 3  ;;  %p4098_p4 = scmp.ne.s32.totalorder %s5162_s16, 1 }
   0xc   : > { %v4746_v1 = vld [vmem:[%s6259_s1 + $0xf8] sm:$0xff]   ;;  %4180 = vmatprep.subr.bf16.mxu0 %v4745_v0  ;;  %v4750_v5 = vld [vmem:[%s6259_s1 + $0xf0] sm:$0xff]   ;;  %v4754_v9 = vld [vmem:[%s6259_s1 + $0xe8] sm:$0xff]   ;;  %p182_p3 = scmp.lt.s32.totalorder %s3771_s23, 15 }
   0xd   : > { %v4747_v2 = vld [vmem:[%s6259_s1 + $0x38] sm:$0xff]   ;;  %4220 = vmatprep.subr.bf16.mxu1 %v4746_v1  ;;  %v4751_v6 = vld [vmem:[%s6259_s1 + $0x30] sm:$0xff]   ;;  %v4755_v10 = vld [vmem:[%s6259_s1 + $0x28] sm:$0xff]  }
   0xe   : > { %v4748_v3 = vld [vmem:[%s6259_s1 + $0xb8] sm:$0xff]   ;;  %4181 = vmatpush3.bf16.msra.mxu0 %v4747_v2  ;;  %v4752_v7 = vld [vmem:[%s6259_s1 + $0xb0] sm:$0xff]   ;;  %v4756_v11 = vld [vmem:[%s6259_s1 + $0xa8] sm:$0xff]   ;;  %s6292_s23 = smov (!%p182_p3, %s3771_s23), 15 }
   0xf   : > { %4221 = vmatpush3.bf16.msra.mxu1 %v4748_v3  ;;  %4182 = vmatprep.subr.bf16.mxu0 %v4749_v4  ;;  %v4757_v12 = vld [vmem:[%s6259_s1 + $0x60] sm:$0xff]   ;;  %v4761_v16 = vld [vmem:[%s6259_s1 + $0x58] sm:$0xff]   ;;  %v4765_v20 = vld [vmem:[%s6259_s1 + $0x50] sm:$0xff]   ;;  %s4736_s22 = smul.u32 108, %s6292_s23 }
  0x10   : > { %4222 = vmatprep.subr.bf16.mxu1 %v4750_v5  ;;  %v4758_v13 = vld [vmem:[%s6259_s1 + $0xe0] sm:$0xff]   ;;  %v4762_v17 = vld [vmem:[%s6259_s1 + $0xd8] sm:$0xff]   ;;  %v4766_v21 = vld [vmem:[%s6259_s1 + $0xd0] sm:$0xff]  }
  0x11   : > { %v4759_v14 = vld [vmem:[%s6259_s1 + $0x20] sm:$0xff]   ;;  %v4763_v18 = vld [vmem:[%s6259_s1 + $0x18] sm:$0xff]   ;;  %v4767_v22 = vld [vmem:[%s6259_s1 + $0x10] sm:$0xff]   ;;  %s5260_s7 = scalar_lea.vmem %s6258_s0, %s4736_s22 }
  0x12   : > { %4183 = vmatpush3.bf16.msra.mxu0 %v4751_v6  ;;  %v4760_v15 = vld [vmem:[%s6259_s1 + $0xa0] sm:$0xff]   ;;  %v4764_v19 = vld [vmem:[%s6259_s1 + $0x98] sm:$0xff]   ;;  %v4768_v23 = vld [vmem:[%s6259_s1 + $0x90] sm:$0xff]  }
  0x13   : > { %4223 = vmatpush3.bf16.msra.mxu1 %v4752_v7  ;;  %4184 = vmatprep.subr.bf16.mxu0 %v4753_v8  ;;  %v4769_v24 = vld [vmem:[%s6259_s1 + $0x48] sm:$0xff]   ;;  %v4773_v28 = vld [vmem:[%s6259_s1 + $0x40] sm:$0xff]   ;;  %v4783_v36 = vld [vmem:[%s6259_s1 + $0x178] sm:$0xff]  }
  0x14   : > { %4224 = vmatprep.subr.bf16.mxu1 %v4754_v9  ;;  %v4770_v25 = vld [vmem:[%s6259_s1 + $0xc8] sm:$0xff]   ;;  %v4774_v29 = vld [vmem:[%s6259_s1 + $0xc0] sm:$0xff]   ;;  %v4784_v37 = vld [vmem:[%s6259_s1 + $0x138] sm:$0xff]  }
  0x15   : > { %v4771_v26 = vld [vmem:[%s6259_s1 + $0x8] sm:$0xff]   ;;  %v4775_v30 = vld [vmem:[%s6259_s1] sm:$0xff]   ;;  %v4785_v38 = vld [vmem:[%s6259_s1 + $0x1f8] sm:$0xff]  }
  0x16   : > { %4185 = vmatpush3.bf16.msra.mxu0 %v4755_v10  ;;  %v4772_v27 = vld [vmem:[%s6259_s1 + $0x88] sm:$0xff]   ;;  %v4776_v31 = vld [vmem:[%s6259_s1 + $0x80] sm:$0xff]   ;;  %v4786_v39 = vld [vmem:[%s6259_s1 + $0x1b8] sm:$0xff]  }
  0x17   : > { %4225 = vmatpush3.bf16.msra.mxu1 %v4756_v11  ;;  %4186 = vmatprep.subr.bf16.mxu0 %v4757_v12  ;;  %v4777_v32 = vld [vmem:[%s5260_s7] ss:$108 sps:$4 sm:$0xff]   ;;  %v4779_v33 = vld [vmem:[%s5260_s7 + $0x4] ss:$108 sps:$4 sm:$0xff]   ;;  %v4780_v34 = vld [vmem:[%s5260_s7 + $0x8] ss:$108 sps:$4 sm:$0xff]  }
  0x18   : > { %4226 = vmatprep.subr.bf16.mxu1 %v4758_v13  ;;  %v4782_v35 = vld [vmem:[%s5260_s7 + $0xc] ss:$108 sps:$4 sm:$0xff]   ;;  %2605 = vmatprep.mubr.bf16.mxu0 %v4779_v33  ;;  %v4787_v40 = vld [vmem:[%s6259_s1 + $0x170] sm:$0xff]   ;;  %v4790_v43 = vld [vmem:[%s5260_s7 + $0xdc] ss:$108 sps:$4 sm:$0xff]  }
  0x19   : > { %2670 = vmatprep.mubr.bf16.mxu1 %v4782_v35  ;;  %v4788_v41 = vld [vmem:[%s6259_s1 + $0x130] sm:$0xff]   ;;  %v4795_v46 = vld [vmem:[%s5260_s7 + $0xd8] ss:$108 sps:$4 sm:$0xff]   ;;  %v4796_v47 = vld [vmem:[%s5260_s7 + $0xe0] ss:$108 sps:$4 sm:$0xff]  }
  0x1a   : > { %4187 = vmatpush3.bf16.msra.mxu0 %v4759_v14  ;;  %v4789_v42 = vld [vmem:[%s6259_s1 + $0x1f0] sm:$0xff]   ;;  %v4797_v48 = vld [vmem:[%s6259_s1 + $0x168] sm:$0xff]   ;;  %v4801_v52 = vld [vmem:[%s6259_s1 + $0x160] sm:$0xff]  }
  0x1b   : > { %4227 = vmatpush3.bf16.msra.mxu1 %v4760_v15  ;;  %4188 = vmatprep.subr.bf16.mxu0 %v4761_v16  ;;  %v4792_v44 = vld [vmem:[%s5260_s7 + $0xe4] ss:$108 sps:$4 sm:$0xff]   ;;  %v4798_v49 = vld [vmem:[%s6259_s1 + $0x128] sm:$0xff]   ;;  %v4804_v55 = vld [vmem:[%s5260_s7 + $0x1b4] ss:$108 sps:$4 sm:$0xff]  }
  0x1c   : > { %4228 = vmatprep.subr.bf16.mxu1 %v4762_v17  ;;  %v4794_v45 = vld [vmem:[%s6259_s1 + $0x1b0] sm:$0xff]   ;;  %v4799_v50 = vld [vmem:[%s6259_s1 + $0x1e8] sm:$0xff]   ;;  %v4802_v53 = vld [vmem:[%s6259_s1 + $0x120] sm:$0xff]  }
  0x1d   : > { %v4800_v51 = vld [vmem:[%s6259_s1 + $0x1a8] sm:$0xff]   ;;  %v4803_v54 = vld [vmem:[%s6259_s1 + $0x1e0] sm:$0xff]   ;;  %v4809_v58 = vld [vmem:[%s5260_s7 + $0x1b0] ss:$108 sps:$4 sm:$0xff]  }
  0x1e   : > { %4189 = vmatpush3.bf16.msra.mxu0 %v4763_v18  ;;  %v4806_v56 = vld [vmem:[%s5260_s7 + $0x1bc] ss:$108 sps:$4 sm:$0xff]   ;;  %v4808_v57 = vld [vmem:[%s6259_s1 + $0x1a0] sm:$0xff]   ;;  %v4815_v0 = vld [vmem:[%s6259_s1 + $0x150] sm:$0xff]  }
  0x1f   : > { %4229 = vmatpush3.bf16.msra.mxu1 %v4764_v19  ;;  %4190 = vmatprep.subr.bf16.mxu0 %v4765_v20  ;;  %v4810_v59 = vld [vmem:[%s5260_s7 + $0x1b8] ss:$108 sps:$4 sm:$0xff]   ;;  %v4816_v1 = vld [vmem:[%s6259_s1 + $0x110] sm:$0xff]   ;;  %v4825_v8 = vld [vmem:[%s6259_s1 + $0x148] sm:$0xff]  }
  0x20   : > { %4230 = vmatprep.subr.bf16.mxu1 %v4766_v21  ;;  %v4811_v60 = vld [vmem:[%s6259_s1 + $0x158] sm:$0xff]   ;;  %v4817_v2 = vld [vmem:[%s6259_s1 + $0x1d0] sm:$0xff]   ;;  %v4826_v9 = vld [vmem:[%s6259_s1 + $0x108] sm:$0xff]  }
  0x21   : > { %v4812_v61 = vld [vmem:[%s6259_s1 + $0x118] sm:$0xff]   ;;  %v4820_v4 = vld [vmem:[%s5260_s7 + $0x294] ss:$108 sps:$4 sm:$0xff]   ;;  %v4827_v10 = vld [vmem:[%s6259_s1 + $0x1c8] sm:$0xff]  }
  0x22   : > { %4191 = vmatpush3.bf16.msra.mxu0 %v4767_v22  ;;  %v4813_v62 = vld [vmem:[%s6259_s1 + $0x1d8] sm:$0xff]   ;;  %v4822_v5 = vld [vmem:[%s6259_s1 + $0x190] sm:$0xff]   ;;  %v4828_v11 = vld [vmem:[%s6259_s1 + $0x188] sm:$0xff]  }
  0x23   : > { %4231 = vmatpush3.bf16.msra.mxu1 %v4768_v23  ;;  %4192 = vmatprep.subr.bf16.mxu0 %v4769_v24  ;;  %v4814_v63 = vld [vmem:[%s6259_s1 + $0x198] sm:$0xff]   ;;  %v4823_v6 = vld [vmem:[%s5260_s7 + $0x288] ss:$108 sps:$4 sm:$0xff]   ;;  %v4829_v12 = vld [vmem:[%s6259_s1 + $0x140] sm:$0xff]  }
  0x24   : > { %4232 = vmatprep.subr.bf16.mxu1 %v4770_v25  ;;  %v4818_v3 = vld [vmem:[%s5260_s7 + $0x28c] ss:$108 sps:$4 sm:$0xff]   ;;  %v4824_v7 = vld [vmem:[%s5260_s7 + $0x290] ss:$108 sps:$4 sm:$0xff]   ;;  %v4830_v13 = vld [vmem:[%s6259_s1 + $0x100] sm:$0xff]  }
  0x25   : > { %v4831_v14 = vld [vmem:[%s6259_s1 + $0x1c0] sm:$0xff]   ;;  %v4832_v15 = vld [vmem:[%s5260_s7 + $0x10] ss:$108 sps:$4 sm:$0xff]   ;;  %v4856_v35 = vld [vmem:[%s6259_s1 + $0x2a8] sm:$0xff]  }
  0x26   : > { %4193 = vmatpush3.bf16.msra.mxu0 %v4771_v26  ;;  %v4834_v16 = vld [vmem:[%s5260_s7 + $0x14] ss:$108 sps:$4 sm:$0xff]   ;;  %v4836_v18 = vld [vmem:[%s6259_s1 + $0x278] sm:$0xff]  }
  0x27   : > { %4233 = vmatpush3.bf16.msra.mxu1 %v4772_v27  ;;  %4194 = vmatprep.subr.bf16.mxu0 %v4773_v28  ;;  %v4835_v17 = vld [vmem:[%s6259_s1 + $0x180] sm:$0xff]   ;;  %v4839_v20 = vld [vmem:[%s5260_s7 + $0x1c] ss:$108 sps:$4 sm:$0xff]   ;;  %v4843_v24 = vld [vmem:[%s6259_s1 + $0x270] sm:$0xff]  }
  0x28   : > { %4234 = vmatprep.subr.bf16.mxu1 %v4774_v29  ;;  %v4837_v19 = vld [vmem:[%s5260_s7 + $0x18] ss:$108 sps:$4 sm:$0xff]   ;;  %v4844_v25 = vld [vmem:[%s6259_s1 + $0x230] sm:$0xff]  }
  0x29   : > { %v4840_v21 = vld [vmem:[%s6259_s1 + $0x238] sm:$0xff]   ;;  %v4845_v26 = vld [vmem:[%s6259_s1 + $0x2f0] sm:$0xff]  }
  0x2a   : > { %4195 = vmatpush3.bf16.msra.mxu0 %v4775_v30  ;;  %v4841_v22 = vld [vmem:[%s6259_s1 + $0x2f8] sm:$0xff]   ;;  %v4848_v28 = vld [vmem:[%s6259_s1 + $0x2b0] sm:$0xff]   ;;  %v4850_v30 = vld [vmem:[%s6259_s1 + $0x268] sm:$0xff]  }
  0x2b   : > { %4235 = vmatpush3.bf16.msra.mxu1 %v4776_v31  ;;  %4260 = vmatprep.subr.bf16.mxu0 %v4783_v36  ;;  %v4842_v23 = vld [vmem:[%s6259_s1 + $0x2b8] sm:$0xff]   ;;  %v4849_v29 = vld [vmem:[%s5260_s7 + $0xe8] ss:$108 sps:$4 sm:$0xff]   ;;  %v4857_v36 = vld [vmem:[%s6259_s1 + $0x260] sm:$0xff]  }
  0x2c   : > { %4300 = vmatprep.subr.bf16.mxu1 %v4785_v38  ;;  %v4846_v27 = vld [vmem:[%s5260_s7 + $0xec] ss:$108 sps:$4 sm:$0xff]   ;;  %v4851_v31 = vld [vmem:[%s5260_s7 + $0xf4] ss:$108 sps:$4 sm:$0xff]   ;;  %v4854_v33 = vld [vmem:[%s5260_s7 + $0xf0] ss:$108 sps:$4 sm:$0xff]  }
  0x2d   : > { %2606 = vmatmul.mubr.bf16.vlgmr.msra.gmra.mxu0 %v4777_v32  ;;  %v4853_v32 = vld [vmem:[%s6259_s1 + $0x228] sm:$0xff]   ;;  %v4859_v38 = vld [vmem:[%s6259_s1 + $0x2e0] sm:$0xff]  }
  0x2e   : > { %2671 = vmatmul.mubr.bf16.vlgmr.msra.gmra.mxu1 %v4780_v34  ;;  %4261 = vmatpush3.bf16.msra.mxu0 %v4784_v37  ;;  %v4855_v34 = vld [vmem:[%s6259_s1 + $0x2e8] sm:$0xff]   ;;  %v4858_v37 = vld [vmem:[%s6259_s1 + $0x220] sm:$0xff]  }
  0x2f   : > { %4301 = vmatpush3.bf16.msra.mxu1 %v4786_v39  ;;  %4262 = vmatprep.subr.bf16.mxu0 %v4787_v40  ;;  %v4860_v39 = vld [vmem:[%s5260_s7 + $0x1c4] ss:$108 sps:$4 sm:$0xff]  }
  0x30   : > { %4302 = vmatprep.subr.bf16.mxu1 %v4789_v42  ;;  %2613 = vmatprep.mubr.bf16.mxu0 %v4790_v43  ;;  %v4862_v40 = vld [vmem:[%s6259_s1 + $0x2a0] sm:$0xff]   ;;  %v4864_v42 = vld [vmem:[%s6259_s1 + $0x258] sm:$0xff]  }
  0x31   : > { %2678 = vmatprep.mubr.bf16.mxu1 %v4792_v44  ;;  %v4865_v43 = vld [vmem:[%s5260_s7 + $0x1cc] ss:$108 sps:$4 sm:$0xff]  }
  0x32   : > { %4263 = vmatpush3.bf16.msra.mxu0 %v4788_v41  ;;  %v4863_v41 = vld [vmem:[%s5260_s7 + $0x1c0] ss:$108 sps:$4 sm:$0xff]   ;;  %v4867_v44 = vld [vmem:[%s6259_s1 + $0x218] sm:$0xff]  }
  0x33   : > { %4303 = vmatpush3.bf16.msra.mxu1 %v4794_v45  ;;  %4264 = vmatprep.subr.bf16.mxu0 %v4797_v48  ;;  %v4868_v45 = vld [vmem:[%s5260_s7 + $0x1c8] ss:$108 sps:$4 sm:$0xff]  }
  0x34   : > { %4304 = vmatprep.subr.bf16.mxu1 %v4799_v50  ;;  %v4871_v48 = vld [vmem:[%s6259_s1 + $0x250] sm:$0xff]  }
  0x35   : > { %2614 = vmatmul.mubr.bf16.gmra.mxu0 %v4795_v46  ;;  %v4869_v46 = vld [vmem:[%s6259_s1 + $0x2d8] sm:$0xff]   ;;  %v4873_v50 = vld [vmem:[%s6259_s1 + $0x2d0] sm:$0xff]  }
  0x36   : > { %2679 = vmatmul.mubr.bf16.gmra.mxu1 %v4796_v47  ;;  %4265 = vmatpush3.bf16.msra.mxu0 %v4798_v49  ;;  %v4870_v47 = vld [vmem:[%s6259_s1 + $0x298] sm:$0xff]   ;;  %v4872_v49 = vld [vmem:[%s6259_s1 + $0x210] sm:$0xff]  }
  0x37   : > { %4305 = vmatpush3.bf16.msra.mxu1 %v4800_v51  ;;  %4266 = vmatprep.subr.bf16.mxu0 %v4801_v52  ;;  %v4874_v51 = vld [vmem:[%s5260_s7 + $0x29c] ss:$108 sps:$4 sm:$0xff]   ;;  %v4876_v52 = vld [vmem:[%s6259_s1 + $0x290] sm:$0xff]  }
  0x38   : > { %4306 = vmatprep.subr.bf16.mxu1 %v4803_v54  ;;  %2621 = vmatprep.mubr.bf16.mxu0 %v4804_v55  ;;  %v4878_v54 = vld [vmem:[%s6259_s1 + $0x248] sm:$0xff]   ;;  %v4879_v55 = vld [vmem:[%s5260_s7 + $0x2a4] ss:$108 sps:$4 sm:$0xff]  }
  0x39   : > { %2686 = vmatprep.mubr.bf16.mxu1 %v4806_v56  ;;  %v4881_v56 = vld [vmem:[%s6259_s1 + $0x208] sm:$0xff]  }
  0x3a   : > { %4267 = vmatpush3.bf16.msra.mxu0 %v4802_v53  ;;  %v4877_v53 = vld [vmem:[%s5260_s7 + $0x298] ss:$108 sps:$4 sm:$0xff]  }
  0x3b   : > { %4307 = vmatpush3.bf16.msra.mxu1 %v4808_v57  ;;  %4268 = vmatprep.subr.bf16.mxu0 %v4811_v60  ;;  %v4882_v57 = vld [vmem:[%s5260_s7 + $0x2a0] ss:$108 sps:$4 sm:$0xff]  }
  0x3c   : > { %4308 = vmatprep.subr.bf16.mxu1 %v4813_v62  ;;  %v4885_v60 = vld [vmem:[%s6259_s1 + $0x240] sm:$0xff]  }
  0x3d   : > { %2622 = vmatmul.mubr.bf16.gmra.mxu0 %v4809_v58  ;;  %v4883_v58 = vld [vmem:[%s6259_s1 + $0x2c8] sm:$0xff]   ;;  %v4887_v62 = vld [vmem:[%s6259_s1 + $0x2c0] sm:$0xff]  }
  0x3e   : > { %2687 = vmatmul.mubr.bf16.gmra.mxu1 %v4810_v59  ;;  %4269 = vmatpush3.bf16.msra.mxu0 %v4812_v61  ;;  %v4884_v59 = vld [vmem:[%s6259_s1 + $0x288] sm:$0xff]   ;;  %v4886_v61 = vld [vmem:[%s6259_s1 + $0x200] sm:$0xff]  }
  0x3f   : > { %4309 = vmatpush3.bf16.msra.mxu1 %v4814_v63  ;;  %4270 = vmatprep.subr.bf16.mxu0 %v4815_v0  ;;  %v4888_v63 = vld [vmem:[%s5260_s7 + $0x20] ss:$108 sps:$4 sm:$0xff]   ;;  %v4890_v0 = vld [vmem:[%s5260_s7 + $0x24] ss:$108 sps:$4 sm:$0xff]  }
  0x40   : > { %4310 = vmatprep.subr.bf16.mxu1 %v4817_v2  ;;  %2629 = vmatprep.mubr.bf16.mxu0 %v4818_v3  ;;  %v4892_v2 = vld [vmem:[%s6259_s1 + $0x378] sm:$0xff]   ;;  %v4893_v3 = vld [vmem:[%s5260_s7 + $0x28] ss:$108 sps:$4 sm:$0xff]  }
  0x41   : > { %2694 = vmatprep.mubr.bf16.mxu1 %v4820_v4  ;;  %v4895_v4 = vld [vmem:[%s5260_s7 + $0x2c] ss:$108 sps:$4 sm:$0xff]  }
  0x42   : > { %4271 = vmatpush3.bf16.msra.mxu0 %v4816_v1  ;;  %v4891_v1 = vld [vmem:[%s6259_s1 + $0x280] sm:$0xff]  }
  0x43   : > { %4311 = vmatpush3.bf16.msra.mxu1 %v4822_v5  ;;  %4272 = vmatprep.subr.bf16.mxu0 %v4825_v8  ;;  %v4896_v5 = vld [vmem:[%s6259_s1 + $0x338] sm:$0xff]   ;;  %v4899_v8 = vld [vmem:[%s6259_s1 + $0x370] sm:$0xff]  }
  0x44   : > { %4312 = vmatprep.subr.bf16.mxu1 %v4827_v10  ;;  %v4901_v10 = vld [vmem:[%s6259_s1 + $0x3f0] sm:$0xff]  }
  0x45   : > { %2630 = vmatmul.mubr.bf16.gmra.mxu0 %v4823_v6  ;;  %v4897_v6 = vld [vmem:[%s6259_s1 + $0x3f8] sm:$0xff]  }
  0x46   : > { %2695 = vmatmul.mubr.bf16.gmra.mxu1 %v4824_v7  ;;  %4273 = vmatpush3.bf16.msra.mxu0 %v4826_v9  ;;  %v4898_v7 = vld [vmem:[%s6259_s1 + $0x3b8] sm:$0xff]   ;;  %v4900_v9 = vld [vmem:[%s6259_s1 + $0x330] sm:$0xff]  }
  0x47   : > { %4313 = vmatpush3.bf16.msra.mxu1 %v4828_v11  ;;  %4274 = vmatprep.subr.bf16.mxu0 %v4829_v12  ;;  %v4902_v11 = vld [vmem:[%s5260_s7 + $0xfc] ss:$108 sps:$4 sm:$0xff]   ;;  %v4904_v12 = vld [vmem:[%s6259_s1 + $0x3b0] sm:$0xff]  }
  0x48   : > { %4314 = vmatprep.subr.bf16.mxu1 %v4831_v14  ;;  %2735 = vmatprep.mubr.bf16.mxu0 %v4834_v16  ;;  %v4906_v14 = vld [vmem:[%s6259_s1 + $0x368] sm:$0xff]  }
  0x49   : > { %2800 = vmatprep.mubr.bf16.mxu1 %v4839_v20  ;;  %v4909_v16 = vld [vmem:[%s6259_s1 + $0x328] sm:$0xff]   ;;  %v4913_v20 = vld [vmem:[%s6259_s1 + $0x360] sm:$0xff]  }
  0x4a   : > { %4275 = vmatpush3.bf16.msra.mxu0 %v4830_v13  ;;  %v4905_v13 = vld [vmem:[%s5260_s7 + $0xf8] ss:$108 sps:$4 sm:$0xff]  }
  0x4b   : > { %4315 = vmatpush3.bf16.msra.mxu1 %v4835_v17  ;;  %4340 = vmatprep.subr.bf16.mxu0 %v4836_v18  ;;  %v4910_v17 = vld [vmem:[%s5260_s7 + $0x100] ss:$108 sps:$4 sm:$0xff]  }
  0x4c   : > { %4380 = vmatprep.subr.bf16.mxu1 %v4841_v22  ;;  %v4911_v18 = vld [vmem:[%s6259_s1 + $0x3e8] sm:$0xff]   ;;  %v4915_v22 = vld [vmem:[%s6259_s1 + $0x3e0] sm:$0xff]  }
  0x4d   : > { %2736 = vmatmul.mubr.bf16.vlgmr.msra.gmra.mxu0 %v4832_v15  ;;  %v4907_v15 = vld [vmem:[%s5260_s7 + $0x104] ss:$108 sps:$4 sm:$0xff]  }
  0x4e   : > { %4341 = vmatpush3.bf16.msra.mxu0 %v4840_v21  ;;  %2801 = vmatmul.mubr.bf16.vlgmr.msra.gmra.mxu1 %v4837_v19  ;;  %v4912_v19 = vld [vmem:[%s6259_s1 + $0x3a8] sm:$0xff]   ;;  %v4914_v21 = vld [vmem:[%s6259_s1 + $0x320] sm:$0xff]  }
  0x4f   : > { %4381 = vmatpush3.bf16.msra.mxu1 %v4842_v23  ;;  %4342 = vmatprep.subr.bf16.mxu0 %v4843_v24  ;;  %v4916_v23 = vld [vmem:[%s5260_s7 + $0x1d4] ss:$108 sps:$4 sm:$0xff]  }
  0x50   : > { %4382 = vmatprep.subr.bf16.mxu1 %v4845_v26  ;;  %2743 = vmatprep.mubr.bf16.mxu0 %v4846_v27  ;;  %v4918_v24 = vld [vmem:[%s6259_s1 + $0x3a0] sm:$0xff]   ;;  %v4920_v26 = vld [vmem:[%s6259_s1 + $0x358] sm:$0xff]  }
  0x51   : > { %2808 = vmatprep.mubr.bf16.mxu1 %v4851_v31  ;;  %v4921_v27 = vld [vmem:[%s5260_s7 + $0x1dc] ss:$108 sps:$4 sm:$0xff]  }
  0x52   : > { %4343 = vmatpush3.bf16.msra.mxu0 %v4844_v25  ;;  %v4919_v25 = vld [vmem:[%s5260_s7 + $0x1d0] ss:$108 sps:$4 sm:$0xff]  }
  0x53   : > { %4383 = vmatpush3.bf16.msra.mxu1 %v4848_v28  ;;  %4344 = vmatprep.subr.bf16.mxu0 %v4850_v30  ;;  %v4923_v28 = vld [vmem:[%s6259_s1 + $0x318] sm:$0xff]  }
  0x54   : > { %4384 = vmatprep.subr.bf16.mxu1 %v4855_v34  ;;  %v4925_v30 = vld [vmem:[%s6259_s1 + $0x3d8] sm:$0xff]   ;;  %v4929_v34 = vld [vmem:[%s6259_s1 + $0x3d0] sm:$0xff]  }
  0x55   : > { %2744 = vmatmul.mubr.bf16.gmra.mxu0 %v4849_v29  ;;  %v4924_v29 = vld [vmem:[%s5260_s7 + $0x1d8] ss:$108 sps:$4 sm:$0xff]  }
  0x56   : > { %4345 = vmatpush3.bf16.msra.mxu0 %v4853_v32  ;;  %2809 = vmatmul.mubr.bf16.gmra.mxu1 %v4854_v33  ;;  %v4926_v31 = vld [vmem:[%s6259_s1 + $0x398] sm:$0xff]   ;;  %v4927_v32 = vld [vmem:[%s6259_s1 + $0x350] sm:$0xff]  }
  0x57   : > { %4385 = vmatpush3.bf16.msra.mxu1 %v4856_v35  ;;  %4346 = vmatprep.subr.bf16.mxu0 %v4857_v36  ;;  %v4928_v33 = vld [vmem:[%s6259_s1 + $0x310] sm:$0xff]   ;;  %v4930_v35 = vld [vmem:[%s5260_s7 + $0x2ac] ss:$108 sps:$4 sm:$0xff]  }
  0x58   : > { %4386 = vmatprep.subr.bf16.mxu1 %v4859_v38  ;;  %2751 = vmatprep.mubr.bf16.mxu0 %v4860_v39  ;;  %v4932_v36 = vld [vmem:[%s6259_s1 + $0x390] sm:$0xff]   ;;  %v4934_v38 = vld [vmem:[%s6259_s1 + $0x348] sm:$0xff]  }
  0x59   : > { %2816 = vmatprep.mubr.bf16.mxu1 %v4865_v43  ;;  %v4935_v39 = vld [vmem:[%s5260_s7 + $0x2b4] ss:$108 sps:$4 sm:$0xff]   ;;  %v4940_v43 = vld [vmem:[%s6259_s1 + $0x388] sm:$0xff]  }
  0x5a   : > { %4347 = vmatpush3.bf16.msra.mxu0 %v4858_v37  ;;  %v4933_v37 = vld [vmem:[%s5260_s7 + $0x2a8] ss:$108 sps:$4 sm:$0xff]  }
  0x5b   : > { %4387 = vmatpush3.bf16.msra.mxu1 %v4862_v40  ;;  %4348 = vmatprep.subr.bf16.mxu0 %v4864_v42  ;;  %v4937_v40 = vld [vmem:[%s6259_s1 + $0x308] sm:$0xff]  }
  0x5c   : > { %4388 = vmatprep.subr.bf16.mxu1 %v4869_v46  ;;  %v4939_v42 = vld [vmem:[%s6259_s1 + $0x3c8] sm:$0xff]   ;;  %v4943_v46 = vld [vmem:[%s6259_s1 + $0x3c0] sm:$0xff]  }
  0x5d   : > { %2752 = vmatmul.mubr.bf16.gmra.mxu0 %v4863_v41  ;;  %v4938_v41 = vld [vmem:[%s5260_s7 + $0x2b0] ss:$108 sps:$4 sm:$0xff]  }
  0x5e   : > { %4349 = vmatpush3.bf16.msra.mxu0 %v4867_v44  ;;  %2817 = vmatmul.mubr.bf16.gmra.mxu1 %v4868_v45  ;;  %v4941_v44 = vld [vmem:[%s6259_s1 + $0x340] sm:$0xff]  }
  0x5f   : > { %4389 = vmatpush3.bf16.msra.mxu1 %v4870_v47  ;;  %4350 = vmatprep.subr.bf16.mxu0 %v4871_v48  ;;  %v4942_v45 = vld [vmem:[%s6259_s1 + $0x300] sm:$0xff]   ;;  %v4944_v47 = vld [vmem:[%s5260_s7 + $0x30] ss:$108 sps:$4 sm:$0xff]  }
  0x60   : > { %4390 = vmatprep.subr.bf16.mxu1 %v4873_v50  ;;  %2759 = vmatprep.mubr.bf16.mxu0 %v4874_v51  ;;  %v4946_v48 = vld [vmem:[%s5260_s7 + $0x34] ss:$108 sps:$4 sm:$0xff]   ;;  %v4948_v50 = vld [vmem:[%s6259_s1 + $0x478] sm:$0xff]  }
  0x61   : > { %2824 = vmatprep.mubr.bf16.mxu1 %v4879_v55  ;;  %v4949_v51 = vld [vmem:[%s5260_s7 + $0x38] ss:$108 sps:$4 sm:$0xff]  }
  0x62   : > { %4351 = vmatpush3.bf16.msra.mxu0 %v4872_v49  ;;  %v4947_v49 = vld [vmem:[%s6259_s1 + $0x380] sm:$0xff]   ;;  %v4954_v55 = vld [vmem:[%s6259_s1 + $0x4b8] sm:$0xff]  }
  0x63   : > { %4391 = vmatpush3.bf16.msra.mxu1 %v4876_v52  ;;  %4352 = vmatprep.subr.bf16.mxu0 %v4878_v54  ;;  %v4951_v52 = vld [vmem:[%s5260_s7 + $0x3c] ss:$108 sps:$4 sm:$0xff]  }
  0x64   : > { %4392 = vmatprep.subr.bf16.mxu1 %v4883_v58  ;;  %v4953_v54 = vld [vmem:[%s6259_s1 + $0x4f8] sm:$0xff]   ;;  %v4957_v58 = vld [vmem:[%s6259_s1 + $0x4f0] sm:$0xff]  }
  0x65   : > { %2760 = vmatmul.mubr.bf16.gmra.mxu0 %v4877_v53  ;;  %v4952_v53 = vld [vmem:[%s6259_s1 + $0x438] sm:$0xff]  }
  0x66   : > { %4353 = vmatpush3.bf16.msra.mxu0 %v4881_v56  ;;  %2825 = vmatmul.mubr.bf16.gmra.mxu1 %v4882_v57  ;;  %v4955_v56 = vld [vmem:[%s6259_s1 + $0x470] sm:$0xff]  }
  0x67   : > { %4393 = vmatpush3.bf16.msra.mxu1 %v4884_v59  ;;  %4354 = vmatprep.subr.bf16.mxu0 %v4885_v60  ;;  %v4956_v57 = vld [vmem:[%s6259_s1 + $0x430] sm:$0xff]   ;;  %v4958_v59 = vld [vmem:[%s5260_s7 + $0x10c] ss:$108 sps:$4 sm:$0xff]  }
  0x68   : > { %4394 = vmatprep.subr.bf16.mxu1 %v4887_v62  ;;  %2865 = vmatprep.mubr.bf16.mxu0 %v4890_v0  ;;  %v4960_v60 = vld [vmem:[%s6259_s1 + $0x4b0] sm:$0xff]   ;;  %v4962_v62 = vld [vmem:[%s6259_s1 + $0x468] sm:$0xff]  }
  0x69   : > { %2930 = vmatprep.mubr.bf16.mxu1 %v4895_v4  ;;  %v4965_v0 = vld [vmem:[%s6259_s1 + $0x428] sm:$0xff]   ;;  %v4969_v4 = vld [vmem:[%s6259_s1 + $0x460] sm:$0xff]  }
  0x6a   : > { %4355 = vmatpush3.bf16.msra.mxu0 %v4886_v61  ;;  %v4961_v61 = vld [vmem:[%s5260_s7 + $0x108] ss:$108 sps:$4 sm:$0xff]  }
  0x6b   : > { %4395 = vmatpush3.bf16.msra.mxu1 %v4891_v1  ;;  %4420 = vmatprep.subr.bf16.mxu0 %v4892_v2  ;;  %v4966_v1 = vld [vmem:[%s5260_s7 + $0x110] ss:$108 sps:$4 sm:$0xff]   ;;  %v4967_v2 = vld [vmem:[%s6259_s1 + $0x4e8] sm:$0xff]  }
  0x6c   : > { %4460 = vmatprep.subr.bf16.mxu1 %v4897_v6  ;;  %v4971_v6 = vld [vmem:[%s6259_s1 + $0x4e0] sm:$0xff]  }
  0x6d   : > { %2866 = vmatmul.mubr.bf16.vlgmr.msra.gmra.mxu0 %v4888_v63  ;;  %v4963_v63 = vld [vmem:[%s5260_s7 + $0x114] ss:$108 sps:$4 sm:$0xff]  }
  0x6e   : > { %4421 = vmatpush3.bf16.msra.mxu0 %v4896_v5  ;;  %2931 = vmatmul.mubr.bf16.vlgmr.msra.gmra.mxu1 %v4893_v3  ;;  %v4968_v3 = vld [vmem:[%s6259_s1 + $0x4a8] sm:$0xff]   ;;  %v4970_v5 = vld [vmem:[%s6259_s1 + $0x420] sm:$0xff]  }
  0x6f   : > { %4461 = vmatpush3.bf16.msra.mxu1 %v4898_v7  ;;  %4422 = vmatprep.subr.bf16.mxu0 %v4899_v8  ;;  %v4972_v7 = vld [vmem:[%s5260_s7 + $0x1e4] ss:$108 sps:$4 sm:$0xff]  }
  0x70   : > { %4462 = vmatprep.subr.bf16.mxu1 %v4901_v10  ;;  %2873 = vmatprep.mubr.bf16.mxu0 %v4902_v11  ;;  %v4974_v8 = vld [vmem:[%s6259_s1 + $0x4a0] sm:$0xff]   ;;  %v4976_v10 = vld [vmem:[%s6259_s1 + $0x458] sm:$0xff]  }
  0x71   : > { %2938 = vmatprep.mubr.bf16.mxu1 %v4907_v15  ;;  %v4977_v11 = vld [vmem:[%s5260_s7 + $0x1ec] ss:$108 sps:$4 sm:$0xff]  }
  0x72   : > { %4423 = vmatpush3.bf16.msra.mxu0 %v4900_v9  ;;  %v4975_v9 = vld [vmem:[%s5260_s7 + $0x1e0] ss:$108 sps:$4 sm:$0xff]   ;;  %v4982_v15 = vld [vmem:[%s6259_s1 + $0x498] sm:$0xff]  }
  0x73   : > { %4463 = vmatpush3.bf16.msra.mxu1 %v4904_v12  ;;  %4424 = vmatprep.subr.bf16.mxu0 %v4906_v14  ;;  %v4979_v12 = vld [vmem:[%s6259_s1 + $0x418] sm:$0xff]  }
  0x74   : > { %4464 = vmatprep.subr.bf16.mxu1 %v4911_v18  ;;  %v4981_v14 = vld [vmem:[%s6259_s1 + $0x4d8] sm:$0xff]   ;;  %v4985_v18 = vld [vmem:[%s6259_s1 + $0x4d0] sm:$0xff]  }
  0x75   : > { %2874 = vmatmul.mubr.bf16.gmra.mxu0 %v4905_v13  ;;  %v4980_v13 = vld [vmem:[%s5260_s7 + $0x1e8] ss:$108 sps:$4 sm:$0xff]  }
  0x76   : > { %4425 = vmatpush3.bf16.msra.mxu0 %v4909_v16  ;;  %2939 = vmatmul.mubr.bf16.gmra.mxu1 %v4910_v17  ;;  %v4983_v16 = vld [vmem:[%s6259_s1 + $0x450] sm:$0xff]  }
  0x77   : > { %4465 = vmatpush3.bf16.msra.mxu1 %v4912_v19  ;;  %4426 = vmatprep.subr.bf16.mxu0 %v4913_v20  ;;  %v4984_v17 = vld [vmem:[%s6259_s1 + $0x410] sm:$0xff]   ;;  %v4986_v19 = vld [vmem:[%s5260_s7 + $0x2bc] ss:$108 sps:$4 sm:$0xff]  }
  0x78   : > { %4466 = vmatprep.subr.bf16.mxu1 %v4915_v22  ;;  %2881 = vmatprep.mubr.bf16.mxu0 %v4916_v23  ;;  %v4988_v20 = vld [vmem:[%s6259_s1 + $0x490] sm:$0xff]   ;;  %v4990_v22 = vld [vmem:[%s6259_s1 + $0x448] sm:$0xff]  }
  0x79   : > { %2946 = vmatprep.mubr.bf16.mxu1 %v4921_v27  ;;  %v4991_v23 = vld [vmem:[%s5260_s7 + $0x2c4] ss:$108 sps:$4 sm:$0xff]   ;;  %v4996_v27 = vld [vmem:[%s6259_s1 + $0x488] sm:$0xff]  }
  0x7a   : > { %4427 = vmatpush3.bf16.msra.mxu0 %v4914_v21  ;;  %v4989_v21 = vld [vmem:[%s5260_s7 + $0x2b8] ss:$108 sps:$4 sm:$0xff]  }
  0x7b   : > { %4467 = vmatpush3.bf16.msra.mxu1 %v4918_v24  ;;  %4428 = vmatprep.subr.bf16.mxu0 %v4920_v26  ;;  %v4993_v24 = vld [vmem:[%s6259_s1 + $0x408] sm:$0xff]  }
  0x7c   : > { %4468 = vmatprep.subr.bf16.mxu1 %v4925_v30  ;;  %v4995_v26 = vld [vmem:[%s6259_s1 + $0x4c8] sm:$0xff]   ;;  %v4999_v30 = vld [vmem:[%s6259_s1 + $0x4c0] sm:$0xff]  }
  0x7d   : > { %2882 = vmatmul.mubr.bf16.gmra.mxu0 %v4919_v25  ;;  %v4994_v25 = vld [vmem:[%s5260_s7 + $0x2c0] ss:$108 sps:$4 sm:$0xff]  }
  0x7e   : > { %4429 = vmatpush3.bf16.msra.mxu0 %v4923_v28  ;;  %2947 = vmatmul.mubr.bf16.gmra.mxu1 %v4924_v29  ;;  %v4997_v28 = vld [vmem:[%s6259_s1 + $0x440] sm:$0xff]  }
  0x7f   : > { %4469 = vmatpush3.bf16.msra.mxu1 %v4926_v31  ;;  %4430 = vmatprep.subr.bf16.mxu0 %v4927_v32  ;;  %v4998_v29 = vld [vmem:[%s6259_s1 + $0x400] sm:$0xff]  }
  0x80   : > { %4470 = vmatprep.subr.bf16.mxu1 %v4929_v34  ;;  %2889 = vmatprep.mubr.bf16.mxu0 %v4930_v35  ;;  %v5000_v31 = vld [vmem:[%s5260_s7 + $0x40] ss:$108 sps:$4 sm:$0xff]   ;;  %v5002_v32 = vld [vmem:[%s5260_s7 + $0x44] ss:$108 sps:$4 sm:$0xff]   ;;  %v5004_v34 = vld [vmem:[%s6259_s1 + $0x578] sm:$0xff]  }
  0x81   : > { %2954 = vmatprep.mubr.bf16.mxu1 %v4935_v39  ;;  %v5005_v35 = vld [vmem:[%s5260_s7 + $0x48] ss:$108 sps:$4 sm:$0xff]   ;;  %v5010_v39 = vld [vmem:[%s6259_s1 + $0x5b8] sm:$0xff]  }
  0x82   : > { %4431 = vmatpush3.bf16.msra.mxu0 %v4928_v33  ;;  %v5003_v33 = vld [vmem:[%s6259_s1 + $0x480] sm:$0xff]  }
  0x83   : > { %4471 = vmatpush3.bf16.msra.mxu1 %v4932_v36  ;;  %4432 = vmatprep.subr.bf16.mxu0 %v4934_v38  ;;  %v5007_v36 = vld [vmem:[%s5260_s7 + $0x4c] ss:$108 sps:$4 sm:$0xff]  }
  0x84   : > { %4472 = vmatprep.subr.bf16.mxu1 %v4939_v42  ;;  %v5009_v38 = vld [vmem:[%s6259_s1 + $0x5f8] sm:$0xff]   ;;  %v5013_v42 = vld [vmem:[%s6259_s1 + $0x5f0] sm:$0xff]  }
  0x85   : > { %2890 = vmatmul.mubr.bf16.gmra.mxu0 %v4933_v37  ;;  %v5008_v37 = vld [vmem:[%s6259_s1 + $0x538] sm:$0xff]  }
  0x86   : > { %4433 = vmatpush3.bf16.msra.mxu0 %v4937_v40  ;;  %2955 = vmatmul.mubr.bf16.gmra.mxu1 %v4938_v41  ;;  %v5011_v40 = vld [vmem:[%s6259_s1 + $0x570] sm:$0xff]  }
  0x87   : > { %4473 = vmatpush3.bf16.msra.mxu1 %v4940_v43  ;;  %4434 = vmatprep.subr.bf16.mxu0 %v4941_v44  ;;  %v5012_v41 = vld [vmem:[%s6259_s1 + $0x530] sm:$0xff]   ;;  %v5014_v43 = vld [vmem:[%s5260_s7 + $0x11c] ss:$108 sps:$4 sm:$0xff]  }
  0x88   : > { %4474 = vmatprep.subr.bf16.mxu1 %v4943_v46  ;;  %2995 = vmatprep.mubr.bf16.mxu0 %v4946_v48  ;;  %v5016_v44 = vld [vmem:[%s6259_s1 + $0x5b0] sm:$0xff]   ;;  %v5018_v46 = vld [vmem:[%s6259_s1 + $0x568] sm:$0xff]  }
  0x89   : > { %3060 = vmatprep.mubr.bf16.mxu1 %v4951_v52  ;;  %v5021_v48 = vld [vmem:[%s6259_s1 + $0x528] sm:$0xff]   ;;  %v5025_v52 = vld [vmem:[%s6259_s1 + $0x560] sm:$0xff]  }
  0x8a   : > { %4435 = vmatpush3.bf16.msra.mxu0 %v4942_v45  ;;  %v5017_v45 = vld [vmem:[%s5260_s7 + $0x118] ss:$108 sps:$4 sm:$0xff]  }
  0x8b   : > { %4475 = vmatpush3.bf16.msra.mxu1 %v4947_v49  ;;  %4500 = vmatprep.subr.bf16.mxu0 %v4948_v50  ;;  %v5022_v49 = vld [vmem:[%s5260_s7 + $0x120] ss:$108 sps:$4 sm:$0xff]  }
  0x8c   : > { %4540 = vmatprep.subr.bf16.mxu1 %v4953_v54  ;;  %v5023_v50 = vld [vmem:[%s6259_s1 + $0x5e8] sm:$0xff]   ;;  %v5027_v54 = vld [vmem:[%s6259_s1 + $0x5e0] sm:$0xff]  }
  0x8d   : > { %2996 = vmatmul.mubr.bf16.vlgmr.msra.gmra.mxu0 %v4944_v47  ;;  %v5019_v47 = vld [vmem:[%s5260_s7 + $0x124] ss:$108 sps:$4 sm:$0xff]  }
  0x8e   : > { %4501 = vmatpush3.bf16.msra.mxu0 %v4952_v53  ;;  %3061 = vmatmul.mubr.bf16.vlgmr.msra.gmra.mxu1 %v4949_v51  ;;  %v5024_v51 = vld [vmem:[%s6259_s1 + $0x5a8] sm:$0xff]   ;;  %v5026_v53 = vld [vmem:[%s6259_s1 + $0x520] sm:$0xff]  }
  0x8f   : > { %4541 = vmatpush3.bf16.msra.mxu1 %v4954_v55  ;;  %4502 = vmatprep.subr.bf16.mxu0 %v4955_v56  ;;  %v5028_v55 = vld [vmem:[%s5260_s7 + $0x1f4] ss:$108 sps:$4 sm:$0xff]  }
  0x90   : > { %4542 = vmatprep.subr.bf16.mxu1 %v4957_v58  ;;  %3003 = vmatprep.mubr.bf16.mxu0 %v4958_v59  ;;  %v5030_v56 = vld [vmem:[%s6259_s1 + $0x5a0] sm:$0xff]   ;;  %v5032_v58 = vld [vmem:[%s6259_s1 + $0x558] sm:$0xff]  }
  0x91   : > { %3068 = vmatprep.mubr.bf16.mxu1 %v4963_v63  ;;  %v5033_v59 = vld [vmem:[%s5260_s7 + $0x1fc] ss:$108 sps:$4 sm:$0xff]  }
  0x92   : > { %4503 = vmatpush3.bf16.msra.mxu0 %v4956_v57  ;;  %v5031_v57 = vld [vmem:[%s5260_s7 + $0x1f0] ss:$108 sps:$4 sm:$0xff]  }
  0x93   : > { %4543 = vmatpush3.bf16.msra.mxu1 %v4960_v60  ;;  %4504 = vmatprep.subr.bf16.mxu0 %v4962_v62  ;;  %v5035_v60 = vld [vmem:[%s6259_s1 + $0x518] sm:$0xff]  }
  0x94   : > { %4544 = vmatprep.subr.bf16.mxu1 %v4967_v2  ;;  %v5037_v63 = vld [vmem:[%s6259_s1 + $0x5d8] sm:$0xff]  }
  0x95   : > { %3004 = vmatmul.mubr.bf16.gmra.mxu0 %v4961_v61  ;;  %v5036_v61 = vld [vmem:[%s5260_s7 + $0x1f8] ss:$108 sps:$4 sm:$0xff]  }
  0x96   : > { %4505 = vmatpush3.bf16.msra.mxu0 %v4965_v0  ;;  %3069 = vmatmul.mubr.bf16.gmra.mxu1 %v4966_v1  ;;  %v5038_v1 = vld [vmem:[%s6259_s1 + $0x598] sm:$0xff]  }
  0x97   : > { %4545 = vmatpush3.bf16.msra.mxu1 %v4968_v3  ;;  %4506 = vmatprep.subr.bf16.mxu0 %v4969_v4  ;;  %v5039_v3 = vld [vmem:[%s6259_s1 + $0x550] sm:$0xff]  }
  0x98   : > { %4546 = vmatprep.subr.bf16.mxu1 %v4971_v6  ;;  %3011 = vmatprep.mubr.bf16.mxu0 %v4972_v7  ;;  %v5040_v6 = vld [vmem:[%s6259_s1 + $0x510] sm:$0xff]  }
  0x99   : > { %3076 = vmatprep.mubr.bf16.mxu1 %v4977_v11  ;;  %v5042_v11 = vld [vmem:[%s5260_s7 + $0x2cc] ss:$108 sps:$4 sm:$0xff]  }
  0x9a   : > { %4507 = vmatpush3.bf16.msra.mxu0 %v4970_v5 }
  0x9b   : > { %4547 = vmatpush3.bf16.msra.mxu1 %v4974_v8  ;;  %4508 = vmatprep.subr.bf16.mxu0 %v4976_v10 }
  0x9c   : > { %4548 = vmatprep.subr.bf16.mxu1 %v4981_v14  ;;  %v5044_v14 = vld [vmem:[%s6259_s1 + $0x590] sm:$0xff]  }
  0x9d   : > { %3012 = vmatmul.mubr.bf16.gmra.mxu0 %v4975_v9  ;;  %v5041_v9 = vld [vmem:[%s6259_s1 + $0x5d0] sm:$0xff]  }
  0x9e   : > { %4509 = vmatpush3.bf16.msra.mxu0 %v4979_v12  ;;  %3077 = vmatmul.mubr.bf16.gmra.mxu1 %v4980_v13 }
  0x9f   : > { %4549 = vmatpush3.bf16.msra.mxu1 %v4982_v15  ;;  %4510 = vmatprep.subr.bf16.mxu0 %v4983_v16  ;;  %v5045_v15 = vld [vmem:[%s5260_s7 + $0x2c8] ss:$108 sps:$4 sm:$0xff]  }
  0xa0   : > { %4550 = vmatprep.subr.bf16.mxu1 %v4985_v18  ;;  %3019 = vmatprep.mubr.bf16.mxu0 %v4986_v19  ;;  %v5046_v18 = vld [vmem:[%s6259_s1 + $0x548] sm:$0xff]  }
  0xa1   : > { %3084 = vmatprep.mubr.bf16.mxu1 %v4991_v23 }
  0xa2   : > { %4511 = vmatpush3.bf16.msra.mxu0 %v4984_v17 }
  0xa3   : > { %4551 = vmatpush3.bf16.msra.mxu1 %v4988_v20  ;;  %4512 = vmatprep.subr.bf16.mxu0 %v4990_v22  ;;  %v5047_v20 = vld [vmem:[%s5260_s7 + $0x2d4] ss:$108 sps:$4 sm:$0xff]  }
  0xa4   : > { %4552 = vmatprep.subr.bf16.mxu1 %v4995_v26  ;;  %v5051_v26 = vld [vmem:[%s6259_s1 + $0x5c8] sm:$0xff]  }
  0xa5   : > { %3020 = vmatmul.mubr.bf16.gmra.mxu0 %v4989_v21  ;;  %v5049_v21 = vld [vmem:[%s6259_s1 + $0x508] sm:$0xff]  }
  0xa6   : > { %4513 = vmatpush3.bf16.msra.mxu0 %v4993_v24  ;;  %3085 = vmatmul.mubr.bf16.gmra.mxu1 %v4994_v25  ;;  %v5050_v24 = vld [vmem:[%s5260_s7 + $0x2d0] ss:$108 sps:$4 sm:$0xff]  }
  0xa7   : > { %4553 = vmatpush3.bf16.msra.mxu1 %v4996_v27  ;;  %4514 = vmatprep.subr.bf16.mxu0 %v4997_v28  ;;  %v5052_v28 = vld [vmem:[%s6259_s1 + $0x588] sm:$0xff]  }
  0xa8   : > { %4554 = vmatprep.subr.bf16.mxu1 %v4999_v30  ;;  %3125 = vmatprep.mubr.bf16.mxu0 %v5002_v32 }
  0xa9   : > { %3190 = vmatprep.mubr.bf16.mxu1 %v5007_v36  ;;  %v5055_v36 = vld [vmem:[%s6259_s1 + $0x5c0] sm:$0xff]  }
  0xaa   : > { %4515 = vmatpush3.bf16.msra.mxu0 %v4998_v29 }
  0xab   : > { %4555 = vmatpush3.bf16.msra.mxu1 %v5003_v33  ;;  %4580 = vmatprep.subr.bf16.mxu0 %v5004_v34  ;;  %v5054_v34 = vld [vmem:[%s6259_s1 + $0x500] sm:$0xff]  }
  0xac   : > { %4620 = vmatprep.subr.bf16.mxu1 %v5009_v38 }
  0xad   : > { %3126 = vmatmul.mubr.bf16.vlgmr.msra.gmra.mxu0 %v5000_v31  ;;  %v5053_v31 = vld [vmem:[%s6259_s1 + $0x540] sm:$0xff]  }
  0xae   : > { %4581 = vmatpush3.bf16.msra.mxu0 %v5008_v37  ;;  %3191 = vmatmul.mubr.bf16.vlgmr.msra.gmra.mxu1 %v5005_v35 }
  0xaf   : > { %4621 = vmatpush3.bf16.msra.mxu1 %v5010_v39  ;;  %4582 = vmatprep.subr.bf16.mxu0 %v5011_v40  ;;  %v5056_v39 = vld [vmem:[%s5260_s7 + $0x50] ss:$108 sps:$4 sm:$0xff]   ;;  %v5058_v40 = vld [vmem:[%s5260_s7 + $0x54] ss:$108 sps:$4 sm:$0xff]  }
  0xb0   : > { %4622 = vmatprep.subr.bf16.mxu1 %v5013_v42  ;;  %3133 = vmatprep.mubr.bf16.mxu0 %v5014_v43  ;;  %v5059_v43 = vld [vmem:[%s6259_s1 + $0x580] sm:$0xff]  }
  0xb1   : > { %3198 = vmatprep.mubr.bf16.mxu1 %v5019_v47  ;;  %v5063_v47 = vld [vmem:[%s5260_s7 + $0x5c] ss:$108 sps:$4 sm:$0xff]  }
  0xb2   : > { %4583 = vmatpush3.bf16.msra.mxu0 %v5012_v41 }
  0xb3   : > { %4623 = vmatpush3.bf16.msra.mxu1 %v5016_v44  ;;  %4584 = vmatprep.subr.bf16.mxu0 %v5018_v46  ;;  %v5061_v46 = vld [vmem:[%s5260_s7 + $0x58] ss:$108 sps:$4 sm:$0xff]  }
  0xb4   : > { %4624 = vmatprep.subr.bf16.mxu1 %v5023_v50 }
  0xb5   : > { %3134 = vmatmul.mubr.bf16.gmra.mxu0 %v5017_v45  ;;  %v5060_v45 = vld [vmem:[%s6259_s1 + $0x678] sm:$0xff]  }
  0xb6   : > { %4585 = vmatpush3.bf16.msra.mxu0 %v5021_v48  ;;  %3199 = vmatmul.mubr.bf16.gmra.mxu1 %v5022_v49  ;;  %v5064_v49 = vld [vmem:[%s6259_s1 + $0x638] sm:$0xff]  }
  0xb7   : > { %4625 = vmatpush3.bf16.msra.mxu1 %v5024_v51  ;;  %4586 = vmatprep.subr.bf16.mxu0 %v5025_v52  ;;  %v5065_v51 = vld [vmem:[%s6259_s1 + $0x670] sm:$0xff]  }
  0xb8   : > { %4626 = vmatprep.subr.bf16.mxu1 %v5027_v54  ;;  %3141 = vmatprep.mubr.bf16.mxu0 %v5028_v55  ;;  %v5067_v55 = vld [vmem:[%s6259_s1 + $0x630] sm:$0xff]  }
  0xb9   : > { %3206 = vmatprep.mubr.bf16.mxu1 %v5033_v59 }
  0xba   : > { %4587 = vmatpush3.bf16.msra.mxu0 %v5026_v53  ;;  %v5066_v53 = vld [vmem:[%s6259_s1 + $0x6b8] sm:$0xff]  }
  0xbb   : > { %4627 = vmatpush3.bf16.msra.mxu1 %v5030_v56  ;;  %4588 = vmatprep.subr.bf16.mxu0 %v5032_v58  ;;  %v5068_v58 = vld [vmem:[%s5260_s7 + $0x12c] ss:$108 sps:$4 sm:$0xff]  }
  0xbc   : > { %4628 = vmatprep.subr.bf16.mxu1 %v5037_v63  ;;  %v5071_v63 = vld [vmem:[%s6259_s1 + $0x668] sm:$0xff]  }
  0xbd   : > { %3142 = vmatmul.mubr.bf16.gmra.mxu0 %v5031_v57 }
  0xbe   : > { %4589 = vmatpush3.bf16.msra.mxu0 %v5035_v60  ;;  %3207 = vmatmul.mubr.bf16.gmra.mxu1 %v5036_v61  ;;  %v5070_v61 = vld [vmem:[%s5260_s7 + $0x128] ss:$108 sps:$4 sm:$0xff]  }
  0xbf   : > { %4629 = vmatpush3.bf16.msra.mxu1 %v5038_v1  ;;  %4590 = vmatprep.subr.bf16.mxu0 %v5039_v3 }
  0xc0   : > { %4630 = vmatprep.subr.bf16.mxu1 %v5041_v9  ;;  %3149 = vmatprep.mubr.bf16.mxu0 %v5042_v11  ;;  %v5077_v9 = vld [vmem:[%s6259_s1 + $0x660] sm:$0xff]   ;;  %v5078_v11 = vld [vmem:[%s6259_s1 + $0x6a8] sm:$0xff]  }
  0xc1   : > { %3214 = vmatprep.mubr.bf16.mxu1 %v5047_v20  ;;  %v5083_v20 = vld [vmem:[%s6259_s1 + $0x658] sm:$0xff]  }
  0xc2   : > { %4591 = vmatpush3.bf16.msra.mxu0 %v5040_v6 }
  0xc3   : > { %4631 = vmatpush3.bf16.msra.mxu1 %v5044_v14  ;;  %4592 = vmatprep.subr.bf16.mxu0 %v5046_v18 }
  0xc4   : > { %4632 = vmatprep.subr.bf16.mxu1 %v5051_v26 }
  0xc5   : > { %3150 = vmatmul.mubr.bf16.gmra.mxu0 %v5045_v15  ;;  %v5079_v15 = vld [vmem:[%s6259_s1 + $0x620] sm:$0xff]  }
  0xc6   : > { %4593 = vmatpush3.bf16.msra.mxu0 %v5049_v21  ;;  %3215 = vmatmul.mubr.bf16.gmra.mxu1 %v5050_v24  ;;  %v5084_v24 = vld [vmem:[%s6259_s1 + $0x6a0] sm:$0xff]  }
  0xc7   : > { %4633 = vmatpush3.bf16.msra.mxu1 %v5052_v28  ;;  %4594 = vmatprep.subr.bf16.mxu0 %v5053_v31 }
  0xc8   : > { %4634 = vmatprep.subr.bf16.mxu1 %v5055_v36  ;;  %3255 = vmatprep.mubr.bf16.mxu0 %v5058_v40  ;;  %v5090_v36 = vld [vmem:[%s6259_s1 + $0x698] sm:$0xff]   ;;  %v5091_v40 = vld [vmem:[%s6259_s1 + $0x610] sm:$0xff]  }
  0xc9   : > { %3320 = vmatprep.mubr.bf16.mxu1 %v5063_v47 }
  0xca   : > { %4595 = vmatpush3.bf16.msra.mxu0 %v5054_v34 }
  0xcb   : > { %4635 = vmatpush3.bf16.msra.mxu1 %v5059_v43  ;;  %4660 = vmatprep.subr.bf16.mxu0 %v5060_v45 }
  0xcc   : > { %4712 = vmatprep.subr.bf16.mxu1 %v5066_v53 }
  0xcd   : > { %3256 = vmatmul.mubr.bf16.vlgmr.msra.gmra.mxu0 %v5056_v39 }
  0xce   : > { %4661 = vmatpush3.bf16.msra.mxu0 %v5064_v49  ;;  %3321 = vmatmul.mubr.bf16.vlgmr.msra.gmra.mxu1 %v5061_v46  ;;  %v5096_v46 = vld [vmem:[%s6259_s1 + $0x690] sm:$0xff]  }
  0xcf   : > { %4662 = vmatprep.subr.bf16.mxu0 %v5065_v51  ;;  %4713 = vmatpush3.bf16.msra.mxu1 %v5066_v53  ;;  %v5100_v53 = vld [vmem:[%s5260_s7 + $0x2e0] ss:$108 sps:$4 sm:$0xff]  }
  0xd0   : > { %3263 = vmatprep.mubr.bf16.mxu0 %v5068_v58 }
  0xd2   : > { %4663 = vmatpush3.bf16.msra.mxu0 %v5067_v55 }
  0xd3   : > { %4664 = vmatprep.subr.bf16.mxu0 %v5071_v63  ;;  %v5104_v63 = vld [vmem:[%s5260_s7 + $0x60] ss:$108 sps:$4 sm:$0xff]  }
  0xd5   : > { %3264 = vmatmul.mubr.bf16.gmra.mxu0 %v5070_v61 }
  0xed   : > { %v4196_v62 = vpop.f32.mrf.mxu0 }
  0xee   : > { %v4236_v0 = vpop.f32.mrf.mxu1 }
  0xef   : > { %v4197_v2 = vpop.f32.mrf.mxu0 }
  0xf0   : > { %v4198_v4 = vadd.f32 %v4197_v2, %v4196_v62  ;;  %v4237_v5 = vpop.f32.mrf.mxu1  ;;  %v5072_v2 = vld [vmem:[%s6259_s1 + $0x6b0] sm:$0xff]  }
  0xf1   : > { %v4238_v7 = vadd.f32 %v4237_v5, %v4236_v0  ;;  %v4199_v8 = vpop.f32.mrf.mxu0  ;;  %v5073_v5 = vld [vmem:[%s5260_s7 + $0x134] ss:$108 sps:$4 sm:$0xff]   ;;  %4714 = vmatprep.subr.bf16.mxu1 %v5072_v2 }
  0xf2   : > { %v4239_v10 = vpop.f32.mrf.mxu1  ;;  %3328 = vmatprep.mubr.bf16.mxu1 %v5073_v5  ;;  %4715 = vmatpush3.bf16.msra.mxu1 %v5072_v2  ;;  %v5106_v2 = vld [vmem:[%s5260_s7 + $0x64] ss:$108 sps:$4 sm:$0xff]  }
  0xf3   : > { %v5798_v12 = vadd.f32 %v4238_v7, %v4198_v4  ;;  %v4200_v13 = vpop.f32.mrf.mxu0  ;;  %v5075_v7 = vld [vmem:[%s6259_s1 + $0x628] sm:$0xff]   ;;  %4716 = vmatprep.subr.bf16.mxu1 %v5078_v11  ;;  %v5107_v5 = vld [vmem:[%s6259_s1 + $0x680] sm:$0xff]  }
  0xf4   : > { %v4201_v16 = vadd.f32 %v4200_v13, %v4199_v8  ;;  %v4240_v17 = vpop.f32.mrf.mxu1  ;;  %v5076_v8 = vld [vmem:[%s5260_s7 + $0x130] ss:$108 sps:$4 sm:$0xff]   ;;  %4665 = vmatpush3.bf16.msra.mxu0 %v5075_v7 }
  0xf5   : > { %v4241_v19 = vadd.f32 %v4240_v17, %v4239_v10  ;;  %v4202_v23 = vpop.f32.mrf.mxu0  ;;  %3329 = vmatmul.mubr.bf16.gmra.mxu1 %v5076_v8  ;;  %4666 = vmatprep.subr.bf16.mxu0 %v5077_v9  ;;  %v5082_v17 = vld [vmem:[%s5260_s7 + $0x200] ss:$108 sps:$4 sm:$0xff]  }
  0xf6   : > { %v4242_v25 = vpop.f32.mrf.mxu1  ;;  %4717 = vmatpush3.bf16.msra.mxu1 %v5078_v11 }
  0xf7   : > { %v5811_v22 = vadd.f32 %v4241_v19, %v4201_v16  ;;  %v4203_v27 = vpop.f32.mrf.mxu0  ;;  %v5080_v16 = vld [vmem:[%s5260_s7 + $0x204] ss:$108 sps:$4 sm:$0xff]   ;;  %4718 = vmatprep.subr.bf16.mxu1 %v5084_v24 }
  0xf8   : > { %v4204_v29 = vadd.f32 %v4203_v27, %v4202_v23  ;;  %v4243_v30 = vpop.f32.mrf.mxu1  ;;  %4667 = vmatpush3.bf16.msra.mxu0 %v5079_v15  ;;  %3271 = vmatprep.mubr.bf16.mxu0 %v5080_v16  ;;  %v5085_v27 = vld [vmem:[%s5260_s7 + $0x20c] ss:$108 sps:$4 sm:$0xff]  }
  0xf9   : > { %v4244_v32 = vadd.f32 %v4243_v30, %v4242_v25  ;;  %v4205_v33 = vpop.f32.mrf.mxu0  ;;  %3272 = vmatmul.mubr.bf16.gmra.mxu0 %v5082_v17  ;;  %4668 = vmatprep.subr.bf16.mxu0 %v5083_v20  ;;  %v5116_v17 = vld [vmem:[%s5260_s7 + $0x218] ss:$108 sps:$4 sm:$0xff]  }
  0xfa   : > { %v4245_v35 = vpop.f32.mrf.mxu1  ;;  %3336 = vmatprep.mubr.bf16.mxu1 %v5085_v27  ;;  %4719 = vmatpush3.bf16.msra.mxu1 %v5084_v24 }
  0xfb   : > { %v5829_v37 = vadd.f32 %v4244_v32, %v4204_v29  ;;  %v4206_v38 = vpop.f32.mrf.mxu0  ;;  %v5087_v29 = vld [vmem:[%s6259_s1 + $0x618] sm:$0xff]   ;;  %v5088_v32 = vld [vmem:[%s5260_s7 + $0x208] ss:$108 sps:$4 sm:$0xff]   ;;  %4720 = vmatprep.subr.bf16.mxu1 %v5090_v36 }
  0xfc   : > { %v4207_v41 = vadd.f32 %v4206_v38, %v4205_v33  ;;  %v4246_v42 = vpop.f32.mrf.mxu1  ;;  %4669 = vmatpush3.bf16.msra.mxu0 %v5087_v29  ;;  %v5117_v29 = vld [vmem:[%s5260_s7 + $0x2f0] ss:$108 sps:$4 sm:$0xff]  }
  0xfd   : > { %v4247_v44 = vadd.f32 %v4246_v42, %v4245_v35  ;;  %v4208_v50 = vpop.f32.mrf.mxu0  ;;  %v5089_v35 = vld [vmem:[%s6259_s1 + $0x650] sm:$0xff]   ;;  %3337 = vmatmul.mubr.bf16.gmra.mxu1 %v5088_v32  ;;  %v5094_v42 = vld [vmem:[%s5260_s7 + $0x2d8] ss:$108 sps:$4 sm:$0xff]  }
  0xfe   : > { %v4248_v52 = vpop.f32.mrf.mxu1  ;;  %4670 = vmatprep.subr.bf16.mxu0 %v5089_v35  ;;  %4721 = vmatpush3.bf16.msra.mxu1 %v5090_v36  ;;  %v5115_v36 = vld [vmem:[%s5260_s7 + $0x210] ss:$108 sps:$4 sm:$0xff]  }
  0xff   : > { %v5841_v48 = vadd.f32 %v4247_v44, %v4207_v41  ;;  %v4209_v54 = vpop.f32.mrf.mxu0  ;;  %v5092_v41 = vld [vmem:[%s5260_s7 + $0x2dc] ss:$108 sps:$4 sm:$0xff]   ;;  %4722 = vmatprep.subr.bf16.mxu1 %v5096_v46 }
 0x100   : > { %v4210_v56 = vadd.f32 %v4209_v54, %v4208_v50  ;;  %v4249_v57 = vpop.f32.mrf.mxu1  ;;  %4671 = vmatpush3.bf16.msra.mxu0 %v5091_v40  ;;  %v5095_v44 = vld [vmem:[%s6259_s1 + $0x648] sm:$0xff]   ;;  %3279 = vmatprep.mubr.bf16.mxu0 %v5092_v41  ;;  %v5097_v50 = vld [vmem:[%s5260_s7 + $0x2e4] ss:$108 sps:$4 sm:$0xff]  }
 0x101   : > { %v4250_v59 = vadd.f32 %v4249_v57, %v4248_v52  ;;  %v4211_v60 = vpop.f32.mrf.mxu0  ;;  %3280 = vmatmul.mubr.bf16.gmra.mxu0 %v5094_v42  ;;  %4672 = vmatprep.subr.bf16.mxu0 %v5095_v44  ;;  %v5099_v52 = vld [vmem:[%s6259_s1 + $0x608] sm:$0xff]  }
 0x102   : > { %v4251_v62 = vpop.f32.mrf.mxu1  ;;  %3344 = vmatprep.mubr.bf16.mxu1 %v5097_v50  ;;  %4723 = vmatpush3.bf16.msra.mxu1 %v5096_v46 }
 0x103   : > { %v5860_v0 = vadd.f32 %v4250_v59, %v4210_v56  ;;  %v4212_v1 = vpop.f32.mrf.mxu0  ;;  %v5101_v56 = vld [vmem:[%s6259_s1 + $0x640] sm:$0xff]   ;;  %3385 = vmatprep.mubr.bf16.mxu0 %v5106_v2 }
 0x104   : > { %v4213_v3 = vadd.f32 %v4212_v1, %v4211_v60  ;;  %v4252_v4 = vpop.f32.mrf.mxu1  ;;  %4673 = vmatpush3.bf16.msra.mxu0 %v5099_v52  ;;  %v5103_v60 = vld [vmem:[%s6259_s1 + $0x600] sm:$0xff]  }
 0x105   : > { %v4253_v6 = vadd.f32 %v4252_v4, %v4251_v62  ;;  %v4214_v13 = vpop.f32.mrf.mxu0  ;;  %3345 = vmatmul.mubr.bf16.gmra.mxu1 %v5100_v53  ;;  %4674 = vmatprep.subr.bf16.mxu0 %v5101_v56  ;;  %v5120_v53 = vld [vmem:[%s5260_s7 + $0x2e8] ss:$108 sps:$4 sm:$0xff]  }
 0x106   : > { %v4254_v14 = vpop.f32.mrf.mxu1 }
 0x107   : > { %v5873_v10 = vadd.f32 %v4253_v6, %v4213_v3  ;;  %v4215_v18 = vpop.f32.mrf.mxu0  ;;  %v5108_v6 = vld [vmem:[%s5260_s7 + $0x68] ss:$108 sps:$4 sm:$0xff]  }
 0x108   : > { %v4255_v19 = vpop.f32.mrf.mxu1  ;;  %v4216_v21 = vadd.f32 %v4215_v18, %v4214_v13  ;;  %4675 = vmatpush3.bf16.msra.mxu0 %v5103_v60  ;;  %v5110_v13 = vld [vmem:[%s5260_s7 + $0x13c] ss:$108 sps:$4 sm:$0xff]   ;;  %4728 = vmatprep.mubr.bf16.mxu1 %v5108_v6 }
 0x109   : > { %v4256_v23 = vadd.f32 %v4255_v19, %v4254_v14  ;;  %v4217_v25 = vpop.f32.mrf.mxu0 }
 0x10a   : > { %v4257_v26 = vpop.f32.mrf.mxu1 }
 0x10b   : > { %v5890_v28 = vadd.f32 %v4256_v23, %v4216_v21  ;;  %v4218_v30 = vpop.f32.mrf.mxu0  ;;  %3386 = vmatmul.mubr.bf16.vlgmr.msra.gmra.mxu0 %v5104_v63  ;;  %v5112_v23 = vld [vmem:[%s5260_s7 + $0x138] ss:$108 sps:$4 sm:$0xff]  }
 0x10c   : > { %v4258_v31 = vpop.f32.mrf.mxu1  ;;  %v4219_v33 = vadd.f32 %v4218_v30, %v4217_v25  ;;  %3393 = vmatprep.mubr.bf16.mxu0 %v5110_v13  ;;  %v5113_v25 = vld [vmem:[%s5260_s7 + $0x214] ss:$108 sps:$4 sm:$0xff]  }
 0x10d   : > { %v4259_v34 = vadd.f32 %v4258_v31, %v4257_v26  ;;  %v4276_v39 = vpop.f32.mrf.mxu0 }
 0x10e   : > { %v4316_v47 = vpop.f32.mrf.mxu1 }
 0x10f   : > { %v5902_v38 = vadd.f32 %v4259_v34, %v4219_v33  ;;  %v4277_v43 = vpop.f32.mrf.mxu0 }
 0x110   : > { %v4278_v45 = vadd.f32 %v4277_v43, %v4276_v39  ;;  %v4317_v54 = vpop.f32.mrf.mxu1 }
 0x111   : > { %v4279_v49 = vpop.f32.mrf.mxu0  ;;  %v4318_v57 = vadd.f32 %v4317_v54, %v4316_v47 }
 0x112   : > { %v2738_v51 = vadd.f32 %v4278_v45, %v5798_v12  ;;  %v5102_v12 = vld [vmem:[%s6259_s1 + $0x688] sm:$0xff]   ;;  %v4319_v59 = vpop.f32.mrf.mxu1 }
 0x113   : > { %v4280_v55 = vpop.f32.mrf.mxu0  ;;  %4724 = vmatprep.subr.bf16.mxu1 %v5102_v12  ;;  %3394 = vmatmul.mubr.bf16.gmra.mxu0 %v5112_v23 }
 0x114   : > { %v4281_v58 = vadd.f32 %v4280_v55, %v4279_v49  ;;  %v5930_v61 = vadd.f32 %v4318_v57, %v2738_v51  ;;  %v4320_v1 = vpop.f32.mrf.mxu1  ;;  %4725 = vmatpush3.bf16.msra.mxu1 %v5102_v12  ;;  %3401 = vmatprep.mubr.bf16.mxu0 %v5113_v25 }
 0x115   : > { %v4282_v3 = vpop.f32.mrf.mxu0  ;;  %v4321_v4 = vadd.f32 %v4320_v1, %v4319_v59  ;;  %4726 = vmatprep.subr.bf16.mxu1 %v5107_v5 }
 0x116   : > { %v2741_v62 = vadd.f32 %v4281_v58, %v5811_v22  ;;  %v5109_v22 = vld [vmem:[%s5260_s7 + $0x140] ss:$108 sps:$4 sm:$0xff]   ;;  %v4322_v11 = vpop.f32.mrf.mxu1 }
 0x117   : > { %v4283_v8 = vpop.f32.mrf.mxu0 }
 0x118   : > { %v5939_v7 = vadd.f32 %v4321_v4, %v2741_v62  ;;  %v4284_v9 = vadd.f32 %v4283_v8, %v4282_v3  ;;  %4727 = vmatpush3.bf16.msra.mxu1 %v5107_v5  ;;  %v4323_v16 = vpop.f32.mrf.mxu1 }
 0x119   : > { %v4285_v14 = vpop.f32.mrf.mxu0  ;;  %v4324_v18 = vadd.f32 %v4323_v16, %v4322_v11 }
 0x11a   : > { %v2746_v15 = vadd.f32 %v4284_v9, %v5829_v37  ;;  %v4325_v21 = vpop.f32.mrf.mxu1 }
 0x11b   : > { %v4286_v19 = vpop.f32.mrf.mxu0  ;;  %4729 = vmatmul.mubr.bf16.vlgmr.msra.gmra.mxu1 %v5109_v22  ;;  %3402 = vmatmul.mubr.bf16.gmra.mxu0 %v5115_v36 }
 0x11c   : > { %v4287_v20 = vadd.f32 %v4286_v19, %v4285_v14  ;;  %4732 = vmatprep.mubr.bf16.mxu1 %v5116_v17  ;;  %v5946_v24 = vadd.f32 %v4324_v18, %v2746_v15  ;;  %v4326_v27 = vpop.f32.mrf.mxu1 }
 0x11d   : > { %v4327_v37 = vadd.f32 %v4326_v27, %v4325_v21  ;;  %v4288_v30 = vpop.f32.mrf.mxu0 }
 0x11e   : > { %v2749_v26 = vadd.f32 %v4287_v20, %v5841_v48  ;;  %v4328_v34 = vpop.f32.mrf.mxu1  ;;  %v5118_v48 = vld [vmem:[%s5260_s7 + $0x2ec] ss:$108 sps:$4 sm:$0xff]   ;;  %s4097_s7 = sshll.u32 %s5162_s16, 6 }
 0x11f   : > { %v4289_v32 = vpop.f32.mrf.mxu0  ;;  %3409 = vmatprep.mubr.bf16.mxu0 %v5118_v48  ;;  %s6084_s12 = scalar_lea.vmem [#allocation2], %s4097_s7 }
 0x120   : > { %v5951_v31 = vadd.f32 %v4327_v37, %v2749_v26  ;;  %v4290_v33 = vadd.f32 %v4289_v32, %v4288_v30  ;;  %v4329_v40 = vpop.f32.mrf.mxu1 }
 0x121   : > { %v4291_v35 = vpop.f32.mrf.mxu0  ;;  %v4330_v41 = vadd.f32 %v4329_v40, %v4328_v34 }
 0x122   : > { %v2754_v39 = vadd.f32 %v4290_v33, %v5860_v0  ;;  %v4331_v44 = vpop.f32.mrf.mxu1 }
 0x123   : > { %4733 = vmatmul.mubr.bf16.gmra.mxu1 %v5117_v29  ;;  %v4292_v42 = vpop.f32.mrf.mxu0  ;;  %3410 = vmatmul.mubr.bf16.gmra.mxu0 %v5120_v53 }
 0x124   : > { %v4293_v43 = vadd.f32 %v4292_v42, %v4291_v35  ;;  %v2819_v45 = vadd.f32 %v4330_v41, %v2754_v39  ;;  %v4332_v47 = vpop.f32.mrf.mxu1 }
 0x125   : > { %v4294_v49 = vpop.f32.mrf.mxu0  ;;  %v4333_v50 = vadd.f32 %v4332_v47, %v4331_v44 }
 0x126   : > { %v2757_v46 = vadd.f32 %v4293_v43, %v5873_v10  ;;  %v4334_v0 = vpop.f32.mrf.mxu1 }
 0x127   : > { %v4295_v52 = vpop.f32.mrf.mxu0 }
 0x128   : > { %v2822_v51 = vadd.f32 %v4333_v50, %v2757_v46  ;;  %v4296_v54 = vadd.f32 %v4295_v52, %v4294_v49  ;;  %v4335_v57 = vpop.f32.mrf.mxu1 }
 0x129   : > { %v4297_v55 = vpop.f32.mrf.mxu0  ;;  %v4336_v12 = vadd.f32 %v4335_v57, %v4334_v0 }
 0x12a   : > { %v2762_v56 = vadd.f32 %v4296_v54, %v5890_v28  ;;  %v4337_v60 = vpop.f32.mrf.mxu1 }
 0x12b   : > { %v4298_v58 = vpop.f32.mrf.mxu0 }
 0x12c   : > { %v4299_v59 = vadd.f32 %v4298_v58, %v4297_v55  ;;  %v2827_v62 = vadd.f32 %v4336_v12, %v2762_v56  ;;  %v4338_v63 = vpop.f32.mrf.mxu1 }
 0x12d   : > { %v4339_v1 = vadd.f32 %v4338_v63, %v4337_v60  ;;  %v4356_v2 = vpop.f32.mrf.mxu0 }
 0x12e   : > { %v2765_v10 = vadd.f32 %v4299_v59, %v5902_v38  ;;  %v4396_v6 = vpop.f32.mrf.mxu1 }
 0x12f   : > { %v4357_v4 = vpop.f32.mrf.mxu0 }
 0x130   : > { %v2830_v3 = vadd.f32 %v4339_v1, %v2765_v10  ;;  %v4358_v5 = vadd.f32 %v4357_v4, %v4356_v2  ;;  %v4397_v28 = vpop.f32.mrf.mxu1 }
 0x131   : > { %v4359_v8 = vpop.f32.mrf.mxu0  ;;  %v4398_v9 = vadd.f32 %v4397_v28, %v4396_v6 }
 0x132   : > { %v2868_v22 = vadd.f32 %v4358_v5, %v5930_v61  ;;  %v4399_v14 = vpop.f32.mrf.mxu1 }
 0x133   : > { %v4360_v11 = vpop.f32.mrf.mxu0 }
 0x134   : > { %v4361_v13 = vadd.f32 %v4360_v11, %v4359_v8  ;;  %v2933_v15 = vadd.f32 %v4398_v9, %v2868_v22  ;;  %v4400_v17 = vpop.f32.mrf.mxu1 }
 0x135   : > { %v4401_v38 = vadd.f32 %v4400_v17, %v4399_v14  ;;  %v4362_v18 = vpop.f32.mrf.mxu0 }
 0x136   : > { %v2871_v16 = vadd.f32 %v4361_v13, %v5939_v7  ;;  %v4402_v23 = vpop.f32.mrf.mxu1 }
 0x137   : > { %v4363_v20 = vpop.f32.mrf.mxu0 }
 0x138   : > { %v2936_v19 = vadd.f32 %v4401_v38, %v2871_v16  ;;  %v4364_v21 = vadd.f32 %v4363_v20, %v4362_v18  ;;  %v4403_v27 = vpop.f32.mrf.mxu1 }
 0x139   : > { %v4365_v25 = vpop.f32.mrf.mxu0  ;;  %v4404_v61 = vadd.f32 %v4403_v27, %v4402_v23 }
 0x13a   : > { %v2876_v26 = vadd.f32 %v4364_v21, %v5946_v24  ;;  %v4405_v30 = vpop.f32.mrf.mxu1 }
 0x13b   : > { %v4366_v37 = vpop.f32.mrf.mxu0 }
 0x13c   : > { %v4367_v29 = vadd.f32 %v4366_v37, %v4365_v25  ;;  %v2941_v32 = vadd.f32 %v4404_v61, %v2876_v26  ;;  %v4406_v34 = vpop.f32.mrf.mxu1 }
 0x13d   : > { %v4368_v7 = vpop.f32.mrf.mxu0  ;;  %v4407_v35 = vadd.f32 %v4406_v34, %v4405_v30 }
 0x13e   : > { %v2879_v33 = vadd.f32 %v4367_v29, %v5951_v31  ;;  %v4408_v48 = vpop.f32.mrf.mxu1 }
 0x13f   : > { %v4369_v39 = vpop.f32.mrf.mxu0 }
 0x140   : > { %v2944_v36 = vadd.f32 %v4407_v35, %v2879_v33  ;;  %v4370_v40 = vadd.f32 %v4369_v39, %v4368_v7  ;;  %v4409_v43 = vpop.f32.mrf.mxu1 }
 0x141   : > { %v4371_v41 = vpop.f32.mrf.mxu0  ;;  %v4410_v24 = vadd.f32 %v4409_v43, %v4408_v48 }
 0x142   : > { %v2884_v42 = vadd.f32 %v4370_v40, %v2819_v45  ;;  %v4411_v47 = vpop.f32.mrf.mxu1 }
 0x143   : > { %v4372_v44 = vpop.f32.mrf.mxu0 }
 0x144   : > { %v4373_v46 = vadd.f32 %v4372_v44, %v4371_v41  ;;  %v2949_v49 = vadd.f32 %v4410_v24, %v2884_v42  ;;  %v4412_v52 = vpop.f32.mrf.mxu1 }
 0x145   : > { %v4374_v53 = vpop.f32.mrf.mxu0  ;;  %v4413_v54 = vadd.f32 %v4412_v52, %v4411_v47 }
 0x146   : > { %v2887_v50 = vadd.f32 %v4373_v46, %v2822_v51  ;;  %v4414_v56 = vpop.f32.mrf.mxu1 }
 0x147   : > { %v4375_v0 = vpop.f32.mrf.mxu0 }
 0x148   : > { %v2952_v31 = vadd.f32 %v4413_v54, %v2887_v50  ;;  %v4376_v55 = vadd.f32 %v4375_v0, %v4374_v53  ;;  %v4415_v12 = vpop.f32.mrf.mxu1 }
 0x149   : > { %v4377_v57 = vpop.f32.mrf.mxu0  ;;  %v4416_v59 = vadd.f32 %v4415_v12, %v4414_v56 }
 0x14a   : > { %v2892_v58 = vadd.f32 %v4376_v55, %v2827_v62  ;;  %v4417_v10 = vpop.f32.mrf.mxu1 }
 0x14b   : > { %v4378_v60 = vpop.f32.mrf.mxu0 }
 0x14c   : > { %v4379_v45 = vadd.f32 %v4378_v60, %v4377_v57  ;;  %v2957_v63 = vadd.f32 %v4416_v59, %v2892_v58  ;;  %v4418_v2 = vpop.f32.mrf.mxu1 }
 0x14d   : > { %v4419_v4 = vadd.f32 %v4418_v2, %v4417_v10  ;;  %v4436_v5 = vpop.f32.mrf.mxu0 }
 0x14e   : > { %v2895_v1 = vadd.f32 %v4379_v45, %v2830_v3  ;;  %v4476_v22 = vpop.f32.mrf.mxu1 }
 0x14f   : > { %v4437_v6 = vpop.f32.mrf.mxu0 }
 0x150   : > { %v2960_v51 = vadd.f32 %v4419_v4, %v2895_v1  ;;  %v4438_v8 = vadd.f32 %v4437_v6, %v4436_v5  ;;  %v4477_v11 = vpop.f32.mrf.mxu1 }
 0x151   : > { %v4439_v28 = vpop.f32.mrf.mxu0  ;;  %v4478_v13 = vadd.f32 %v4477_v11, %v4476_v22 }
 0x152   : > { %v2998_v9 = vadd.f32 %v4438_v8, %v2933_v15  ;;  %v4479_v16 = vpop.f32.mrf.mxu1 }
 0x153   : > { %v4440_v14 = vpop.f32.mrf.mxu0 }
 0x154   : > { %v4441_v62 = vadd.f32 %v4440_v14, %v4439_v28  ;;  %v5964_v17 = vadd.f32 %v4478_v13, %v2998_v9  ;;  %v4480_v18 = vpop.f32.mrf.mxu1 }
 0x155   : > { %v4442_v20 = vpop.f32.mrf.mxu0  ;;  %v4481_v3 = vadd.f32 %v4480_v18, %v4479_v16 }
 0x156   : > { %v3001_v38 = vadd.f32 %v4441_v62, %v2936_v19  ;;  %v4482_v26 = vpop.f32.mrf.mxu1 }
 0x157   : > { %v4443_v23 = vpop.f32.mrf.mxu0 }
 0x158   : > { %v5966_v21 = vadd.f32 %v4481_v3, %v3001_v38  ;;  %v4444_v25 = vadd.f32 %v4443_v23, %v4442_v20  ;;  %v4483_v37 = vpop.f32.mrf.mxu1 }
 0x159   : > { %v4445_v27 = vpop.f32.mrf.mxu0  ;;  %v4484_v29 = vadd.f32 %v4483_v37, %v4482_v26 }
 0x15a   : > { %v3006_v61 = vadd.f32 %v4444_v25, %v2941_v32  ;;  %v4485_v33 = vpop.f32.mrf.mxu1 }
 0x15b   : > { %v4446_v15 = vpop.f32.mrf.mxu0 }
 0x15c   : > { %v4447_v30 = vadd.f32 %v4446_v15, %v4445_v27  ;;  %v5968_v34 = vadd.f32 %v4484_v29, %v3006_v61  ;;  %v4486_v35 = vpop.f32.mrf.mxu1 }
 0x15d   : > { %v4448_v19 = vpop.f32.mrf.mxu0  ;;  %v4487_v39 = vadd.f32 %v4486_v35, %v4485_v33 }
 0x15e   : > { %v3009_v7 = vadd.f32 %v4447_v30, %v2944_v36  ;;  %v4488_v42 = vpop.f32.mrf.mxu1 }
 0x15f   : > { %v4449_v48 = vpop.f32.mrf.mxu0 }
 0x160   : > { %v5970_v40 = vadd.f32 %v4487_v39, %v3009_v7  ;;  %v4450_v41 = vadd.f32 %v4449_v48, %v4448_v19  ;;  %v4489_v24 = vpop.f32.mrf.mxu1 }
 0x161   : > { %v4451_v43 = vpop.f32.mrf.mxu0  ;;  %v4490_v32 = vadd.f32 %v4489_v24, %v4488_v42 }
 0x162   : > { %v3014_v44 = vadd.f32 %v4450_v41, %v2949_v49  ;;  %v4491_v50 = vpop.f32.mrf.mxu1 }
 0x163   : > { %v4452_v46 = vpop.f32.mrf.mxu0 }
 0x164   : > { %v4453_v47 = vadd.f32 %v4452_v46, %v4451_v43  ;;  %v5972_v52 = vadd.f32 %v4490_v32, %v3014_v44  ;;  %v4492_v54 = vpop.f32.mrf.mxu1 }
 0x165   : > { %v4493_v36 = vadd.f32 %v4492_v54, %v4491_v50  ;;  %v4454_v0 = vpop.f32.mrf.mxu0 }
 0x166   : > { %v3017_v53 = vadd.f32 %v4453_v47, %v2952_v31  ;;  %v4494_v58 = vpop.f32.mrf.mxu1 }
 0x167   : > { %v4455_v56 = vpop.f32.mrf.mxu0 }
 0x168   : > { %v5974_v55 = vadd.f32 %v4493_v36, %v3017_v53  ;;  %v4456_v57 = vadd.f32 %v4455_v56, %v4454_v0  ;;  %v4495_v60 = vpop.f32.mrf.mxu1 }
 0x169   : > { %v4457_v12 = vpop.f32.mrf.mxu0  ;;  %v4496_v49 = vadd.f32 %v4495_v60, %v4494_v58 }
 0x16a   : > { %v3022_v59 = vadd.f32 %v4456_v57, %v2957_v63  ;;  %v4497_v1 = vpop.f32.mrf.mxu1 }
 0x16b   : > { %v4458_v45 = vpop.f32.mrf.mxu0 }
 0x16c   : > { %v4459_v10 = vadd.f32 %v4458_v45, %v4457_v12  ;;  %v5976_v2 = vadd.f32 %v4496_v49, %v3022_v59  ;;  %v4498_v5 = vpop.f32.mrf.mxu1 }
 0x16d   : > { %v4499_v31 = vadd.f32 %v4498_v5, %v4497_v1  ;;  %v4516_v6 = vpop.f32.mrf.mxu0 }
 0x16e   : > { %6263 = vst [vmem:[#allocation3_spill] sm:$0xff] %v5976_v2  ;;  %v3025_v4 = vadd.f32 %v4459_v10, %v2960_v51  ;;  %v4556_v28 = vpop.f32.mrf.mxu1 }
 0x16f   : > { %v4517_v22 = vpop.f32.mrf.mxu0 }
 0x170   : > { %v5978_v8 = vadd.f32 %v4499_v31, %v3025_v4  ;;  %v4557_v11 = vpop.f32.mrf.mxu1  ;;  %v4518_v5 = vadd.f32 %v4517_v22, %v4516_v6 }
 0x171   : > { %v4519_v9 = vpop.f32.mrf.mxu0 }
 0x172   : > { %6264 = vst [vmem:[#allocation4_spill] sm:$0xff] %v5978_v8  ;;  %v5980_v14 = vpop.f32.mrf.mxu1 }
 0x173   : > { %v4520_v13 = vpop.f32.mrf.mxu0 }
 0x174   : > { %v5982_v63 = vpop.f32.mrf.mxu1 }
 0x175   : > { %v4522_v62 = vpop.f32.mrf.mxu0 }
 0x176   : > { %v5984_v38 = vpop.f32.mrf.mxu1 }
 0x177   : > { %v4523_v16 = vpop.f32.mrf.mxu0 }
 0x178   : > { %v5988_v51 = vpop.f32.mrf.mxu1  ;;  %v4524_v6 = vadd.f32 %v4523_v16, %v4522_v62 }
 0x179   : > { %v5986_v18 = vpop.f32.mrf.mxu0 }
 0x17a   : > { %v5992_v3 = vpop.f32.mrf.mxu1 }
 0x17b   : > { %v5990_v20 = vpop.f32.mrf.mxu0 }
 0x17c   : > { %v5994_v23 = vpop.f32.mrf.mxu1 }
 0x17d   : > { %v5996_v25 = vpop.f32.mrf.mxu0 }
 0x17e   : > { %v6000_v27 = vpop.f32.mrf.mxu1 }
 0x17f   : > { %v5998_v26 = vpop.f32.mrf.mxu0 }
 0x180   : > { %v6004_v37 = vpop.f32.mrf.mxu1 }
 0x181   : > { %v6002_v61 = vpop.f32.mrf.mxu0 }
 0x182   : > { %v6008_v29 = vpop.f32.mrf.mxu1 }
 0x183   : > { %v6006_v15 = vpop.f32.mrf.mxu0 }
 0x184   : > { %v6012_v33 = vpop.f32.mrf.mxu1 }
 0x185   : > { %v6010_v30 = vpop.f32.mrf.mxu0 }
 0x186   : > { %v6016_v35 = vpop.f32.mrf.mxu1 }
 0x187   : > { %v6014_v7 = vpop.f32.mrf.mxu0  ;;  %6265 = vst [vmem:[#allocation5_spill] sm:$0xff] %v6016_v35 }
 0x188   : > { %v6020_v39 = vpop.f32.mrf.mxu1 }
 0x189   : > { %v6018_v19 = vpop.f32.mrf.mxu0  ;;  %6267 = vst [vmem:[#allocation7_spill] sm:$0xff] %v6020_v39  ;;  %v4521_v39 = vadd.f32 %v4520_v13, %v4519_v9  ;;  %v4564_v13 = vadd.f32 %v5988_v51, %v5984_v38 }
 0x18a   : > { %6266 = vst [vmem:[#allocation6_spill] sm:$0xff] %v6018_v19  ;;  %v6024_v41 = vpop.f32.mrf.mxu1  ;;  %v4558_v19 = vadd.f32 %v4557_v11, %v4556_v28  ;;  %v3136_v11 = vadd.f32 %v4524_v6, %v5968_v34  ;;  %v4530_v34 = vadd.f32 %v5998_v26, %v5996_v25  ;;  %v4570_v25 = vadd.f32 %v6004_v37, %v6000_v27 }
 0x18b   : > { %v6022_v48 = vpop.f32.mrf.mxu0  ;;  %6269 = vst [vmem:[#allocation9_spill] sm:$0xff] %v6024_v41 }
 0x18c   : > { %6268 = vst [vmem:[#allocation8_spill] sm:$0xff] %v6022_v48  ;;  %v6026_v42 = vpop.f32.mrf.mxu1  ;;  %v3128_v48 = vadd.f32 %v4518_v5, %v5964_v17  ;;  %v3144_v5 = vadd.f32 %v4530_v34, %v5972_v52 }
 0x18d   : > { %6270 = vst [vmem:[#allocation10_spill] sm:$0xff] %v6026_v42  ;;  %v4596_v43 = vpop.f32.mrf.mxu0 }
 0x18e   : > { %v4636_v24 = vpop.f32.mrf.mxu1  ;;  %v3209_v6 = vadd.f32 %v4570_v25, %v3144_v5 }
 0x18f   : > { %v4597_v44 = vpop.f32.mrf.mxu0 }
 0x190   : > { %v4637_v46 = vpop.f32.mrf.mxu1 }
 0x191   : > { %v4599_v32 = vpop.f32.mrf.mxu0  ;;  %v4638_v28 = vadd.f32 %v4637_v46, %v4636_v24 }
 0x192   : > { %v4639_v50 = vpop.f32.mrf.mxu1  ;;  %v6289_v25 = vld [vmem:[#allocation9_spill] sm:$0xff] }
 0x193   : > { %v4600_v47 = vpop.f32.mrf.mxu0 }
 0x194   : > { %v4640_v54 = vpop.f32.mrf.mxu1  ;;  %v4601_v9 = vadd.f32 %v4600_v47, %v4599_v32  ;;  %v3201_v32 = vadd.f32 %v4564_v13, %v3136_v11 }
 0x195   : > { %v4602_v53 = vpop.f32.mrf.mxu0 }
 0x197   : > { %v4603_v36 = vpop.f32.mrf.mxu0 }
 0x199   : > { %v4605_v56 = vpop.f32.mrf.mxu0 }
 0x19b   : > { %v4606_v58 = vpop.f32.mrf.mxu0 }
 0x1b5   : > { %v4642_v0 = vpop.f32.mrf.mxu1 }
 0x1b7   : > { %v4643_v57 = vpop.f32.mrf.mxu1 }
 0x1b8   : > { %v4644_v46 = vadd.f32 %v4643_v57, %v4642_v0 }
 0x1b9   : > { %v6028_v12 = vpop.f32.mrf.mxu1  ;;  %v6030_v59 = vpop.f32.mrf.mxu0 }
 0x1bb   : > { %v6032_v60 = vpop.f32.mrf.mxu1  ;;  %v6034_v49 = vpop.f32.mrf.mxu0 }
 0x1bc   : > { %v4610_v57 = vadd.f32 %v6034_v49, %v6030_v59  ;;  %v4647_v27 = vadd.f32 %v6032_v60, %v6028_v12 }
 0x1bd   : > { %v6036_v45 = vpop.f32.mrf.mxu1  ;;  %v6038_v10 = vpop.f32.mrf.mxu0 }
 0x1be   : > { %6271 = vst [vmem:[#allocation11_spill] sm:$0xff] %v6038_v10  ;;  %v4598_v10 = vadd.f32 %v4597_v44, %v4596_v43  ;;  %v4641_v43 = vadd.f32 %v4640_v54, %v4639_v50  ;;  %v4607_v50 = vadd.f32 %v4606_v58, %v4605_v56  ;;  %v3274_v49 = vadd.f32 %v4610_v57, %v3209_v6 }
 0x1bf   : > { %v6040_v1 = vpop.f32.mrf.mxu1  ;;  %v6042_v4 = vpop.f32.mrf.mxu0 }
 0x1c0   : > { %6272 = vst [vmem:[#allocation12_spill] sm:$0xff] %v6040_v1 }
 0x1c1   : > { %v6044_v31 = vpop.f32.mrf.mxu1  ;;  %v6046_v42 = vpop.f32.mrf.mxu0 }
 0x1c2   : > { %6273 = vst [vmem:[#allocation13_spill] sm:$0xff] %v6044_v31  ;;  %6274 = vst [vmem:[#allocation14_spill] sm:$0xff] %v6046_v42  ;;  %v3193_v31 = vadd.f32 %v4558_v19, %v3128_v48  ;;  %v3131_v42 = vadd.f32 %v4521_v39, %v5966_v21  ;;  %v4527_v19 = vadd.f32 %v5990_v20, %v5986_v18 }
 0x1c3   : > { %v6048_v41 = vpop.f32.mrf.mxu1  ;;  %v6050_v8 = vpop.f32.mrf.mxu0  ;;  %v4604_v39 = vadd.f32 %v4603_v36, %v4602_v53  ;;  %v4567_v18 = vadd.f32 %v5994_v23, %v5992_v3  ;;  %v4533_v3 = vadd.f32 %v6006_v15, %v6002_v61  ;;  %v4536_v61 = vadd.f32 %v6014_v7, %v6010_v30 }
 0x1c4   : > { %6275 = vst [vmem:[#allocation15_spill] sm:$0xff] %v6048_v41  ;;  %6276 = vst [vmem:[#allocation16_spill] sm:$0xff] %v6050_v8  ;;  %v4561_v41 = vadd.f32 %v5982_v63, %v5980_v14  ;;  %v3258_v17 = vadd.f32 %v4598_v10, %v3193_v31  ;;  %v3139_v51 = vadd.f32 %v4527_v19, %v5970_v40  ;;  %v6279_v19 = vld [vmem:[#allocation3_spill] sm:$0xff] }
 0x1c5   : > { %v6053_v35 = vpop.f32.mrf.mxu1  ;;  %v6055_v2 = vpop.f32.mrf.mxu0 }
 0x1c6   : > { %v3196_v16 = vadd.f32 %v4561_v41, %v3131_v42  ;;  %v3323_v63 = vadd.f32 %v4638_v28, %v3258_v17  ;;  %v3266_v42 = vadd.f32 %v4604_v39, %v3201_v32  ;;  %v3204_v40 = vadd.f32 %v4567_v18, %v3139_v51 }
 0x1c7   : > { %v6057_v1 = vpop.f32.mrf.mxu1  ;;  %v6059_v22 = vpop.f32.mrf.mxu0  ;;  %v3147_v28 = vadd.f32 %v4533_v3, %v5974_v55  ;;  %v6277_v11 = vld [vmem:[#allocation12_spill] sm:$0xff]  ;;  %v3152_v39 = vadd.f32 %v4536_v61, %v6279_v19  ;;  %v6280_v55 = vld [vmem:[#allocation5_spill] sm:$0xff] }
 0x1c8   : > { %v3261_v48 = vadd.f32 %v4601_v9, %v3196_v16  ;;  %v3331_v56 = vadd.f32 %v4644_v46, %v3266_v42  ;;  %v3269_v58 = vadd.f32 %v4607_v50, %v3204_v40  ;;  %v4573_v9 = vadd.f32 %v6012_v33, %v6008_v29 }
 0x1c9   : > { %v6064_v8 = vpop.f32.mrf.mxu1  ;;  %v4650_v12 = vadd.f32 %v6277_v11, %v6036_v45 }
 0x1ca   : > { %v3326_v53 = vadd.f32 %v4641_v43, %v3261_v48  ;;  %v3334_v13 = vadd.f32 %v4647_v27, %v3269_v58  ;;  %v3212_v48 = vadd.f32 %v4573_v9, %v3147_v28  ;;  %v6282_v43 = vld [vmem:[#allocation6_spill] sm:$0xff] }
 0x1cb   : > { %v4676_v62 = vpop.f32.mrf.mxu0  ;;  %v6071_v21 = vpop.f32.mrf.mxu1  ;;  %v3339_v34 = vadd.f32 %v4650_v12, %v3274_v49  ;;  %v6285_v51 = vld [vmem:[#allocation16_spill] sm:$0xff] }
 0x1cd   : > { %v4677_v14 = vpop.f32.mrf.mxu0 }
 0x1ce   : > { %v4678_v44 = vadd.f32 %v4677_v14, %v4676_v62  ;;  %v6278_v62 = vld [vmem:[#allocation11_spill] sm:$0xff] }
 0x1cf   : > { %v4679_v38 = vpop.f32.mrf.mxu0  ;;  %v4613_v16 = vadd.f32 %v6042_v4, %v6278_v62  ;;  %v6281_v14 = vld [vmem:[#allocation7_spill] sm:$0xff] }
 0x1d0   : > { %v3388_v20 = vadd.f32 %v4678_v44, %v3323_v63  ;;  %v4576_v63 = vadd.f32 %v6281_v14, %v6280_v55  ;;  %v6283_v44 = vld [vmem:[#allocation8_spill] sm:$0xff] }
 0x1d1   : > { %v4680_v47 = vpop.f32.mrf.mxu0  ;;  %v4539_v32 = vadd.f32 %v6283_v44, %v6282_v43  ;;  %v3277_v18 = vadd.f32 %v4613_v16, %v3212_v48 }
 0x1d2   : > { %v4681_v54 = vadd.f32 %v4680_v47, %v4679_v38  ;;  %v6284_v38 = vld [vmem:[#allocation14_spill] sm:$0xff] }
 0x1d3   : > { %v4682_v26 = vpop.f32.mrf.mxu0  ;;  %v4616_v4 = vadd.f32 %v6285_v51, %v6284_v38 }
 0x1d4   : > { %v3391_v23 = vadd.f32 %v4681_v54, %v3326_v53  ;;  %v3217_v53 = vadd.f32 %v4576_v63, %v3152_v39 }
 0x1d5   : > { %v4683_v52 = vpop.f32.mrf.mxu0 }
 0x1d6   : > { %v4684_v37 = vadd.f32 %v4683_v52, %v4682_v26  ;;  %v6290_v26 = vld [vmem:[#allocation10_spill] sm:$0xff] }
 0x1d7   : > { %v4685_v15 = vpop.f32.mrf.mxu0  ;;  %v4579_v40 = vadd.f32 %v6290_v26, %v6289_v25 }
 0x1d8   : > { %v3396_v59 = vadd.f32 %v4684_v37, %v3331_v56 }
 0x1d9   : > { %v4686_v60 = vpop.f32.mrf.mxu0 }
 0x1da   : > { %v4687_v7 = vadd.f32 %v4686_v60, %v4685_v15 }
 0x1db   : > { %v4730_v24 = vpop.f32.mrf.mxu1  ;;  %v4688_v29 = vpop.f32.mrf.mxu0 }
 0x1dc   : > { %v3461_v30 = vadd.f32 %v4730_v24, %v3396_v59  ;;  %v3399_v45 = vadd.f32 %v4687_v7, %v3334_v13 }
 0x1dd   : > { %v3452_v41 = vpop.f32.mrf.mxu1  ;;  %v4689_v24 = vpop.f32.mrf.mxu0 }
 0x1de   : > { %v3453_v36 = vadd.f32 %v3452_v41, %v3388_v20  ;;  %3487 = vst [vmem:[%s6084_s12 + $0x10] sm:$0xff] %v3461_v30  ;;  %v6286_v20 = vld [vmem:[#allocation13_spill] sm:$0xff]  ;;  %v6287_v41 = vld [vmem:[#allocation15_spill] sm:$0xff]  ;;  %v4690_v47 = vadd.f32 %v4689_v24, %v4688_v29 }
 0x1df   : > { %v4731_v10 = vpop.f32.mrf.mxu1  ;;  %v4653_v42 = vadd.f32 %v6287_v41, %v6286_v20  ;;  %v4691_v50 = vpop.f32.mrf.mxu0 }
 0x1e0   : > { %3485 = vst [vmem:[%s6084_s12] sm:$0xff] %v3453_v36  ;;  %v3464_v46 = vadd.f32 %v4731_v10, %v3399_v45  ;;  %v6288_v36 = vld [vmem:[#allocation4_spill] sm:$0xff]  ;;  %v3404_v3 = vadd.f32 %v4690_v47, %v3339_v34  ;;  %v4619_v10 = vadd.f32 %v6059_v22, %v6055_v2 }
 0x1e1   : > { %v3455_v0 = vpop.f32.mrf.mxu1  ;;  %v3155_v5 = vadd.f32 %v4539_v32, %v6288_v36  ;;  %v4692_v56 = vpop.f32.mrf.mxu0  ;;  %v3342_v57 = vadd.f32 %v4653_v42, %v3277_v18 }
 0x1e2   : > { %v3456_v31 = vadd.f32 %v3455_v0, %v3391_v23  ;;  %3488 = vst [vmem:[%s6084_s12 + $0x18] sm:$0xff] %v3464_v46  ;;  %v3282_v23 = vadd.f32 %v4616_v4, %v3217_v53  ;;  %v4656_v0 = vadd.f32 %v6057_v1, %v6053_v35  ;;  %v4693_v52 = vadd.f32 %v4692_v56, %v4691_v50 }
 0x1e3   : > { %v4734_v17 = vpop.f32.mrf.mxu1  ;;  %v4694_v27 = vpop.f32.mrf.mxu0  ;;  %v4659_v35 = vadd.f32 %v6071_v21, %v6064_v8 }
 0x1e4   : > { %3486 = vst [vmem:[%s6084_s12 + $0x8] sm:$0xff] %v3456_v31  ;;  %v3220_v31 = vadd.f32 %v4579_v40, %v3155_v5  ;;  %v3407_v6 = vadd.f32 %v4693_v52, %v3342_v57  ;;  %v3347_v61 = vadd.f32 %v4656_v0, %v3282_v23 }
 0x1e5   : > { %v3468_v33 = vpop.f32.mrf.mxu1  ;;  %v4695_v15 = vpop.f32.mrf.mxu0 }
 0x1e6   : > { %v3469_v58 = vadd.f32 %v3468_v33, %v3404_v3  ;;  %v3285_v28 = vadd.f32 %v4619_v10, %v3220_v31  ;;  %v4696_v1 = vadd.f32 %v4695_v15, %v4694_v27 }
 0x1e7   : > { %v4735_v54 = vpop.f32.mrf.mxu1  ;;  %v4697_v59 = vpop.f32.mrf.mxu0 }
 0x1e8   : > { %3489 = vst [vmem:[%s6084_s12 + $0x20] sm:$0xff] %v3469_v58  ;;  %v3412_v2 = vadd.f32 %v4696_v1, %v3347_v61  ;;  %v3350_v49 = vadd.f32 %v4659_v35, %v3285_v28 }
 0x1e9   : > { %v3471_v37 = vpop.f32.mrf.mxu1  ;;  %v4698_v22 = vpop.f32.mrf.mxu0 }
 0x1ea   : > { %v3472_v9 = vadd.f32 %v3471_v37, %v3407_v6  ;;  %v3477_v11 = vadd.f32 %v4734_v17, %v3412_v2  ;;  %v4699_v12 = vadd.f32 %v4698_v22, %v4697_v59 }
 0x1ec   : > { %3490 = vst [vmem:[%s6084_s12 + $0x28] sm:$0xff] %v3472_v9  ;;  %3491 = vst [vmem:[%s6084_s12 + $0x30] sm:$0xff] %v3477_v11  ;;  %v3415_v60 = vadd.f32 %v4699_v12, %v3350_v49  ;;  %3496 = sbr.rel (%p4098_p4) target bundleno = 636 (0x27c), region = 40 }
 0x1ee   : > { %v3480_v13 = vadd.f32 %v4735_v54, %v3415_v60 }
 0x1f0   : > { %3492 = vst [vmem:[%s6084_s12 + $0x38] sm:$0xff] %v3480_v13 }
 0x1f7   : > { %v6126_v62 = vld [vmem:[#allocation2] sm:$0xff]  ;;  %v6128_v16 = vld [vmem:[#allocation2 + $0x8] sm:$0xff]  ;;  %v6130_v8 = vld [vmem:[#allocation2 + $0x10] sm:$0xff] }
 0x1f8   : > { %v3513_v21 = vadd.f32 %v6128_v16, %v6126_v62  ;;  %v6134_v30 = vld [vmem:[#allocation2 + $0x18] sm:$0xff]  ;;  %v6137_v7 = vld [vmem:[#allocation2 + $0x20] sm:$0xff]  ;;  %v6140_v39 = vld [vmem:[#allocation2 + $0x28] sm:$0xff] }
 0x1f9   : > { %v6143_v14 = vld [vmem:[#allocation2 + $0x30] sm:$0xff]  ;;  %v6146_v29 = vld [vmem:[#allocation2 + $0x38] sm:$0xff]  ;;  %v6149_v48 = vld [vmem:[#allocation2 + $0x40] sm:$0xff] }
 0x1fa   : > { %v3514_v17 = vadd.f32 %v3513_v21, %v6130_v8  ;;  %v6152_v44 = vld [vmem:[#allocation2 + $0x48] sm:$0xff]  ;;  %v6155_v45 = vld [vmem:[#allocation2 + $0x50] sm:$0xff]  ;;  %v6158_v38 = vld [vmem:[#allocation2 + $0x58] sm:$0xff] }
 0x1fb   : > { %v6161_v4 = vld [vmem:[#allocation2 + $0x60] sm:$0xff]  ;;  %v6164_v18 = vld [vmem:[#allocation2 + $0x68] sm:$0xff]  ;;  %v6167_v41 = vld [vmem:[#allocation2 + $0x70] sm:$0xff] }
 0x1fc   : > { %v3515_v19 = vadd.f32 %v3514_v17, %v6134_v30  ;;  %v6170_v46 = vld [vmem:[#allocation2 + $0x78] sm:$0xff] }
 0x1fe   : > { %v3516_v55 = vadd.f32 %v3515_v19, %v6137_v7 }
 0x200   : > { %v3517_v63 = vadd.f32 %v3516_v55, %v6140_v39 }
 0x202   : > { %v3518_v33 = vadd.f32 %v3517_v63, %v6143_v14 }
 0x204   : > { %v3519_v43 = vadd.f32 %v3518_v33, %v6146_v29 }
 0x206   : > { %v3520_v32 = vadd.f32 %v3519_v43, %v6149_v48 }
 0x208   : > { %v3521_v34 = vadd.f32 %v3520_v32, %v6152_v44 }
 0x20a   : > { %v3522_v51 = vadd.f32 %v3521_v34, %v6155_v45 }
 0x20c   : > { %v3523_v24 = vadd.f32 %v3522_v51, %v6158_v38 }
 0x20e   : > { %v3524_v20 = vadd.f32 %v3523_v24, %v6161_v4 }
 0x210   : > { %v3525_v42 = vadd.f32 %v3524_v20, %v6164_v18 }
 0x212   : > { %v3526_v47 = vadd.f32 %v3525_v42, %v6167_v41 }
 0x214   : > { %v3527_v53 = vadd.f32 %v3526_v47, %v6170_v46 }
 0x216   : > { %v3528_v50 = vrot.slane %v3527_v53, 4 }
 0x218   : > { %v3529_v54 = vadd.f32 %v3528_v50, %v3527_v53 }
 0x21a   : > { %v3530_v36 = vrot.slane %v3529_v54, 2 }
 0x21c   : > { %v3531_v5 = vadd.f32 %v3530_v36, %v3529_v54 }
 0x21e   : > { %v3532_v25 = vrot.slane %v3531_v5, 1 }
 0x220   : > { %v3533_v26 = vadd.f32 %v3532_v25, %v3531_v5 }
 0x222   : > { %v6174_v40 = vmul.f32 0.0078125, %v3533_v26 }
 0x224   : > { %v3536_v3 = vsub.f32 %v6126_v62, %v6174_v40  ;;  %v3537_v23 = vsub.f32 %v6128_v16, %v6174_v40  ;;  %v3538_v0 = vsub.f32 %v6130_v8, %v6174_v40  ;;  %v3539_v56 = vsub.f32 %v6134_v30, %v6174_v40 }
 0x225   : > { %v3540_v52 = vsub.f32 %v6137_v7, %v6174_v40  ;;  %v3541_v27 = vsub.f32 %v6140_v39, %v6174_v40  ;;  %v3542_v6 = vsub.f32 %v6143_v14, %v6174_v40  ;;  %v3543_v28 = vsub.f32 %v6146_v29, %v6174_v40 }
 0x226   : > { %v3552_v57 = vmul.f32 %v3536_v3, %v3536_v3  ;;  %v3553_v10 = vmul.f32 %v3537_v23, %v3537_v23  ;;  %v3554_v58 = vmul.f32 %v3538_v0, %v3538_v0  ;;  %v3555_v37 = vmul.f32 %v3539_v56, %v3539_v56 }
 0x227   : > { %v3556_v61 = vmul.f32 %v3540_v52, %v3540_v52  ;;  %v3557_v35 = vmul.f32 %v3541_v27, %v3541_v27  ;;  %v3544_v9 = vsub.f32 %v6149_v48, %v6174_v40  ;;  %v3558_v59 = vmul.f32 %v3542_v6, %v3542_v6 }
 0x228   : > { %v3568_v31 = vadd.f32 %v3553_v10, %v3552_v57  ;;  %v3545_v22 = vsub.f32 %v6152_v44, %v6174_v40  ;;  %v3559_v49 = vmul.f32 %v3543_v28, %v3543_v28  ;;  %v3546_v12 = vsub.f32 %v6155_v45, %v6174_v40  ;;  %v3594_v28 = vld [vmem:[%s6261_s3] sm:$0x1] }
 0x229   : > { %v3560_v60 = vmul.f32 %v3544_v9, %v3544_v9  ;;  %v3547_v21 = vsub.f32 %v6158_v38, %v6174_v40  ;;  %v3548_v55 = vsub.f32 %v6161_v4, %v6174_v40  ;;  %v3549_v43 = vsub.f32 %v6164_v18, %v6174_v40 }
 0x22a   : > { %v3569_v15 = vadd.f32 %v3568_v31, %v3554_v58  ;;  %v3561_v17 = vmul.f32 %v3545_v22, %v3545_v22  ;;  %v3562_v63 = vmul.f32 %v3546_v12, %v3546_v12  ;;  %v3550_v51 = vsub.f32 %v6167_v41, %v6174_v40  ;;  %v3590_v31 = vld [vmem:[%s6260_s2] sm:$0x1] }
 0x22b   : > { %v3563_v32 = vmul.f32 %v3547_v21, %v3547_v21  ;;  %v3564_v24 = vmul.f32 %v3548_v55, %v3548_v55  ;;  %v3551_v42 = vsub.f32 %v6170_v46, %v6174_v40  ;;  %v3565_v47 = vmul.f32 %v3549_v43, %v3549_v43 }
 0x22c   : > { %v3570_v1 = vadd.f32 %v3569_v15, %v3555_v37  ;;  %v3566_v50 = vmul.f32 %v3550_v51, %v3550_v51  ;;  %v3598_v27 = vlaneseq }
 0x22d   : > { %v3567_v36 = vmul.f32 %v3551_v42, %v3551_v42 }
 0x22e   : > { %v3571_v2 = vadd.f32 %v3570_v1, %v3556_v61  ;;  %v3599_v37 = vshrl.u32 %v3598_v27, 7 }
 0x230   : > { %v3572_v11 = vadd.f32 %v3571_v2, %v3557_v35  ;;  %v3600_v6 = vsub.s32 0, %v3599_v37 }
 0x232   : > { %v3573_v13 = vadd.f32 %v3572_v11, %v3558_v59 }
 0x234   : > { %v3574_v19 = vadd.f32 %v3573_v13, %v3559_v49 }
 0x236   : > { %v3575_v33 = vadd.f32 %v3574_v19, %v3560_v60 }
 0x238   : > { %v3576_v34 = vadd.f32 %v3575_v33, %v3561_v17 }
 0x23a   : > { %v3577_v20 = vadd.f32 %v3576_v34, %v3562_v63 }
 0x23c   : > { %v3578_v53 = vadd.f32 %v3577_v20, %v3563_v32 }
 0x23e   : > { %v3579_v54 = vadd.f32 %v3578_v53, %v3564_v24 }
 0x240   : > { %v3580_v5 = vadd.f32 %v3579_v54, %v3565_v47 }
 0x242   : > { %v3581_v25 = vadd.f32 %v3580_v5, %v3566_v50 }
 0x244   : > { %v3582_v26 = vadd.f32 %v3581_v25, %v3567_v36 }
 0x246   : > { %v3583_v3 = vrot.slane %v3582_v26, 4 }
 0x248   : > { %v3584_v23 = vadd.f32 %v3583_v3, %v3582_v26 }
 0x24a   : > { %v3585_v0 = vrot.slane %v3584_v23, 2 }
 0x24c   : > { %v3586_v56 = vadd.f32 %v3585_v0, %v3584_v23 }
 0x24e   : > { %v3587_v57 = vrot.slane %v3586_v56, 1 }
 0x250   : > { %v3588_v10 = vadd.f32 %v3587_v57, %v3586_v56 }
 0x252   : > { %v3589_v52 = vmul.f32 0.0078125, %v3588_v10 }
 0x254   : > { %v3591_v58 = vadd.f32 1e-05, %v3589_v52 }
 0x256   : > { %5121 = vrsqrt.f32 %v3591_v58 }
 0x263   : > { %v5122_v61 = vpop.eup %5121 }
 0x264   : > { %v3593_v15 = vmul.f32 %v5122_v61, %v3590_v31 }
 0x266   : > { %v3595_v35 = vmul.f32 %v3593_v15, %v6174_v40  ;;  %v3601_v1 = vrot.slane %v3593_v15, %v3600_v6 }
 0x268   : > { %v3596_v9 = vsub.f32 %v3594_v28, %v3595_v35  ;;  %v3603_v59 = vmul.f32 %v3601_v1, %v6126_v62  ;;  %v3604_v2 = vmul.f32 %v3601_v1, %v6128_v16  ;;  %v3605_v22 = vmul.f32 %v3601_v1, %v6130_v8 }
 0x269   : > { %v3606_v49 = vmul.f32 %v3601_v1, %v6134_v30  ;;  %v3607_v11 = vmul.f32 %v3601_v1, %v6137_v7  ;;  %v3608_v12 = vmul.f32 %v3601_v1, %v6140_v39  ;;  %v3609_v60 = vmul.f32 %v3601_v1, %v6143_v14 }
 0x26a   : > { %v3623_v13 = vrot.slane %v3596_v9, %v3600_v6  ;;  %v3610_v21 = vmul.f32 %v3601_v1, %v6146_v29  ;;  %v3611_v40 = vmul.f32 %v3601_v1, %v6149_v48  ;;  %v3612_v17 = vmul.f32 %v3601_v1, %v6152_v44 }
 0x26b   : > { %v3613_v62 = vmul.f32 %v3601_v1, %v6155_v45  ;;  %v3614_v16 = vmul.f32 %v3601_v1, %v6158_v38  ;;  %v3615_v8 = vmul.f32 %v3601_v1, %v6161_v4  ;;  %v3616_v30 = vmul.f32 %v3601_v1, %v6164_v18 }
 0x26c   : > { %v3625_v7 = vadd.f32 %v3623_v13, %v3603_v59  ;;  %v3626_v19 = vadd.f32 %v3623_v13, %v3604_v2  ;;  %v3627_v39 = vadd.f32 %v3623_v13, %v3605_v22  ;;  %v3628_v55 = vadd.f32 %v3623_v13, %v3606_v49 }
 0x26d   : > { %v3629_v14 = vadd.f32 %v3623_v13, %v3607_v11  ;;  %v3630_v63 = vadd.f32 %v3623_v13, %v3608_v12  ;;  %v3631_v33 = vadd.f32 %v3623_v13, %v3609_v60  ;;  %v3632_v29 = vadd.f32 %v3623_v13, %v3610_v21 }
 0x26e   : > { %v3641_v43 = vmax.f32 %v3625_v7, 0.0  ;;  %v3642_v48 = vmax.f32 %v3626_v19, 0.0  ;;  %v3643_v32 = vmax.f32 %v3627_v39, 0.0  ;;  %v3644_v44 = vmax.f32 %v3628_v55, 0.0 }
 0x26f   : > { %v3645_v34 = vmax.f32 %v3629_v14, 0.0  ;;  %v3646_v45 = vmax.f32 %v3630_v63, 0.0  ;;  %v3647_v51 = vmax.f32 %v3631_v33, 0.0  ;;  %v3648_v38 = vmax.f32 %v3632_v29, 0.0 }
 0x270   : > { %v4136_v24 = vpack.c.bf16 %v3642_v48, %v3641_v43  ;;  %v4141_v4 = vpack.c.bf16 %v3644_v44, %v3643_v32  ;;  %v3633_v20 = vadd.f32 %v3623_v13, %v3611_v40  ;;  %v3634_v18 = vadd.f32 %v3623_v13, %v3612_v17 }
 0x271   : > { %v4146_v42 = vpack.c.bf16 %v3646_v45, %v3645_v34  ;;  %v4151_v47 = vpack.c.bf16 %v3648_v38, %v3647_v51  ;;  %v3635_v53 = vadd.f32 %v3623_v13, %v3613_v62  ;;  %v3636_v50 = vadd.f32 %v3623_v13, %v3614_v16 }
 0x272   : > { %4137 = vst [vmem:[%s6262_s4] sm:$0xff] %v4136_v24   ;;  %4173 = vst [vmem:[%s6262_s4 + $0x8] sm:$0xff] %v4141_v4   ;;  %v3649_v54 = vmax.f32 %v3633_v20, 0.0  ;;  %v3650_v36 = vmax.f32 %v3634_v18, 0.0  ;;  %v3637_v5 = vadd.f32 %v3623_v13, %v3615_v8  ;;  %v3638_v25 = vadd.f32 %v3623_v13, %v3616_v30 }
 0x273   : > { %4174 = vst [vmem:[%s6262_s4 + $0x10] sm:$0xff] %v4146_v42   ;;  %4175 = vst [vmem:[%s6262_s4 + $0x18] sm:$0xff] %v4151_v47   ;;  %v3651_v26 = vmax.f32 %v3635_v53, 0.0  ;;  %v3652_v3 = vmax.f32 %v3636_v50, 0.0  ;;  %v3617_v23 = vmul.f32 %v3601_v1, %v6167_v41  ;;  %v3618_v0 = vmul.f32 %v3601_v1, %v6170_v46 }
 0x274   : > { %v4156_v56 = vpack.c.bf16 %v3650_v36, %v3649_v54  ;;  %v3653_v57 = vmax.f32 %v3637_v5, 0.0  ;;  %v3654_v10 = vmax.f32 %v3638_v25, 0.0 }
 0x275   : > { %v4161_v52 = vpack.c.bf16 %v3652_v3, %v3651_v26  ;;  %v3639_v58 = vadd.f32 %v3623_v13, %v3617_v23  ;;  %v3640_v27 = vadd.f32 %v3623_v13, %v3618_v0 }
 0x276   : > { %4176 = vst [vmem:[%s6262_s4 + $0x20] sm:$0xff] %v4156_v56   ;;  %v4166_v37 = vpack.c.bf16 %v3654_v10, %v3653_v57 }
 0x277   : > { %4177 = vst [vmem:[%s6262_s4 + $0x28] sm:$0xff] %v4161_v52   ;;  %v3655_v31 = vmax.f32 %v3639_v58, 0.0  ;;  %v3656_v6 = vmax.f32 %v3640_v27, 0.0 }
 0x278   : > { %4178 = vst [vmem:[%s6262_s4 + $0x30] sm:$0xff] %v4166_v37  }
 0x279   : > { %v4171_v41 = vpack.c.bf16 %v3656_v6, %v3655_v31 }
 0x27b   : > { %4179 = vst [vmem:[%s6262_s4 + $0x38] sm:$0xff] %v4171_v41  }
 0x27c PF: > { %s14_s15 = sadd.s32 1, %s5129_s15  }
 0x27d   : > { %p11_p5 = scmp.ge.s32.totalorder %s14_s15, 4  }
 0x27f   :  { %13 = sbr.rel (!%p11_p5) target bundleno = 1 (0x1), region = 67 }

// kernel: unet_forward.11
= control target key start
LH: loop header
LB: loop body
LE: loop exit
PB: predicated region body
PF: predicated region fallthrough
CT: control target
= control target key end

     0   :  { %s903_s12 = smov 0   ;;  %s1037_s0 = inlined_call_operand.vmem [shape: bf16[512,128], index: 0, kind: input, shape index: {}]   ;;  %s1038_s1 = inlined_call_operand.vmem [shape: bf16[128,128], index: 1, kind: input, shape index: {}]   ;;  %s1039_s2 = inlined_call_operand.vmem [shape: f32[1,128], index: 2, kind: input, shape index: {}]   ;;  %s1040_s3 = inlined_call_operand.vmem [shape: f32[512,128], index: 3, kind: output, shape index: {}]  }
   0x1 LB: > { %s655_s13 = sadd.s32 4294967295, %s881_s12   ;;  %p659_p0 = scmp.ge.s32.totalorder %s881_s12, 1  ;;  %s881_s12 = sphi %s903_s12, %s13_s12  }
   0x2   : > { %p138_p1 = scmp.lt.s32.totalorder %s881_s12, 3 }
   0x4   : > { %p139_p2 = pnand %p659_p0, %p138_p1 }
   0x5   : > { %s660_s16 = sshll.u32 (!%p139_p2), %s655_s13, 5 }
   0x6   : > { %142 = sbr.rel (%p139_p2) target bundleno = 285 (0x11d), region = 32  ;;  %p163_p3 = scmp.lt.s32.totalorder (!%p139_p2), %s660_s16, 63 }
   0xb   : > { %v787_v0 = vld [vmem:[%s1038_s1 + $0x38] sm:$0xff]   ;;  %v788_v1 = vld [vmem:[%s1038_s1 + $0x30] sm:$0xff]   ;;  %s1042_s16 = smov (!%p163_p3, %s660_s16), 63  ;;  %v789_v2 = vld [vmem:[%s1038_s1 + $0x28] sm:$0xff]  }
   0xc   : > { %715 = vmatprep.subr.bf16.mxu0 %v787_v0  ;;  %763 = vmatprep.subr.bf16.mxu1 %v787_v0  ;;  %s661_s21 = sshll.u32 %s1042_s16, 2  ;;  %v790_v3 = vld [vmem:[%s1038_s1 + $0x20] sm:$0xff]   ;;  %v791_v6 = vld [vmem:[%s1038_s1 + $0x18] sm:$0xff]   ;;  %v792_v7 = vld [vmem:[%s1038_s1 + $0x10] sm:$0xff]   ;;  %s663_s10 = sshll.u32 %s1042_s16, 3 }
   0xd   : > { %716 = vmatpush3.bf16.msra.mxu0 %v787_v0  ;;  %771 = vmatpush3.bf16.msra.mxu1 %v787_v0  ;;  %s926_s24 = scalar_lea.vmem %s1037_s0, %s661_s21  ;;  %v793_v8 = vld [vmem:[%s1038_s1 + $0x8] sm:$0xff]   ;;  %v794_v9 = vld [vmem:[%s1038_s1] sm:$0xff]   ;;  %s982_s14 = scalar_lea.vmem %s1040_s3, %s663_s10 }
   0xe   : > { %717 = vmatprep.subr.bf16.mxu0 %v788_v1  ;;  %764 = vmatprep.subr.bf16.mxu1 %v788_v1  ;;  %v795_v4 = vld [vmem:[%s926_s24] sm:$0xff]   ;;  %v797_v10 = vld [vmem:[%s926_s24 + $0x8] sm:$0xff]   ;;  %v799_v12 = vld [vmem:[%s926_s24 + $0x10] sm:$0xff]  }
   0xf   : > { %v796_v5 = vld [vmem:[%s926_s24 + $0x40] sm:$0xff]   ;;  %731 = vmatprep.mubr.bf16.mxu0 %v795_v4  ;;  %v798_v11 = vld [vmem:[%s926_s24 + $0x48] sm:$0xff]   ;;  %v800_v13 = vld [vmem:[%s926_s24 + $0x50] sm:$0xff]  }
  0x10   : > { %747 = vmatprep.mubr.bf16.mxu1 %v796_v5  ;;  %v801_v14 = vld [vmem:[%s926_s24 + $0x18] sm:$0xff]   ;;  %v803_v16 = vld [vmem:[%s926_s24 + $0x20] sm:$0xff]   ;;  %v805_v18 = vld [vmem:[%s926_s24 + $0x28] sm:$0xff]  }
  0x11   : > { %718 = vmatpush3.bf16.msra.mxu0 %v788_v1  ;;  %772 = vmatpush3.bf16.msra.mxu1 %v788_v1  ;;  %v802_v15 = vld [vmem:[%s926_s24 + $0x58] sm:$0xff]   ;;  %v804_v17 = vld [vmem:[%s926_s24 + $0x60] sm:$0xff]   ;;  %v806_v19 = vld [vmem:[%s926_s24 + $0x68] sm:$0xff]  }
  0x12   : > { %719 = vmatprep.subr.bf16.mxu0 %v789_v2  ;;  %765 = vmatprep.subr.bf16.mxu1 %v789_v2  ;;  %v807_v20 = vld [vmem:[%s926_s24 + $0x30] sm:$0xff]   ;;  %v809_v22 = vld [vmem:[%s926_s24 + $0x38] sm:$0xff]   ;;  %v962_v24 = vld [vmem:[%s1039_s2] ss:$0 sm:$0xff] }
  0x13   : > { %v808_v21 = vld [vmem:[%s926_s24 + $0x70] sm:$0xff]   ;;  %v810_v23 = vld [vmem:[%s926_s24 + $0x78] sm:$0xff]  }
  0x15   : > { %720 = vmatpush3.bf16.msra.mxu0 %v789_v2  ;;  %773 = vmatpush3.bf16.msra.mxu1 %v789_v2 }
  0x16   : > { %721 = vmatprep.subr.bf16.mxu0 %v790_v3  ;;  %766 = vmatprep.subr.bf16.mxu1 %v790_v3 }
  0x19   : > { %722 = vmatpush3.bf16.msra.mxu0 %v790_v3  ;;  %774 = vmatpush3.bf16.msra.mxu1 %v790_v3 }
  0x1a   : > { %723 = vmatprep.subr.bf16.mxu0 %v791_v6  ;;  %767 = vmatprep.subr.bf16.mxu1 %v791_v6 }
  0x1d   : > { %724 = vmatpush3.bf16.msra.mxu0 %v791_v6  ;;  %775 = vmatpush3.bf16.msra.mxu1 %v791_v6 }
  0x1e   : > { %725 = vmatprep.subr.bf16.mxu0 %v792_v7  ;;  %768 = vmatprep.subr.bf16.mxu1 %v792_v7 }
  0x21   : > { %726 = vmatpush3.bf16.msra.mxu0 %v792_v7  ;;  %776 = vmatpush3.bf16.msra.mxu1 %v792_v7 }
  0x22   : > { %727 = vmatprep.subr.bf16.mxu0 %v793_v8  ;;  %769 = vmatprep.subr.bf16.mxu1 %v793_v8 }
  0x25   : > { %728 = vmatpush3.bf16.msra.mxu0 %v793_v8  ;;  %777 = vmatpush3.bf16.msra.mxu1 %v793_v8 }
  0x26   : > { %729 = vmatprep.subr.bf16.mxu0 %v794_v9  ;;  %770 = vmatprep.subr.bf16.mxu1 %v794_v9 }
  0x29   : > { %730 = vmatpush3.bf16.msra.mxu0 %v794_v9  ;;  %778 = vmatpush3.bf16.msra.mxu1 %v794_v9 }
  0x2c   : > { %732 = vmatmul.mubr.bf16.vlgmr.msra.gmra.mxu0 %v797_v10  ;;  %748 = vmatmul.mubr.bf16.vlgmr.msra.gmra.mxu1 %v798_v11 }
  0x2d   : > { %735 = vmatprep.mubr.bf16.mxu0 %v799_v12  ;;  %751 = vmatprep.mubr.bf16.mxu1 %v800_v13 }
  0x34   : > { %736 = vmatmul.mubr.bf16.gmra.mxu0 %v801_v14  ;;  %752 = vmatmul.mubr.bf16.gmra.mxu1 %v802_v15 }
  0x35   : > { %739 = vmatprep.mubr.bf16.mxu0 %v803_v16  ;;  %755 = vmatprep.mubr.bf16.mxu1 %v804_v17 }
  0x3c   : > { %740 = vmatmul.mubr.bf16.gmra.mxu0 %v805_v18  ;;  %756 = vmatmul.mubr.bf16.gmra.mxu1 %v806_v19 }
  0x3d   : > { %743 = vmatprep.mubr.bf16.mxu0 %v807_v20  ;;  %759 = vmatprep.mubr.bf16.mxu1 %v808_v21 }
  0x44   : > { %744 = vmatmul.mubr.bf16.gmra.mxu0 %v809_v22  ;;  %760 = vmatmul.mubr.bf16.gmra.mxu1 %v810_v23 }
  0xec   : > { %v733_v25 = vpop.f32.mrf.mxu0  ;;  %v749_v26 = vpop.f32.mrf.mxu1 }
  0xed   : > { %v417_v27 = vadd.f32 %v733_v25, %v962_v24  ;;  %v481_v28 = vadd.f32 %v749_v26, %v962_v24 }
  0xee   : > { %v408_v29 = vpop.f32.mrf.mxu0  ;;  %v472_v30 = vpop.f32.mrf.mxu1 }
  0xef   : > { %811 = vtanh.f32 %v417_v27  ;;  %v409_v31 = vadd.f32 %v962_v24, %v408_v29  ;;  %v473_v32 = vadd.f32 %v962_v24, %v472_v30 }
  0xf0   : > { %813 = vtanh.f32 %v481_v28  ;;  %v734_v33 = vpop.f32.mrf.mxu0  ;;  %v750_v34 = vpop.f32.mrf.mxu1 }
  0xf1   : > { %815 = vtanh.f32 %v409_v31  ;;  %v420_v35 = vadd.f32 %v734_v33, %v962_v24  ;;  %v484_v36 = vadd.f32 %v750_v34, %v962_v24 }
  0xf2   : > { %817 = vtanh.f32 %v473_v32  ;;  %v411_v37 = vpop.f32.mrf.mxu0  ;;  %v475_v38 = vpop.f32.mrf.mxu1 }
  0xf3   : > { %819 = vtanh.f32 %v420_v35  ;;  %v412_v39 = vadd.f32 %v962_v24, %v411_v37  ;;  %v476_v40 = vadd.f32 %v962_v24, %v475_v38 }
  0xf4   : > { %821 = vtanh.f32 %v484_v36  ;;  %v737_v41 = vpop.f32.mrf.mxu0  ;;  %v753_v42 = vpop.f32.mrf.mxu1 }
  0xf5   : > { %823 = vtanh.f32 %v412_v39  ;;  %v433_v43 = vadd.f32 %v737_v41, %v962_v24  ;;  %v497_v44 = vadd.f32 %v753_v42, %v962_v24 }
  0xf6   : > { %825 = vtanh.f32 %v476_v40  ;;  %v424_v45 = vpop.f32.mrf.mxu0  ;;  %v488_v46 = vpop.f32.mrf.mxu1 }
  0xf7   : > { %827 = vtanh.f32 %v433_v43  ;;  %v425_v47 = vadd.f32 %v962_v24, %v424_v45  ;;  %v489_v48 = vadd.f32 %v962_v24, %v488_v46 }
  0xf8   : > { %829 = vtanh.f32 %v497_v44  ;;  %v738_v49 = vpop.f32.mrf.mxu0  ;;  %v754_v50 = vpop.f32.mrf.mxu1 }
  0xf9   : > { %831 = vtanh.f32 %v425_v47  ;;  %v436_v51 = vadd.f32 %v738_v49, %v962_v24  ;;  %v500_v52 = vadd.f32 %v754_v50, %v962_v24 }
  0xfa   : > { %833 = vtanh.f32 %v489_v48  ;;  %v427_v53 = vpop.f32.mrf.mxu0  ;;  %v491_v54 = vpop.f32.mrf.mxu1 }
  0xfb   : > { %835 = vtanh.f32 %v436_v51  ;;  %v428_v55 = vadd.f32 %v962_v24, %v427_v53  ;;  %v492_v56 = vadd.f32 %v962_v24, %v491_v54 }
  0xfc   : > { %v812_v57 = vpop.eup %811  ;;  %837 = vtanh.f32 %v500_v52  ;;  %v741_v58 = vpop.f32.mrf.mxu0 }
  0xfd   : > { %v757_v59 = vpop.f32.mrf.mxu1  ;;  %v814_v60 = vpop.eup %813  ;;  %569 = vst [vmem:[%s982_s14 + $0x10] sm:$0xff] %v812_v57  ;;  %839 = vtanh.f32 %v428_v55  ;;  %v449_v61 = vadd.f32 %v741_v58, %v962_v24 }
  0xfe   : > { %v513_v62 = vadd.f32 %v757_v59, %v962_v24  ;;  %v816_v63 = vpop.eup %815  ;;  %585 = vst [vmem:[%s982_s14 + $0x90] sm:$0xff] %v814_v60  ;;  %841 = vtanh.f32 %v492_v56  ;;  %v440_v0 = vpop.f32.mrf.mxu0 }
  0xff   : > { %v504_v1 = vpop.f32.mrf.mxu1  ;;  %v818_v2 = vpop.eup %817  ;;  %567 = vst [vmem:[%s982_s14] sm:$0xff] %v816_v63  ;;  %843 = vtanh.f32 %v449_v61  ;;  %v441_v3 = vadd.f32 %v962_v24, %v440_v0 }
 0x100   : > { %v505_v4 = vadd.f32 %v962_v24, %v504_v1  ;;  %v820_v5 = vpop.eup %819  ;;  %583 = vst [vmem:[%s982_s14 + $0x80] sm:$0xff] %v818_v2  ;;  %845 = vtanh.f32 %v513_v62  ;;  %v742_v6 = vpop.f32.mrf.mxu0 }
 0x101   : > { %v758_v7 = vpop.f32.mrf.mxu1  ;;  %v822_v8 = vpop.eup %821  ;;  %570 = vst [vmem:[%s982_s14 + $0x18] sm:$0xff] %v820_v5  ;;  %847 = vtanh.f32 %v441_v3  ;;  %v452_v9 = vadd.f32 %v742_v6, %v962_v24 }
 0x102   : > { %v516_v10 = vadd.f32 %v758_v7, %v962_v24  ;;  %v824_v11 = vpop.eup %823  ;;  %586 = vst [vmem:[%s982_s14 + $0x98] sm:$0xff] %v822_v8  ;;  %849 = vtanh.f32 %v505_v4  ;;  %v443_v12 = vpop.f32.mrf.mxu0 }
 0x103   : > { %v507_v13 = vpop.f32.mrf.mxu1  ;;  %v826_v14 = vpop.eup %825  ;;  %568 = vst [vmem:[%s982_s14 + $0x8] sm:$0xff] %v824_v11  ;;  %851 = vtanh.f32 %v452_v9  ;;  %v444_v15 = vadd.f32 %v962_v24, %v443_v12 }
 0x104   : > { %v508_v16 = vadd.f32 %v962_v24, %v507_v13  ;;  %v828_v17 = vpop.eup %827  ;;  %584 = vst [vmem:[%s982_s14 + $0x88] sm:$0xff] %v826_v14  ;;  %853 = vtanh.f32 %v516_v10  ;;  %v745_v18 = vpop.f32.mrf.mxu0 }
 0x105   : > { %v761_v19 = vpop.f32.mrf.mxu1  ;;  %v830_v20 = vpop.eup %829  ;;  %573 = vst [vmem:[%s982_s14 + $0x30] sm:$0xff] %v828_v17  ;;  %855 = vtanh.f32 %v444_v15  ;;  %v465_v21 = vadd.f32 %v745_v18, %v962_v24 }
 0x106   : > { %v529_v22 = vadd.f32 %v761_v19, %v962_v24  ;;  %v832_v23 = vpop.eup %831  ;;  %589 = vst [vmem:[%s982_s14 + $0xb0] sm:$0xff] %v830_v20  ;;  %857 = vtanh.f32 %v508_v16  ;;  %v456_v25 = vpop.f32.mrf.mxu0 }
 0x107   : > { %v520_v26 = vpop.f32.mrf.mxu1  ;;  %v834_v27 = vpop.eup %833  ;;  %571 = vst [vmem:[%s982_s14 + $0x20] sm:$0xff] %v832_v23  ;;  %859 = vtanh.f32 %v465_v21  ;;  %v457_v28 = vadd.f32 %v962_v24, %v456_v25 }
 0x108   : > { %v521_v29 = vadd.f32 %v962_v24, %v520_v26  ;;  %v836_v30 = vpop.eup %835  ;;  %587 = vst [vmem:[%s982_s14 + $0xa0] sm:$0xff] %v834_v27  ;;  %861 = vtanh.f32 %v529_v22  ;;  %v746_v31 = vpop.f32.mrf.mxu0 }
 0x109   : > { %v762_v32 = vpop.f32.mrf.mxu1  ;;  %v838_v33 = vpop.eup %837  ;;  %574 = vst [vmem:[%s982_s14 + $0x38] sm:$0xff] %v836_v30  ;;  %863 = vtanh.f32 %v457_v28  ;;  %v468_v34 = vadd.f32 %v746_v31, %v962_v24 }
 0x10a   : > { %v532_v35 = vadd.f32 %v762_v32, %v962_v24  ;;  %v840_v36 = vpop.eup %839  ;;  %590 = vst [vmem:[%s982_s14 + $0xb8] sm:$0xff] %v838_v33  ;;  %865 = vtanh.f32 %v521_v29  ;;  %v459_v37 = vpop.f32.mrf.mxu0 }
 0x10b   : > { %v523_v38 = vpop.f32.mrf.mxu1  ;;  %v842_v39 = vpop.eup %841  ;;  %572 = vst [vmem:[%s982_s14 + $0x28] sm:$0xff] %v840_v36  ;;  %867 = vtanh.f32 %v468_v34  ;;  %v460_v40 = vadd.f32 %v962_v24, %v459_v37 }
 0x10c   : > { %v524_v41 = vadd.f32 %v962_v24, %v523_v38  ;;  %v844_v42 = vpop.eup %843  ;;  %588 = vst [vmem:[%s982_s14 + $0xa8] sm:$0xff] %v842_v39  ;;  %869 = vtanh.f32 %v532_v35 }
 0x10d   : > { %v846_v43 = vpop.eup %845  ;;  %577 = vst [vmem:[%s982_s14 + $0x50] sm:$0xff] %v844_v42  ;;  %871 = vtanh.f32 %v460_v40 }
 0x10e   : > { %v848_v44 = vpop.eup %847  ;;  %593 = vst [vmem:[%s982_s14 + $0xd0] sm:$0xff] %v846_v43  ;;  %873 = vtanh.f32 %v524_v41 }
 0x10f   : > { %v850_v45 = vpop.eup %849  ;;  %575 = vst [vmem:[%s982_s14 + $0x40] sm:$0xff] %v848_v44 }
 0x110   : > { %v852_v46 = vpop.eup %851  ;;  %591 = vst [vmem:[%s982_s14 + $0xc0] sm:$0xff] %v850_v45 }
 0x111   : > { %v854_v24 = vpop.eup %853  ;;  %578 = vst [vmem:[%s982_s14 + $0x58] sm:$0xff] %v852_v46 }
 0x112   : > { %v856_v47 = vpop.eup %855  ;;  %594 = vst [vmem:[%s982_s14 + $0xd8] sm:$0xff] %v854_v24 }
 0x113   : > { %v858_v48 = vpop.eup %857  ;;  %576 = vst [vmem:[%s982_s14 + $0x48] sm:$0xff] %v856_v47 }
 0x114   : > { %v860_v49 = vpop.eup %859  ;;  %592 = vst [vmem:[%s982_s14 + $0xc8] sm:$0xff] %v858_v48 }
 0x115   : > { %v862_v50 = vpop.eup %861  ;;  %581 = vst [vmem:[%s982_s14 + $0x70] sm:$0xff] %v860_v49 }
 0x116   : > { %v864_v51 = vpop.eup %863  ;;  %597 = vst [vmem:[%s982_s14 + $0xf0] sm:$0xff] %v862_v50 }
 0x117   : > { %v866_v52 = vpop.eup %865  ;;  %579 = vst [vmem:[%s982_s14 + $0x60] sm:$0xff] %v864_v51 }
 0x118   : > { %v868_v53 = vpop.eup %867  ;;  %595 = vst [vmem:[%s982_s14 + $0xe0] sm:$0xff] %v866_v52 }
 0x119   : > { %v870_v54 = vpop.eup %869  ;;  %582 = vst [vmem:[%s982_s14 + $0x78] sm:$0xff] %v868_v53 }
 0x11a   : > { %v872_v55 = vpop.eup %871  ;;  %598 = vst [vmem:[%s982_s14 + $0xf8] sm:$0xff] %v870_v54 }
 0x11b   : > { %v874_v56 = vpop.eup %873  ;;  %580 = vst [vmem:[%s982_s14 + $0x68] sm:$0xff] %v872_v55 }
 0x11c   : > { %596 = vst [vmem:[%s982_s14 + $0xe8] sm:$0xff] %v874_v56 }
 0x11d PF: > { %s13_s12 = sadd.s32 1, %s881_s12  }
 0x11e   : > { %p10_p4 = scmp.ge.s32.totalorder %s13_s12, 4  }
 0x120   :  { %12 = sbr.rel (!%p10_p4) target bundleno = 1 (0x1), region = 62 }

// kernel: unet_forward.10
= control target key start
LH: loop header
LB: loop body
LE: loop exit
PB: predicated region body
PF: predicated region fallthrough
CT: control target
= control target key end

     0   :  { %s6344_s15 = smov 0   ;;  %s7884_s0 = inlined_call_operand.vmem [shape: bf16[512,1728], index: 0, kind: input, shape index: {}]   ;;  %s7885_s1 = inlined_call_operand.vmem [shape: bf16[1728,128], index: 1, kind: input, shape index: {}]   ;;  %s7886_s2 = inlined_call_operand.vmem [shape: f32[1,128], index: 2, kind: input, shape index: {}]   ;;  %s7887_s3 = inlined_call_operand.vmem [shape: f32[1,128], index: 3, kind: input, shape index: {}]   ;;  %s7888_s4 = inlined_call_operand.vmem [shape: bf16[512,128], index: 4, kind: output, shape index: {}]  }
   0x1 LB: > { %s6350_s16 = sadd.s32 4294967295, %s6316_s15   ;;  %p4492_p0 = scmp.ge.s32.totalorder %s6316_s15, 1  ;;  %s6316_s15 = sphi %s6344_s15, %s14_s15  }
   0x2   : > { %p159_p1 = scmp.lt.s32.totalorder %s6316_s15, 3 }
   0x4   : > { %p160_p2 = pnand %p4492_p0, %p159_p1 }
   0x5   : > { %s4493_s19 = sshll.u32 (!%p160_p2), %s6350_s16, 5  ;;  %p4844_p4 = scmp.ne.s32.totalorder (!%p160_p2), %s6350_s16, 1 }
   0x6   : > { %163 = sbr.rel (%p160_p2) target bundleno = 1063 (0x427), region = 36  ;;  %p182_p3 = scmp.lt.s32.totalorder (!%p160_p2), %s4493_s19, 63 }
   0xb   : > { %v5864_v0 = vld [vmem:[%s7885_s1 + $0x78] sm:$0xff]   ;;  %v5866_v2 = vld [vmem:[%s7885_s1 + $0x70] sm:$0xff]   ;;  %v5868_v4 = vld [vmem:[%s7885_s1 + $0x68] sm:$0xff]   ;;  %s7993_s19 = smov (!%p182_p3, %s4493_s19), 63  ;;  %vm2381_vm0 = vcmask 523264  }
   0xc   : > { %v5865_v1 = vld [vmem:[%s7885_s1 + $0x38] sm:$0xff]   ;;  %5838 = vmatprep.subr.bf16.mxu1 %v5864_v0  ;;  %5166 = vmatprep.subr.bf16.mxu0 %v5864_v0  ;;  %v5867_v3 = vld [vmem:[%s7885_s1 + $0x30] sm:$0xff]   ;;  %v5869_v5 = vld [vmem:[%s7885_s1 + $0x28] sm:$0xff]   ;;  %s5854_s6 = smul.u32 56, %s7993_s19 }
   0xd   : > { %5846 = vmatpush3.bf16.msra.mxu1 %v5865_v1  ;;  %5167 = vmatpush3.bf16.msra.mxu0 %v5865_v1  ;;  %v5870_v6 = vld [vmem:[%s7885_s1 + $0x60] sm:$0xff]   ;;  %v5872_v8 = vld [vmem:[%s7885_s1 + $0x58] sm:$0xff]   ;;  %v5874_v10 = vld [vmem:[%s7885_s1 + $0x50] sm:$0xff]  }
   0xe   : > { %5839 = vmatprep.subr.bf16.mxu1 %v5866_v2  ;;  %5168 = vmatprep.subr.bf16.mxu0 %v5866_v2  ;;  %v5871_v7 = vld [vmem:[%s7885_s1 + $0x20] sm:$0xff]   ;;  %s6385_s13 = scalar_lea.vmem %s7884_s0, %s5854_s6  ;;  %v5873_v9 = vld [vmem:[%s7885_s1 + $0x18] sm:$0xff]   ;;  %v5875_v13 = vld [vmem:[%s7885_s1 + $0x10] sm:$0xff]  }
   0xf   : > { %v5882_v11 = vld [vmem:[%s6385_s13 + $0x384] ss:$56 sps:$4 sm:$0xff]   ;;  %v5876_v14 = vld [vmem:[%s7885_s1 + $0x48] sm:$0xff]   ;;  %v5880_v19 = vld [vmem:[%s6385_s13 + $0x380] ss:$56 sps:$4 sm:$0xff]  }
  0x10   : > { %v5885_v12 = vld [vmem:[%s6385_s13 + $0x4] ss:$56 sps:$4 sm:$0xff]   ;;  %2526 = vmatprep.mubr.bf16.mxu1 %v5882_v11  ;;  %v5877_v15 = vld [vmem:[%s7885_s1 + $0x8] sm:$0xff]   ;;  %v5883_v21 = vld [vmem:[%s6385_s13] ss:$56 sps:$4 sm:$0xff]  }
  0x11   : > { %5847 = vmatpush3.bf16.msra.mxu1 %v5867_v3  ;;  %5169 = vmatpush3.bf16.msra.mxu0 %v5867_v3  ;;  %v5878_v16 = vld [vmem:[%s7885_s1 + $0x40] sm:$0xff]   ;;  %v5886_v18 = vld [vmem:[%s7885_s1 + $0xf8] sm:$0xff]   ;;  %v5889_v23 = vld [vmem:[%s6385_s13 + $0x3f4] ss:$56 sps:$4 sm:$0xff]  }
  0x12   : > { %5840 = vmatprep.subr.bf16.mxu1 %v5868_v4  ;;  %5170 = vmatprep.subr.bf16.mxu0 %v5868_v4  ;;  %v5879_v17 = vld [vmem:[%s7885_s1] sm:$0xff]   ;;  %v5888_v20 = vld [vmem:[%s7885_s1 + $0x178] sm:$0xff]   ;;  %v5892_v25 = vld [vmem:[%s6385_s13 + $0x74] ss:$56 sps:$4 sm:$0xff]  }
  0x13   : > { %2462 = vmatprep.mubr.bf16.mxu0 %v5885_v12  ;;  %v5887_v22 = vld [vmem:[%s7885_s1 + $0xb8] sm:$0xff]   ;;  %v5895_v26 = vld [vmem:[%s7885_s1 + $0xf0] sm:$0xff]   ;;  %v5905_v32 = vld [vmem:[%s7885_s1 + $0xe8] sm:$0xff]  }
  0x14   : > { %v5891_v24 = vld [vmem:[%s7885_s1 + $0x138] sm:$0xff]   ;;  %v5898_v27 = vld [vmem:[%s7885_s1 + $0x170] sm:$0xff]   ;;  %v5908_v34 = vld [vmem:[%s7885_s1 + $0x168] sm:$0xff]  }
  0x15   : > { %5848 = vmatpush3.bf16.msra.mxu1 %v5869_v5  ;;  %5171 = vmatpush3.bf16.msra.mxu0 %v5869_v5  ;;  %v5897_v28 = vld [vmem:[%s7885_s1 + $0xb0] sm:$0xff]   ;;  %v5899_v33 = vld [vmem:[%s6385_s13 + $0x464] ss:$56 sps:$4 sm:$0xff]   ;;  %v5907_v36 = vld [vmem:[%s7885_s1 + $0xa8] sm:$0xff]  }
  0x16   : > { %5841 = vmatprep.subr.bf16.mxu1 %v5870_v6  ;;  %5172 = vmatprep.subr.bf16.mxu0 %v5870_v6  ;;  %v5901_v29 = vld [vmem:[%s7885_s1 + $0x130] sm:$0xff]   ;;  %v5902_v35 = vld [vmem:[%s6385_s13 + $0xe4] ss:$56 sps:$4 sm:$0xff]   ;;  %v5911_v37 = vld [vmem:[%s7885_s1 + $0x128] sm:$0xff]  }
  0x17   : > { %v5894_v30 = vld [vmem:[%s6385_s13 + $0x3f0] ss:$56 sps:$4 sm:$0xff]   ;;  %v5915_v38 = vld [vmem:[%s7885_s1 + $0xe0] sm:$0xff]   ;;  %v5909_v44 = vld [vmem:[%s6385_s13 + $0x4d4] ss:$56 sps:$4 sm:$0xff]  }
  0x18   : > { %v5896_v31 = vld [vmem:[%s6385_s13 + $0x70] ss:$56 sps:$4 sm:$0xff]   ;;  %v5918_v39 = vld [vmem:[%s7885_s1 + $0x160] sm:$0xff]   ;;  %v5925_v45 = vld [vmem:[%s7885_s1 + $0xd8] sm:$0xff]  }
  0x19   : > { %5849 = vmatpush3.bf16.msra.mxu1 %v5871_v7  ;;  %5173 = vmatpush3.bf16.msra.mxu0 %v5871_v7  ;;  %v5904_v40 = vld [vmem:[%s6385_s13 + $0x460] ss:$56 sps:$4 sm:$0xff]   ;;  %v5912_v46 = vld [vmem:[%s6385_s13 + $0x154] ss:$56 sps:$4 sm:$0xff]   ;;  %v5914_v50 = vld [vmem:[%s6385_s13 + $0x4d0] ss:$56 sps:$4 sm:$0xff]  }
  0x1a   : > { %5842 = vmatprep.subr.bf16.mxu1 %v5872_v8  ;;  %5174 = vmatprep.subr.bf16.mxu0 %v5872_v8  ;;  %v5906_v41 = vld [vmem:[%s6385_s13 + $0xe0] ss:$56 sps:$4 sm:$0xff]   ;;  %v5916_v51 = vld [vmem:[%s6385_s13 + $0x150] ss:$56 sps:$4 sm:$0xff]   ;;  %v5919_v53 = vld [vmem:[%s6385_s13 + $0x544] ss:$56 sps:$4 sm:$0xff]  }
  0x1b   : > { %v5917_v42 = vld [vmem:[%s7885_s1 + $0xa0] sm:$0xff]   ;;  %v5927_v47 = vld [vmem:[%s7885_s1 + $0x98] sm:$0xff]   ;;  %v5935_v52 = vld [vmem:[%s7885_s1 + $0xd0] sm:$0xff]  }
  0x1c   : > { %v5921_v43 = vld [vmem:[%s7885_s1 + $0x120] sm:$0xff]   ;;  %v5928_v48 = vld [vmem:[%s7885_s1 + $0x158] sm:$0xff]   ;;  %v5937_v54 = vld [vmem:[%s7885_s1 + $0x90] sm:$0xff]  }
  0x1d   : > { %5850 = vmatpush3.bf16.msra.mxu1 %v5873_v9  ;;  %5175 = vmatpush3.bf16.msra.mxu0 %v5873_v9  ;;  %v5931_v49 = vld [vmem:[%s7885_s1 + $0x118] sm:$0xff]   ;;  %v5938_v55 = vld [vmem:[%s7885_s1 + $0x150] sm:$0xff]   ;;  %v5945_v58 = vld [vmem:[%s7885_s1 + $0xc8] sm:$0xff]  }
  0x1e   : > { %5843 = vmatprep.subr.bf16.mxu1 %v5874_v10  ;;  %5176 = vmatprep.subr.bf16.mxu0 %v5874_v10  ;;  %v5922_v56 = vld [vmem:[%s6385_s13 + $0x1c4] ss:$56 sps:$4 sm:$0xff]   ;;  %v5941_v57 = vld [vmem:[%s7885_s1 + $0x110] sm:$0xff]   ;;  %v5924_v59 = vld [vmem:[%s6385_s13 + $0x540] ss:$56 sps:$4 sm:$0xff]  }
  0x1f   : > { %v5926_v60 = vld [vmem:[%s6385_s13 + $0x1c0] ss:$56 sps:$4 sm:$0xff]   ;;  %v5947_v61 = vld [vmem:[%s7885_s1 + $0x88] sm:$0xff]   ;;  %v5939_v8 = vld [vmem:[%s6385_s13 + $0x624] ss:$56 sps:$4 sm:$0xff]  }
  0x20   : > { %v5929_v62 = vld [vmem:[%s6385_s13 + $0x5b4] ss:$56 sps:$4 sm:$0xff]   ;;  %v5955_v2 = vld [vmem:[%s7885_s1 + $0xc0] sm:$0xff]   ;;  %v5934_v6 = vld [vmem:[%s6385_s13 + $0x5b0] ss:$56 sps:$4 sm:$0xff]  }
  0x21   : > { %5851 = vmatpush3.bf16.msra.mxu1 %v5875_v13  ;;  %5177 = vmatpush3.bf16.msra.mxu0 %v5875_v13  ;;  %v5948_v63 = vld [vmem:[%s7885_s1 + $0x148] sm:$0xff]   ;;  %v5957_v3 = vld [vmem:[%s7885_s1 + $0x80] sm:$0xff]   ;;  %v5966_v10 = vld [vmem:[%s7885_s1 + $0x1f8] sm:$0xff]  }
  0x22   : > { %5844 = vmatprep.subr.bf16.mxu1 %v5876_v14  ;;  %5178 = vmatprep.subr.bf16.mxu0 %v5876_v14  ;;  %v5932_v0 = vld [vmem:[%s6385_s13 + $0x234] ss:$56 sps:$4 sm:$0xff]   ;;  %v5958_v4 = vld [vmem:[%s7885_s1 + $0x140] sm:$0xff]   ;;  %v5936_v7 = vld [vmem:[%s6385_s13 + $0x230] ss:$56 sps:$4 sm:$0xff]  }
  0x23   : > { %v5951_v1 = vld [vmem:[%s7885_s1 + $0x108] sm:$0xff]   ;;  %v5959_v5 = vld [vmem:[%s7885_s1 + $0x100] sm:$0xff]   ;;  %v5968_v11 = vld [vmem:[%s7885_s1 + $0x278] sm:$0xff]  }
  0x24   : > { %v5942_v9 = vld [vmem:[%s6385_s13 + $0x2a4] ss:$56 sps:$4 sm:$0xff]   ;;  %v5944_v12 = vld [vmem:[%s6385_s13 + $0x620] ss:$56 sps:$4 sm:$0xff]   ;;  %v5949_v14 = vld [vmem:[%s6385_s13 + $0x694] ss:$56 sps:$4 sm:$0xff]  }
  0x25   : > { %5852 = vmatpush3.bf16.msra.mxu1 %v5877_v15  ;;  %5179 = vmatpush3.bf16.msra.mxu0 %v5877_v15  ;;  %v5946_v13 = vld [vmem:[%s6385_s13 + $0x2a0] ss:$56 sps:$4 sm:$0xff]   ;;  %v5952_v15 = vld [vmem:[%s6385_s13 + $0x314] ss:$56 sps:$4 sm:$0xff]  }
  0x26   : > { %5845 = vmatprep.subr.bf16.mxu1 %v5878_v16  ;;  %5180 = vmatprep.subr.bf16.mxu0 %v5878_v16  ;;  %v5954_v16 = vld [vmem:[%s6385_s13 + $0x690] ss:$56 sps:$4 sm:$0xff]  }
  0x29   : > { %5853 = vmatpush3.bf16.msra.mxu1 %v5879_v17  ;;  %5181 = vmatpush3.bf16.msra.mxu0 %v5879_v17  ;;  %v5956_v17 = vld [vmem:[%s6385_s13 + $0x310] ss:$56 sps:$4 sm:$0xff]  }
  0x2a   : > { %5278 = vmatprep.subr.bf16.mxu1 %v5886_v18  ;;  %5390 = vmatprep.subr.bf16.mxu0 %v5888_v20  ;;  %v5962_v18 = vld [vmem:[%s6385_s13 + $0xc] ss:$56 sps:$4 sm:$0xff]   ;;  %v5960_v20 = vld [vmem:[%s6385_s13 + $0x8] ss:$56 sps:$4 sm:$0xff]  }
  0x2c   : > { %2527 = vmatmul.mubr.bf16.vlgmr.msra.gmra.mxu1 %v5880_v19  ;;  %2463 = vmatmul.mubr.bf16.vlgmr.msra.gmra.mxu0 %v5883_v21  ;;  %v5965_v19 = vld [vmem:[%s6385_s13 + $0x14] ss:$56 sps:$4 sm:$0xff]   ;;  %v5963_v21 = vld [vmem:[%s6385_s13 + $0x10] ss:$56 sps:$4 sm:$0xff]  }
  0x2d   : > { %5279 = vmatpush3.bf16.msra.mxu1 %v5887_v22  ;;  %2534 = vmatprep.mubr.bf16.mxu1 %v5889_v23  ;;  %v5967_v22 = vld [vmem:[%s7885_s1 + $0x1b8] sm:$0xff]  }
  0x2e   : > { %5391 = vmatpush3.bf16.msra.mxu0 %v5891_v24  ;;  %2470 = vmatprep.mubr.bf16.mxu0 %v5892_v25  ;;  %v5969_v23 = vld [vmem:[%s6385_s13 + $0x7c] ss:$56 sps:$4 sm:$0xff]  }
  0x2f   : > { %5280 = vmatprep.subr.bf16.mxu1 %v5895_v26  ;;  %5392 = vmatprep.subr.bf16.mxu0 %v5898_v27  ;;  %v5971_v24 = vld [vmem:[%s7885_s1 + $0x238] sm:$0xff]   ;;  %v5981_v26 = vld [vmem:[%s7885_s1 + $0x1f0] sm:$0xff]  }
  0x30   : > { %v5973_v25 = vld [vmem:[%s6385_s13 + $0x84] ss:$56 sps:$4 sm:$0xff]   ;;  %v5984_v27 = vld [vmem:[%s7885_s1 + $0x270] sm:$0xff]  }
  0x31   : > { %5281 = vmatpush3.bf16.msra.mxu1 %v5897_v28  ;;  %v5983_v28 = vld [vmem:[%s7885_s1 + $0x1b0] sm:$0xff]  }
  0x32   : > { %5393 = vmatpush3.bf16.msra.mxu0 %v5901_v29  ;;  %5282 = vmatprep.subr.bf16.mxu1 %v5905_v32  ;;  %v5972_v29 = vld [vmem:[%s6385_s13 + $0x78] ss:$56 sps:$4 sm:$0xff]   ;;  %v5997_v32 = vld [vmem:[%s7885_s1 + $0x1e8] sm:$0xff]  }
  0x33   : > { %5394 = vmatprep.subr.bf16.mxu0 %v5908_v34  ;;  %v5979_v34 = vld [vmem:[%s6385_s13 + $0xf4] ss:$56 sps:$4 sm:$0xff]  }
  0x34   : > { %2535 = vmatmul.mubr.bf16.gmra.mxu1 %v5894_v30  ;;  %2471 = vmatmul.mubr.bf16.gmra.mxu0 %v5896_v31  ;;  %v5975_v30 = vld [vmem:[%s6385_s13 + $0x80] ss:$56 sps:$4 sm:$0xff]   ;;  %v5987_v31 = vld [vmem:[%s7885_s1 + $0x230] sm:$0xff]  }
  0x35   : > { %2542 = vmatprep.mubr.bf16.mxu1 %v5899_v33  ;;  %2478 = vmatprep.mubr.bf16.mxu0 %v5902_v35  ;;  %v5976_v33 = vld [vmem:[%s6385_s13 + $0xec] ss:$56 sps:$4 sm:$0xff]  }
  0x36   : > { %5283 = vmatpush3.bf16.msra.mxu1 %v5907_v36  ;;  %5395 = vmatpush3.bf16.msra.mxu0 %v5911_v37  ;;  %v6000_v35 = vld [vmem:[%s7885_s1 + $0x268] sm:$0xff]  }
  0x37   : > { %5284 = vmatprep.subr.bf16.mxu1 %v5915_v38  ;;  %5396 = vmatprep.subr.bf16.mxu0 %v5918_v39  ;;  %v5999_v36 = vld [vmem:[%s7885_s1 + $0x1a8] sm:$0xff]   ;;  %v6013_v38 = vld [vmem:[%s7885_s1 + $0x1e0] sm:$0xff]  }
  0x38   : > { %v6003_v37 = vld [vmem:[%s7885_s1 + $0x228] sm:$0xff]   ;;  %v6016_v39 = vld [vmem:[%s7885_s1 + $0x260] sm:$0xff]  }
  0x3a   : > { %5285 = vmatpush3.bf16.msra.mxu1 %v5917_v42  ;;  %5397 = vmatpush3.bf16.msra.mxu0 %v5921_v43  ;;  %v5982_v42 = vld [vmem:[%s6385_s13 + $0xf0] ss:$56 sps:$4 sm:$0xff]   ;;  %v6019_v43 = vld [vmem:[%s7885_s1 + $0x220] sm:$0xff]  }
  0x3b   : > { %5286 = vmatprep.subr.bf16.mxu1 %v5925_v45  ;;  %5398 = vmatprep.subr.bf16.mxu0 %v5928_v48  ;;  %v6029_v45 = vld [vmem:[%s7885_s1 + $0x1d8] sm:$0xff]  }
  0x3c   : > { %2543 = vmatmul.mubr.bf16.gmra.mxu1 %v5904_v40  ;;  %2479 = vmatmul.mubr.bf16.gmra.mxu0 %v5906_v41  ;;  %v6015_v40 = vld [vmem:[%s7885_s1 + $0x1a0] sm:$0xff]   ;;  %v6032_v48 = vld [vmem:[%s7885_s1 + $0x258] sm:$0xff]  }
  0x3d   : > { %2550 = vmatprep.mubr.bf16.mxu1 %v5909_v44  ;;  %2486 = vmatprep.mubr.bf16.mxu0 %v5912_v46  ;;  %v5978_v41 = vld [vmem:[%s6385_s13 + $0xe8] ss:$56 sps:$4 sm:$0xff]   ;;  %v5985_v44 = vld [vmem:[%s6385_s13 + $0x15c] ss:$56 sps:$4 sm:$0xff]  }
  0x3e   : > { %5287 = vmatpush3.bf16.msra.mxu1 %v5927_v47  ;;  %5399 = vmatpush3.bf16.msra.mxu0 %v5931_v49  ;;  %v5989_v46 = vld [vmem:[%s6385_s13 + $0x164] ss:$56 sps:$4 sm:$0xff]  }
  0x3f   : > { %5288 = vmatprep.subr.bf16.mxu1 %v5935_v52  ;;  %5400 = vmatprep.subr.bf16.mxu0 %v5938_v55  ;;  %v6031_v47 = vld [vmem:[%s7885_s1 + $0x198] sm:$0xff]   ;;  %v5992_v52 = vld [vmem:[%s6385_s13 + $0x1cc] ss:$56 sps:$4 sm:$0xff]   ;;  %v6047_v55 = vld [vmem:[%s7885_s1 + $0x190] sm:$0xff]  }
  0x40   : > { %v6035_v49 = vld [vmem:[%s7885_s1 + $0x218] sm:$0xff]  }
  0x42   : > { %5289 = vmatpush3.bf16.msra.mxu1 %v5937_v54  ;;  %5401 = vmatpush3.bf16.msra.mxu0 %v5941_v57  ;;  %v6045_v54 = vld [vmem:[%s7885_s1 + $0x1d0] sm:$0xff]  }
  0x43   : > { %5290 = vmatprep.subr.bf16.mxu1 %v5945_v58  ;;  %5402 = vmatprep.subr.bf16.mxu0 %v5948_v63  ;;  %v6051_v57 = vld [vmem:[%s7885_s1 + $0x210] sm:$0xff]   ;;  %v5994_v58 = vld [vmem:[%s6385_s13 + $0x1c8] ss:$56 sps:$4 sm:$0xff]  }
  0x44   : > { %2551 = vmatmul.mubr.bf16.gmra.mxu1 %v5914_v50  ;;  %2487 = vmatmul.mubr.bf16.gmra.mxu0 %v5916_v51  ;;  %v5988_v50 = vld [vmem:[%s6385_s13 + $0x158] ss:$56 sps:$4 sm:$0xff]   ;;  %v6063_v63 = vld [vmem:[%s7885_s1 + $0x188] sm:$0xff]  }
  0x45   : > { %2558 = vmatprep.mubr.bf16.mxu1 %v5919_v53  ;;  %2494 = vmatprep.mubr.bf16.mxu0 %v5922_v56  ;;  %v5991_v51 = vld [vmem:[%s6385_s13 + $0x160] ss:$56 sps:$4 sm:$0xff]   ;;  %v5995_v53 = vld [vmem:[%s6385_s13 + $0x1d4] ss:$56 sps:$4 sm:$0xff]  }
  0x46   : > { %5291 = vmatpush3.bf16.msra.mxu1 %v5947_v61  ;;  %5403 = vmatpush3.bf16.msra.mxu0 %v5951_v1  ;;  %v6048_v56 = vld [vmem:[%s7885_s1 + $0x250] sm:$0xff]   ;;  %v6005_v61 = vld [vmem:[%s6385_s13 + $0x244] ss:$56 sps:$4 sm:$0xff]   ;;  %v6067_v1 = vld [vmem:[%s7885_s1 + $0x208] sm:$0xff]  }
  0x47   : > { %5292 = vmatprep.subr.bf16.mxu1 %v5955_v2  ;;  %5404 = vmatprep.subr.bf16.mxu0 %v5958_v4  ;;  %v6004_v2 = vld [vmem:[%s6385_s13 + $0x238] ss:$56 sps:$4 sm:$0xff]   ;;  %v6008_v4 = vld [vmem:[%s6385_s13 + $0x2ac] ss:$56 sps:$4 sm:$0xff]  }
  0x4a   : > { %5293 = vmatpush3.bf16.msra.mxu1 %v5957_v3  ;;  %5405 = vmatpush3.bf16.msra.mxu0 %v5959_v5  ;;  %v6007_v3 = vld [vmem:[%s6385_s13 + $0x240] ss:$56 sps:$4 sm:$0xff]   ;;  %v6011_v5 = vld [vmem:[%s6385_s13 + $0x2b4] ss:$56 sps:$4 sm:$0xff]  }
  0x4b   : > { %5502 = vmatprep.subr.bf16.mxu1 %v5966_v10  ;;  %5614 = vmatprep.subr.bf16.mxu0 %v5968_v11  ;;  %v6014_v10 = vld [vmem:[%s6385_s13 + $0x2b0] ss:$56 sps:$4 sm:$0xff]   ;;  %v6083_v11 = vld [vmem:[%s7885_s1 + $0x200] sm:$0xff]  }
  0x4c   : > { %2559 = vmatmul.mubr.bf16.gmra.mxu1 %v5924_v59  ;;  %2495 = vmatmul.mubr.bf16.gmra.mxu0 %v5926_v60  ;;  %v5998_v59 = vld [vmem:[%s6385_s13 + $0x1d0] ss:$56 sps:$4 sm:$0xff]   ;;  %v6001_v60 = vld [vmem:[%s6385_s13 + $0x23c] ss:$56 sps:$4 sm:$0xff]  }
  0x4d   : > { %2566 = vmatprep.mubr.bf16.mxu1 %v5929_v62  ;;  %2502 = vmatprep.mubr.bf16.mxu0 %v5932_v0  ;;  %v6061_v62 = vld [vmem:[%s7885_s1 + $0x1c8] sm:$0xff]  }
  0x4e   : > { %v6064_v0 = vld [vmem:[%s7885_s1 + $0x248] sm:$0xff]  }
  0x54   : > { %2567 = vmatmul.mubr.bf16.gmra.mxu1 %v5934_v6  ;;  %2503 = vmatmul.mubr.bf16.gmra.mxu0 %v5936_v7  ;;  %v6077_v6 = vld [vmem:[%s7885_s1 + $0x1c0] sm:$0xff]  }
  0x55   : > { %2574 = vmatprep.mubr.bf16.mxu1 %v5939_v8  ;;  %2510 = vmatprep.mubr.bf16.mxu0 %v5942_v9  ;;  %v6079_v7 = vld [vmem:[%s7885_s1 + $0x180] sm:$0xff]  }
  0x56   : > { %v6080_v8 = vld [vmem:[%s7885_s1 + $0x240] sm:$0xff]  }
  0x57   : > { %v6010_v9 = vld [vmem:[%s6385_s13 + $0x2a8] ss:$56 sps:$4 sm:$0xff]  }
  0x5c   : > { %2575 = vmatmul.mubr.bf16.gmra.mxu1 %v5944_v12  ;;  %2511 = vmatmul.mubr.bf16.gmra.mxu0 %v5946_v13  ;;  %v6017_v12 = vld [vmem:[%s6385_s13 + $0x31c] ss:$56 sps:$4 sm:$0xff]  }
  0x5d   : > { %2582 = vmatprep.mubr.bf16.mxu1 %v5949_v14  ;;  %2518 = vmatprep.mubr.bf16.mxu0 %v5952_v15  ;;  %v6021_v13 = vld [vmem:[%s6385_s13 + $0x324] ss:$56 sps:$4 sm:$0xff]   ;;  %v6318_v14 = vmov 0  }
  0x5e   : > { %v6094_v15 = vld [vmem:[%s7885_s1 + $0x2f8] sm:$0xff]  }
  0x64   : > { %2583 = vmatmul.mubr.bf16.gmra.mxu1 %v5954_v16  ;;  %2519 = vmatmul.mubr.bf16.gmra.mxu0 %v5956_v17  ;;  %v6020_v16 = vld [vmem:[%s6385_s13 + $0x318] ss:$56 sps:$4 sm:$0xff]  }
  0x65   : > { %2623 = vmatprep.mubr.bf16.mxu1 %v5962_v18  ;;  %2784 = vmatprep.mubr.bf16.mxu0 %v5965_v19  ;;  %v6023_v17 = vld [vmem:[%s6385_s13 + $0x320] ss:$56 sps:$4 sm:$0xff]   ;;  %v6024_v18 = vld [vmem:[%s6385_s13 + $0x38c] ss:$56 sps:$4 sm:$0xff]  }
  0x66   : > { %v6027_v19 = vld [vmem:[%s6385_s13 + $0x394] ss:$56 sps:$4 sm:$0xff]  }
  0x6c   : > { %2624 = vmatmul.mubr.bf16.vlgmr.msra.gmra.mxu1 %v5960_v20  ;;  %2785 = vmatmul.mubr.bf16.vlgmr.msra.gmra.mxu0 %v5963_v21  ;;  %v6026_v20 = vld [vmem:[%s6385_s13 + $0x388] ss:$56 sps:$4 sm:$0xff]  }
  0x6d   : > { %5503 = vmatpush3.bf16.msra.mxu1 %v5967_v22  ;;  %2631 = vmatprep.mubr.bf16.mxu1 %v5969_v23  ;;  %v6030_v21 = vld [vmem:[%s6385_s13 + $0x390] ss:$56 sps:$4 sm:$0xff]   ;;  %v6033_v22 = vld [vmem:[%s6385_s13 + $0x3fc] ss:$56 sps:$4 sm:$0xff]  }
  0x6e   : > { %5615 = vmatpush3.bf16.msra.mxu0 %v5971_v24  ;;  %2792 = vmatprep.mubr.bf16.mxu0 %v5973_v25  ;;  %v6037_v23 = vld [vmem:[%s6385_s13 + $0x404] ss:$56 sps:$4 sm:$0xff]   ;;  %v6036_v24 = vld [vmem:[%s6385_s13 + $0x3f8] ss:$56 sps:$4 sm:$0xff]  }
  0x6f   : > { %5504 = vmatprep.subr.bf16.mxu1 %v5981_v26  ;;  %5616 = vmatprep.subr.bf16.mxu0 %v5984_v27  ;;  %v6039_v25 = vld [vmem:[%s6385_s13 + $0x400] ss:$56 sps:$4 sm:$0xff]   ;;  %v6040_v26 = vld [vmem:[%s6385_s13 + $0x46c] ss:$56 sps:$4 sm:$0xff]  }
  0x70   : > { %v6043_v27 = vld [vmem:[%s6385_s13 + $0x474] ss:$56 sps:$4 sm:$0xff]  }
  0x71   : > { %5505 = vmatpush3.bf16.msra.mxu1 %v5983_v28  ;;  %v6042_v28 = vld [vmem:[%s6385_s13 + $0x468] ss:$56 sps:$4 sm:$0xff]  }
  0x72   : > { %5617 = vmatpush3.bf16.msra.mxu0 %v5987_v31  ;;  %5506 = vmatprep.subr.bf16.mxu1 %v5997_v32  ;;  %v6053_v31 = vld [vmem:[%s6385_s13 + $0x4e4] ss:$56 sps:$4 sm:$0xff]   ;;  %v6052_v32 = vld [vmem:[%s6385_s13 + $0x4d8] ss:$56 sps:$4 sm:$0xff]  }
  0x73   : > { %5618 = vmatprep.subr.bf16.mxu0 %v6000_v35  ;;  %v6059_v35 = vld [vmem:[%s6385_s13 + $0x554] ss:$56 sps:$4 sm:$0xff]  }
  0x74   : > { %2632 = vmatmul.mubr.bf16.gmra.mxu1 %v5972_v29  ;;  %2793 = vmatmul.mubr.bf16.gmra.mxu0 %v5975_v30  ;;  %v6046_v29 = vld [vmem:[%s6385_s13 + $0x470] ss:$56 sps:$4 sm:$0xff]   ;;  %v6049_v30 = vld [vmem:[%s6385_s13 + $0x4dc] ss:$56 sps:$4 sm:$0xff]  }
  0x75   : > { %2639 = vmatprep.mubr.bf16.mxu1 %v5976_v33  ;;  %2800 = vmatprep.mubr.bf16.mxu0 %v5979_v34  ;;  %v6055_v33 = vld [vmem:[%s6385_s13 + $0x4e0] ss:$56 sps:$4 sm:$0xff]   ;;  %v6056_v34 = vld [vmem:[%s6385_s13 + $0x54c] ss:$56 sps:$4 sm:$0xff]  }
  0x76   : > { %5507 = vmatpush3.bf16.msra.mxu1 %v5999_v36  ;;  %5619 = vmatpush3.bf16.msra.mxu0 %v6003_v37  ;;  %v6058_v36 = vld [vmem:[%s6385_s13 + $0x548] ss:$56 sps:$4 sm:$0xff]  }
  0x77   : > { %5508 = vmatprep.subr.bf16.mxu1 %v6013_v38  ;;  %5620 = vmatprep.subr.bf16.mxu0 %v6016_v39  ;;  %v6062_v37 = vld [vmem:[%s6385_s13 + $0x550] ss:$56 sps:$4 sm:$0xff]   ;;  %v6065_v38 = vld [vmem:[%s6385_s13 + $0x5bc] ss:$56 sps:$4 sm:$0xff]  }
  0x78   : > { %v6069_v39 = vld [vmem:[%s6385_s13 + $0x5c4] ss:$56 sps:$4 sm:$0xff]  }
  0x7a   : > { %5509 = vmatpush3.bf16.msra.mxu1 %v6015_v40  ;;  %5621 = vmatpush3.bf16.msra.mxu0 %v6019_v43  ;;  %v6068_v40 = vld [vmem:[%s6385_s13 + $0x5b8] ss:$56 sps:$4 sm:$0xff]   ;;  %v6075_v43 = vld [vmem:[%s6385_s13 + $0x634] ss:$56 sps:$4 sm:$0xff]  }
  0x7b   : > { %5510 = vmatprep.subr.bf16.mxu1 %v6029_v45  ;;  %5622 = vmatprep.subr.bf16.mxu0 %v6032_v48  ;;  %v6078_v45 = vld [vmem:[%s6385_s13 + $0x630] ss:$56 sps:$4 sm:$0xff]  }
  0x7c   : > { %2640 = vmatmul.mubr.bf16.gmra.mxu1 %v5978_v41  ;;  %2801 = vmatmul.mubr.bf16.gmra.mxu0 %v5982_v42  ;;  %v6071_v41 = vld [vmem:[%s6385_s13 + $0x5c0] ss:$56 sps:$4 sm:$0xff]   ;;  %v6072_v42 = vld [vmem:[%s6385_s13 + $0x62c] ss:$56 sps:$4 sm:$0xff]  }
  0x7d   : > { %2647 = vmatprep.mubr.bf16.mxu1 %v5985_v44  ;;  %2808 = vmatprep.mubr.bf16.mxu0 %v5989_v46  ;;  %v6074_v44 = vld [vmem:[%s6385_s13 + $0x628] ss:$56 sps:$4 sm:$0xff]   ;;  %v6081_v46 = vld [vmem:[%s6385_s13 + $0x69c] ss:$56 sps:$4 sm:$0xff]   ;;  %v6084_v48 = vld [vmem:[%s6385_s13 + $0x698] ss:$56 sps:$4 sm:$0xff]  }
  0x7e   : > { %5511 = vmatpush3.bf16.msra.mxu1 %v6031_v47  ;;  %5623 = vmatpush3.bf16.msra.mxu0 %v6035_v49  ;;  %v6085_v47 = vld [vmem:[%s6385_s13 + $0x6a4] ss:$56 sps:$4 sm:$0xff]   ;;  %v6087_v49 = vld [vmem:[%s6385_s13 + $0x6a0] ss:$56 sps:$4 sm:$0xff]  }
  0x7f   : > { %5512 = vmatprep.subr.bf16.mxu1 %v6045_v54  ;;  %5624 = vmatprep.subr.bf16.mxu0 %v6048_v56  ;;  %v6095_v54 = vld [vmem:[%s7885_s1 + $0x2b8] sm:$0xff]  }
  0x80   : > { %v6098_v56 = vld [vmem:[%s7885_s1 + $0x338] sm:$0xff]  }
  0x82   : > { %5513 = vmatpush3.bf16.msra.mxu1 %v6047_v55  ;;  %5625 = vmatpush3.bf16.msra.mxu0 %v6051_v57  ;;  %v6096_v55 = vld [vmem:[%s6385_s13 + $0x8c] ss:$56 sps:$4 sm:$0xff]  }
  0x83   : > { %5514 = vmatprep.subr.bf16.mxu1 %v6061_v62  ;;  %5626 = vmatprep.subr.bf16.mxu0 %v6064_v0  ;;  %v6100_v57 = vld [vmem:[%s6385_s13 + $0x94] ss:$56 sps:$4 sm:$0xff]  }
  0x84   : > { %2648 = vmatmul.mubr.bf16.gmra.mxu1 %v5988_v50  ;;  %2809 = vmatmul.mubr.bf16.gmra.mxu0 %v5991_v51  ;;  %v6090_v50 = vld [vmem:[%s6385_s13 + $0x1c] ss:$56 sps:$4 sm:$0xff]  }
  0x85   : > { %2655 = vmatprep.mubr.bf16.mxu1 %v5992_v52  ;;  %2816 = vmatprep.mubr.bf16.mxu0 %v5995_v53  ;;  %v6093_v51 = vld [vmem:[%s6385_s13 + $0x24] ss:$56 sps:$4 sm:$0xff]   ;;  %v6088_v52 = vld [vmem:[%s6385_s13 + $0x18] ss:$56 sps:$4 sm:$0xff]  }
  0x86   : > { %5515 = vmatpush3.bf16.msra.mxu1 %v6063_v63  ;;  %5627 = vmatpush3.bf16.msra.mxu0 %v6067_v1  ;;  %v6091_v53 = vld [vmem:[%s6385_s13 + $0x20] ss:$56 sps:$4 sm:$0xff]   ;;  %v6111_v62 = vld [vmem:[%s7885_s1 + $0x330] sm:$0xff]   ;;  %v6125_v63 = vld [vmem:[%s7885_s1 + $0x2e8] sm:$0xff]  }
  0x87   : > { %5516 = vmatprep.subr.bf16.mxu1 %v6077_v6  ;;  %5628 = vmatprep.subr.bf16.mxu0 %v6080_v8  ;;  %v6103_v6 = vld [vmem:[%s6385_s13 + $0xfc] ss:$56 sps:$4 sm:$0xff]  }
  0x8a   : > { %5517 = vmatpush3.bf16.msra.mxu1 %v6079_v7  ;;  %5629 = vmatpush3.bf16.msra.mxu0 %v6083_v11 }
  0x8b   : > { %3396 = vmatprep.subr.bf16.mxu0 %v6318_v14  ;;  %5726 = vmatprep.subr.bf16.mxu1 %v6094_v15  ;;  %v6140_v15 = vld [vmem:[%s7885_s1 + $0x2e0] sm:$0xff]  }
  0x8c   : > { %2656 = vmatmul.mubr.bf16.gmra.mxu1 %v5994_v58  ;;  %2817 = vmatmul.mubr.bf16.gmra.mxu0 %v5998_v59  ;;  %v6108_v58 = vld [vmem:[%s7885_s1 + $0x2f0] sm:$0xff]  }
  0x8d   : > { %2663 = vmatprep.mubr.bf16.mxu1 %v6001_v60  ;;  %2824 = vmatprep.mubr.bf16.mxu0 %v6005_v61  ;;  %v6110_v59 = vld [vmem:[%s7885_s1 + $0x2b0] sm:$0xff]  }
  0x94   : > { %2664 = vmatmul.mubr.bf16.gmra.mxu1 %v6004_v2  ;;  %2825 = vmatmul.mubr.bf16.gmra.mxu0 %v6007_v3  ;;  %v6099_v2 = vld [vmem:[%s6385_s13 + $0x88] ss:$56 sps:$4 sm:$0xff]  }
  0x95   : > { %2671 = vmatprep.mubr.bf16.mxu1 %v6008_v4  ;;  %2832 = vmatprep.mubr.bf16.mxu0 %v6011_v5  ;;  %v6102_v3 = vld [vmem:[%s6385_s13 + $0x90] ss:$56 sps:$4 sm:$0xff]  }
  0x9c   : > { %2672 = vmatmul.mubr.bf16.gmra.mxu1 %v6010_v9  ;;  %2833 = vmatmul.mubr.bf16.gmra.mxu0 %v6014_v10  ;;  %v6106_v9 = vld [vmem:[%s6385_s13 + $0x104] ss:$56 sps:$4 sm:$0xff]   ;;  %v6118_v10 = vld [vmem:[%s7885_s1 + $0x328] sm:$0xff]  }
  0x9d   : > { %2679 = vmatprep.mubr.bf16.mxu1 %v6017_v12  ;;  %2840 = vmatprep.mubr.bf16.mxu0 %v6021_v13  ;;  %v6126_v13 = vld [vmem:[%s7885_s1 + $0x2a8] sm:$0xff]  }
  0xa4   : > { %2680 = vmatmul.mubr.bf16.gmra.mxu1 %v6020_v16  ;;  %2841 = vmatmul.mubr.bf16.gmra.mxu0 %v6023_v17 }
  0xa5   : > { %2687 = vmatprep.mubr.bf16.mxu1 %v6024_v18  ;;  %2848 = vmatprep.mubr.bf16.mxu0 %v6027_v19 }
  0xac   : > { %2688 = vmatmul.mubr.bf16.gmra.mxu1 %v6026_v20  ;;  %2849 = vmatmul.mubr.bf16.gmra.mxu0 %v6030_v21  ;;  %v6130_v20 = vld [vmem:[%s7885_s1 + $0x320] sm:$0xff]  }
  0xad   : > { %2695 = vmatprep.mubr.bf16.mxu1 %v6033_v22  ;;  %2856 = vmatprep.mubr.bf16.mxu0 %v6037_v23  ;;  %v6141_v21 = vld [vmem:[%s7885_s1 + $0x2a0] sm:$0xff]   ;;  %v6156_v22 = vld [vmem:[%s7885_s1 + $0x2d8] sm:$0xff]  }
  0xb4   : > { %2696 = vmatmul.mubr.bf16.gmra.mxu1 %v6036_v24  ;;  %2857 = vmatmul.mubr.bf16.gmra.mxu0 %v6039_v25  ;;  %v6105_v25 = vld [vmem:[%s6385_s13 + $0xf8] ss:$56 sps:$4 sm:$0xff]  }
  0xb5   : > { %2703 = vmatprep.mubr.bf16.mxu1 %v6040_v26  ;;  %2864 = vmatprep.mubr.bf16.mxu0 %v6043_v27 }
  0xbc   : > { %2704 = vmatmul.mubr.bf16.gmra.mxu1 %v6042_v28  ;;  %2865 = vmatmul.mubr.bf16.gmra.mxu0 %v6046_v29 }
  0xbd   : > { %2711 = vmatprep.mubr.bf16.mxu1 %v6049_v30  ;;  %2872 = vmatprep.mubr.bf16.mxu0 %v6053_v31  ;;  %v6109_v30 = vld [vmem:[%s6385_s13 + $0x100] ss:$56 sps:$4 sm:$0xff]   ;;  %v6112_v31 = vld [vmem:[%s6385_s13 + $0x16c] ss:$56 sps:$4 sm:$0xff]  }
  0xc4   : > { %2712 = vmatmul.mubr.bf16.gmra.mxu1 %v6052_v32  ;;  %2873 = vmatmul.mubr.bf16.gmra.mxu0 %v6055_v33  ;;  %v6115_v32 = vld [vmem:[%s6385_s13 + $0x174] ss:$56 sps:$4 sm:$0xff]  }
  0xc5   : > { %2719 = vmatprep.mubr.bf16.mxu1 %v6056_v34  ;;  %2880 = vmatprep.mubr.bf16.mxu0 %v6059_v35  ;;  %v6142_v35 = vld [vmem:[%s7885_s1 + $0x318] sm:$0xff]  }
  0xcc   : > { %2720 = vmatmul.mubr.bf16.gmra.mxu1 %v6058_v36  ;;  %2881 = vmatmul.mubr.bf16.gmra.mxu0 %v6062_v37  ;;  %v6157_v36 = vld [vmem:[%s7885_s1 + $0x298] sm:$0xff]  }
  0xcd   : > { %2727 = vmatprep.mubr.bf16.mxu1 %v6065_v38  ;;  %2888 = vmatprep.mubr.bf16.mxu0 %v6069_v39  ;;  %v6171_v39 = vld [vmem:[%s7885_s1 + $0x2d0] sm:$0xff]  }
  0xd4   : > { %2728 = vmatmul.mubr.bf16.gmra.mxu1 %v6068_v40  ;;  %2889 = vmatmul.mubr.bf16.gmra.mxu0 %v6071_v41 }
  0xd5   : > { %2735 = vmatprep.mubr.bf16.mxu1 %v6072_v42  ;;  %2896 = vmatprep.mubr.bf16.mxu0 %v6075_v43 }
  0xdc   : > { %2736 = vmatmul.mubr.bf16.gmra.mxu1 %v6074_v44  ;;  %2897 = vmatmul.mubr.bf16.gmra.mxu0 %v6078_v45  ;;  %v6149_v44 = vld [vmem:[%s7885_s1 + $0x310] sm:$0xff]  }
  0xdd   : > { %2743 = vmatprep.mubr.bf16.mxu1 %v6081_v46  ;;  %2904 = vmatprep.mubr.bf16.mxu0 %v6085_v47  ;;  %v6172_v45 = vld [vmem:[%s7885_s1 + $0x290] sm:$0xff]  }
  0xe4   : > { %2744 = vmatmul.mubr.bf16.gmra.mxu1 %v6084_v48  ;;  %2905 = vmatmul.mubr.bf16.gmra.mxu0 %v6087_v49  ;;  %v6187_v48 = vld [vmem:[%s7885_s1 + $0x2c8] sm:$0xff]  }
  0xe5   : > { %2945 = vmatprep.mubr.bf16.mxu1 %v6090_v50  ;;  %3106 = vmatprep.mubr.bf16.mxu0 %v6093_v51  ;;  %v6114_v51 = vld [vmem:[%s6385_s13 + $0x168] ss:$56 sps:$4 sm:$0xff]  }
  0xec   : > { %v5230_v60 = vpop.f32.mrf.mxu1  ;;  %2946 = vmatmul.mubr.bf16.vlgmr.msra.gmra.mxu1 %v6088_v52  ;;  %v5182_v61 = vpop.f32.mrf.mxu0  ;;  %3107 = vmatmul.mubr.bf16.vlgmr.msra.gmra.mxu0 %v6091_v53  ;;  %v6117_v52 = vld [vmem:[%s6385_s13 + $0x170] ss:$56 sps:$4 sm:$0xff]   ;;  %v6121_v53 = vld [vmem:[%s6385_s13 + $0x1dc] ss:$56 sps:$4 sm:$0xff]  }
  0xed   : > { %5727 = vmatpush3.bf16.msra.mxu1 %v6095_v54  ;;  %2953 = vmatprep.mubr.bf16.mxu1 %v6096_v55  ;;  %v6124_v54 = vld [vmem:[%s6385_s13 + $0x1e4] ss:$56 sps:$4 sm:$0xff]  }
  0xee   : > { %v5231_v0 = vpop.f32.mrf.mxu1  ;;  %v5183_v1 = vpop.f32.mrf.mxu0  ;;  %3397 = vmatpush1.bf16.msra.mxu0 %v6098_v56  ;;  %3114 = vmatprep.mubr.bf16.mxu0 %v6100_v57  ;;  %v6161_v57 = vld [vmem:[%s7885_s1 + $0x308] sm:$0xff]  }
  0xef   : > { %v6726_v4 = vadd.f32 %v5231_v0, %v5230_v60  ;;  %v6728_v5 = vadd.f32 %v5183_v1, %v5182_v61  ;;  %5728 = vmatprep.subr.bf16.mxu1 %v6108_v58  ;;  %3398 = vmatprep.subr.bf16.mxu0 %v6318_v14  ;;  %v6188_v58 = vld [vmem:[%s7885_s1 + $0x288] sm:$0xff]   ;;  %v6202_v61 = vld [vmem:[%s7885_s1 + $0x2c0] sm:$0xff]  }
  0xf0   : > { %v5233_v7 = vpop.f32.mrf.mxu1  ;;  %v5185_v8 = vpop.f32.mrf.mxu0 }
  0xf1   : > { %5729 = vmatpush3.bf16.msra.mxu1 %v6110_v59 }
  0xf2   : > { %v5234_v11 = vpop.f32.mrf.mxu1  ;;  %v5186_v12 = vpop.f32.mrf.mxu0  ;;  %3399 = vmatpush1.bf16.msra.mxu0 %v6111_v62  ;;  %5730 = vmatprep.subr.bf16.mxu1 %v6125_v63 }
  0xf3   : > { %v6742_v16 = vadd.f32 %v5234_v11, %v5233_v7  ;;  %v6744_v17 = vadd.f32 %v5186_v12, %v5185_v8  ;;  %3400 = vmatprep.subr.bf16.mxu0 %v6318_v14  ;;  %v6122_v11 = vld [vmem:[%s6385_s13 + $0x1e0] ss:$56 sps:$4 sm:$0xff]   ;;  %v6129_v12 = vld [vmem:[%s6385_s13 + $0x24c] ss:$56 sps:$4 sm:$0xff]  }
  0xf4   : > { %v5236_v18 = vpop.f32.mrf.mxu1  ;;  %2954 = vmatmul.mubr.bf16.gmra.mxu1 %v6099_v2  ;;  %v5188_v19 = vpop.f32.mrf.mxu0  ;;  %3115 = vmatmul.mubr.bf16.gmra.mxu0 %v6102_v3  ;;  %v6173_v2 = vld [vmem:[%s7885_s1 + $0x300] sm:$0xff]  }
  0xf5   : > { %2961 = vmatprep.mubr.bf16.mxu1 %v6103_v6  ;;  %3122 = vmatprep.mubr.bf16.mxu0 %v6106_v9  ;;  %v6203_v3 = vld [vmem:[%s7885_s1 + $0x280] sm:$0xff]  }
  0xf6   : > { %v5237_v23 = vpop.f32.mrf.mxu1  ;;  %v5189_v24 = vpop.f32.mrf.mxu0  ;;  %3401 = vmatpush1.bf16.msra.mxu0 %v6118_v10  ;;  %5731 = vmatpush3.bf16.msra.mxu1 %v6126_v13  ;;  %v6119_v10 = vld [vmem:[%s6385_s13 + $0x1d8] ss:$56 sps:$4 sm:$0xff]   ;;  %v6133_v13 = vld [vmem:[%s6385_s13 + $0x254] ss:$56 sps:$4 sm:$0xff]  }
  0xf7   : > { %v6757_v26 = vadd.f32 %v5237_v23, %v5236_v18  ;;  %v6759_v27 = vadd.f32 %v5189_v24, %v5188_v19  ;;  %3402 = vmatprep.subr.bf16.mxu0 %v6318_v14  ;;  %5732 = vmatprep.subr.bf16.mxu1 %v6140_v15  ;;  %v6180_v19 = vld [vmem:[%s7885_s1 + $0x358] sm:$0xff]  }
  0xf8   : > { %v5239_v28 = vpop.f32.mrf.mxu1  ;;  %v5191_v29 = vpop.f32.mrf.mxu0 }
  0xfa   : > { %v5240_v33 = vpop.f32.mrf.mxu1  ;;  %v5192_v34 = vpop.f32.mrf.mxu0  ;;  %3403 = vmatpush1.bf16.msra.mxu0 %v6130_v20  ;;  %5733 = vmatpush3.bf16.msra.mxu1 %v6141_v21 }
  0xfb   : > { %v6771_v37 = vadd.f32 %v5240_v33, %v5239_v28  ;;  %v6773_v38 = vadd.f32 %v5192_v34, %v5191_v29  ;;  %3404 = vmatprep.subr.bf16.mxu0 %v6318_v14  ;;  %5734 = vmatprep.subr.bf16.mxu1 %v6156_v22  ;;  %v6192_v28 = vld [vmem:[%s7885_s1 + $0x350] sm:$0xff]   ;;  %v6127_v33 = vld [vmem:[%s6385_s13 + $0x248] ss:$56 sps:$4 sm:$0xff]  }
  0xfc   : > { %v5242_v40 = vpop.f32.mrf.mxu1  ;;  %2962 = vmatmul.mubr.bf16.gmra.mxu1 %v6105_v25  ;;  %v5194_v41 = vpop.f32.mrf.mxu0  ;;  %3123 = vmatmul.mubr.bf16.gmra.mxu0 %v6109_v30  ;;  %v6131_v34 = vld [vmem:[%s6385_s13 + $0x250] ss:$56 sps:$4 sm:$0xff]  }
  0xfd   : > { %2969 = vmatprep.mubr.bf16.mxu1 %v6112_v31  ;;  %3130 = vmatprep.mubr.bf16.mxu0 %v6115_v32 }
  0xfe   : > { %v5243_v42 = vpop.f32.mrf.mxu1  ;;  %v5195_v43 = vpop.f32.mrf.mxu0  ;;  %3405 = vmatpush1.bf16.msra.mxu0 %v6142_v35  ;;  %5735 = vmatpush3.bf16.msra.mxu1 %v6157_v36  ;;  %v6136_v35 = vld [vmem:[%s6385_s13 + $0x2bc] ss:$56 sps:$4 sm:$0xff]  }
  0xff   : > { %v6785_v46 = vadd.f32 %v5243_v42, %v5242_v40  ;;  %v6787_v47 = vadd.f32 %v5195_v43, %v5194_v41  ;;  %3406 = vmatprep.subr.bf16.mxu0 %v6318_v14  ;;  %5736 = vmatprep.subr.bf16.mxu1 %v6171_v39  ;;  %v6139_v36 = vld [vmem:[%s6385_s13 + $0x2c4] ss:$56 sps:$4 sm:$0xff]   ;;  %v6204_v41 = vld [vmem:[%s7885_s1 + $0x348] sm:$0xff]  }
 0x100   : > { %v5245_v49 = vpop.f32.mrf.mxu1  ;;  %v5197_v50 = vpop.f32.mrf.mxu0 }
 0x102   : > { %v5246_v55 = vpop.f32.mrf.mxu1  ;;  %v5198_v56 = vpop.f32.mrf.mxu0  ;;  %3407 = vmatpush1.bf16.msra.mxu0 %v6149_v44  ;;  %5737 = vmatpush3.bf16.msra.mxu1 %v6172_v45 }
 0x103   : > { %v6803_v59 = vadd.f32 %v5246_v55, %v5245_v49  ;;  %v6805_v60 = vadd.f32 %v5198_v56, %v5197_v50  ;;  %3408 = vmatprep.subr.bf16.mxu0 %v6318_v14  ;;  %5738 = vmatprep.subr.bf16.mxu1 %v6187_v48  ;;  %v6211_v50 = vld [vmem:[%s7885_s1 + $0x340] sm:$0xff]   ;;  %v6134_v55 = vld [vmem:[%s6385_s13 + $0x2b8] ss:$56 sps:$4 sm:$0xff]  }
 0x104   : > { %v5248_v62 = vpop.f32.mrf.mxu1  ;;  %2970 = vmatmul.mubr.bf16.gmra.mxu1 %v6114_v51  ;;  %v5200_v63 = vpop.f32.mrf.mxu0  ;;  %3131 = vmatmul.mubr.bf16.gmra.mxu0 %v6117_v52  ;;  %v6137_v56 = vld [vmem:[%s6385_s13 + $0x2c0] ss:$56 sps:$4 sm:$0xff]  }
 0x105   : > { %2977 = vmatprep.mubr.bf16.mxu1 %v6121_v53  ;;  %3138 = vmatprep.mubr.bf16.mxu0 %v6124_v54 }
 0x106   : > { %v5249_v0 = vpop.f32.mrf.mxu1  ;;  %v5201_v1 = vpop.f32.mrf.mxu0  ;;  %3409 = vmatpush1.bf16.msra.mxu0 %v6161_v57  ;;  %5739 = vmatpush3.bf16.msra.mxu1 %v6188_v58  ;;  %v6145_v57 = vld [vmem:[%s6385_s13 + $0x32c] ss:$56 sps:$4 sm:$0xff]  }
 0x107   : > { %v6817_v6 = vadd.f32 %v5249_v0, %v5248_v62  ;;  %v6819_v7 = vadd.f32 %v5201_v1, %v5200_v63  ;;  %3410 = vmatprep.subr.bf16.mxu0 %v6318_v14  ;;  %5740 = vmatprep.subr.bf16.mxu1 %v6202_v61  ;;  %v6148_v58 = vld [vmem:[%s6385_s13 + $0x334] ss:$56 sps:$4 sm:$0xff]  }
 0x108   : > { %v5251_v8 = vpop.f32.mrf.mxu1  ;;  %v5203_v9 = vpop.f32.mrf.mxu0 }
 0x10a   : > { %v5252_v15 = vpop.f32.mrf.mxu1  ;;  %v5204_v18 = vpop.f32.mrf.mxu0  ;;  %3411 = vmatpush1.bf16.msra.mxu0 %v6173_v2  ;;  %5741 = vmatpush3.bf16.msra.mxu1 %v6203_v3 }
 0x10b   : > { %v6829_v20 = vadd.f32 %v5252_v15, %v5251_v8  ;;  %v6831_v21 = vadd.f32 %v5204_v18, %v5203_v9  ;;  %3420 = vmatprep.subr.bf16.mxu0 %v6318_v14  ;;  %v6152_v15 = vld [vmem:[%s6385_s13 + $0x39c] ss:$56 sps:$4 sm:$0xff]  }
 0x10c   : > { %v5254_v22 = vpop.f32.mrf.mxu1  ;;  %2978 = vmatmul.mubr.bf16.gmra.mxu1 %v6119_v10  ;;  %v5206_v23 = vpop.f32.mrf.mxu0  ;;  %3139 = vmatmul.mubr.bf16.gmra.mxu0 %v6122_v11  ;;  %v6155_v18 = vld [vmem:[%s6385_s13 + $0x3a4] ss:$56 sps:$4 sm:$0xff]  }
 0x10d   : > { %2985 = vmatprep.mubr.bf16.mxu1 %v6129_v12  ;;  %3146 = vmatprep.mubr.bf16.mxu0 %v6133_v13  ;;  %v6143_v12 = vld [vmem:[%s6385_s13 + $0x328] ss:$56 sps:$4 sm:$0xff]  }
 0x10e   : > { %v5255_v24 = vpop.f32.mrf.mxu1  ;;  %v5207_v25 = vpop.f32.mrf.mxu0  ;;  %3421 = vmatpush2.bf16.msra.mxu0 %v6180_v19  ;;  %v6146_v13 = vld [vmem:[%s6385_s13 + $0x330] ss:$56 sps:$4 sm:$0xff]  }
 0x10f   : > { %v6837_v29 = vadd.f32 %v5255_v24, %v5254_v22  ;;  %v6839_v30 = vadd.f32 %v5207_v25, %v5206_v23  ;;  %3422 = vmatprep.subr.bf16.mxu0 %v6318_v14 }
 0x110   : > { %v5257_v31 = vpop.f32.mrf.mxu1  ;;  %v5209_v32 = vpop.f32.mrf.mxu0 }
 0x112   : > { %v5258_v39 = vpop.f32.mrf.mxu1  ;;  %v5210_v40 = vpop.f32.mrf.mxu0  ;;  %3423 = vmatpush2.bf16.msra.mxu0 %v6192_v28 }
 0x113   : > { %v6849_v42 = vadd.f32 %v5258_v39, %v5257_v31  ;;  %v6851_v43 = vadd.f32 %v5210_v40, %v5209_v32  ;;  %3424 = vmatprep.subr.bf16.mxu0 %v6318_v14  ;;  %v6150_v39 = vld [vmem:[%s6385_s13 + $0x398] ss:$56 sps:$4 sm:$0xff]  }
 0x114   : > { %v5260_v44 = vpop.f32.mrf.mxu1  ;;  %2986 = vmatmul.mubr.bf16.gmra.mxu1 %v6127_v33  ;;  %v5212_v45 = vpop.f32.mrf.mxu0  ;;  %3147 = vmatmul.mubr.bf16.gmra.mxu0 %v6131_v34  ;;  %v6153_v40 = vld [vmem:[%s6385_s13 + $0x3a0] ss:$56 sps:$4 sm:$0xff]  }
 0x115   : > { %2993 = vmatprep.mubr.bf16.mxu1 %v6136_v35  ;;  %3154 = vmatprep.mubr.bf16.mxu0 %v6139_v36 }
 0x116   : > { %v5261_v48 = vpop.f32.mrf.mxu1  ;;  %v5213_v49 = vpop.f32.mrf.mxu0  ;;  %3425 = vmatpush2.bf16.msra.mxu0 %v6204_v41  ;;  %v6160_v41 = vld [vmem:[%s6385_s13 + $0x40c] ss:$56 sps:$4 sm:$0xff]  }
 0x117   : > { %v6857_v51 = vadd.f32 %v5261_v48, %v5260_v44  ;;  %v6859_v52 = vadd.f32 %v5213_v49, %v5212_v45  ;;  %3426 = vmatprep.subr.bf16.mxu0 %v6318_v14  ;;  %v6164_v44 = vld [vmem:[%s6385_s13 + $0x414] ss:$56 sps:$4 sm:$0xff]  }
 0x118   : > { %v5263_v53 = vpop.f32.mrf.mxu1  ;;  %v5215_v54 = vpop.f32.mrf.mxu0 }
 0x11a   : > { %v5264_v61 = vpop.f32.mrf.mxu1  ;;  %v5216_v62 = vpop.f32.mrf.mxu0  ;;  %3427 = vmatpush2.bf16.msra.mxu0 %v6211_v50 }
 0x11b   : > { %v6866_v63 = vadd.f32 %v5264_v61, %v5263_v53  ;;  %v6868_v0 = vadd.f32 %v5216_v62, %v5215_v54 }
 0x11c   : > { %v5266_v1 = vpop.f32.mrf.mxu1  ;;  %2994 = vmatmul.mubr.bf16.gmra.mxu1 %v6134_v55  ;;  %v5218_v14 = vpop.f32.mrf.mxu0  ;;  %3155 = vmatmul.mubr.bf16.gmra.mxu0 %v6137_v56 }
 0x11d   : > { %3001 = vmatprep.mubr.bf16.mxu1 %v6145_v57  ;;  %3162 = vmatprep.mubr.bf16.mxu0 %v6148_v58 }
 0x11e   : > { %v5267_v2 = vpop.f32.mrf.mxu1  ;;  %v5219_v3 = vpop.f32.mrf.mxu0 }
 0x11f   : > { %v6870_v8 = vadd.f32 %v5267_v2, %v5266_v1  ;;  %v6872_v9 = vadd.f32 %v5219_v3, %v5218_v14  ;;  %v6158_v1 = vld [vmem:[%s6385_s13 + $0x408] ss:$56 sps:$4 sm:$0xff]   ;;  %v6167_v3 = vld [vmem:[%s6385_s13 + $0x47c] ss:$56 sps:$4 sm:$0xff]  }
 0x120   : > { %v5269_v10 = vpop.f32.mrf.mxu1  ;;  %v5221_v11 = vpop.f32.mrf.mxu0  ;;  %v6162_v14 = vld [vmem:[%s6385_s13 + $0x410] ss:$56 sps:$4 sm:$0xff]  }
 0x122   : > { %v5270_v19 = vpop.f32.mrf.mxu1  ;;  %v5222_v22 = vpop.f32.mrf.mxu0 }
 0x123   : > { %v6878_v23 = vadd.f32 %v5270_v19, %v5269_v10  ;;  %v6880_v24 = vadd.f32 %v5222_v22, %v5221_v11  ;;  %v6170_v10 = vld [vmem:[%s6385_s13 + $0x484] ss:$56 sps:$4 sm:$0xff]  }
 0x124   : > { %v5272_v25 = vpop.f32.mrf.mxu1  ;;  %3002 = vmatmul.mubr.bf16.gmra.mxu1 %v6143_v12  ;;  %v5224_v28 = vpop.f32.mrf.mxu0  ;;  %3163 = vmatmul.mubr.bf16.gmra.mxu0 %v6146_v13 }
 0x125   : > { %3009 = vmatprep.mubr.bf16.mxu1 %v6152_v15  ;;  %3170 = vmatprep.mubr.bf16.mxu0 %v6155_v18 }
 0x126   : > { %v5273_v31 = vpop.f32.mrf.mxu1  ;;  %v5225_v32 = vpop.f32.mrf.mxu0 }
 0x127   : > { %v6882_v33 = vadd.f32 %v5273_v31, %v5272_v25  ;;  %v6884_v34 = vadd.f32 %v5225_v32, %v5224_v28 }
 0x128   : > { %v5275_v35 = vpop.f32.mrf.mxu1  ;;  %v5227_v36 = vpop.f32.mrf.mxu0 }
 0x12a   : > { %v5276_v45 = vpop.f32.mrf.mxu1  ;;  %v5228_v48 = vpop.f32.mrf.mxu0 }
 0x12b   : > { %v6890_v49 = vadd.f32 %v5276_v45, %v5275_v35  ;;  %v6892_v50 = vadd.f32 %v5228_v48, %v5227_v36  ;;  %v6176_v45 = vld [vmem:[%s6385_s13 + $0x4ec] ss:$56 sps:$4 sm:$0xff]  }
 0x12c   : > { %v5294_v53 = vpop.f32.mrf.mxu1  ;;  %3010 = vmatmul.mubr.bf16.gmra.mxu1 %v6150_v39  ;;  %v5406_v54 = vpop.f32.mrf.mxu0  ;;  %3171 = vmatmul.mubr.bf16.gmra.mxu0 %v6153_v40  ;;  %v6165_v40 = vld [vmem:[%s6385_s13 + $0x478] ss:$56 sps:$4 sm:$0xff]   ;;  %v6179_v48 = vld [vmem:[%s6385_s13 + $0x4f4] ss:$56 sps:$4 sm:$0xff]  }
 0x12d   : > { %3017 = vmatprep.mubr.bf16.mxu1 %v6160_v41  ;;  %3178 = vmatprep.mubr.bf16.mxu0 %v6164_v44  ;;  %v6168_v41 = vld [vmem:[%s6385_s13 + $0x480] ss:$56 sps:$4 sm:$0xff]  }
 0x12e   : > { %v5295_v55 = vpop.f32.mrf.mxu1  ;;  %v5407_v56 = vpop.f32.mrf.mxu0 }
 0x12f   : > { %v5296_v57 = vadd.f32 %v5295_v55, %v5294_v53  ;;  %v5408_v58 = vadd.f32 %v5407_v56, %v5406_v54 }
 0x130   : > { %v5297_v61 = vpop.f32.mrf.mxu1  ;;  %v5409_v62 = vpop.f32.mrf.mxu0 }
 0x131   : > { %v2626_v2 = vadd.f32 %v5296_v57, %v6728_v5 }
 0x132   : > { %v5298_v11 = vpop.f32.mrf.mxu1  ;;  %v5410_v12 = vpop.f32.mrf.mxu0 }
 0x133   : > { %v6899_v13 = vadd.f32 %v5408_v58, %v2626_v2  ;;  %v5299_v15 = vadd.f32 %v5298_v11, %v5297_v61  ;;  %v5411_v18 = vadd.f32 %v5410_v12, %v5409_v62  ;;  %v6174_v11 = vld [vmem:[%s6385_s13 + $0x4e8] ss:$56 sps:$4 sm:$0xff]  }
 0x134   : > { %v5300_v19 = vpop.f32.mrf.mxu1  ;;  %3018 = vmatmul.mubr.bf16.gmra.mxu1 %v6158_v1  ;;  %v5412_v22 = vpop.f32.mrf.mxu0  ;;  %3179 = vmatmul.mubr.bf16.gmra.mxu0 %v6162_v14  ;;  %v6177_v12 = vld [vmem:[%s6385_s13 + $0x4f0] ss:$56 sps:$4 sm:$0xff]  }
 0x135   : > { %v2629_v25 = vadd.f32 %v5299_v15, %v6744_v17  ;;  %3025 = vmatprep.mubr.bf16.mxu1 %v6167_v3  ;;  %3186 = vmatprep.mubr.bf16.mxu0 %v6170_v10 }
 0x136   : > { %v5301_v5 = vpop.f32.mrf.mxu1  ;;  %v5413_v28 = vpop.f32.mrf.mxu0 }
 0x137   : > { %v6902_v31 = vadd.f32 %v5411_v18, %v2629_v25  ;;  %v5302_v32 = vadd.f32 %v5301_v5, %v5300_v19  ;;  %v5414_v35 = vadd.f32 %v5413_v28, %v5412_v22  ;;  %v6183_v18 = vld [vmem:[%s6385_s13 + $0x55c] ss:$56 sps:$4 sm:$0xff]  }
 0x138   : > { %v5303_v36 = vpop.f32.mrf.mxu1  ;;  %v5415_v39 = vpop.f32.mrf.mxu0  ;;  %v6186_v19 = vld [vmem:[%s6385_s13 + $0x564] ss:$56 sps:$4 sm:$0xff]  }
 0x139   : > { %v2634_v44 = vadd.f32 %v5302_v32, %v6759_v27 }
 0x13a   : > { %v5304_v53 = vpop.f32.mrf.mxu1  ;;  %v5416_v54 = vpop.f32.mrf.mxu0 }
 0x13b   : > { %v6909_v55 = vadd.f32 %v5414_v35, %v2634_v44  ;;  %v5305_v17 = vadd.f32 %v5304_v53, %v5303_v36  ;;  %v5417_v56 = vadd.f32 %v5416_v54, %v5415_v39  ;;  %v6181_v53 = vld [vmem:[%s6385_s13 + $0x558] ss:$56 sps:$4 sm:$0xff]  }
 0x13c   : > { %v5306_v57 = vpop.f32.mrf.mxu1  ;;  %3026 = vmatmul.mubr.bf16.gmra.mxu1 %v6165_v40  ;;  %v5418_v58 = vpop.f32.mrf.mxu0  ;;  %3187 = vmatmul.mubr.bf16.gmra.mxu0 %v6168_v41  ;;  %v6184_v54 = vld [vmem:[%s6385_s13 + $0x560] ss:$56 sps:$4 sm:$0xff]  }
 0x13d   : > { %v2637_v61 = vadd.f32 %v5305_v17, %v6773_v38  ;;  %3033 = vmatprep.mubr.bf16.mxu1 %v6176_v45  ;;  %3194 = vmatprep.mubr.bf16.mxu0 %v6179_v48 }
 0x13e   : > { %v5307_v27 = vpop.f32.mrf.mxu1  ;;  %v5419_v62 = vpop.f32.mrf.mxu0 }
 0x13f   : > { %v6912_v1 = vadd.f32 %v5417_v56, %v2637_v61  ;;  %v5308_v14 = vadd.f32 %v5307_v27, %v5306_v57  ;;  %v5420_v2 = vadd.f32 %v5419_v62, %v5418_v58  ;;  %v6191_v56 = vld [vmem:[%s6385_s13 + $0x5cc] ss:$56 sps:$4 sm:$0xff]  }
 0x140   : > { %v5309_v3 = vpop.f32.mrf.mxu1  ;;  %v5421_v10 = vpop.f32.mrf.mxu0  ;;  %v6195_v57 = vld [vmem:[%s6385_s13 + $0x5d4] ss:$56 sps:$4 sm:$0xff]  }
 0x141   : > { %v2642_v15 = vadd.f32 %v5308_v14, %v6787_v47 }
 0x142   : > { %v5310_v22 = vpop.f32.mrf.mxu1  ;;  %v5422_v25 = vpop.f32.mrf.mxu0 }
 0x143   : > { %v6919_v5 = vadd.f32 %v5420_v2, %v2642_v15  ;;  %v5311_v38 = vadd.f32 %v5310_v22, %v5309_v3  ;;  %v5423_v28 = vadd.f32 %v5422_v25, %v5421_v10  ;;  %v6189_v22 = vld [vmem:[%s6385_s13 + $0x5c8] ss:$56 sps:$4 sm:$0xff]  }
 0x144   : > { %v5312_v32 = vpop.f32.mrf.mxu1  ;;  %3034 = vmatmul.mubr.bf16.gmra.mxu1 %v6174_v11  ;;  %v5424_v35 = vpop.f32.mrf.mxu0  ;;  %3195 = vmatmul.mubr.bf16.gmra.mxu0 %v6177_v12  ;;  %v6193_v25 = vld [vmem:[%s6385_s13 + $0x5d0] ss:$56 sps:$4 sm:$0xff]  }
 0x145   : > { %v2645_v36 = vadd.f32 %v5311_v38, %v6805_v60  ;;  %3041 = vmatprep.mubr.bf16.mxu1 %v6183_v18  ;;  %3202 = vmatprep.mubr.bf16.mxu0 %v6186_v19 }
 0x146   : > { %v5313_v47 = vpop.f32.mrf.mxu1  ;;  %v5425_v39 = vpop.f32.mrf.mxu0 }
 0x147   : > { %v6922_v40 = vadd.f32 %v5423_v28, %v2645_v36  ;;  %v5314_v41 = vadd.f32 %v5313_v47, %v5312_v32  ;;  %v5426_v44 = vadd.f32 %v5425_v39, %v5424_v35  ;;  %v6198_v28 = vld [vmem:[%s6385_s13 + $0x63c] ss:$56 sps:$4 sm:$0xff]  }
 0x148   : > { %v5315_v45 = vpop.f32.mrf.mxu1  ;;  %v5427_v48 = vpop.f32.mrf.mxu0  ;;  %v6201_v32 = vld [vmem:[%s6385_s13 + $0x644] ss:$56 sps:$4 sm:$0xff]  }
 0x149   : > { %v2650_v17 = vadd.f32 %v5314_v41, %v6819_v7 }
 0x14a   : > { %v5316_v58 = vpop.f32.mrf.mxu1  ;;  %v5428_v61 = vpop.f32.mrf.mxu0 }
 0x14b   : > { %v6929_v27 = vadd.f32 %v5426_v44, %v2650_v17  ;;  %v5317_v60 = vadd.f32 %v5316_v58, %v5315_v45  ;;  %v5429_v62 = vadd.f32 %v5428_v61, %v5427_v48  ;;  %v6196_v58 = vld [vmem:[%s6385_s13 + $0x638] ss:$56 sps:$4 sm:$0xff]  }
 0x14c   : > { %v5318_v14 = vpop.f32.mrf.mxu1  ;;  %3042 = vmatmul.mubr.bf16.gmra.mxu1 %v6181_v53  ;;  %v5430_v2 = vpop.f32.mrf.mxu0  ;;  %3203 = vmatmul.mubr.bf16.gmra.mxu0 %v6184_v54  ;;  %v6199_v61 = vld [vmem:[%s6385_s13 + $0x640] ss:$56 sps:$4 sm:$0xff]  }
 0x14d   : > { %v2653_v3 = vadd.f32 %v5317_v60, %v6831_v21  ;;  %3049 = vmatprep.mubr.bf16.mxu1 %v6191_v56  ;;  %3210 = vmatprep.mubr.bf16.mxu0 %v6195_v57 }
 0x14e   : > { %v5319_v7 = vpop.f32.mrf.mxu1  ;;  %v5431_v10 = vpop.f32.mrf.mxu0 }
 0x14f   : > { %v6932_v11 = vadd.f32 %v5429_v62, %v2653_v3  ;;  %v5320_v12 = vadd.f32 %v5319_v7, %v5318_v14  ;;  %v5432_v15 = vadd.f32 %v5431_v10, %v5430_v2  ;;  %v6207_v62 = vld [vmem:[%s6385_s13 + $0x6ac] ss:$56 sps:$4 sm:$0xff]  }
 0x150   : > { %v5321_v18 = vpop.f32.mrf.mxu1  ;;  %v5433_v19 = vpop.f32.mrf.mxu0  ;;  %v6210_v14 = vld [vmem:[%s6385_s13 + $0x6b4] ss:$56 sps:$4 sm:$0xff]  }
 0x151   : > { %v2658_v38 = vadd.f32 %v5320_v12, %v6839_v30 }
 0x152   : > { %v5322_v35 = vpop.f32.mrf.mxu1  ;;  %v5434_v36 = vpop.f32.mrf.mxu0 }
 0x153   : > { %v6939_v47 = vadd.f32 %v5432_v15, %v2658_v38  ;;  %v5323_v21 = vadd.f32 %v5322_v35, %v5321_v18  ;;  %v5435_v39 = vadd.f32 %v5434_v36, %v5433_v19  ;;  %v6205_v35 = vld [vmem:[%s6385_s13 + $0x6a8] ss:$56 sps:$4 sm:$0xff]  }
 0x154   : > { %v5324_v41 = vpop.f32.mrf.mxu1  ;;  %3050 = vmatmul.mubr.bf16.gmra.mxu1 %v6189_v22  ;;  %v5436_v44 = vpop.f32.mrf.mxu0  ;;  %3211 = vmatmul.mubr.bf16.gmra.mxu0 %v6193_v25  ;;  %v6208_v36 = vld [vmem:[%s6385_s13 + $0x6b0] ss:$56 sps:$4 sm:$0xff]  }
 0x155   : > { %v2661_v45 = vadd.f32 %v5323_v21, %v6851_v43  ;;  %3057 = vmatprep.mubr.bf16.mxu1 %v6198_v28  ;;  %3218 = vmatprep.mubr.bf16.mxu0 %v6201_v32 }
 0x156   : > { %v5325_v30 = vpop.f32.mrf.mxu1  ;;  %v5437_v48 = vpop.f32.mrf.mxu0 }
 0x157   : > { %v6942_v53 = vadd.f32 %v5435_v39, %v2661_v45  ;;  %v5326_v54 = vadd.f32 %v5325_v30, %v5324_v41  ;;  %v5438_v17 = vadd.f32 %v5437_v48, %v5436_v44  ;;  %v6214_v39 = vld [vmem:[%s6385_s13 + $0x2c] ss:$56 sps:$4 sm:$0xff]  }
 0x158   : > { %v5327_v56 = vpop.f32.mrf.mxu1  ;;  %v5439_v57 = vpop.f32.mrf.mxu0  ;;  %v6217_v41 = vld [vmem:[%s6385_s13 + $0x34] ss:$56 sps:$4 sm:$0xff]  }
 0x159   : > { %v2666_v60 = vadd.f32 %v5326_v54, %v6859_v52 }
 0x15a   : > { %v5328_v2 = vpop.f32.mrf.mxu1  ;;  %v5440_v3 = vpop.f32.mrf.mxu0 }
 0x15b   : > { %v6949_v7 = vadd.f32 %v5438_v17, %v2666_v60  ;;  %v5329_v43 = vadd.f32 %v5328_v2, %v5327_v56  ;;  %v5441_v10 = vadd.f32 %v5440_v3, %v5439_v57  ;;  %v6212_v2 = vld [vmem:[%s6385_s13 + $0x28] ss:$56 sps:$4 sm:$0xff]  }
 0x15c   : > { %v5330_v12 = vpop.f32.mrf.mxu1  ;;  %3058 = vmatmul.mubr.bf16.gmra.mxu1 %v6196_v58  ;;  %v5442_v15 = vpop.f32.mrf.mxu0  ;;  %3219 = vmatmul.mubr.bf16.gmra.mxu0 %v6199_v61  ;;  %v6215_v3 = vld [vmem:[%s6385_s13 + $0x30] ss:$56 sps:$4 sm:$0xff]  }
 0x15d   : > { %v2669_v18 = vadd.f32 %v5329_v43, %v6868_v0  ;;  %3065 = vmatprep.mubr.bf16.mxu1 %v6207_v62  ;;  %3226 = vmatprep.mubr.bf16.mxu0 %v6210_v14 }
 0x15e   : > { %v5331_v52 = vpop.f32.mrf.mxu1  ;;  %v5443_v19 = vpop.f32.mrf.mxu0 }
 0x15f   : > { %v6952_v22 = vadd.f32 %v5441_v10, %v2669_v18  ;;  %v5332_v25 = vadd.f32 %v5331_v52, %v5330_v12  ;;  %v5444_v38 = vadd.f32 %v5443_v19, %v5442_v15  ;;  %v6220_v10 = vld [vmem:[%s6385_s13 + $0x9c] ss:$56 sps:$4 sm:$0xff]  }
 0x160   : > { %v5333_v28 = vpop.f32.mrf.mxu1  ;;  %v5445_v32 = vpop.f32.mrf.mxu0  ;;  %v6221_v12 = vld [vmem:[%s6385_s13 + $0xa4] ss:$56 sps:$4 sm:$0xff]  }
 0x161   : > { %v2674_v21 = vadd.f32 %v5332_v25, %v6872_v9 }
 0x162   : > { %v5334_v44 = vpop.f32.mrf.mxu1  ;;  %v5446_v45 = vpop.f32.mrf.mxu0 }
 0x163   : > { %v6959_v0 = vadd.f32 %v5444_v38, %v2674_v21  ;;  %v5335_v30 = vadd.f32 %v5334_v44, %v5333_v28  ;;  %v5447_v48 = vadd.f32 %v5446_v45, %v5445_v32  ;;  %v6218_v44 = vld [vmem:[%s6385_s13 + $0x98] ss:$56 sps:$4 sm:$0xff]  }
 0x164   : > { %v5336_v54 = vpop.f32.mrf.mxu1  ;;  %3066 = vmatmul.mubr.bf16.gmra.mxu1 %v6205_v35  ;;  %v5448_v17 = vpop.f32.mrf.mxu0  ;;  %3227 = vmatmul.mubr.bf16.gmra.mxu0 %v6208_v36  ;;  %v6223_v45 = vld [vmem:[%s6385_s13 + $0xa0] ss:$56 sps:$4 sm:$0xff]  }
 0x165   : > { %v2677_v56 = vadd.f32 %v5335_v30, %v6880_v24  ;;  %3267 = vmatprep.mubr.bf16.mxu1 %v6214_v39  ;;  %4827 = vmatprep.mubr.msk.bf16.mxu0 %vm2381_vm0, %v6217_v41 }
 0x166   : > { %v5337_v9 = vpop.f32.mrf.mxu1  ;;  %v5449_v57 = vpop.f32.mrf.mxu0 }
 0x167   : > { %v6963_v58 = vadd.f32 %v5447_v48, %v2677_v56  ;;  %v5338_v61 = vadd.f32 %v5337_v9, %v5336_v54  ;;  %v5450_v60 = vadd.f32 %v5449_v57, %v5448_v17  ;;  %v6226_v48 = vld [vmem:[%s6385_s13 + $0x10c] ss:$56 sps:$4 sm:$0xff]  }
 0x168   : > { %v5339_v62 = vpop.f32.mrf.mxu1  ;;  %v5451_v14 = vpop.f32.mrf.mxu0  ;;  %v6227_v54 = vld [vmem:[%s6385_s13 + $0x114] ss:$56 sps:$4 sm:$0xff]  }
 0x169   : > { %v2682_v43 = vadd.f32 %v5338_v61, %v6884_v34 }
 0x16a   : > { %v5340_v15 = vpop.f32.mrf.mxu1  ;;  %v5452_v18 = vpop.f32.mrf.mxu0 }
 0x16b   : > { %v6970_v24 = vadd.f32 %v5450_v60, %v2682_v43  ;;  %v5341_v52 = vadd.f32 %v5340_v15, %v5339_v62  ;;  %v5453_v19 = vadd.f32 %v5452_v18, %v5451_v14  ;;  %v6224_v15 = vld [vmem:[%s6385_s13 + $0x108] ss:$56 sps:$4 sm:$0xff]  }
 0x16c   : > { %v5342_v25 = vpop.f32.mrf.mxu1  ;;  %3268 = vmatmul.mubr.bf16.vlgmr.msra.gmra.mxu1 %v6212_v2  ;;  %v5454_v38 = vpop.f32.mrf.mxu0  ;;  %3429 = vmatmul.mubr.bf16.vlgmr.msra.gmra.mxu0 %v6215_v3  ;;  %v6229_v18 = vld [vmem:[%s6385_s13 + $0x110] ss:$56 sps:$4 sm:$0xff]  }
 0x16d   : > { %v2685_v28 = vadd.f32 %v5341_v52, %v6892_v50  ;;  %3275 = vmatprep.mubr.bf16.mxu1 %v6220_v10  ;;  %4828 = vmatprep.mubr.msk.bf16.mxu0 %vm2381_vm0, %v6221_v12 }
 0x16e   : > { %v5343_v34 = vpop.f32.mrf.mxu1  ;;  %v5455_v32 = vpop.f32.mrf.mxu0 }
 0x16f   : > { %v6974_v35 = vadd.f32 %v5453_v19, %v2685_v28  ;;  %v5344_v36 = vadd.f32 %v5343_v34, %v5342_v25  ;;  %v5456_v21 = vadd.f32 %v5455_v32, %v5454_v38  ;;  %v6232_v19 = vld [vmem:[%s6385_s13 + $0x17c] ss:$56 sps:$4 sm:$0xff]  }
 0x170   : > { %v5345_v39 = vpop.f32.mrf.mxu1  ;;  %v5457_v41 = vpop.f32.mrf.mxu0  ;;  %v6233_v25 = vld [vmem:[%s6385_s13 + $0x184] ss:$56 sps:$4 sm:$0xff]  }
 0x171   : > { %v2690_v30 = vadd.f32 %v5344_v36, %v6726_v4 }
 0x172   : > { %v5346_v17 = vpop.f32.mrf.mxu1  ;;  %v5458_v56 = vpop.f32.mrf.mxu0 }
 0x173   : > { %v6981_v50 = vadd.f32 %v5456_v21, %v2690_v30  ;;  %v5347_v9 = vadd.f32 %v5346_v17, %v5345_v39  ;;  %v5459_v57 = vadd.f32 %v5458_v56, %v5457_v41  ;;  %v6230_v17 = vld [vmem:[%s6385_s13 + $0x178] ss:$56 sps:$4 sm:$0xff]  }
 0x174   : > { %v5348_v61 = vpop.f32.mrf.mxu1  ;;  %3276 = vmatmul.mubr.bf16.gmra.mxu1 %v6218_v44  ;;  %v5460_v60 = vpop.f32.mrf.mxu0  ;;  %3437 = vmatmul.mubr.bf16.gmra.mxu0 %v6223_v45  ;;  %v6235_v56 = vld [vmem:[%s6385_s13 + $0x180] ss:$56 sps:$4 sm:$0xff]  }
 0x175   : > { %v2693_v62 = vadd.f32 %v5347_v9, %v6742_v16  ;;  %3283 = vmatprep.mubr.bf16.mxu1 %v6226_v48  ;;  %4829 = vmatprep.mubr.msk.bf16.mxu0 %vm2381_vm0, %v6227_v54 }
 0x176   : > { %v5349_v4 = vpop.f32.mrf.mxu1  ;;  %v5461_v14 = vpop.f32.mrf.mxu0 }
 0x177   : > { %v6985_v2 = vadd.f32 %v5459_v57, %v2693_v62  ;;  %v5350_v3 = vadd.f32 %v5349_v4, %v5348_v61  ;;  %v5462_v43 = vadd.f32 %v5461_v14, %v5460_v60  ;;  %v6238_v57 = vld [vmem:[%s6385_s13 + $0x1ec] ss:$56 sps:$4 sm:$0xff]  }
 0x178   : > { %v5351_v10 = vpop.f32.mrf.mxu1  ;;  %v5463_v12 = vpop.f32.mrf.mxu0  ;;  %v6239_v61 = vld [vmem:[%s6385_s13 + $0x1f4] ss:$56 sps:$4 sm:$0xff]  }
 0x179   : > { %v2698_v52 = vadd.f32 %v5350_v3, %v6757_v26 }
 0x17a   : > { %v5352_v38 = vpop.f32.mrf.mxu1  ;;  %v5464_v28 = vpop.f32.mrf.mxu0 }
 0x17b   : > { %v6992_v16 = vadd.f32 %v5462_v43, %v2698_v52  ;;  %v5353_v34 = vadd.f32 %v5352_v38, %v5351_v10  ;;  %v5465_v32 = vadd.f32 %v5464_v28, %v5463_v12  ;;  %v6236_v38 = vld [vmem:[%s6385_s13 + $0x1e8] ss:$56 sps:$4 sm:$0xff]  }
 0x17c   : > { %v5354_v36 = vpop.f32.mrf.mxu1  ;;  %3284 = vmatmul.mubr.bf16.gmra.mxu1 %v6224_v15  ;;  %v5466_v21 = vpop.f32.mrf.mxu0  ;;  %3445 = vmatmul.mubr.bf16.gmra.mxu0 %v6229_v18  ;;  %v6241_v28 = vld [vmem:[%s6385_s13 + $0x1f0] ss:$56 sps:$4 sm:$0xff]  }
 0x17d   : > { %v2701_v39 = vadd.f32 %v5353_v34, %v6771_v37  ;;  %3291 = vmatprep.mubr.bf16.mxu1 %v6232_v19  ;;  %4830 = vmatprep.mubr.msk.bf16.mxu0 %vm2381_vm0, %v6233_v25 }
 0x17e   : > { %v5355_v26 = vpop.f32.mrf.mxu1  ;;  %v5467_v41 = vpop.f32.mrf.mxu0 }
 0x17f   : > { %v6996_v44 = vadd.f32 %v5465_v32, %v2701_v39  ;;  %v5356_v45 = vadd.f32 %v5355_v26, %v5354_v36  ;;  %v5468_v30 = vadd.f32 %v5467_v41, %v5466_v21  ;;  %v6244_v32 = vld [vmem:[%s6385_s13 + $0x25c] ss:$56 sps:$4 sm:$0xff]  }
 0x180   : > { %v5357_v48 = vpop.f32.mrf.mxu1  ;;  %v5469_v54 = vpop.f32.mrf.mxu0  ;;  %v6245_v36 = vld [vmem:[%s6385_s13 + $0x264] ss:$56 sps:$4 sm:$0xff]  }
 0x181   : > { %v2706_v9 = vadd.f32 %v5356_v45, %v6785_v46 }
 0x182   : > { %v5358_v60 = vpop.f32.mrf.mxu1  ;;  %v5470_v62 = vpop.f32.mrf.mxu0 }
 0x183   : > { %v7003_v37 = vadd.f32 %v5468_v30, %v2706_v9  ;;  %v5359_v4 = vadd.f32 %v5358_v60, %v5357_v48  ;;  %v5471_v14 = vadd.f32 %v5470_v62, %v5469_v54  ;;  %v6242_v60 = vld [vmem:[%s6385_s13 + $0x258] ss:$56 sps:$4 sm:$0xff]  }
 0x184   : > { %v5360_v3 = vpop.f32.mrf.mxu1  ;;  %3292 = vmatmul.mubr.bf16.gmra.mxu1 %v6230_v17  ;;  %v5472_v43 = vpop.f32.mrf.mxu0  ;;  %3453 = vmatmul.mubr.bf16.gmra.mxu0 %v6235_v56  ;;  %v6247_v62 = vld [vmem:[%s6385_s13 + $0x260] ss:$56 sps:$4 sm:$0xff]  }
 0x185   : > { %v2709_v10 = vadd.f32 %v5359_v4, %v6803_v59  ;;  %3299 = vmatprep.mubr.bf16.mxu1 %v6238_v57  ;;  %4831 = vmatprep.mubr.msk.bf16.mxu0 %vm2381_vm0, %v6239_v61 }
 0x186   : > { %v5361_v46 = vpop.f32.mrf.mxu1  ;;  %v5473_v12 = vpop.f32.mrf.mxu0 }
 0x187   : > { %v7007_v15 = vadd.f32 %v5471_v14, %v2709_v10  ;;  %v5362_v18 = vadd.f32 %v5361_v46, %v5360_v3  ;;  %v5474_v52 = vadd.f32 %v5473_v12, %v5472_v43  ;;  %v6250_v14 = vld [vmem:[%s6385_s13 + $0x2cc] ss:$56 sps:$4 sm:$0xff]  }
 0x188   : > { %v5363_v19 = vpop.f32.mrf.mxu1  ;;  %v5475_v25 = vpop.f32.mrf.mxu0  ;;  %v6251_v3 = vld [vmem:[%s6385_s13 + $0x2d4] ss:$56 sps:$4 sm:$0xff]  }
 0x189   : > { %v2714_v34 = vadd.f32 %v5362_v18, %v6817_v6 }
 0x18a   : > { %v5364_v21 = vpop.f32.mrf.mxu1  ;;  %v5476_v39 = vpop.f32.mrf.mxu0 }
 0x18b   : > { %v7014_v59 = vadd.f32 %v5474_v52, %v2714_v34  ;;  %v5365_v26 = vadd.f32 %v5364_v21, %v5363_v19  ;;  %v5477_v41 = vadd.f32 %v5476_v39, %v5475_v25  ;;  %v6248_v21 = vld [vmem:[%s6385_s13 + $0x2c8] ss:$56 sps:$4 sm:$0xff]  }
 0x18c   : > { %v5366_v45 = vpop.f32.mrf.mxu1  ;;  %3300 = vmatmul.mubr.bf16.gmra.mxu1 %v6236_v38  ;;  %v5478_v30 = vpop.f32.mrf.mxu0  ;;  %3461 = vmatmul.mubr.bf16.gmra.mxu0 %v6241_v28  ;;  %v6253_v39 = vld [vmem:[%s6385_s13 + $0x2d0] ss:$56 sps:$4 sm:$0xff]  }
 0x18d   : > { %v2717_v48 = vadd.f32 %v5365_v26, %v6829_v20  ;;  %3307 = vmatprep.mubr.bf16.mxu1 %v6244_v32  ;;  %4832 = vmatprep.mubr.msk.bf16.mxu0 %vm2381_vm0, %v6245_v36 }
 0x18e   : > { %v5367_v6 = vpop.f32.mrf.mxu1  ;;  %v5479_v54 = vpop.f32.mrf.mxu0 }
 0x18f   : > { %v7018_v17 = vadd.f32 %v5477_v41, %v2717_v48  ;;  %v5368_v56 = vadd.f32 %v5367_v6, %v5366_v45  ;;  %v5480_v9 = vadd.f32 %v5479_v54, %v5478_v30  ;;  %v6256_v41 = vld [vmem:[%s6385_s13 + $0x33c] ss:$56 sps:$4 sm:$0xff]  }
 0x190   : > { %v5369_v57 = vpop.f32.mrf.mxu1  ;;  %v5481_v61 = vpop.f32.mrf.mxu0  ;;  %v6257_v45 = vld [vmem:[%s6385_s13 + $0x344] ss:$56 sps:$4 sm:$0xff]  }
 0x191   : > { %v2722_v4 = vadd.f32 %v5368_v56, %v6837_v29 }
 0x192   : > { %v5370_v43 = vpop.f32.mrf.mxu1  ;;  %v5482_v10 = vpop.f32.mrf.mxu0 }
 0x193   : > { %v7025_v20 = vadd.f32 %v5480_v9, %v2722_v4  ;;  %v5371_v46 = vadd.f32 %v5370_v43, %v5369_v57  ;;  %v5483_v12 = vadd.f32 %v5482_v10, %v5481_v61  ;;  %v6254_v43 = vld [vmem:[%s6385_s13 + $0x338] ss:$56 sps:$4 sm:$0xff]  }
 0x194   : > { %v5372_v18 = vpop.f32.mrf.mxu1  ;;  %3308 = vmatmul.mubr.bf16.gmra.mxu1 %v6242_v60  ;;  %v5484_v52 = vpop.f32.mrf.mxu0  ;;  %3469 = vmatmul.mubr.bf16.gmra.mxu0 %v6247_v62  ;;  %v6259_v10 = vld [vmem:[%s6385_s13 + $0x340] ss:$56 sps:$4 sm:$0xff]  }
 0x195   : > { %v2725_v19 = vadd.f32 %v5371_v46, %v6849_v42  ;;  %3315 = vmatprep.mubr.bf16.mxu1 %v6250_v14  ;;  %4833 = vmatprep.mubr.msk.bf16.mxu0 %vm2381_vm0, %v6251_v3 }
 0x196   : > { %v5373_v29 = vpop.f32.mrf.mxu1  ;;  %v5485_v25 = vpop.f32.mrf.mxu0 }
 0x197   : > { %v7029_v38 = vadd.f32 %v5483_v12, %v2725_v19  ;;  %v5374_v28 = vadd.f32 %v5373_v29, %v5372_v18  ;;  %v5486_v34 = vadd.f32 %v5485_v25, %v5484_v52  ;;  %v6262_v12 = vld [vmem:[%s6385_s13 + $0x3ac] ss:$56 sps:$4 sm:$0xff]  }
 0x198   : > { %v5375_v32 = vpop.f32.mrf.mxu1  ;;  %v5487_v36 = vpop.f32.mrf.mxu0  ;;  %v6263_v18 = vld [vmem:[%s6385_s13 + $0x3b4] ss:$56 sps:$4 sm:$0xff]  }
 0x199   : > { %v2730_v26 = vadd.f32 %v5374_v28, %v6857_v51 }
 0x19a   : > { %v5376_v30 = vpop.f32.mrf.mxu1  ;;  %v5488_v48 = vpop.f32.mrf.mxu0 }
 0x19b   : > { %v7036_v42 = vadd.f32 %v5486_v34, %v2730_v26  ;;  %v5377_v6 = vadd.f32 %v5376_v30, %v5375_v32  ;;  %v5489_v54 = vadd.f32 %v5488_v48, %v5487_v36  ;;  %v6260_v30 = vld [vmem:[%s6385_s13 + $0x3a8] ss:$56 sps:$4 sm:$0xff]  }
 0x19c   : > { %v5378_v56 = vpop.f32.mrf.mxu1  ;;  %3316 = vmatmul.mubr.bf16.gmra.mxu1 %v6248_v21  ;;  %v5490_v9 = vpop.f32.mrf.mxu0  ;;  %3477 = vmatmul.mubr.bf16.gmra.mxu0 %v6253_v39  ;;  %v6265_v48 = vld [vmem:[%s6385_s13 + $0x3b0] ss:$56 sps:$4 sm:$0xff]  }
 0x19d   : > { %v2733_v57 = vadd.f32 %v5377_v6, %v6866_v63  ;;  %3323 = vmatprep.mubr.bf16.mxu1 %v6256_v41  ;;  %4834 = vmatprep.mubr.msk.bf16.mxu0 %vm2381_vm0, %v6257_v45 }
 0x19e   : > { %v5379_v51 = vpop.f32.mrf.mxu1  ;;  %v5491_v61 = vpop.f32.mrf.mxu0 }
 0x19f   : > { %v7040_v60 = vadd.f32 %v5489_v54, %v2733_v57  ;;  %v5380_v62 = vadd.f32 %v5379_v51, %v5378_v56  ;;  %v5492_v4 = vadd.f32 %v5491_v61, %v5490_v9  ;;  %v6268_v54 = vld [vmem:[%s6385_s13 + $0x41c] ss:$56 sps:$4 sm:$0xff]  }
 0x1a0   : > { %v5381_v14 = vpop.f32.mrf.mxu1  ;;  %v5493_v3 = vpop.f32.mrf.mxu0  ;;  %v6269_v56 = vld [vmem:[%s6385_s13 + $0x424] ss:$56 sps:$4 sm:$0xff]  }
 0x1a1   : > { %v2738_v46 = vadd.f32 %v5380_v62, %v6870_v8 }
 0x1a2   : > { %v5382_v52 = vpop.f32.mrf.mxu1  ;;  %v5494_v19 = vpop.f32.mrf.mxu0 }
 0x1a3   : > { %v7047_v63 = vadd.f32 %v5492_v4, %v2738_v46  ;;  %v5383_v29 = vadd.f32 %v5382_v52, %v5381_v14  ;;  %v5495_v25 = vadd.f32 %v5494_v19, %v5493_v3  ;;  %v6266_v52 = vld [vmem:[%s6385_s13 + $0x418] ss:$56 sps:$4 sm:$0xff]  }
 0x1a4   : > { %v5384_v28 = vpop.f32.mrf.mxu1  ;;  %3324 = vmatmul.mubr.bf16.gmra.mxu1 %v6254_v43  ;;  %v5496_v34 = vpop.f32.mrf.mxu0  ;;  %3485 = vmatmul.mubr.bf16.gmra.mxu0 %v6259_v10  ;;  %v6271_v19 = vld [vmem:[%s6385_s13 + $0x420] ss:$56 sps:$4 sm:$0xff]  }
 0x1a5   : > { %v2741_v32 = vadd.f32 %v5383_v29, %v6878_v23  ;;  %3331 = vmatprep.mubr.bf16.mxu1 %v6262_v12  ;;  %4835 = vmatprep.mubr.msk.bf16.mxu0 %vm2381_vm0, %v6263_v18 }
 0x1a6   : > { %v5385_v8 = vpop.f32.mrf.mxu1  ;;  %v5497_v36 = vpop.f32.mrf.mxu0 }
 0x1a7   : > { %v7051_v21 = vadd.f32 %v5495_v25, %v2741_v32  ;;  %v5386_v39 = vadd.f32 %v5385_v8, %v5384_v28  ;;  %v5498_v26 = vadd.f32 %v5497_v36, %v5496_v34  ;;  %v6274_v25 = vld [vmem:[%s6385_s13 + $0x48c] ss:$56 sps:$4 sm:$0xff]  }
 0x1a8   : > { %v5387_v41 = vpop.f32.mrf.mxu1  ;;  %v5499_v45 = vpop.f32.mrf.mxu0  ;;  %v6275_v28 = vld [vmem:[%s6385_s13 + $0x494] ss:$56 sps:$4 sm:$0xff]  }
 0x1a9   : > { %v2746_v6 = vadd.f32 %v5386_v39, %v6882_v33 }
 0x1aa   : > { %v5388_v9 = vpop.f32.mrf.mxu1  ;;  %v5500_v57 = vpop.f32.mrf.mxu0 }
 0x1ab   : > { %v7058_v23 = vadd.f32 %v5498_v26, %v2746_v6  ;;  %v5389_v51 = vadd.f32 %v5388_v9, %v5387_v41  ;;  %v5501_v61 = vadd.f32 %v5500_v57, %v5499_v45  ;;  %v6272_v9 = vld [vmem:[%s6385_s13 + $0x488] ss:$56 sps:$4 sm:$0xff]  }
 0x1ac   : > { %v5518_v62 = vpop.f32.mrf.mxu1  ;;  %3332 = vmatmul.mubr.bf16.gmra.mxu1 %v6260_v30  ;;  %v5630_v4 = vpop.f32.mrf.mxu0  ;;  %3493 = vmatmul.mubr.bf16.gmra.mxu0 %v6265_v48  ;;  %v6277_v57 = vld [vmem:[%s6385_s13 + $0x490] ss:$56 sps:$4 sm:$0xff]  }
 0x1ad   : > { %v2749_v14 = vadd.f32 %v5389_v51, %v6890_v49  ;;  %3339 = vmatprep.mubr.bf16.mxu1 %v6268_v54  ;;  %4836 = vmatprep.mubr.msk.bf16.mxu0 %vm2381_vm0, %v6269_v56 }
 0x1ae   : > { %v5519_v33 = vpop.f32.mrf.mxu1  ;;  %v5631_v3 = vpop.f32.mrf.mxu0 }
 0x1af   : > { %v7062_v43 = vadd.f32 %v5501_v61, %v2749_v14  ;;  %v5520_v10 = vadd.f32 %v5519_v33, %v5518_v62  ;;  %v5632_v46 = vadd.f32 %v5631_v3, %v5630_v4  ;;  %v6280_v61 = vld [vmem:[%s6385_s13 + $0x4fc] ss:$56 sps:$4 sm:$0xff]  }
 0x1b0   : > { %v5521_v12 = vpop.f32.mrf.mxu1  ;;  %v5633_v18 = vpop.f32.mrf.mxu0  ;;  %v6281_v62 = vld [vmem:[%s6385_s13 + $0x504] ss:$56 sps:$4 sm:$0xff]  }
 0x1b1   : > { %v2948_v29 = vadd.f32 %v5520_v10, %v6899_v13 }
 0x1b2   : > { %v5522_v34 = vpop.f32.mrf.mxu1  ;;  %v5634_v32 = vpop.f32.mrf.mxu0 }
 0x1b3   : > { %v7069_v49 = vadd.f32 %v5632_v46, %v2948_v29  ;;  %v5523_v8 = vadd.f32 %v5522_v34, %v5521_v12  ;;  %v5635_v36 = vadd.f32 %v5634_v32, %v5633_v18  ;;  %v6278_v34 = vld [vmem:[%s6385_s13 + $0x4f8] ss:$56 sps:$4 sm:$0xff]  }
 0x1b4   : > { %v5524_v39 = vpop.f32.mrf.mxu1  ;;  %3340 = vmatmul.mubr.bf16.gmra.mxu1 %v6266_v52  ;;  %v5636_v26 = vpop.f32.mrf.mxu0  ;;  %3501 = vmatmul.mubr.bf16.gmra.mxu0 %v6271_v19  ;;  %v6283_v32 = vld [vmem:[%s6385_s13 + $0x500] ss:$56 sps:$4 sm:$0xff]  }
 0x1b5   : > { %v2951_v41 = vadd.f32 %v5523_v8, %v6902_v31  ;;  %3347 = vmatprep.mubr.bf16.mxu1 %v6274_v25  ;;  %4837 = vmatprep.mubr.msk.bf16.mxu0 %vm2381_vm0, %v6275_v28 }
 0x1b6   : > { %v5525_v13 = vpop.f32.mrf.mxu1  ;;  %v5637_v45 = vpop.f32.mrf.mxu0 }
 0x1b7   : > { %v7073_v30 = vadd.f32 %v5635_v36, %v2951_v41  ;;  %v5526_v48 = vadd.f32 %v5525_v13, %v5524_v39  ;;  %v5638_v6 = vadd.f32 %v5637_v45, %v5636_v26  ;;  %v6286_v36 = vld [vmem:[%s6385_s13 + $0x56c] ss:$56 sps:$4 sm:$0xff]  }
 0x1b8   : > { %v5527_v54 = vpop.f32.mrf.mxu1  ;;  %v5639_v56 = vpop.f32.mrf.mxu0  ;;  %v6287_v39 = vld [vmem:[%s6385_s13 + $0x574] ss:$56 sps:$4 sm:$0xff]  }
 0x1b9   : > { %v2956_v51 = vadd.f32 %v5526_v48, %v6909_v55 }
 0x1ba   : > { %v5528_v4 = vpop.f32.mrf.mxu1  ;;  %v5640_v14 = vpop.f32.mrf.mxu0 }
 0x1bb   : > { %v7080_v31 = vadd.f32 %v5638_v6, %v2956_v51  ;;  %v5529_v33 = vadd.f32 %v5528_v4, %v5527_v54  ;;  %v5641_v3 = vadd.f32 %v5640_v14, %v5639_v56  ;;  %v6284_v4 = vld [vmem:[%s6385_s13 + $0x568] ss:$56 sps:$4 sm:$0xff]  }
 0x1bc   : > { %v5530_v10 = vpop.f32.mrf.mxu1  ;;  %3348 = vmatmul.mubr.bf16.gmra.mxu1 %v6272_v9  ;;  %v5642_v46 = vpop.f32.mrf.mxu0  ;;  %3509 = vmatmul.mubr.bf16.gmra.mxu0 %v6277_v57  ;;  %v6289_v14 = vld [vmem:[%s6385_s13 + $0x570] ss:$56 sps:$4 sm:$0xff]  }
 0x1bd   : > { %v2959_v12 = vadd.f32 %v5529_v33, %v6912_v1  ;;  %3355 = vmatprep.mubr.bf16.mxu1 %v6280_v61  ;;  %4838 = vmatprep.mubr.msk.bf16.mxu0 %vm2381_vm0, %v6281_v62 }
 0x1be   : > { %v5531_v55 = vpop.f32.mrf.mxu1  ;;  %v5643_v18 = vpop.f32.mrf.mxu0 }
 0x1bf   : > { %v7084_v52 = vadd.f32 %v5641_v3, %v2959_v12  ;;  %v5532_v19 = vadd.f32 %v5531_v55, %v5530_v10  ;;  %v5644_v29 = vadd.f32 %v5643_v18, %v5642_v46  ;;  %v6292_v3 = vld [vmem:[%s6385_s13 + $0x5dc] ss:$56 sps:$4 sm:$0xff]  }
 0x1c0   : > { %v5533_v25 = vpop.f32.mrf.mxu1  ;;  %v5645_v28 = vpop.f32.mrf.mxu0  ;;  %v6293_v10 = vld [vmem:[%s6385_s13 + $0x5e4] ss:$56 sps:$4 sm:$0xff]  }
 0x1c1   : > { %v2964_v8 = vadd.f32 %v5532_v19, %v6919_v5 }
 0x1c2   : > { %v5534_v26 = vpop.f32.mrf.mxu1  ;;  %v5646_v41 = vpop.f32.mrf.mxu0 }
 0x1c3   : > { %v7091_v1 = vadd.f32 %v5644_v29, %v2964_v8  ;;  %v5535_v13 = vadd.f32 %v5534_v26, %v5533_v25  ;;  %v5647_v45 = vadd.f32 %v5646_v41, %v5645_v28  ;;  %v6290_v26 = vld [vmem:[%s6385_s13 + $0x5d8] ss:$56 sps:$4 sm:$0xff]  }
 0x1c4   : > { %v5536_v48 = vpop.f32.mrf.mxu1  ;;  %3356 = vmatmul.mubr.bf16.gmra.mxu1 %v6278_v34  ;;  %v5648_v6 = vpop.f32.mrf.mxu0  ;;  %3517 = vmatmul.mubr.bf16.gmra.mxu0 %v6283_v32  ;;  %v6295_v41 = vld [vmem:[%s6385_s13 + $0x5e0] ss:$56 sps:$4 sm:$0xff]  }
 0x1c5   : > { %v2967_v54 = vadd.f32 %v5535_v13, %v6922_v40  ;;  %3363 = vmatprep.mubr.bf16.mxu1 %v6286_v36  ;;  %4839 = vmatprep.mubr.msk.bf16.mxu0 %vm2381_vm0, %v6287_v39 }
 0x1c6   : > { %v5537_v5 = vpop.f32.mrf.mxu1  ;;  %v5649_v56 = vpop.f32.mrf.mxu0 }
 0x1c7   : > { %v7095_v9 = vadd.f32 %v5647_v45, %v2967_v54  ;;  %v5538_v57 = vadd.f32 %v5537_v5, %v5536_v48  ;;  %v5650_v51 = vadd.f32 %v5649_v56, %v5648_v6  ;;  %v6298_v45 = vld [vmem:[%s6385_s13 + $0x64c] ss:$56 sps:$4 sm:$0xff]  }
 0x1c8   : > { %v5539_v61 = vpop.f32.mrf.mxu1  ;;  %v5651_v62 = vpop.f32.mrf.mxu0  ;;  %v6299_v48 = vld [vmem:[%s6385_s13 + $0x654] ss:$56 sps:$4 sm:$0xff]  }
 0x1c9   : > { %v2972_v33 = vadd.f32 %v5538_v57, %v6929_v27 }
 0x1ca   : > { %v5540_v46 = vpop.f32.mrf.mxu1  ;;  %v5652_v12 = vpop.f32.mrf.mxu0 }
 0x1cb   : > { %v7102_v40 = vadd.f32 %v5650_v51, %v2972_v33  ;;  %v5541_v55 = vadd.f32 %v5540_v46, %v5539_v61  ;;  %v5653_v18 = vadd.f32 %v5652_v12, %v5651_v62  ;;  %v6296_v46 = vld [vmem:[%s6385_s13 + $0x648] ss:$56 sps:$4 sm:$0xff]  }
 0x1cc   : > { %v5542_v19 = vpop.f32.mrf.mxu1  ;;  %3364 = vmatmul.mubr.bf16.gmra.mxu1 %v6284_v4  ;;  %v5654_v29 = vpop.f32.mrf.mxu0  ;;  %3525 = vmatmul.mubr.bf16.gmra.mxu0 %v6289_v14  ;;  %v6301_v12 = vld [vmem:[%s6385_s13 + $0x650] ss:$56 sps:$4 sm:$0xff]  }
 0x1cd   : > { %v2975_v25 = vadd.f32 %v5541_v55, %v6932_v11  ;;  %3371 = vmatprep.mubr.bf16.mxu1 %v6292_v3  ;;  %4840 = vmatprep.mubr.msk.bf16.mxu0 %vm2381_vm0, %v6293_v10 }
 0x1ce   : > { %v5543_v27 = vpop.f32.mrf.mxu1  ;;  %v5655_v28 = vpop.f32.mrf.mxu0 }
 0x1cf   : > { %v7106_v34 = vadd.f32 %v5653_v18, %v2975_v25  ;;  %v5544_v32 = vadd.f32 %v5543_v27, %v5542_v19  ;;  %v5656_v8 = vadd.f32 %v5655_v28, %v5654_v29  ;;  %v6304_v18 = vld [vmem:[%s6385_s13 + $0x6bc] ss:$56 sps:$4 sm:$0xff]  }
 0x1d0   : > { %v5545_v36 = vpop.f32.mrf.mxu1  ;;  %v5657_v39 = vpop.f32.mrf.mxu0  ;;  %v6305_v19 = vld [vmem:[%s6385_s13 + $0x6c4] ss:$56 sps:$4 sm:$0xff]  }
 0x1d1   : > { %v2980_v13 = vadd.f32 %v5544_v32, %v6939_v47 }
 0x1d2   : > { %v5546_v6 = vpop.f32.mrf.mxu1  ;;  %v5658_v54 = vpop.f32.mrf.mxu0 }
 0x1d3   : > { %v7113_v11 = vadd.f32 %v5656_v8, %v2980_v13  ;;  %v5547_v5 = vadd.f32 %v5546_v6, %v5545_v36  ;;  %v5659_v56 = vadd.f32 %v5658_v54, %v5657_v39  ;;  %v6302_v6 = vld [vmem:[%s6385_s13 + $0x6b8] ss:$56 sps:$4 sm:$0xff]  }
 0x1d4   : > { %v5548_v57 = vpop.f32.mrf.mxu1  ;;  %3372 = vmatmul.mubr.bf16.gmra.mxu1 %v6290_v26  ;;  %v5660_v51 = vpop.f32.mrf.mxu0  ;;  %3533 = vmatmul.mubr.bf16.gmra.mxu0 %v6295_v41  ;;  %v6307_v54 = vld [vmem:[%s6385_s13 + $0x6c0] ss:$56 sps:$4 sm:$0xff]   ;;  %s4843_s13 = sshll.u32 %s6350_s16, 8 }
 0x1d5   : > { %v2983_v61 = vadd.f32 %v5547_v5, %v6942_v53  ;;  %3379 = vmatprep.mubr.bf16.mxu1 %v6298_v45  ;;  %4841 = vmatprep.mubr.msk.bf16.mxu0 %vm2381_vm0, %v6299_v48  ;;  %s7194_s30 = scalar_lea.vmem [#allocation2], %s4843_s13 }
 0x1d6   : > { %v5549_v47 = vpop.f32.mrf.mxu1  ;;  %v5661_v62 = vpop.f32.mrf.mxu0 }
 0x1d7   : > { %v7117_v4 = vadd.f32 %v5659_v56, %v2983_v61  ;;  %v5550_v14 = vadd.f32 %v5549_v47, %v5548_v57  ;;  %v5662_v33 = vadd.f32 %v5661_v62, %v5660_v51 }
 0x1d8   : > { %v5551_v3 = vpop.f32.mrf.mxu1  ;;  %v5663_v10 = vpop.f32.mrf.mxu0 }
 0x1d9   : > { %v2988_v55 = vadd.f32 %v5550_v14, %v6949_v7 }
 0x1da   : > { %v5552_v29 = vpop.f32.mrf.mxu1  ;;  %v5664_v25 = vpop.f32.mrf.mxu0 }
 0x1db   : > { %v7124_v53 = vadd.f32 %v5662_v33, %v2988_v55  ;;  %v5553_v27 = vadd.f32 %v5552_v29, %v5551_v3  ;;  %v5665_v28 = vadd.f32 %v5664_v25, %v5663_v10 }
 0x1dc   : > { %v5554_v32 = vpop.f32.mrf.mxu1  ;;  %3380 = vmatmul.mubr.bf16.gmra.mxu1 %v6296_v46  ;;  %v5666_v8 = vpop.f32.mrf.mxu0  ;;  %3541 = vmatmul.mubr.bf16.gmra.mxu0 %v6301_v12 }
 0x1dd   : > { %v2991_v36 = vadd.f32 %v5553_v27, %v6952_v22  ;;  %3387 = vmatprep.mubr.bf16.mxu1 %v6304_v18  ;;  %4842 = vmatprep.mubr.msk.bf16.mxu0 %vm2381_vm0, %v6305_v19 }
 0x1de   : > { %v5555_v7 = vpop.f32.mrf.mxu1  ;;  %v5667_v39 = vpop.f32.mrf.mxu0 }
 0x1df   : > { %v7128_v26 = vadd.f32 %v5665_v28, %v2991_v36  ;;  %v5556_v41 = vadd.f32 %v5555_v7, %v5554_v32  ;;  %v5668_v13 = vadd.f32 %v5667_v39, %v5666_v8 }
 0x1e0   : > { %v5557_v45 = vpop.f32.mrf.mxu1  ;;  %v5669_v48 = vpop.f32.mrf.mxu0 }
 0x1e1   : > { %v2996_v5 = vadd.f32 %v5556_v41, %v6959_v0 }
 0x1e2   : > { %v5558_v56 = vpop.f32.mrf.mxu1  ;;  %v5670_v57 = vpop.f32.mrf.mxu0 }
 0x1e3   : > { %v7133_v51 = vadd.f32 %v5668_v13, %v2996_v5  ;;  %v5559_v22 = vadd.f32 %v5558_v56, %v5557_v45  ;;  %v5671_v61 = vadd.f32 %v5670_v57, %v5669_v48 }
 0x1e4   : > { %v5560_v47 = vpop.f32.mrf.mxu1  ;;  %3388 = vmatmul.mubr.bf16.gmra.mxu1 %v6302_v6  ;;  %v5672_v62 = vpop.f32.mrf.mxu0  ;;  %3549 = vmatmul.mubr.bf16.gmra.mxu0 %v6307_v54 }
 0x1e5   : > { %v2999_v14 = vadd.f32 %v5559_v22, %v6963_v58 }
 0x1e6   : > { %v5561_v33 = vpop.f32.mrf.mxu1  ;;  %v5673_v3 = vpop.f32.mrf.mxu0 }
 0x1e7   : > { %v7136_v10 = vadd.f32 %v5671_v61, %v2999_v14  ;;  %v5562_v46 = vadd.f32 %v5561_v33, %v5560_v47  ;;  %v5674_v12 = vadd.f32 %v5673_v3, %v5672_v62 }
 0x1e8   : > { %v5563_v55 = vpop.f32.mrf.mxu1  ;;  %v5675_v0 = vpop.f32.mrf.mxu0 }
 0x1e9   : > { %v3004_v18 = vadd.f32 %v5562_v46, %v6970_v24 }
 0x1ea   : > { %v5564_v19 = vpop.f32.mrf.mxu1  ;;  %v5676_v29 = vpop.f32.mrf.mxu0 }
 0x1eb   : > { %v7139_v25 = vadd.f32 %v5674_v12, %v3004_v18  ;;  %v5565_v27 = vadd.f32 %v5564_v19, %v5563_v55  ;;  %v5677_v28 = vadd.f32 %v5676_v29, %v5675_v0 }
 0x1ec   : > { %v5566_v32 = vpop.f32.mrf.mxu1  ;;  %v5678_v8 = vpop.f32.mrf.mxu0 }
 0x1ed   : > { %v3007_v58 = vadd.f32 %v5565_v27, %v6974_v35 }
 0x1ee   : > { %v5567_v36 = vpop.f32.mrf.mxu1  ;;  %v5679_v7 = vpop.f32.mrf.mxu0 }
 0x1ef   : > { %v7142_v39 = vadd.f32 %v5677_v28, %v3007_v58  ;;  %v5568_v41 = vadd.f32 %v5567_v36, %v5566_v32  ;;  %v5680_v13 = vadd.f32 %v5679_v7, %v5678_v8 }
 0x1f0   : > { %v5569_v45 = vpop.f32.mrf.mxu1  ;;  %v5681_v48 = vpop.f32.mrf.mxu0 }
 0x1f1   : > { %v3012_v24 = vadd.f32 %v5568_v41, %v6981_v50 }
 0x1f2   : > { %v5570_v6 = vpop.f32.mrf.mxu1  ;;  %v5682_v54 = vpop.f32.mrf.mxu0 }
 0x1f3   : > { %v7145_v5 = vadd.f32 %v5680_v13, %v3012_v24  ;;  %v5571_v56 = vadd.f32 %v5570_v6, %v5569_v45  ;;  %v5683_v57 = vadd.f32 %v5682_v54, %v5681_v48 }
 0x1f4   : > { %v5572_v22 = vpop.f32.mrf.mxu1  ;;  %v5684_v61 = vpop.f32.mrf.mxu0 }
 0x1f5   : > { %v3015_v35 = vadd.f32 %v5571_v56, %v6985_v2 }
 0x1f6   : > { %v5573_v47 = vpop.f32.mrf.mxu1  ;;  %v5685_v62 = vpop.f32.mrf.mxu0 }
 0x1f7   : > { %v7148_v14 = vadd.f32 %v5683_v57, %v3015_v35  ;;  %v5574_v33 = vadd.f32 %v5573_v47, %v5572_v22  ;;  %v5686_v3 = vadd.f32 %v5685_v62, %v5684_v61 }
 0x1f8   : > { %v5575_v46 = vpop.f32.mrf.mxu1  ;;  %v5687_v12 = vpop.f32.mrf.mxu0 }
 0x1f9   : > { %v3020_v50 = vadd.f32 %v5574_v33, %v6992_v16 }
 0x1fa   : > { %v5576_v55 = vpop.f32.mrf.mxu1  ;;  %v5688_v0 = vpop.f32.mrf.mxu0 }
 0x1fb   : > { %v7151_v18 = vadd.f32 %v5686_v3, %v3020_v50  ;;  %v5577_v19 = vadd.f32 %v5576_v55, %v5575_v46  ;;  %v5689_v29 = vadd.f32 %v5688_v0, %v5687_v12 }
 0x1fc   : > { %v5578_v27 = vpop.f32.mrf.mxu1  ;;  %v5690_v28 = vpop.f32.mrf.mxu0 }
 0x1fd   : > { %v3023_v2 = vadd.f32 %v5577_v19, %v6996_v44 }
 0x1fe   : > { %v5579_v32 = vpop.f32.mrf.mxu1  ;;  %v5691_v8 = vpop.f32.mrf.mxu0 }
 0x1ff   : > { %v7154_v58 = vadd.f32 %v5689_v29, %v3023_v2  ;;  %v5580_v36 = vadd.f32 %v5579_v32, %v5578_v27  ;;  %v5692_v7 = vadd.f32 %v5691_v8, %v5690_v28 }
 0x200   : > { %v5581_v41 = vpop.f32.mrf.mxu1  ;;  %v5693_v13 = vpop.f32.mrf.mxu0 }
 0x201   : > { %v3028_v16 = vadd.f32 %v5580_v36, %v7003_v37 }
 0x202   : > { %v5582_v45 = vpop.f32.mrf.mxu1  ;;  %v5694_v48 = vpop.f32.mrf.mxu0 }
 0x203   : > { %v7157_v24 = vadd.f32 %v5692_v7, %v3028_v16  ;;  %v5583_v6 = vadd.f32 %v5582_v45, %v5581_v41  ;;  %v5695_v54 = vadd.f32 %v5694_v48, %v5693_v13 }
 0x204   : > { %v5584_v56 = vpop.f32.mrf.mxu1  ;;  %v5696_v57 = vpop.f32.mrf.mxu0 }
 0x205   : > { %v3031_v44 = vadd.f32 %v5583_v6, %v7007_v15 }
 0x206   : > { %v5585_v22 = vpop.f32.mrf.mxu1  ;;  %v5697_v61 = vpop.f32.mrf.mxu0 }
 0x207   : > { %v7160_v35 = vadd.f32 %v5695_v54, %v3031_v44  ;;  %v5586_v47 = vadd.f32 %v5585_v22, %v5584_v56  ;;  %v5698_v62 = vadd.f32 %v5697_v61, %v5696_v57 }
 0x208   : > { %v5587_v33 = vpop.f32.mrf.mxu1  ;;  %v5699_v3 = vpop.f32.mrf.mxu0 }
 0x209   : > { %v3036_v37 = vadd.f32 %v5586_v47, %v7014_v59 }
 0x20a   : > { %v5588_v46 = vpop.f32.mrf.mxu1  ;;  %v5700_v12 = vpop.f32.mrf.mxu0 }
 0x20b   : > { %v7163_v50 = vadd.f32 %v5698_v62, %v3036_v37  ;;  %v5589_v55 = vadd.f32 %v5588_v46, %v5587_v33  ;;  %v5701_v0 = vadd.f32 %v5700_v12, %v5699_v3 }
 0x20c   : > { %v5590_v19 = vpop.f32.mrf.mxu1  ;;  %v5702_v29 = vpop.f32.mrf.mxu0 }
 0x20d   : > { %v3039_v15 = vadd.f32 %v5589_v55, %v7018_v17 }
 0x20e   : > { %v5591_v27 = vpop.f32.mrf.mxu1  ;;  %v5703_v28 = vpop.f32.mrf.mxu0 }
 0x20f   : > { %v7166_v2 = vadd.f32 %v5701_v0, %v3039_v15  ;;  %v5592_v32 = vadd.f32 %v5591_v27, %v5590_v19  ;;  %v5704_v8 = vadd.f32 %v5703_v28, %v5702_v29 }
 0x210   : > { %v5593_v36 = vpop.f32.mrf.mxu1  ;;  %v5705_v7 = vpop.f32.mrf.mxu0 }
 0x211   : > { %v3044_v59 = vadd.f32 %v5592_v32, %v7025_v20 }
 0x212   : > { %v5594_v41 = vpop.f32.mrf.mxu1  ;;  %v5706_v13 = vpop.f32.mrf.mxu0 }
 0x213   : > { %v7169_v16 = vadd.f32 %v5704_v8, %v3044_v59  ;;  %v5595_v45 = vadd.f32 %v5594_v41, %v5593_v36  ;;  %v5707_v48 = vadd.f32 %v5706_v13, %v5705_v7 }
 0x214   : > { %v5596_v6 = vpop.f32.mrf.mxu1  ;;  %v5708_v54 = vpop.f32.mrf.mxu0 }
 0x215   : > { %v3047_v17 = vadd.f32 %v5595_v45, %v7029_v38 }
 0x216   : > { %v5597_v56 = vpop.f32.mrf.mxu1  ;;  %v5709_v57 = vpop.f32.mrf.mxu0 }
 0x217   : > { %v7172_v44 = vadd.f32 %v5707_v48, %v3047_v17  ;;  %v5598_v22 = vadd.f32 %v5597_v56, %v5596_v6  ;;  %v5710_v61 = vadd.f32 %v5709_v57, %v5708_v54 }
 0x218   : > { %v5599_v47 = vpop.f32.mrf.mxu1  ;;  %v5711_v62 = vpop.f32.mrf.mxu0 }
 0x219   : > { %v3052_v20 = vadd.f32 %v5598_v22, %v7036_v42 }
 0x21a   : > { %v5600_v33 = vpop.f32.mrf.mxu1  ;;  %v5712_v3 = vpop.f32.mrf.mxu0 }
 0x21b   : > { %v7175_v37 = vadd.f32 %v5710_v61, %v3052_v20  ;;  %v5601_v46 = vadd.f32 %v5600_v33, %v5599_v47  ;;  %v5713_v12 = vadd.f32 %v5712_v3, %v5711_v62 }
 0x21c   : > { %v5602_v55 = vpop.f32.mrf.mxu1  ;;  %v5714_v0 = vpop.f32.mrf.mxu0 }
 0x21d   : > { %v3055_v38 = vadd.f32 %v5601_v46, %v7040_v60 }
 0x21e   : > { %v5603_v19 = vpop.f32.mrf.mxu1  ;;  %v5715_v29 = vpop.f32.mrf.mxu0 }
 0x21f   : > { %v7178_v15 = vadd.f32 %v5713_v12, %v3055_v38  ;;  %v5604_v27 = vadd.f32 %v5603_v19, %v5602_v55  ;;  %v5716_v28 = vadd.f32 %v5715_v29, %v5714_v0 }
 0x220   : > { %v5605_v32 = vpop.f32.mrf.mxu1  ;;  %v5717_v8 = vpop.f32.mrf.mxu0 }
 0x221   : > { %v3060_v42 = vadd.f32 %v5604_v27, %v7047_v63 }
 0x222   : > { %v5606_v36 = vpop.f32.mrf.mxu1  ;;  %v5718_v7 = vpop.f32.mrf.mxu0 }
 0x223   : > { %v7181_v59 = vadd.f32 %v5716_v28, %v3060_v42  ;;  %v5607_v41 = vadd.f32 %v5606_v36, %v5605_v32  ;;  %v5719_v13 = vadd.f32 %v5718_v7, %v5717_v8 }
 0x224   : > { %v5608_v45 = vpop.f32.mrf.mxu1  ;;  %v5720_v48 = vpop.f32.mrf.mxu0 }
 0x225   : > { %v3063_v60 = vadd.f32 %v5607_v41, %v7051_v21 }
 0x226   : > { %v5609_v6 = vpop.f32.mrf.mxu1  ;;  %v5721_v54 = vpop.f32.mrf.mxu0 }
 0x227   : > { %v7184_v17 = vadd.f32 %v5719_v13, %v3063_v60  ;;  %v5610_v56 = vadd.f32 %v5609_v6, %v5608_v45  ;;  %v5722_v57 = vadd.f32 %v5721_v54, %v5720_v48 }
 0x228   : > { %v5611_v22 = vpop.f32.mrf.mxu1  ;;  %v5723_v61 = vpop.f32.mrf.mxu0 }
 0x229   : > { %v3068_v63 = vadd.f32 %v5610_v56, %v7058_v23 }
 0x22a   : > { %v5612_v47 = vpop.f32.mrf.mxu1  ;;  %v5724_v62 = vpop.f32.mrf.mxu0 }
 0x22b   : > { %v7187_v20 = vadd.f32 %v5722_v57, %v3068_v63  ;;  %v5613_v33 = vadd.f32 %v5612_v47, %v5611_v22  ;;  %v5725_v3 = vadd.f32 %v5724_v62, %v5723_v61 }
 0x22c   : > { %v5742_v46 = vpop.f32.mrf.mxu1  ;;  %v3430_v12 = vpop.f32.mrf.mxu0 }
 0x22d   : > { %v3071_v21 = vadd.f32 %v5613_v33, %v7062_v43 }
 0x22e   : > { %v5743_v55 = vpop.f32.mrf.mxu1  ;;  %v3432_v0 = vpop.f32.mrf.mxu0 }
 0x22f   : > { %v7190_v38 = vadd.f32 %v5725_v3, %v3071_v21  ;;  %v5744_v19 = vadd.f32 %v5743_v55, %v5742_v46 }
 0x230   : > { %v5745_v29 = vpop.f32.mrf.mxu1  ;;  %v3433_v27 = vpop.f32.mrf.mxu0 }
 0x231   : > { %v3270_v23 = vadd.f32 %v5744_v19, %v7069_v49 }
 0x232   : > { %v5746_v28 = vpop.f32.mrf.mxu1  ;;  %v3435_v32 = vpop.f32.mrf.mxu0 }
 0x233   : > { %v3431_v8 = vadd.f32 %v3430_v12, %v3270_v23  ;;  %v5747_v42 = vadd.f32 %v5746_v28, %v5745_v29 }
 0x234   : > { %v5748_v36 = vpop.f32.mrf.mxu1  ;;  %v3438_v7 = vpop.f32.mrf.mxu0 }
 0x235   : > { %3559 = vst [vmem:[%s7194_s30] sm:$0xff] %v3431_v8  ;;  %v3273_v43 = vadd.f32 %v5747_v42, %v7073_v30 }
 0x236   : > { %v5749_v41 = vpop.f32.mrf.mxu1  ;;  %v3440_v13 = vpop.f32.mrf.mxu0 }
 0x237   : > { %v3434_v45 = vadd.f32 %v3433_v27, %v3273_v43  ;;  %v5750_v48 = vadd.f32 %v5749_v41, %v5748_v36 }
 0x238   : > { %v5751_v60 = vpop.f32.mrf.mxu1  ;;  %v3441_v49 = vpop.f32.mrf.mxu0 }
 0x239   : > { %3560 = vst [vmem:[%s7194_s30 + $0x8] sm:$0xff] %v3434_v45  ;;  %v3278_v6 = vadd.f32 %v5750_v48, %v7080_v31 }
 0x23a   : > { %v5752_v54 = vpop.f32.mrf.mxu1  ;;  %v3443_v56 = vpop.f32.mrf.mxu0 }
 0x23b   : > { %v3439_v57 = vadd.f32 %v3438_v7, %v3278_v6  ;;  %v5753_v22 = vadd.f32 %v5752_v54, %v5751_v60 }
 0x23c   : > { %v5754_v61 = vpop.f32.mrf.mxu1  ;;  %v3446_v63 = vpop.f32.mrf.mxu0 }
 0x23d   : > { %3561 = vst [vmem:[%s7194_s30 + $0x10] sm:$0xff] %v3439_v57  ;;  %v3281_v30 = vadd.f32 %v5753_v22, %v7084_v52 }
 0x23e   : > { %v5755_v47 = vpop.f32.mrf.mxu1  ;;  %v3448_v62 = vpop.f32.mrf.mxu0 }
 0x23f   : > { %v3442_v33 = vadd.f32 %v3441_v49, %v3281_v30  ;;  %v5756_v3 = vadd.f32 %v5755_v47, %v5754_v61 }
 0x240   : > { %v5757_v46 = vpop.f32.mrf.mxu1  ;;  %v3449_v12 = vpop.f32.mrf.mxu0 }
 0x241   : > { %3562 = vst [vmem:[%s7194_s30 + $0x18] sm:$0xff] %v3442_v33  ;;  %v3286_v31 = vadd.f32 %v5756_v3, %v7091_v1 }
 0x242   : > { %v5758_v21 = vpop.f32.mrf.mxu1  ;;  %v3451_v55 = vpop.f32.mrf.mxu0 }
 0x243   : > { %v3447_v0 = vadd.f32 %v3446_v63, %v3286_v31  ;;  %v5759_v19 = vadd.f32 %v5758_v21, %v5757_v46 }
 0x244   : > { %v5760_v29 = vpop.f32.mrf.mxu1  ;;  %v3454_v27 = vpop.f32.mrf.mxu0 }
 0x245   : > { %3563 = vst [vmem:[%s7194_s30 + $0x20] sm:$0xff] %v3447_v0  ;;  %v3289_v52 = vadd.f32 %v5759_v19, %v7095_v9 }
 0x246   : > { %v5761_v23 = vpop.f32.mrf.mxu1  ;;  %v3456_v28 = vpop.f32.mrf.mxu0 }
 0x247   : > { %v3450_v32 = vadd.f32 %v3449_v12, %v3289_v52  ;;  %v5762_v8 = vadd.f32 %v5761_v23, %v5760_v29 }
 0x248   : > { %v5763_v42 = vpop.f32.mrf.mxu1  ;;  %v3457_v36 = vpop.f32.mrf.mxu0 }
 0x249   : > { %3564 = vst [vmem:[%s7194_s30 + $0x28] sm:$0xff] %v3450_v32  ;;  %v3294_v1 = vadd.f32 %v5762_v8, %v7102_v40 }
 0x24a   : > { %v5764_v7 = vpop.f32.mrf.mxu1  ;;  %v3459_v43 = vpop.f32.mrf.mxu0 }
 0x24b   : > { %v3455_v41 = vadd.f32 %v3454_v27, %v3294_v1  ;;  %v5765_v13 = vadd.f32 %v5764_v7, %v5763_v42 }
 0x24c   : > { %v5766_v45 = vpop.f32.mrf.mxu1  ;;  %v3462_v48 = vpop.f32.mrf.mxu0 }
 0x24d   : > { %3565 = vst [vmem:[%s7194_s30 + $0x30] sm:$0xff] %v3455_v41  ;;  %v3297_v9 = vadd.f32 %v5765_v13, %v7106_v34 }
 0x24e   : > { %v5767_v60 = vpop.f32.mrf.mxu1  ;;  %v3464_v49 = vpop.f32.mrf.mxu0 }
 0x24f   : > { %v3458_v6 = vadd.f32 %v3457_v36, %v3297_v9  ;;  %v5768_v54 = vadd.f32 %v5767_v60, %v5766_v45 }
 0x250   : > { %v5769_v56 = vpop.f32.mrf.mxu1  ;;  %v3465_v57 = vpop.f32.mrf.mxu0 }
 0x251   : > { %3566 = vst [vmem:[%s7194_s30 + $0x38] sm:$0xff] %v3458_v6  ;;  %v3302_v40 = vadd.f32 %v5768_v54, %v7113_v11 }
 0x252   : > { %v5770_v22 = vpop.f32.mrf.mxu1  ;;  %v3467_v61 = vpop.f32.mrf.mxu0 }
 0x253   : > { %v3463_v63 = vadd.f32 %v3462_v48, %v3302_v40  ;;  %v5771_v30 = vadd.f32 %v5770_v22, %v5769_v56 }
 0x254   : > { %v5772_v47 = vpop.f32.mrf.mxu1  ;;  %v3470_v62 = vpop.f32.mrf.mxu0 }
 0x255   : > { %3567 = vst [vmem:[%s7194_s30 + $0x40] sm:$0xff] %v3463_v63  ;;  %v3305_v34 = vadd.f32 %v5771_v30, %v7117_v4 }
 0x256   : > { %v5773_v33 = vpop.f32.mrf.mxu1  ;;  %v3472_v3 = vpop.f32.mrf.mxu0 }
 0x257   : > { %v3466_v46 = vadd.f32 %v3465_v57, %v3305_v34  ;;  %v5774_v12 = vadd.f32 %v5773_v33, %v5772_v47 }
 0x258   : > { %v5775_v31 = vpop.f32.mrf.mxu1  ;;  %v3473_v21 = vpop.f32.mrf.mxu0 }
 0x259   : > { %3568 = vst [vmem:[%s7194_s30 + $0x48] sm:$0xff] %v3466_v46  ;;  %v3310_v11 = vadd.f32 %v5774_v12, %v7124_v53 }
 0x25a   : > { %v5776_v55 = vpop.f32.mrf.mxu1  ;;  %v3475_v0 = vpop.f32.mrf.mxu0 }
 0x25b   : > { %v3471_v19 = vadd.f32 %v3470_v62, %v3310_v11  ;;  %v5777_v29 = vadd.f32 %v5776_v55, %v5775_v31 }
 0x25c   : > { %v5778_v27 = vpop.f32.mrf.mxu1  ;;  %v3478_v52 = vpop.f32.mrf.mxu0 }
 0x25d   : > { %3569 = vst [vmem:[%s7194_s30 + $0x50] sm:$0xff] %v3471_v19  ;;  %v3313_v4 = vadd.f32 %v5777_v29, %v7128_v26 }
 0x25e   : > { %v5779_v23 = vpop.f32.mrf.mxu1  ;;  %v3480_v28 = vpop.f32.mrf.mxu0 }
 0x25f   : > { %v3474_v32 = vadd.f32 %v3473_v21, %v3313_v4  ;;  %v5780_v8 = vadd.f32 %v5779_v23, %v5778_v27 }
 0x260   : > { %v5781_v42 = vpop.f32.mrf.mxu1  ;;  %v3481_v36 = vpop.f32.mrf.mxu0 }
 0x261   : > { %3570 = vst [vmem:[%s7194_s30 + $0x58] sm:$0xff] %v3474_v32  ;;  %v3318_v53 = vadd.f32 %v5780_v8, %v7133_v51 }
 0x262   : > { %v5782_v1 = vpop.f32.mrf.mxu1  ;;  %v3483_v7 = vpop.f32.mrf.mxu0 }
 0x263   : > { %v3479_v43 = vadd.f32 %v3478_v52, %v3318_v53  ;;  %v5783_v41 = vadd.f32 %v5782_v1, %v5781_v42 }
 0x264   : > { %v5784_v13 = vpop.f32.mrf.mxu1  ;;  %v3486_v45 = vpop.f32.mrf.mxu0 }
 0x265   : > { %3571 = vst [vmem:[%s7194_s30 + $0x60] sm:$0xff] %v3479_v43  ;;  %v3321_v26 = vadd.f32 %v5783_v41, %v7136_v10 }
 0x266   : > { %v5785_v48 = vpop.f32.mrf.mxu1  ;;  %v3488_v9 = vpop.f32.mrf.mxu0 }
 0x267   : > { %v3482_v60 = vadd.f32 %v3481_v36, %v3321_v26  ;;  %v5786_v49 = vadd.f32 %v5785_v48, %v5784_v13 }
 0x268   : > { %v5787_v6 = vpop.f32.mrf.mxu1  ;;  %v3489_v54 = vpop.f32.mrf.mxu0 }
 0x269   : > { %3572 = vst [vmem:[%s7194_s30 + $0x68] sm:$0xff] %v3482_v60  ;;  %v3326_v51 = vadd.f32 %v5786_v49, %v7139_v25 }
 0x26a   : > { %v5788_v56 = vpop.f32.mrf.mxu1  ;;  %v3491_v57 = vpop.f32.mrf.mxu0 }
 0x26b   : > { %v3487_v40 = vadd.f32 %v3486_v45, %v3326_v51  ;;  %v5789_v22 = vadd.f32 %v5788_v56, %v5787_v6 }
 0x26c   : > { %v5790_v61 = vpop.f32.mrf.mxu1  ;;  %v3494_v63 = vpop.f32.mrf.mxu0 }
 0x26d   : > { %3573 = vst [vmem:[%s7194_s30 + $0x70] sm:$0xff] %v3487_v40  ;;  %v3329_v10 = vadd.f32 %v5789_v22, %v7142_v39 }
 0x26e   : > { %v5791_v30 = vpop.f32.mrf.mxu1  ;;  %v3496_v47 = vpop.f32.mrf.mxu0 }
 0x26f   : > { %v3490_v62 = vadd.f32 %v3489_v54, %v3329_v10  ;;  %v5792_v34 = vadd.f32 %v5791_v30, %v5790_v61 }
 0x270   : > { %v5793_v33 = vpop.f32.mrf.mxu1  ;;  %v3497_v3 = vpop.f32.mrf.mxu0 }
 0x271   : > { %3574 = vst [vmem:[%s7194_s30 + $0x78] sm:$0xff] %v3490_v62  ;;  %v3334_v25 = vadd.f32 %v5792_v34, %v7145_v5 }
 0x272   : > { %v5794_v46 = vpop.f32.mrf.mxu1  ;;  %v3499_v12 = vpop.f32.mrf.mxu0 }
 0x273   : > { %v3495_v31 = vadd.f32 %v3494_v63, %v3334_v25  ;;  %v5795_v21 = vadd.f32 %v5794_v46, %v5793_v33 }
 0x274   : > { %v5796_v11 = vpop.f32.mrf.mxu1  ;;  %v3502_v55 = vpop.f32.mrf.mxu0 }
 0x275   : > { %3575 = vst [vmem:[%s7194_s30 + $0x80] sm:$0xff] %v3495_v31  ;;  %v3337_v39 = vadd.f32 %v5795_v21, %v7148_v14 }
 0x276   : > { %v5797_v0 = vpop.f32.mrf.mxu1  ;;  %v3504_v19 = vpop.f32.mrf.mxu0 }
 0x277   : > { %v3498_v29 = vadd.f32 %v3497_v3, %v3337_v39  ;;  %v5798_v27 = vadd.f32 %v5797_v0, %v5796_v11 }
 0x278   : > { %v5799_v52 = vpop.f32.mrf.mxu1  ;;  %v3505_v4 = vpop.f32.mrf.mxu0 }
 0x279   : > { %3576 = vst [vmem:[%s7194_s30 + $0x88] sm:$0xff] %v3498_v29  ;;  %v3342_v5 = vadd.f32 %v5798_v27, %v7151_v18 }
 0x27a   : > { %v5800_v23 = vpop.f32.mrf.mxu1  ;;  %v3507_v28 = vpop.f32.mrf.mxu0 }
 0x27b   : > { %v3503_v32 = vadd.f32 %v3502_v55, %v3342_v5  ;;  %v5801_v8 = vadd.f32 %v5800_v23, %v5799_v52 }
 0x27c   : > { %v5802_v42 = vpop.f32.mrf.mxu1  ;;  %v3510_v36 = vpop.f32.mrf.mxu0 }
 0x27d   : > { %3577 = vst [vmem:[%s7194_s30 + $0x90] sm:$0xff] %v3503_v32  ;;  %v3345_v14 = vadd.f32 %v5801_v8, %v7154_v58 }
 0x27e   : > { %v5803_v53 = vpop.f32.mrf.mxu1  ;;  %v3512_v1 = vpop.f32.mrf.mxu0 }
 0x27f   : > { %v3506_v7 = vadd.f32 %v3505_v4, %v3345_v14  ;;  %v5804_v43 = vadd.f32 %v5803_v53, %v5802_v42 }
 0x280   : > { %v5805_v41 = vpop.f32.mrf.mxu1  ;;  %v3513_v13 = vpop.f32.mrf.mxu0 }
 0x281   : > { %3578 = vst [vmem:[%s7194_s30 + $0x98] sm:$0xff] %v3506_v7  ;;  %v3350_v18 = vadd.f32 %v5804_v43, %v7157_v24 }
 0x282   : > { %v5806_v45 = vpop.f32.mrf.mxu1  ;;  %v3515_v26 = vpop.f32.mrf.mxu0 }
 0x283   : > { %v3511_v48 = vadd.f32 %v3510_v36, %v3350_v18  ;;  %v5807_v9 = vadd.f32 %v5806_v45, %v5805_v41 }
 0x284   : > { %v5808_v60 = vpop.f32.mrf.mxu1  ;;  %v3518_v49 = vpop.f32.mrf.mxu0 }
 0x285   : > { %3579 = vst [vmem:[%s7194_s30 + $0xa0] sm:$0xff] %v3511_v48  ;;  %v3353_v58 = vadd.f32 %v5807_v9, %v7160_v35 }
 0x286   : > { %v5809_v6 = vpop.f32.mrf.mxu1  ;;  %v3520_v54 = vpop.f32.mrf.mxu0 }
 0x287   : > { %v3514_v51 = vadd.f32 %v3513_v13, %v3353_v58  ;;  %v5810_v56 = vadd.f32 %v5809_v6, %v5808_v60 }
 0x288   : > { %v5811_v57 = vpop.f32.mrf.mxu1  ;;  %v3521_v40 = vpop.f32.mrf.mxu0 }
 0x289   : > { %3580 = vst [vmem:[%s7194_s30 + $0xa8] sm:$0xff] %v3514_v51  ;;  %v3358_v24 = vadd.f32 %v5810_v56, %v7163_v50 }
 0x28a   : > { %v5812_v22 = vpop.f32.mrf.mxu1  ;;  %v3523_v61 = vpop.f32.mrf.mxu0 }
 0x28b   : > { %v3519_v63 = vadd.f32 %v3518_v49, %v3358_v24  ;;  %v5813_v10 = vadd.f32 %v5812_v22, %v5811_v57 }
 0x28c   : > { %v5814_v30 = vpop.f32.mrf.mxu1  ;;  %v3526_v47 = vpop.f32.mrf.mxu0 }
 0x28d   : > { %3581 = vst [vmem:[%s7194_s30 + $0xb0] sm:$0xff] %v3519_v63  ;;  %v3361_v35 = vadd.f32 %v5813_v10, %v7166_v2 }
 0x28e   : > { %v5815_v62 = vpop.f32.mrf.mxu1  ;;  %v3528_v34 = vpop.f32.mrf.mxu0 }
 0x28f   : > { %v3522_v33 = vadd.f32 %v3521_v40, %v3361_v35  ;;  %v5816_v3 = vadd.f32 %v5815_v62, %v5814_v30 }
 0x290   : > { %v5817_v25 = vpop.f32.mrf.mxu1  ;;  %v3529_v46 = vpop.f32.mrf.mxu0 }
 0x291   : > { %3582 = vst [vmem:[%s7194_s30 + $0xb8] sm:$0xff] %v3522_v33  ;;  %v3366_v50 = vadd.f32 %v5816_v3, %v7169_v16 }
 0x292   : > { %v5818_v12 = vpop.f32.mrf.mxu1  ;;  %v3531_v31 = vpop.f32.mrf.mxu0 }
 0x293   : > { %v3527_v21 = vadd.f32 %v3526_v47, %v3366_v50  ;;  %v5819_v11 = vadd.f32 %v5818_v12, %v5817_v25 }
 0x294   : > { %v5820_v55 = vpop.f32.mrf.mxu1  ;;  %v3534_v39 = vpop.f32.mrf.mxu0 }
 0x295   : > { %3583 = vst [vmem:[%s7194_s30 + $0xc0] sm:$0xff] %v3527_v21  ;;  %v3369_v2 = vadd.f32 %v5819_v11, %v7172_v44 }
 0x296   : > { %v5821_v0 = vpop.f32.mrf.mxu1  ;;  %v3536_v19 = vpop.f32.mrf.mxu0 }
 0x297   : > { %v3530_v29 = vadd.f32 %v3529_v46, %v3369_v2  ;;  %v5822_v27 = vadd.f32 %v5821_v0, %v5820_v55 }
 0x298   : > { %v5823_v52 = vpop.f32.mrf.mxu1  ;;  %v3537_v4 = vpop.f32.mrf.mxu0 }
 0x299   : > { %3584 = vst [vmem:[%s7194_s30 + $0xc8] sm:$0xff] %v3530_v29  ;;  %v3374_v16 = vadd.f32 %v5822_v27, %v7175_v37 }
 0x29a   : > { %v5824_v5 = vpop.f32.mrf.mxu1  ;;  %v3539_v23 = vpop.f32.mrf.mxu0 }
 0x29b   : > { %v3535_v28 = vadd.f32 %v3534_v39, %v3374_v16  ;;  %v5825_v32 = vadd.f32 %v5824_v5, %v5823_v52 }
 0x29c   : > { %v5826_v8 = vpop.f32.mrf.mxu1  ;;  %v3542_v42 = vpop.f32.mrf.mxu0 }
 0x29d   : > { %3585 = vst [vmem:[%s7194_s30 + $0xd0] sm:$0xff] %v3535_v28  ;;  %v3377_v44 = vadd.f32 %v5825_v32, %v7178_v15 }
 0x29e   : > { %v5827_v36 = vpop.f32.mrf.mxu1  ;;  %v3544_v14 = vpop.f32.mrf.mxu0 }
 0x29f   : > { %v3538_v53 = vadd.f32 %v3537_v4, %v3377_v44  ;;  %v5828_v1 = vadd.f32 %v5827_v36, %v5826_v8 }
 0x2a0   : > { %v5829_v7 = vpop.f32.mrf.mxu1  ;;  %v3545_v43 = vpop.f32.mrf.mxu0 }
 0x2a1   : > { %3586 = vst [vmem:[%s7194_s30 + $0xd8] sm:$0xff] %v3538_v53  ;;  %v3382_v37 = vadd.f32 %v5828_v1, %v7181_v59 }
 0x2a2   : > { %v5830_v41 = vpop.f32.mrf.mxu1  ;;  %v3547_v13 = vpop.f32.mrf.mxu0 }
 0x2a3   : > { %v3543_v18 = vadd.f32 %v3542_v42, %v3382_v37  ;;  %v5831_v45 = vadd.f32 %v5830_v41, %v5829_v7 }
 0x2a4   : > { %v5832_v26 = vpop.f32.mrf.mxu1  ;;  %v3550_v48 = vpop.f32.mrf.mxu0 }
 0x2a5   : > { %3587 = vst [vmem:[%s7194_s30 + $0xe0] sm:$0xff] %v3543_v18  ;;  %v3385_v15 = vadd.f32 %v5831_v45, %v7184_v17 }
 0x2a6   : > { %v5833_v9 = vpop.f32.mrf.mxu1  ;;  %v3552_v60 = vpop.f32.mrf.mxu0 }
 0x2a7   : > { %v3546_v49 = vadd.f32 %v3545_v43, %v3385_v15  ;;  %v5834_v58 = vadd.f32 %v5833_v9, %v5832_v26 }
 0x2a8   : > { %v5835_v6 = vpop.f32.mrf.mxu1  ;;  %v3553_v54 = vpop.f32.mrf.mxu0 }
 0x2a9   : > { %3588 = vst [vmem:[%s7194_s30 + $0xe8] sm:$0xff] %v3546_v49  ;;  %v3390_v59 = vadd.f32 %v5834_v58, %v7187_v20 }
 0x2aa   : > { %v5836_v51 = vpop.f32.mrf.mxu1  ;;  %v3555_v56 = vpop.f32.mrf.mxu0 }
 0x2ab   : > { %v3551_v57 = vadd.f32 %v3550_v48, %v3390_v59  ;;  %v5837_v40 = vadd.f32 %v5836_v51, %v5835_v6 }
 0x2ad   : > { %3589 = vst [vmem:[%s7194_s30 + $0xf0] sm:$0xff] %v3551_v57  ;;  %v3393_v24 = vadd.f32 %v5837_v40, %v7190_v38  ;;  %3594 = sbr.rel (%p4844_p4) target bundleno = 1063 (0x427), region = 40 }
 0x2af   : > { %v3554_v22 = vadd.f32 %v3553_v54, %v3393_v24 }
 0x2b1   : > { %3590 = vst [vmem:[%s7194_s30 + $0xf8] sm:$0xff] %v3554_v22 }
 0x2b8   : > { %v7260_v17 = vld [vmem:[#allocation2] sm:$0xff]  ;;  %v7262_v61 = vld [vmem:[#allocation2 + $0x8] sm:$0xff]  ;;  %v7264_v63 = vld [vmem:[#allocation2 + $0x10] sm:$0xff] }
 0x2b9   : > { %7928 = vst [vmem:[#allocation3_spill] sm:$0xff] %v7260_v17  ;;  %7929 = vst [vmem:[#allocation4_spill] sm:$0xff] %v7262_v61  ;;  %v3659_v20 = vadd.f32 %v7262_v61, %v7260_v17  ;;  %v7268_v10 = vld [vmem:[#allocation2 + $0x18] sm:$0xff]  ;;  %v7271_v47 = vld [vmem:[#allocation2 + $0x20] sm:$0xff] }
 0x2ba   : > { %7930 = vst [vmem:[#allocation5_spill] sm:$0xff] %v7264_v63  ;;  %7931 = vst [vmem:[#allocation6_spill] sm:$0xff] %v7268_v10  ;;  %v7274_v35 = vld [vmem:[#allocation2 + $0x28] sm:$0xff]  ;;  %v7277_v34 = vld [vmem:[#allocation2 + $0x30] sm:$0xff] }
 0x2bb   : > { %v3660_v30 = vadd.f32 %v3659_v20, %v7264_v63  ;;  %7932 = vst [vmem:[#allocation7_spill] sm:$0xff] %v7271_v47  ;;  %7933 = vst [vmem:[#allocation8_spill] sm:$0xff] %v7274_v35  ;;  %v7280_v3 = vld [vmem:[#allocation2 + $0x38] sm:$0xff]  ;;  %v7283_v46 = vld [vmem:[#allocation2 + $0x40] sm:$0xff] }
 0x2bc   : > { %v7286_v12 = vld [vmem:[#allocation2 + $0x48] sm:$0xff]  ;;  %v7289_v21 = vld [vmem:[#allocation2 + $0x50] sm:$0xff]  ;;  %v7292_v55 = vld [vmem:[#allocation2 + $0x58] sm:$0xff] }
 0x2bd   : > { %v3661_v38 = vadd.f32 %v3660_v30, %v7268_v10  ;;  %v7295_v2 = vld [vmem:[#allocation2 + $0x60] sm:$0xff]  ;;  %v7298_v19 = vld [vmem:[#allocation2 + $0x68] sm:$0xff]  ;;  %v7301_v27 = vld [vmem:[#allocation2 + $0x70] sm:$0xff] }
 0x2be   : > { %v7304_v4 = vld [vmem:[#allocation2 + $0x78] sm:$0xff]  ;;  %v7307_v5 = vld [vmem:[#allocation2 + $0x80] sm:$0xff]  ;;  %v7310_v28 = vld [vmem:[#allocation2 + $0x88] sm:$0xff] }
 0x2bf   : > { %v3662_v62 = vadd.f32 %v3661_v38, %v7271_v47  ;;  %v7313_v8 = vld [vmem:[#allocation2 + $0x90] sm:$0xff]  ;;  %v7316_v44 = vld [vmem:[#allocation2 + $0x98] sm:$0xff]  ;;  %v7319_v14 = vld [vmem:[#allocation2 + $0xa0] sm:$0xff] }
 0x2c0   : > { %v7322_v1 = vld [vmem:[#allocation2 + $0xa8] sm:$0xff]  ;;  %v7325_v43 = vld [vmem:[#allocation2 + $0xb0] sm:$0xff]  ;;  %v7328_v41 = vld [vmem:[#allocation2 + $0xb8] sm:$0xff] }
 0x2c1   : > { %v3663_v33 = vadd.f32 %v3662_v62, %v7274_v35  ;;  %v7331_v18 = vld [vmem:[#allocation2 + $0xc0] sm:$0xff]  ;;  %v7334_v26 = vld [vmem:[#allocation2 + $0xc8] sm:$0xff]  ;;  %v7337_v15 = vld [vmem:[#allocation2 + $0xd0] sm:$0xff] }
 0x2c2   : > { %v7340_v60 = vld [vmem:[#allocation2 + $0xd8] sm:$0xff]  ;;  %v7343_v58 = vld [vmem:[#allocation2 + $0xe0] sm:$0xff]  ;;  %v7346_v54 = vld [vmem:[#allocation2 + $0xe8] sm:$0xff] }
 0x2c3   : > { %v3664_v25 = vadd.f32 %v3663_v33, %v7277_v34  ;;  %v7349_v51 = vld [vmem:[#allocation2 + $0xf0] sm:$0xff]  ;;  %v7352_v57 = vld [vmem:[#allocation2 + $0xf8] sm:$0xff]  ;;  %v7355_v24 = vld [vmem:[#allocation2 + $0x100] sm:$0xff] }
 0x2c4   : > { %v7358_v20 = vld [vmem:[#allocation2 + $0x108] sm:$0xff]  ;;  %v7361_v38 = vld [vmem:[#allocation2 + $0x110] sm:$0xff]  ;;  %v7364_v33 = vld [vmem:[#allocation2 + $0x118] sm:$0xff] }
 0x2c5   : > { %v3665_v50 = vadd.f32 %v3664_v25, %v7280_v3 }
 0x2c7   : > { %v3666_v31 = vadd.f32 %v3665_v50, %v7283_v46  ;;  %v7367_v50 = vld [vmem:[#allocation2 + $0x120] sm:$0xff] }
 0x2c9   : > { %v3667_v11 = vadd.f32 %v3666_v31, %v7286_v12 }
 0x2cb   : > { %v3668_v39 = vadd.f32 %v3667_v11, %v7289_v21  ;;  %v7370_v11 = vld [vmem:[#allocation2 + $0x128] sm:$0xff] }
 0x2cd   : > { %v3669_v0 = vadd.f32 %v3668_v39, %v7292_v55 }
 0x2cf   : > { %v3670_v29 = vadd.f32 %v3669_v0, %v7295_v2  ;;  %v7373_v0 = vld [vmem:[#allocation2 + $0x130] sm:$0xff] }
 0x2d1   : > { %v3671_v52 = vadd.f32 %v3670_v29, %v7298_v19 }
 0x2d3   : > { %v3672_v16 = vadd.f32 %v3671_v52, %v7301_v27  ;;  %v7376_v52 = vld [vmem:[#allocation2 + $0x138] sm:$0xff] }
 0x2d5   : > { %v3673_v23 = vadd.f32 %v3672_v16, %v7304_v4 }
 0x2d7   : > { %v3674_v32 = vadd.f32 %v3673_v23, %v7307_v5  ;;  %v7379_v23 = vld [vmem:[#allocation2 + $0x140] sm:$0xff] }
 0x2d9   : > { %v3675_v42 = vadd.f32 %v3674_v32, %v7310_v28 }
 0x2db   : > { %v3676_v36 = vadd.f32 %v3675_v42, %v7313_v8  ;;  %v7382_v42 = vld [vmem:[#allocation2 + $0x148] sm:$0xff] }
 0x2dd   : > { %v3677_v53 = vadd.f32 %v3676_v36, %v7316_v44 }
 0x2df   : > { %v3678_v7 = vadd.f32 %v3677_v53, %v7319_v14  ;;  %v7385_v53 = vld [vmem:[#allocation2 + $0x150] sm:$0xff] }
 0x2e1   : > { %v3679_v37 = vadd.f32 %v3678_v7, %v7322_v1 }
 0x2e3   : > { %v3680_v13 = vadd.f32 %v3679_v37, %v7325_v43  ;;  %v7388_v37 = vld [vmem:[#allocation2 + $0x158] sm:$0xff] }
 0x2e5   : > { %v3681_v45 = vadd.f32 %v3680_v13, %v7328_v41 }
 0x2e7   : > { %v3682_v48 = vadd.f32 %v3681_v45, %v7331_v18  ;;  %v7391_v45 = vld [vmem:[#allocation2 + $0x160] sm:$0xff] }
 0x2e8   : > { %7934 = vst [vmem:[#allocation9_spill] sm:$0xff] %v7391_v45 }
 0x2e9   : > { %v3683_v9 = vadd.f32 %v3682_v48, %v7334_v26 }
 0x2eb   : > { %v3684_v49 = vadd.f32 %v3683_v9, %v7337_v15  ;;  %v7394_v9 = vld [vmem:[#allocation2 + $0x168] sm:$0xff] }
 0x2ec   : > { %7935 = vst [vmem:[#allocation10_spill] sm:$0xff] %v7394_v9 }
 0x2ed   : > { %v3685_v6 = vadd.f32 %v3684_v49, %v7340_v60 }
 0x2ef   : > { %v3686_v59 = vadd.f32 %v3685_v6, %v7343_v58  ;;  %v7397_v6 = vld [vmem:[#allocation2 + $0x170] sm:$0xff] }
 0x2f0   : > { %7936 = vst [vmem:[#allocation11_spill] sm:$0xff] %v7397_v6 }
 0x2f1   : > { %v3687_v56 = vadd.f32 %v3686_v59, %v7346_v54 }
 0x2f3   : > { %v3688_v40 = vadd.f32 %v3687_v56, %v7349_v51  ;;  %v7400_v56 = vld [vmem:[#allocation2 + $0x178] sm:$0xff] }
 0x2f4   : > { %7937 = vst [vmem:[#allocation12_spill] sm:$0xff] %v7400_v56 }
 0x2f5   : > { %v3689_v22 = vadd.f32 %v3688_v40, %v7352_v57 }
 0x2f7   : > { %v3690_v30 = vadd.f32 %v3689_v22, %v7355_v24  ;;  %v7403_v22 = vld [vmem:[#allocation2 + $0x180] sm:$0xff] }
 0x2f8   : > { %7938 = vst [vmem:[#allocation13_spill] sm:$0xff] %v7403_v22 }
 0x2f9   : > { %v3691_v62 = vadd.f32 %v3690_v30, %v7358_v20 }
 0x2fb   : > { %v3692_v25 = vadd.f32 %v3691_v62, %v7361_v38  ;;  %v7406_v62 = vld [vmem:[#allocation2 + $0x188] sm:$0xff] }
 0x2fc   : > { %7939 = vst [vmem:[#allocation14_spill] sm:$0xff] %v7406_v62 }
 0x2fd   : > { %v3693_v31 = vadd.f32 %v3692_v25, %v7364_v33 }
 0x2ff   : > { %v3694_v39 = vadd.f32 %v3693_v31, %v7367_v50  ;;  %v7409_v31 = vld [vmem:[#allocation2 + $0x190] sm:$0xff] }
 0x300   : > { %7940 = vst [vmem:[#allocation15_spill] sm:$0xff] %v7409_v31 }
 0x301   : > { %v3695_v29 = vadd.f32 %v3694_v39, %v7370_v11 }
 0x303   : > { %v3696_v16 = vadd.f32 %v3695_v29, %v7373_v0  ;;  %v7412_v29 = vld [vmem:[#allocation2 + $0x198] sm:$0xff] }
 0x304   : > { %7941 = vst [vmem:[#allocation16_spill] sm:$0xff] %v7412_v29 }
 0x305   : > { %v3697_v32 = vadd.f32 %v3696_v16, %v7376_v52 }
 0x307   : > { %v3698_v36 = vadd.f32 %v3697_v32, %v7379_v23  ;;  %v7415_v32 = vld [vmem:[#allocation2 + $0x1a0] sm:$0xff] }
 0x308   : > { %7942 = vst [vmem:[#allocation17_spill] sm:$0xff] %v7415_v32 }
 0x309   : > { %v3699_v7 = vadd.f32 %v3698_v36, %v7382_v42 }
 0x30b   : > { %v3700_v13 = vadd.f32 %v3699_v7, %v7385_v53  ;;  %v7418_v7 = vld [vmem:[#allocation2 + $0x1a8] sm:$0xff] }
 0x30c   : > { %7943 = vst [vmem:[#allocation18_spill] sm:$0xff] %v7418_v7 }
 0x30d   : > { %v3701_v48 = vadd.f32 %v3700_v13, %v7388_v37 }
 0x30f   : > { %v3702_v49 = vadd.f32 %v3701_v48, %v7391_v45  ;;  %v7421_v48 = vld [vmem:[#allocation2 + $0x1b0] sm:$0xff] }
 0x310   : > { %7944 = vst [vmem:[#allocation19_spill] sm:$0xff] %v7421_v48 }
 0x311   : > { %v3703_v59 = vadd.f32 %v3702_v49, %v7394_v9 }
 0x313   : > { %v3704_v40 = vadd.f32 %v3703_v59, %v7397_v6  ;;  %v7424_v59 = vld [vmem:[#allocation2 + $0x1b8] sm:$0xff] }
 0x314   : > { %7945 = vst [vmem:[#allocation20_spill] sm:$0xff] %v7424_v59 }
 0x315   : > { %v3705_v30 = vadd.f32 %v3704_v40, %v7400_v56 }
 0x317   : > { %v3706_v25 = vadd.f32 %v3705_v30, %v7403_v22  ;;  %v7427_v30 = vld [vmem:[#allocation2 + $0x1c0] sm:$0xff] }
 0x318   : > { %7946 = vst [vmem:[#allocation21_spill] sm:$0xff] %v7427_v30 }
 0x319   : > { %v3707_v39 = vadd.f32 %v3706_v25, %v7406_v62 }
 0x31b   : > { %v3708_v16 = vadd.f32 %v3707_v39, %v7409_v31  ;;  %v7430_v39 = vld [vmem:[#allocation2 + $0x1c8] sm:$0xff]  ;;  %v7440_v31 = vld [vmem:[#allocation2 + $0x1e0] sm:$0xff] }
 0x31c   : > { %7947 = vst [vmem:[#allocation22_spill] sm:$0xff] %v7430_v39  ;;  %7950 = vst [vmem:[#allocation25_spill] sm:$0xff] %v7440_v31 }
 0x31d   : > { %v3709_v36 = vadd.f32 %v3708_v16, %v7412_v29  ;;  %v7433_v29 = vld [vmem:[#allocation2 + $0x1d0] sm:$0xff] }
 0x31e   : > { %7948 = vst [vmem:[#allocation23_spill] sm:$0xff] %v7433_v29 }
 0x31f   : > { %v3710_v13 = vadd.f32 %v3709_v36, %v7415_v32  ;;  %v7436_v32 = vld [vmem:[#allocation2 + $0x1d8] sm:$0xff] }
 0x320   : > { %7949 = vst [vmem:[#allocation24_spill] sm:$0xff] %v7436_v32 }
 0x321   : > { %v3711_v49 = vadd.f32 %v3710_v13, %v7418_v7 }
 0x323   : > { %v3712_v40 = vadd.f32 %v3711_v49, %v7421_v48  ;;  %v7443_v48 = vld [vmem:[#allocation2 + $0x1e8] sm:$0xff] }
 0x324   : > { %7951 = vst [vmem:[#allocation26_spill] sm:$0xff] %v7443_v48 }
 0x325   : > { %v3713_v25 = vadd.f32 %v3712_v40, %v7424_v59  ;;  %v7446_v59 = vld [vmem:[#allocation2 + $0x1f0] sm:$0xff] }
 0x326   : > { %7952 = vst [vmem:[#allocation27_spill] sm:$0xff] %v7446_v59 }
 0x327   : > { %v3714_v16 = vadd.f32 %v3713_v25, %v7427_v30  ;;  %v7449_v30 = vld [vmem:[#allocation2 + $0x1f8] sm:$0xff] }
 0x328   : > { %7953 = vst [vmem:[#allocation28_spill] sm:$0xff] %v7449_v30 }
 0x329   : > { %v3715_v36 = vadd.f32 %v3714_v16, %v7430_v39 }
 0x32b   : > { %v3716_v13 = vadd.f32 %v3715_v36, %v7433_v29 }
 0x32d   : > { %v3717_v7 = vadd.f32 %v3716_v13, %v7436_v32 }
 0x32f   : > { %v3718_v49 = vadd.f32 %v3717_v7, %v7440_v31 }
 0x331   : > { %v3719_v40 = vadd.f32 %v3718_v49, %v7443_v48 }
 0x333   : > { %v3720_v25 = vadd.f32 %v3719_v40, %v7446_v59 }
 0x335   : > { %v3721_v16 = vadd.f32 %v3720_v25, %v7449_v30 }
 0x337   : > { %v3722_v39 = vrot.slane %v3721_v16, 4 }
 0x339   : > { %v3723_v36 = vadd.f32 %v3722_v39, %v3721_v16 }
 0x33b   : > { %v3724_v29 = vrot.slane %v3723_v36, 2 }
 0x33d   : > { %v3725_v13 = vadd.f32 %v3724_v29, %v3723_v36 }
 0x33f   : > { %v3726_v32 = vrot.slane %v3725_v13, 1 }
 0x341   : > { %v3727_v62 = vadd.f32 %v3726_v32, %v3725_v13 }
 0x343   : > { %v7452_v22 = vmul.f32 0.001953125, %v3727_v62 }
 0x345   : > { %v3730_v7 = vsub.f32 %v7260_v17, %v7452_v22  ;;  %v3731_v49 = vsub.f32 %v7262_v61, %v7452_v22  ;;  %v3732_v40 = vsub.f32 %v7264_v63, %v7452_v22  ;;  %v3733_v25 = vsub.f32 %v7268_v10, %v7452_v22 }
 0x346   : > { %v3734_v29 = vsub.f32 %v7271_v47, %v7452_v22  ;;  %v3735_v62 = vsub.f32 %v7274_v35, %v7452_v22  ;;  %v3736_v13 = vsub.f32 %v7277_v34, %v7452_v22  ;;  %v3737_v63 = vsub.f32 %v7280_v3, %v7452_v22 }
 0x347   : > { %v3794_v30 = vmul.f32 %v3730_v7, %v3730_v7  ;;  %v3795_v39 = vmul.f32 %v3731_v49, %v3731_v49  ;;  %v3796_v32 = vmul.f32 %v3732_v40, %v3732_v40  ;;  %v3797_v16 = vmul.f32 %v3733_v25, %v3733_v25 }
 0x348   : > { %v3798_v61 = vmul.f32 %v3734_v29, %v3734_v29  ;;  %v3799_v10 = vmul.f32 %v3735_v62, %v3735_v62  ;;  %v3738_v49 = vsub.f32 %v7283_v46, %v7452_v22  ;;  %v3800_v47 = vmul.f32 %v3736_v13, %v3736_v13 }
 0x349   : > { %v3858_v36 = vadd.f32 %v3795_v39, %v3794_v30  ;;  %v3739_v35 = vsub.f32 %v7286_v12, %v7452_v22  ;;  %v3801_v25 = vmul.f32 %v3737_v63, %v3737_v63  ;;  %v3740_v39 = vsub.f32 %v7289_v21, %v7452_v22 }
 0x34a   : > { %v3802_v29 = vmul.f32 %v3738_v49, %v3738_v49 }
 0x34b   : > { %v3859_v17 = vadd.f32 %v3858_v36, %v3796_v32  ;;  %v3741_v36 = vsub.f32 %v7292_v55, %v7452_v22  ;;  %v3803_v62 = vmul.f32 %v3739_v35, %v3739_v35  ;;  %v3804_v13 = vmul.f32 %v3740_v39, %v3740_v39 }
 0x34d   : > { %v3860_v7 = vadd.f32 %v3859_v17, %v3797_v16  ;;  %v3742_v16 = vsub.f32 %v7295_v2, %v7452_v22  ;;  %v3805_v63 = vmul.f32 %v3741_v36, %v3741_v36 }
 0x34f   : > { %v3861_v40 = vadd.f32 %v3860_v7, %v3798_v61  ;;  %v3743_v7 = vsub.f32 %v7298_v19, %v7452_v22  ;;  %v3806_v49 = vmul.f32 %v3742_v16, %v3742_v16 }
 0x351   : > { %v3862_v30 = vadd.f32 %v3861_v40, %v3799_v10  ;;  %v3744_v40 = vsub.f32 %v7301_v27, %v7452_v22  ;;  %v3807_v35 = vmul.f32 %v3743_v7, %v3743_v7 }
 0x353   : > { %v3863_v32 = vadd.f32 %v3862_v30, %v3800_v47  ;;  %v3745_v30 = vsub.f32 %v7304_v4, %v7452_v22  ;;  %v3808_v39 = vmul.f32 %v3744_v40, %v3744_v40 }
 0x355   : > { %v3864_v17 = vadd.f32 %v3863_v32, %v3801_v25  ;;  %v3746_v32 = vsub.f32 %v7307_v5, %v7452_v22  ;;  %v3809_v36 = vmul.f32 %v3745_v30, %v3745_v30 }
 0x357   : > { %v3865_v61 = vadd.f32 %v3864_v17, %v3802_v29  ;;  %v3747_v17 = vsub.f32 %v7310_v28, %v7452_v22  ;;  %v3810_v16 = vmul.f32 %v3746_v32, %v3746_v32 }
 0x359   : > { %v3866_v10 = vadd.f32 %v3865_v61, %v3803_v62  ;;  %v3748_v61 = vsub.f32 %v7313_v8, %v7452_v22  ;;  %v3811_v7 = vmul.f32 %v3747_v17, %v3747_v17 }
 0x35b   : > { %v3867_v47 = vadd.f32 %v3866_v10, %v3804_v13  ;;  %v3749_v10 = vsub.f32 %v7316_v44, %v7452_v22  ;;  %v3812_v40 = vmul.f32 %v3748_v61, %v3748_v61 }
 0x35d   : > { %v3868_v25 = vadd.f32 %v3867_v47, %v3805_v63  ;;  %v3750_v47 = vsub.f32 %v7319_v14, %v7452_v22  ;;  %v3813_v30 = vmul.f32 %v3749_v10, %v3749_v10 }
 0x35f   : > { %v3869_v29 = vadd.f32 %v3868_v25, %v3806_v49  ;;  %v3751_v25 = vsub.f32 %v7322_v1, %v7452_v22  ;;  %v3814_v32 = vmul.f32 %v3750_v47, %v3750_v47 }
 0x361   : > { %v3870_v62 = vadd.f32 %v3869_v29, %v3807_v35  ;;  %v3752_v29 = vsub.f32 %v7325_v43, %v7452_v22  ;;  %v3815_v17 = vmul.f32 %v3751_v25, %v3751_v25 }
 0x363   : > { %v3871_v13 = vadd.f32 %v3870_v62, %v3808_v39  ;;  %v3753_v62 = vsub.f32 %v7328_v41, %v7452_v22  ;;  %v3816_v61 = vmul.f32 %v3752_v29, %v3752_v29 }
 0x365   : > { %v3872_v63 = vadd.f32 %v3871_v13, %v3809_v36  ;;  %v3754_v13 = vsub.f32 %v7331_v18, %v7452_v22  ;;  %v3817_v10 = vmul.f32 %v3753_v62, %v3753_v62 }
 0x367   : > { %v3873_v49 = vadd.f32 %v3872_v63, %v3810_v16  ;;  %v3755_v63 = vsub.f32 %v7334_v26, %v7452_v22  ;;  %v3818_v47 = vmul.f32 %v3754_v13, %v3754_v13 }
 0x369   : > { %v3874_v35 = vadd.f32 %v3873_v49, %v3811_v7  ;;  %v3756_v49 = vsub.f32 %v7337_v15, %v7452_v22  ;;  %v3819_v25 = vmul.f32 %v3755_v63, %v3755_v63 }
 0x36b   : > { %v3875_v39 = vadd.f32 %v3874_v35, %v3812_v40  ;;  %v3757_v35 = vsub.f32 %v7340_v60, %v7452_v22  ;;  %v3820_v29 = vmul.f32 %v3756_v49, %v3756_v49 }
 0x36d   : > { %v3876_v36 = vadd.f32 %v3875_v39, %v3813_v30  ;;  %v3758_v39 = vsub.f32 %v7343_v58, %v7452_v22  ;;  %v3821_v62 = vmul.f32 %v3757_v35, %v3757_v35 }
 0x36f   : > { %v3877_v16 = vadd.f32 %v3876_v36, %v3814_v32  ;;  %v3759_v36 = vsub.f32 %v7346_v54, %v7452_v22  ;;  %v3822_v13 = vmul.f32 %v3758_v39, %v3758_v39 }
 0x371   : > { %v3878_v7 = vadd.f32 %v3877_v16, %v3815_v17  ;;  %v3760_v16 = vsub.f32 %v7349_v51, %v7452_v22  ;;  %v3823_v63 = vmul.f32 %v3759_v36, %v3759_v36 }
 0x373   : > { %v3879_v40 = vadd.f32 %v3878_v7, %v3816_v61  ;;  %v3761_v7 = vsub.f32 %v7352_v57, %v7452_v22  ;;  %v3824_v49 = vmul.f32 %v3760_v16, %v3760_v16 }
 0x375   : > { %v3880_v30 = vadd.f32 %v3879_v40, %v3817_v10  ;;  %v3762_v40 = vsub.f32 %v7355_v24, %v7452_v22  ;;  %v3825_v35 = vmul.f32 %v3761_v7, %v3761_v7 }
 0x377   : > { %v3881_v32 = vadd.f32 %v3880_v30, %v3818_v47  ;;  %v3763_v30 = vsub.f32 %v7358_v20, %v7452_v22  ;;  %v3826_v39 = vmul.f32 %v3762_v40, %v3762_v40 }
 0x379   : > { %v3882_v17 = vadd.f32 %v3881_v32, %v3819_v25  ;;  %v3764_v32 = vsub.f32 %v7361_v38, %v7452_v22  ;;  %v3827_v36 = vmul.f32 %v3763_v30, %v3763_v30 }
 0x37b   : > { %v3883_v61 = vadd.f32 %v3882_v17, %v3820_v29  ;;  %v3765_v17 = vsub.f32 %v7364_v33, %v7452_v22  ;;  %v3828_v16 = vmul.f32 %v3764_v32, %v3764_v32 }
 0x37d   : > { %v3884_v10 = vadd.f32 %v3883_v61, %v3821_v62  ;;  %v3766_v61 = vsub.f32 %v7367_v50, %v7452_v22  ;;  %v3829_v7 = vmul.f32 %v3765_v17, %v3765_v17 }
 0x37f   : > { %v3885_v47 = vadd.f32 %v3884_v10, %v3822_v13  ;;  %v3767_v10 = vsub.f32 %v7370_v11, %v7452_v22  ;;  %v3830_v40 = vmul.f32 %v3766_v61, %v3766_v61 }
 0x381   : > { %v3886_v25 = vadd.f32 %v3885_v47, %v3823_v63  ;;  %v3768_v47 = vsub.f32 %v7373_v0, %v7452_v22  ;;  %v3831_v30 = vmul.f32 %v3767_v10, %v3767_v10 }
 0x383   : > { %v3887_v29 = vadd.f32 %v3886_v25, %v3824_v49  ;;  %v3769_v25 = vsub.f32 %v7376_v52, %v7452_v22  ;;  %v3832_v32 = vmul.f32 %v3768_v47, %v3768_v47 }
 0x385   : > { %v3888_v62 = vadd.f32 %v3887_v29, %v3825_v35  ;;  %v3770_v29 = vsub.f32 %v7379_v23, %v7452_v22  ;;  %v3833_v17 = vmul.f32 %v3769_v25, %v3769_v25 }
 0x387   : > { %v3889_v13 = vadd.f32 %v3888_v62, %v3826_v39  ;;  %v3771_v62 = vsub.f32 %v7382_v42, %v7452_v22  ;;  %v3834_v61 = vmul.f32 %v3770_v29, %v3770_v29 }
 0x389   : > { %v3890_v63 = vadd.f32 %v3889_v13, %v3827_v36  ;;  %v3772_v13 = vsub.f32 %v7385_v53, %v7452_v22  ;;  %v3835_v10 = vmul.f32 %v3771_v62, %v3771_v62 }
 0x38b   : > { %v3891_v49 = vadd.f32 %v3890_v63, %v3828_v16  ;;  %v3773_v63 = vsub.f32 %v7388_v37, %v7452_v22  ;;  %v3836_v47 = vmul.f32 %v3772_v13, %v3772_v13 }
 0x38d   : > { %v3892_v35 = vadd.f32 %v3891_v49, %v3829_v7  ;;  %v3774_v49 = vsub.f32 %v7391_v45, %v7452_v22  ;;  %v3837_v25 = vmul.f32 %v3773_v63, %v3773_v63 }
 0x38f   : > { %v3893_v39 = vadd.f32 %v3892_v35, %v3830_v40  ;;  %v3775_v35 = vsub.f32 %v7394_v9, %v7452_v22  ;;  %v3838_v29 = vmul.f32 %v3774_v49, %v3774_v49 }
 0x391   : > { %v3894_v36 = vadd.f32 %v3893_v39, %v3831_v30  ;;  %v3776_v39 = vsub.f32 %v7397_v6, %v7452_v22  ;;  %v3839_v62 = vmul.f32 %v3775_v35, %v3775_v35 }
 0x393   : > { %v3895_v16 = vadd.f32 %v3894_v36, %v3832_v32  ;;  %v3777_v36 = vsub.f32 %v7400_v56, %v7452_v22  ;;  %v3840_v13 = vmul.f32 %v3776_v39, %v3776_v39 }
 0x395   : > { %v3896_v7 = vadd.f32 %v3895_v16, %v3833_v17  ;;  %v7954_v16 = vld [vmem:[#allocation13_spill] sm:$0xff]  ;;  %v3841_v63 = vmul.f32 %v3777_v36, %v3777_v36 }
 0x396   : > { %v3778_v45 = vsub.f32 %v7954_v16, %v7452_v22 }
 0x397   : > { %v3897_v40 = vadd.f32 %v3896_v7, %v3834_v61  ;;  %v7955_v7 = vld [vmem:[#allocation14_spill] sm:$0xff] }
 0x398   : > { %v3779_v9 = vsub.f32 %v7955_v7, %v7452_v22  ;;  %v3842_v49 = vmul.f32 %v3778_v45, %v3778_v45 }
 0x399   : > { %v3898_v30 = vadd.f32 %v3897_v40, %v3835_v10  ;;  %v7956_v40 = vld [vmem:[#allocation15_spill] sm:$0xff] }
 0x39a   : > { %v3780_v6 = vsub.f32 %v7956_v40, %v7452_v22  ;;  %v3843_v35 = vmul.f32 %v3779_v9, %v3779_v9 }
 0x39b   : > { %v3899_v32 = vadd.f32 %v3898_v30, %v3836_v47  ;;  %v7957_v30 = vld [vmem:[#allocation16_spill] sm:$0xff] }
 0x39c   : > { %v3781_v56 = vsub.f32 %v7957_v30, %v7452_v22  ;;  %v3844_v39 = vmul.f32 %v3780_v6, %v3780_v6 }
 0x39d   : > { %v3900_v17 = vadd.f32 %v3899_v32, %v3837_v25  ;;  %v7958_v32 = vld [vmem:[#allocation17_spill] sm:$0xff] }
 0x39e   : > { %v3782_v16 = vsub.f32 %v7958_v32, %v7452_v22  ;;  %v3845_v36 = vmul.f32 %v3781_v56, %v3781_v56 }
 0x39f   : > { %v3901_v61 = vadd.f32 %v3900_v17, %v3838_v29  ;;  %v7959_v17 = vld [vmem:[#allocation18_spill] sm:$0xff] }
 0x3a0   : > { %v3783_v7 = vsub.f32 %v7959_v17, %v7452_v22  ;;  %v3846_v45 = vmul.f32 %v3782_v16, %v3782_v16 }
 0x3a1   : > { %v3902_v10 = vadd.f32 %v3901_v61, %v3839_v62  ;;  %v7960_v61 = vld [vmem:[#allocation19_spill] sm:$0xff] }
 0x3a2   : > { %v3784_v40 = vsub.f32 %v7960_v61, %v7452_v22  ;;  %v3847_v9 = vmul.f32 %v3783_v7, %v3783_v7 }
 0x3a3   : > { %v3903_v47 = vadd.f32 %v3902_v10, %v3840_v13  ;;  %v7961_v10 = vld [vmem:[#allocation20_spill] sm:$0xff] }
 0x3a4   : > { %v3785_v30 = vsub.f32 %v7961_v10, %v7452_v22  ;;  %v3848_v6 = vmul.f32 %v3784_v40, %v3784_v40 }
 0x3a5   : > { %v3904_v25 = vadd.f32 %v3903_v47, %v3841_v63  ;;  %v7962_v47 = vld [vmem:[#allocation21_spill] sm:$0xff] }
 0x3a6   : > { %v3786_v32 = vsub.f32 %v7962_v47, %v7452_v22  ;;  %v3849_v56 = vmul.f32 %v3785_v30, %v3785_v30 }
 0x3a7   : > { %v3905_v29 = vadd.f32 %v3904_v25, %v3842_v49  ;;  %v7963_v25 = vld [vmem:[#allocation22_spill] sm:$0xff] }
 0x3a8   : > { %v3787_v17 = vsub.f32 %v7963_v25, %v7452_v22  ;;  %v3850_v16 = vmul.f32 %v3786_v32, %v3786_v32 }
 0x3a9   : > { %v3906_v62 = vadd.f32 %v3905_v29, %v3843_v35  ;;  %v7964_v29 = vld [vmem:[#allocation23_spill] sm:$0xff] }
 0x3aa   : > { %v3788_v61 = vsub.f32 %v7964_v29, %v7452_v22  ;;  %v3851_v7 = vmul.f32 %v3787_v17, %v3787_v17 }
 0x3ab   : > { %v3907_v13 = vadd.f32 %v3906_v62, %v3844_v39  ;;  %v7965_v62 = vld [vmem:[#allocation24_spill] sm:$0xff] }
 0x3ac   : > { %v3789_v10 = vsub.f32 %v7965_v62, %v7452_v22  ;;  %v3852_v40 = vmul.f32 %v3788_v61, %v3788_v61 }
 0x3ad   : > { %v3908_v63 = vadd.f32 %v3907_v13, %v3845_v36  ;;  %v3790_v13 = vsub.f32 %v7440_v31, %v7452_v22 }
 0x3ae   : > { %v3853_v30 = vmul.f32 %v3789_v10, %v3789_v10 }
 0x3af   : > { %v3909_v49 = vadd.f32 %v3908_v63, %v3846_v45  ;;  %v3791_v63 = vsub.f32 %v7443_v48, %v7452_v22  ;;  %v3854_v32 = vmul.f32 %v3790_v13, %v3790_v13 }
 0x3b1   : > { %v3910_v35 = vadd.f32 %v3909_v49, %v3847_v9  ;;  %v3792_v49 = vsub.f32 %v7446_v59, %v7452_v22  ;;  %v3855_v17 = vmul.f32 %v3791_v63, %v3791_v63  ;;  %v3928_v63 = vld [vmem:[%s7886_s2] sm:$0x1] }
 0x3b3   : > { %v3911_v39 = vadd.f32 %v3910_v35, %v3848_v6  ;;  %v7966_v35 = vld [vmem:[#allocation28_spill] sm:$0xff] }
 0x3b4   : > { %v3793_v62 = vsub.f32 %v7966_v35, %v7452_v22 }
 0x3b5   : > { %v3912_v36 = vadd.f32 %v3911_v39, %v3849_v56  ;;  %v3856_v39 = vmul.f32 %v3792_v49, %v3792_v49 }
 0x3b6   : > { %v3857_v31 = vmul.f32 %v3793_v62, %v3793_v62 }
 0x3b7   : > { %v3913_v45 = vadd.f32 %v3912_v36, %v3850_v16 }
 0x3b9   : > { %v3914_v9 = vadd.f32 %v3913_v45, %v3851_v7 }
 0x3bb   : > { %v3915_v6 = vadd.f32 %v3914_v9, %v3852_v40  ;;  %v3936_v40 = vlaneseq }
 0x3bd   : > { %v3916_v56 = vadd.f32 %v3915_v6, %v3853_v30  ;;  %v3937_v9 = vshrl.u32 %v3936_v40, 7 }
 0x3bf   : > { %v3917_v29 = vadd.f32 %v3916_v56, %v3854_v32  ;;  %v3938_v30 = vsub.s32 0, %v3937_v9  ;;  %v7968_v32 = vld [vmem:[#allocation4_spill] sm:$0xff] }
 0x3c1   : > { %v3918_v61 = vadd.f32 %v3917_v29, %v3855_v17  ;;  %v7969_v17 = vld [vmem:[#allocation5_spill] sm:$0xff] }
 0x3c3   : > { %v3919_v16 = vadd.f32 %v3918_v61, %v3856_v39  ;;  %v7970_v39 = vld [vmem:[#allocation6_spill] sm:$0xff] }
 0x3c5   : > { %v3920_v36 = vadd.f32 %v3919_v16, %v3857_v31  ;;  %v3932_v31 = vld [vmem:[%s7887_s3] sm:$0x1] }
 0x3c6   : > { %v7971_v16 = vld [vmem:[#allocation7_spill] sm:$0xff] }
 0x3c7   : > { %v3921_v25 = vrot.slane %v3920_v36, 4 }
 0x3c9   : > { %v3922_v48 = vadd.f32 %v3921_v25, %v3920_v36 }
 0x3cb   : > { %v3923_v10 = vrot.slane %v3922_v48, 2 }
 0x3cd   : > { %v3924_v7 = vadd.f32 %v3923_v10, %v3922_v48  ;;  %v7972_v10 = vld [vmem:[#allocation8_spill] sm:$0xff] }
 0x3cf   : > { %v3925_v45 = vrot.slane %v3924_v7, 1 }
 0x3d1   : > { %v3926_v47 = vadd.f32 %v3925_v45, %v3924_v7 }
 0x3d3   : > { %v3927_v59 = vmul.f32 0.001953125, %v3926_v47 }
 0x3d5   : > { %v3929_v13 = vadd.f32 1e-05, %v3927_v59  ;;  %v7967_v59 = vld [vmem:[#allocation3_spill] sm:$0xff] }
 0x3d7   : > { %6308 = vrsqrt.f32 %v3929_v13 }
 0x3e4   : > { %v6309_v62 = vpop.eup %6308 }
 0x3e5   : > { %v3931_v29 = vmul.f32 %v6309_v62, %v3928_v63 }
 0x3e7   : > { %v3933_v48 = vmul.f32 %v3931_v29, %v7452_v22  ;;  %v7589_v25 = vrot.slane %v3931_v29, %v3938_v30 }
 0x3e9   : > { %v3934_v47 = vsub.f32 %v3932_v31, %v3933_v48  ;;  %v3941_v49 = vmul.f32 %v7589_v25, %v7967_v59  ;;  %v3942_v6 = vmul.f32 %v7589_v25, %v7968_v32  ;;  %v3943_v56 = vmul.f32 %v7589_v25, %v7969_v17 }
 0x3ea   : > { %v3944_v61 = vmul.f32 %v7589_v25, %v7970_v39  ;;  %v3945_v36 = vmul.f32 %v7589_v25, %v7971_v16  ;;  %v3946_v22 = vmul.f32 %v7589_v25, %v7972_v10  ;;  %v3947_v7 = vmul.f32 %v7589_v25, %v7277_v34 }
 0x3eb   : > { %v7605_v45 = vrot.slane %v3934_v47, %v3938_v30  ;;  %v3948_v13 = vmul.f32 %v7589_v25, %v7280_v3  ;;  %v3949_v40 = vmul.f32 %v7589_v25, %v7283_v46  ;;  %v3950_v9 = vmul.f32 %v7589_v25, %v7286_v12 }
 0x3ec   : > { %v3951_v63 = vmul.f32 %v7589_v25, %v7289_v21  ;;  %v3952_v62 = vmul.f32 %v7589_v25, %v7292_v55  ;;  %v3953_v34 = vmul.f32 %v7589_v25, %v7295_v2  ;;  %v3954_v30 = vmul.f32 %v7589_v25, %v7298_v19 }
 0x3ed   : > { %v4011_v3 = vadd.f32 %v7605_v45, %v3941_v49  ;;  %v4012_v29 = vadd.f32 %v7605_v45, %v3942_v6  ;;  %v4013_v46 = vadd.f32 %v7605_v45, %v3943_v56  ;;  %v4014_v12 = vadd.f32 %v7605_v45, %v3944_v61 }
 0x3ee   : > { %v4015_v31 = vadd.f32 %v7605_v45, %v3945_v36  ;;  %v4016_v21 = vadd.f32 %v7605_v45, %v3946_v22  ;;  %v4017_v55 = vadd.f32 %v7605_v45, %v3947_v7  ;;  %v4018_v48 = vadd.f32 %v7605_v45, %v3948_v13 }
 0x3ef   : > { %v4075_v2 = vmax.f32 %v4011_v3, 0.0  ;;  %v4076_v47 = vmax.f32 %v4012_v29, 0.0  ;;  %v4077_v59 = vmax.f32 %v4013_v46, 0.0  ;;  %v4078_v19 = vmax.f32 %v4014_v12, 0.0 }
 0x3f0   : > { %v4079_v32 = vmax.f32 %v4015_v31, 0.0  ;;  %v4080_v49 = vmax.f32 %v4016_v21, 0.0  ;;  %v4081_v17 = vmax.f32 %v4017_v55, 0.0  ;;  %v4082_v6 = vmax.f32 %v4018_v48, 0.0 }
 0x3f1   : > { %v4978_v39 = vpack.c.bf16 %v4076_v47, %v4075_v2  ;;  %v4983_v56 = vpack.c.bf16 %v4078_v19, %v4077_v59  ;;  %v4019_v61 = vadd.f32 %v7605_v45, %v3949_v40  ;;  %v4020_v16 = vadd.f32 %v7605_v45, %v3950_v9 }
 0x3f2   : > { %v4988_v36 = vpack.c.bf16 %v4080_v49, %v4079_v32  ;;  %v4993_v10 = vpack.c.bf16 %v4082_v6, %v4081_v17  ;;  %v4021_v22 = vadd.f32 %v7605_v45, %v3951_v63  ;;  %v4022_v7 = vadd.f32 %v7605_v45, %v3952_v62 }
 0x3f3   : > { %4979 = vst [vmem:[%s7888_s4] sm:$0xff] %v4978_v39   ;;  %5135 = vst [vmem:[%s7888_s4 + $0x8] sm:$0xff] %v4983_v56   ;;  %v4083_v13 = vmax.f32 %v4019_v61, 0.0  ;;  %v4084_v3 = vmax.f32 %v4020_v16, 0.0  ;;  %v4023_v40 = vadd.f32 %v7605_v45, %v3953_v34  ;;  %v4024_v9 = vadd.f32 %v7605_v45, %v3954_v30 }
 0x3f4   : > { %5136 = vst [vmem:[%s7888_s4 + $0x10] sm:$0xff] %v4988_v36   ;;  %5137 = vst [vmem:[%s7888_s4 + $0x18] sm:$0xff] %v4993_v10   ;;  %v4085_v63 = vmax.f32 %v4021_v22, 0.0  ;;  %v4086_v62 = vmax.f32 %v4022_v7, 0.0  ;;  %v3955_v29 = vmul.f32 %v7589_v25, %v7301_v27  ;;  %v3956_v46 = vmul.f32 %v7589_v25, %v7304_v4 }
 0x3f5   : > { %v4998_v12 = vpack.c.bf16 %v4084_v3, %v4083_v13  ;;  %v4087_v34 = vmax.f32 %v4023_v40, 0.0  ;;  %v4088_v31 = vmax.f32 %v4024_v9, 0.0  ;;  %v3957_v30 = vmul.f32 %v7589_v25, %v7307_v5 }
 0x3f6   : > { %v5003_v21 = vpack.c.bf16 %v4086_v62, %v4085_v63  ;;  %v4025_v55 = vadd.f32 %v7605_v45, %v3955_v29  ;;  %v4026_v48 = vadd.f32 %v7605_v45, %v3956_v46  ;;  %v3958_v2 = vmul.f32 %v7589_v25, %v7310_v28 }
 0x3f7   : > { %5138 = vst [vmem:[%s7888_s4 + $0x20] sm:$0xff] %v4998_v12   ;;  %v5008_v27 = vpack.c.bf16 %v4088_v31, %v4087_v34  ;;  %v4027_v4 = vadd.f32 %v7605_v45, %v3957_v30  ;;  %v3959_v47 = vmul.f32 %v7589_v25, %v7313_v8  ;;  %v3960_v5 = vmul.f32 %v7589_v25, %v7316_v44 }
 0x3f8   : > { %5139 = vst [vmem:[%s7888_s4 + $0x28] sm:$0xff] %v5003_v21   ;;  %v4089_v59 = vmax.f32 %v4025_v55, 0.0  ;;  %v4090_v19 = vmax.f32 %v4026_v48, 0.0  ;;  %v4028_v28 = vadd.f32 %v7605_v45, %v3958_v2  ;;  %v3961_v32 = vmul.f32 %v7589_v25, %v7319_v14 }
 0x3f9   : > { %5140 = vst [vmem:[%s7888_s4 + $0x30] sm:$0xff] %v5008_v27   ;;  %v4091_v49 = vmax.f32 %v4027_v4, 0.0  ;;  %v4029_v8 = vadd.f32 %v7605_v45, %v3959_v47  ;;  %v4030_v44 = vadd.f32 %v7605_v45, %v3960_v5  ;;  %v3962_v17 = vmul.f32 %v7589_v25, %v7322_v1 }
 0x3fa   : > { %v5013_v6 = vpack.c.bf16 %v4090_v19, %v4089_v59  ;;  %v4092_v39 = vmax.f32 %v4028_v28, 0.0  ;;  %v4031_v56 = vadd.f32 %v7605_v45, %v3961_v32  ;;  %v3963_v61 = vmul.f32 %v7589_v25, %v7325_v43 }
 0x3fb   : > { %v4093_v14 = vmax.f32 %v4029_v8, 0.0  ;;  %v4094_v16 = vmax.f32 %v4030_v44, 0.0  ;;  %v4032_v36 = vadd.f32 %v7605_v45, %v3962_v17  ;;  %v3964_v10 = vmul.f32 %v7589_v25, %v7328_v41 }
 0x3fc   : > { %5141 = vst [vmem:[%s7888_s4 + $0x38] sm:$0xff] %v5013_v6   ;;  %v5018_v22 = vpack.c.bf16 %v4092_v39, %v4091_v49  ;;  %v4095_v1 = vmax.f32 %v4031_v56, 0.0  ;;  %v4033_v7 = vadd.f32 %v7605_v45, %v3963_v61  ;;  %v3965_v13 = vmul.f32 %v7589_v25, %v7331_v18 }
 0x3fd   : > { %v5023_v3 = vpack.c.bf16 %v4094_v16, %v4093_v14  ;;  %v4096_v43 = vmax.f32 %v4032_v36, 0.0  ;;  %v4034_v40 = vadd.f32 %v7605_v45, %v3964_v10  ;;  %v3966_v9 = vmul.f32 %v7589_v25, %v7334_v26 }
 0x3fe   : > { %5142 = vst [vmem:[%s7888_s4 + $0x40] sm:$0xff] %v5018_v22   ;;  %v4097_v41 = vmax.f32 %v4033_v7, 0.0  ;;  %v4035_v63 = vadd.f32 %v7605_v45, %v3965_v13  ;;  %v3967_v62 = vmul.f32 %v7589_v25, %v7337_v15  ;;  %v3968_v18 = vmul.f32 %v7589_v25, %v7340_v60 }
 0x3ff   : > { %5143 = vst [vmem:[%s7888_s4 + $0x48] sm:$0xff] %v5023_v3   ;;  %v5028_v29 = vpack.c.bf16 %v4096_v43, %v4095_v1  ;;  %v4098_v46 = vmax.f32 %v4034_v40, 0.0  ;;  %v4036_v26 = vadd.f32 %v7605_v45, %v3966_v9  ;;  %v3969_v12 = vmul.f32 %v7589_v25, %v7343_v58 }
 0x400   : > { %v4099_v34 = vmax.f32 %v4035_v63, 0.0  ;;  %v4037_v31 = vadd.f32 %v7605_v45, %v3967_v62  ;;  %v4038_v30 = vadd.f32 %v7605_v45, %v3968_v18  ;;  %v3970_v15 = vmul.f32 %v7589_v25, %v7346_v54 }
 0x401   : > { %5144 = vst [vmem:[%s7888_s4 + $0x50] sm:$0xff] %v5028_v29   ;;  %v5033_v60 = vpack.c.bf16 %v4098_v46, %v4097_v41  ;;  %v4100_v21 = vmax.f32 %v4036_v26, 0.0  ;;  %v4039_v55 = vadd.f32 %v7605_v45, %v3969_v12  ;;  %v3971_v48 = vmul.f32 %v7589_v25, %v7349_v51  ;;  %v7973_v29 = vld [vmem:[#allocation9_spill] sm:$0xff] }
 0x402   : > { %v4101_v58 = vmax.f32 %v4037_v31, 0.0  ;;  %v4102_v2 = vmax.f32 %v4038_v30, 0.0  ;;  %v4040_v27 = vadd.f32 %v7605_v45, %v3970_v15  ;;  %v3972_v4 = vmul.f32 %v7589_v25, %v7352_v57 }
 0x403   : > { %5145 = vst [vmem:[%s7888_s4 + $0x58] sm:$0xff] %v5033_v60   ;;  %v5038_v54 = vpack.c.bf16 %v4100_v21, %v4099_v34  ;;  %v4103_v47 = vmax.f32 %v4039_v55, 0.0  ;;  %v4041_v5 = vadd.f32 %v7605_v45, %v3971_v48  ;;  %v3973_v59 = vmul.f32 %v7589_v25, %v7355_v24  ;;  %v7975_v60 = vld [vmem:[#allocation11_spill] sm:$0xff] }
 0x404   : > { %v5043_v19 = vpack.c.bf16 %v4102_v2, %v4101_v58  ;;  %v4104_v51 = vmax.f32 %v4040_v27, 0.0  ;;  %v4042_v28 = vadd.f32 %v7605_v45, %v3972_v4  ;;  %v3974_v32 = vmul.f32 %v7589_v25, %v7358_v20  ;;  %v7976_v2 = vld [vmem:[#allocation12_spill] sm:$0xff] }
 0x405   : > { %5146 = vst [vmem:[%s7888_s4 + $0x60] sm:$0xff] %v5038_v54   ;;  %v4105_v57 = vmax.f32 %v4041_v5, 0.0  ;;  %v4043_v49 = vadd.f32 %v7605_v45, %v3973_v59  ;;  %v3975_v8 = vmul.f32 %v7589_v25, %v7361_v38  ;;  %v3976_v24 = vmul.f32 %v7589_v25, %v7364_v33  ;;  %v7977_v5 = vld [vmem:[#allocation13_spill] sm:$0xff] }
 0x406   : > { %5147 = vst [vmem:[%s7888_s4 + $0x68] sm:$0xff] %v5043_v19   ;;  %v5048_v44 = vpack.c.bf16 %v4104_v51, %v4103_v47  ;;  %v4106_v17 = vmax.f32 %v4042_v28, 0.0  ;;  %v4044_v20 = vadd.f32 %v7605_v45, %v3974_v32  ;;  %v3977_v6 = vmul.f32 %v7589_v25, %v7367_v50  ;;  %v7978_v32 = vld [vmem:[#allocation14_spill] sm:$0xff] }
 0x407   : > { %v4107_v39 = vmax.f32 %v4043_v49, 0.0  ;;  %v4045_v56 = vadd.f32 %v7605_v45, %v3975_v8  ;;  %v4046_v61 = vadd.f32 %v7605_v45, %v3976_v24  ;;  %v3978_v38 = vmul.f32 %v7589_v25, %v7370_v11  ;;  %v7979_v24 = vld [vmem:[#allocation15_spill] sm:$0xff] }
 0x408   : > { %5148 = vst [vmem:[%s7888_s4 + $0x70] sm:$0xff] %v5048_v44   ;;  %v5053_v33 = vpack.c.bf16 %v4106_v17, %v4105_v57  ;;  %v4108_v14 = vmax.f32 %v4044_v20, 0.0  ;;  %v4047_v16 = vadd.f32 %v7605_v45, %v3977_v6  ;;  %v3979_v36 = vmul.f32 %v7589_v25, %v7373_v0  ;;  %v7980_v17 = vld [vmem:[#allocation16_spill] sm:$0xff] }
 0x409   : > { %v4109_v50 = vmax.f32 %v4045_v56, 0.0  ;;  %v4110_v10 = vmax.f32 %v4046_v61, 0.0  ;;  %v4048_v22 = vadd.f32 %v7605_v45, %v3978_v38  ;;  %v3980_v1 = vmul.f32 %v7589_v25, %v7376_v52  ;;  %v7981_v61 = vld [vmem:[#allocation17_spill] sm:$0xff] }
 0x40a   : > { %5149 = vst [vmem:[%s7888_s4 + $0x78] sm:$0xff] %v5053_v33   ;;  %v5058_v11 = vpack.c.bf16 %v4108_v14, %v4107_v39  ;;  %v4111_v7 = vmax.f32 %v4047_v16, 0.0  ;;  %v4049_v13 = vadd.f32 %v7605_v45, %v3979_v36  ;;  %v3981_v3 = vmul.f32 %v7589_v25, %v7379_v23  ;;  %v7982_v36 = vld [vmem:[#allocation18_spill] sm:$0xff] }
 0x40b   : > { %v5063_v43 = vpack.c.bf16 %v4110_v10, %v4109_v50  ;;  %v4112_v0 = vmax.f32 %v4048_v22, 0.0  ;;  %v4050_v40 = vadd.f32 %v7605_v45, %v3980_v1  ;;  %v3982_v9 = vmul.f32 %v7589_v25, %v7382_v42 }
 0x40c   : > { %5150 = vst [vmem:[%s7888_s4 + $0x80] sm:$0xff] %v5058_v11   ;;  %v4113_v52 = vmax.f32 %v4049_v13, 0.0  ;;  %v4051_v41 = vadd.f32 %v7605_v45, %v3981_v3  ;;  %v3983_v63 = vmul.f32 %v7589_v25, %v7385_v53  ;;  %v3984_v23 = vmul.f32 %v7589_v25, %v7388_v37  ;;  %v7974_v53 = vld [vmem:[#allocation10_spill] sm:$0xff]  ;;  %v7983_v11 = vld [vmem:[#allocation19_spill] sm:$0xff] }
 0x40d   : > { %5151 = vst [vmem:[%s7888_s4 + $0x88] sm:$0xff] %v5063_v43   ;;  %v5068_v62 = vpack.c.bf16 %v4112_v0, %v4111_v7  ;;  %v4114_v18 = vmax.f32 %v4050_v40, 0.0  ;;  %v4052_v42 = vadd.f32 %v7605_v45, %v3982_v9  ;;  %v3985_v46 = vmul.f32 %v7589_v25, %v7973_v29  ;;  %v7984_v0 = vld [vmem:[#allocation20_spill] sm:$0xff]  ;;  %v7986_v29 = vld [vmem:[#allocation22_spill] sm:$0xff] }
 0x40e   : > { %v4115_v26 = vmax.f32 %v4051_v41, 0.0  ;;  %v4053_v12 = vadd.f32 %v7605_v45, %v3983_v63  ;;  %v4054_v34 = vadd.f32 %v7605_v45, %v3984_v23  ;;  %v3986_v31 = vmul.f32 %v7589_v25, %v7974_v53  ;;  %v7985_v63 = vld [vmem:[#allocation21_spill] sm:$0xff] }
 0x40f   : > { %5152 = vst [vmem:[%s7888_s4 + $0x90] sm:$0xff] %v5068_v62   ;;  %v5073_v37 = vpack.c.bf16 %v4114_v18, %v4113_v52  ;;  %v4116_v30 = vmax.f32 %v4052_v42, 0.0  ;;  %v4055_v15 = vadd.f32 %v7605_v45, %v3985_v46  ;;  %v3987_v21 = vmul.f32 %v7589_v25, %v7975_v60 }
 0x410   : > { %v4117_v55 = vmax.f32 %v4053_v12, 0.0  ;;  %v4118_v48 = vmax.f32 %v4054_v34, 0.0  ;;  %v4056_v58 = vadd.f32 %v7605_v45, %v3986_v31  ;;  %v3988_v27 = vmul.f32 %v7589_v25, %v7976_v2  ;;  %v7987_v34 = vld [vmem:[#allocation23_spill] sm:$0xff]  ;;  %v7988_v31 = vld [vmem:[#allocation24_spill] sm:$0xff] }
 0x411   : > { %5153 = vst [vmem:[%s7888_s4 + $0x98] sm:$0xff] %v5073_v37   ;;  %v5078_v4 = vpack.c.bf16 %v4116_v30, %v4115_v26  ;;  %v4119_v54 = vmax.f32 %v4055_v15, 0.0  ;;  %v4057_v47 = vadd.f32 %v7605_v45, %v3987_v21  ;;  %v3989_v59 = vmul.f32 %v7589_v25, %v7977_v5  ;;  %v7989_v21 = vld [vmem:[#allocation25_spill] sm:$0xff] }
 0x412   : > { %v5083_v19 = vpack.c.bf16 %v4118_v48, %v4117_v55  ;;  %v4120_v51 = vmax.f32 %v4056_v58, 0.0  ;;  %v4058_v28 = vadd.f32 %v7605_v45, %v3988_v27  ;;  %v3990_v57 = vmul.f32 %v7589_v25, %v7978_v32  ;;  %v7990_v27 = vld [vmem:[#allocation26_spill] sm:$0xff] }
 0x413   : > { %5154 = vst [vmem:[%s7888_s4 + $0xa0] sm:$0xff] %v5078_v4   ;;  %v4121_v49 = vmax.f32 %v4057_v47, 0.0  ;;  %v4059_v8 = vadd.f32 %v7605_v45, %v3989_v59  ;;  %v3991_v44 = vmul.f32 %v7589_v25, %v7979_v24  ;;  %v3992_v20 = vmul.f32 %v7589_v25, %v7980_v17  ;;  %v7991_v59 = vld [vmem:[#allocation27_spill] sm:$0xff] }
 0x414   : > { %5155 = vst [vmem:[%s7888_s4 + $0xa8] sm:$0xff] %v5083_v19   ;;  %v5088_v6 = vpack.c.bf16 %v4120_v51, %v4119_v54  ;;  %v4122_v39 = vmax.f32 %v4058_v28, 0.0  ;;  %v4060_v56 = vadd.f32 %v7605_v45, %v3990_v57  ;;  %v3993_v38 = vmul.f32 %v7589_v25, %v7981_v61 }
 0x415   : > { %v4123_v33 = vmax.f32 %v4059_v8, 0.0  ;;  %v4061_v14 = vadd.f32 %v7605_v45, %v3991_v44  ;;  %v4062_v16 = vadd.f32 %v7605_v45, %v3992_v20  ;;  %v3994_v50 = vmul.f32 %v7589_v25, %v7982_v36 }
 0x416   : > { %5156 = vst [vmem:[%s7888_s4 + $0xb0] sm:$0xff] %v5088_v6   ;;  %v5093_v10 = vpack.c.bf16 %v4122_v39, %v4121_v49  ;;  %v4124_v22 = vmax.f32 %v4060_v56, 0.0  ;;  %v4063_v1 = vadd.f32 %v7605_v45, %v3993_v38  ;;  %v3995_v7 = vmul.f32 %v7589_v25, %v7983_v11 }
 0x417   : > { %v4125_v13 = vmax.f32 %v4061_v14, 0.0  ;;  %v4126_v3 = vmax.f32 %v4062_v16, 0.0  ;;  %v4064_v43 = vadd.f32 %v7605_v45, %v3994_v50  ;;  %v3996_v40 = vmul.f32 %v7589_v25, %v7984_v0 }
 0x418   : > { %5157 = vst [vmem:[%s7888_s4 + $0xb8] sm:$0xff] %v5093_v10   ;;  %v5098_v9 = vpack.c.bf16 %v4124_v22, %v4123_v33  ;;  %v4127_v52 = vmax.f32 %v4063_v1, 0.0  ;;  %v4065_v41 = vadd.f32 %v7605_v45, %v3995_v7  ;;  %v3997_v23 = vmul.f32 %v7589_v25, %v7985_v63 }
 0x419   : > { %v5103_v62 = vpack.c.bf16 %v4126_v3, %v4125_v13  ;;  %v4128_v18 = vmax.f32 %v4064_v43, 0.0  ;;  %v4066_v42 = vadd.f32 %v7605_v45, %v3996_v40  ;;  %v3998_v46 = vmul.f32 %v7589_v25, %v7986_v29 }
 0x41a   : > { %5158 = vst [vmem:[%s7888_s4 + $0xc0] sm:$0xff] %v5098_v9   ;;  %v4129_v26 = vmax.f32 %v4065_v41, 0.0  ;;  %v4067_v12 = vadd.f32 %v7605_v45, %v3997_v23  ;;  %v3999_v53 = vmul.f32 %v7589_v25, %v7987_v34  ;;  %v4000_v37 = vmul.f32 %v7589_v25, %v7988_v31 }
 0x41b   : > { %5159 = vst [vmem:[%s7888_s4 + $0xc8] sm:$0xff] %v5103_v62   ;;  %v5108_v30 = vpack.c.bf16 %v4128_v18, %v4127_v52  ;;  %v4130_v15 = vmax.f32 %v4066_v42, 0.0  ;;  %v4068_v60 = vadd.f32 %v7605_v45, %v3998_v46  ;;  %v4001_v55 = vmul.f32 %v7589_v25, %v7989_v21 }
 0x41c   : > { %v4131_v48 = vmax.f32 %v4067_v12, 0.0  ;;  %v4069_v58 = vadd.f32 %v7605_v45, %v3999_v53  ;;  %v4070_v2 = vadd.f32 %v7605_v45, %v4000_v37  ;;  %v4002_v4 = vmul.f32 %v7589_v25, %v7990_v27 }
 0x41d   : > { %5160 = vst [vmem:[%s7888_s4 + $0xd0] sm:$0xff] %v5108_v30   ;;  %v5113_v54 = vpack.c.bf16 %v4130_v15, %v4129_v26  ;;  %v4132_v47 = vmax.f32 %v4068_v60, 0.0  ;;  %v4071_v5 = vadd.f32 %v7605_v45, %v4001_v55  ;;  %v4003_v19 = vmul.f32 %v7589_v25, %v7991_v59 }
 0x41e   : > { %v4133_v51 = vmax.f32 %v4069_v58, 0.0  ;;  %v4134_v28 = vmax.f32 %v4070_v2, 0.0  ;;  %v4072_v32 = vadd.f32 %v7605_v45, %v4002_v4  ;;  %v4004_v57 = vmul.f32 %v7589_v25, %v7966_v35 }
 0x41f   : > { %5161 = vst [vmem:[%s7888_s4 + $0xd8] sm:$0xff] %v5113_v54   ;;  %v5118_v49 = vpack.c.bf16 %v4132_v47, %v4131_v48  ;;  %v4135_v8 = vmax.f32 %v4071_v5, 0.0  ;;  %v4073_v24 = vadd.f32 %v7605_v45, %v4003_v19 }
 0x420   : > { %v5123_v44 = vpack.c.bf16 %v4134_v28, %v4133_v51  ;;  %v4136_v17 = vmax.f32 %v4072_v32, 0.0  ;;  %v4074_v20 = vadd.f32 %v7605_v45, %v4004_v57 }
 0x421   : > { %5162 = vst [vmem:[%s7888_s4 + $0xe0] sm:$0xff] %v5118_v49   ;;  %v4137_v6 = vmax.f32 %v4073_v24, 0.0 }
 0x422   : > { %5163 = vst [vmem:[%s7888_s4 + $0xe8] sm:$0xff] %v5123_v44   ;;  %v5128_v35 = vpack.c.bf16 %v4136_v17, %v4135_v8  ;;  %v4138_v25 = vmax.f32 %v4074_v20, 0.0 }
 0x424   : > { %5164 = vst [vmem:[%s7888_s4 + $0xf0] sm:$0xff] %v5128_v35   ;;  %v5133_v39 = vpack.c.bf16 %v4138_v25, %v4137_v6 }
 0x426   : > { %5165 = vst [vmem:[%s7888_s4 + $0xf8] sm:$0xff] %v5133_v39  }
 0x427 PF: > { %s14_s15 = sadd.s32 1, %s6316_s15  }
 0x428   : > { %p11_p5 = scmp.ge.s32.totalorder %s14_s15, 4  }
 0x42a   :  { %13 = sbr.rel (!%p11_p5) target bundleno = 1 (0x1), region = 67 }

</bundles_post_ra>
